<compile_context>
chip_gen: v7x
topology: tpu7x:2x2x1
jax: 0.10.0
libtpu: 0.0.40
codegen_flags: <defaults>
</compile_context>

<pallas_src>
import jax
import jax.numpy as jnp
from jax.experimental import pallas as pl
from jax.experimental.pallas import tpu as pltpu

LANE = 128
SUBLANE = 8


def _round_up(x, m):
    return (x + m - 1) // m * m


def mlp_kernel(x_ref, w1_ref, b1_ref, w2_ref, b2_ref, o_ref):
    """Fused: relu(x @ W1 + b1) @ W2 + b2, with f32 accumulation on the MXU."""
    x = x_ref[...]
    h = jnp.dot(x, w1_ref[...], preferred_element_type=jnp.float32) + b1_ref[...]
    h = jnp.maximum(h, 0.0).astype(w2_ref.dtype)          # back to bf16 for 2nd MXU pass
    out = jnp.dot(h, w2_ref[...], preferred_element_type=jnp.float32) + b2_ref[...]
    o_ref[...] = out.astype(o_ref.dtype)


def init_params(key, D, C, H=3000):
    """PyTorch nn.Linear default init U(-1/sqrt(fan_in), 1/sqrt(fan_in)).

    Weights stored transposed relative to PyTorch: (in_features, out_features).
    These are the f32 "master" params used by the pure-JAX references.
    """
    def linear(k, fan_in, fan_out):
        kw, kb = jax.random.split(k)
        bound = 1.0 / (fan_in ** 0.5)
        w = jax.random.uniform(kw, (fan_in, fan_out), jnp.float32, -bound, bound)
        b = jax.random.uniform(kb, (fan_out,), jnp.float32, -bound, bound)
        return w, b

    k1, k2 = jax.random.split(key)
    w1, b1 = linear(k1, D, H)      # fc1
    w2, b2 = linear(k2, H, C)      # fc2
    return (w1, b1, w2, b2)


def prepare_params(params, compute_dtype=jnp.bfloat16):
    """Zero-pad feature dims to lane (128) multiples and cast weights to bf16."""
    w1, b1, w2, b2 = params
    D, H = w1.shape
    C = w2.shape[1]
    D_pad = _round_up(D, LANE)
    H_pad = _round_up(H, LANE)     # 3000 -> 3072
    C_pad = _round_up(C, LANE)     # 10   -> 128

    w1p = jnp.zeros((D_pad, H_pad), compute_dtype).at[:D, :H].set(w1.astype(compute_dtype))
    b1p = jnp.zeros((1, H_pad), jnp.float32).at[0, :H].set(b1)
    w2p = jnp.zeros((H_pad, C_pad), compute_dtype).at[:H, :C].set(w2.astype(compute_dtype))
    b2p = jnp.zeros((1, C_pad), jnp.float32).at[0, :C].set(b2)
    return (w1p, b1p, w2p, b2p)


def mlp_forward(x_nchw, kparams, num_classes, *, tm=None):
    """Flatten NCHW input, run the fused Pallas kernel, slice back to (B, C)."""
    w1p, b1p, w2p, b2p = kparams
    D_pad, H_pad = w1p.shape
    C_pad = w2p.shape[1]
    compute_dtype = w1p.dtype

    B = x_nchw.shape[0]
    x2d = x_nchw.reshape(B, -1)
    D = x2d.shape[1]
    assert D <= D_pad

    # Batch tile: 256 rows (matched to v6e/v7x MXU height) for large batches,
    # otherwise a single sublane-aligned tile. Pad batch to a whole tile count
    # so there are no partial blocks / masked stores.
    if tm is None:
        tm = min(256, _round_up(B, SUBLANE))
    B_pad = _round_up(B, tm)

    x_p = jnp.zeros((B_pad, D_pad), compute_dtype).at[:B, :D].set(
        x2d.astype(compute_dtype))

    # Advisory cost estimate so XLA can schedule around this DMA-bound call.
    flops = 2 * B_pad * (D_pad * H_pad + H_pad * C_pad)
    bytes_accessed = (
        x_p.size * x_p.dtype.itemsize
        + w1p.size * w1p.dtype.itemsize
        + w2p.size * w2p.dtype.itemsize
        + b1p.size * b1p.dtype.itemsize
        + b2p.size * b2p.dtype.itemsize
        + B_pad * C_pad * 4
    )
    cost = pl.CostEstimate(flops=flops, transcendentals=0,
                           bytes_accessed=bytes_accessed)

    grid = (pl.cdiv(B_pad, tm),)
    out = pl.pallas_call(
        mlp_kernel,
        out_shape=jax.ShapeDtypeStruct((B_pad, C_pad), jnp.float32),
        grid=grid,
        in_specs=[
            pl.BlockSpec((tm, D_pad), lambda i: (i, 0)),       # x: tiled over batch
            pl.BlockSpec((D_pad, H_pad), lambda i: (0, 0)),    # W1: VMEM-resident
            pl.BlockSpec((1, H_pad), lambda i: (0, 0)),        # b1
            pl.BlockSpec((H_pad, C_pad), lambda i: (0, 0)),    # W2: VMEM-resident
            pl.BlockSpec((1, C_pad), lambda i: (0, 0)),        # b2
        ],
        out_specs=pl.BlockSpec((tm, C_pad), lambda i: (i, 0)),
        compiler_params=pltpu.CompilerParams(
            dimension_semantics=("parallel",),   # v7x: shard batch tiles over both TCs
            vmem_limit_bytes=32 << 20,
        ),
        cost_estimate=cost,
    )(x_p, w1p, b1p, w2p, b2p)

    return out[:B, :num_classes]


def reference_forward(x_nchw, params):
    """Pure-JAX f32 reference (exact module semantics)."""
    w1, b1, w2, b2 = params
    x = x_nchw.reshape(x_nchw.shape[0], -1).astype(jnp.float32)
    h = jnp.maximum(x @ w1 + b1, 0.0)
    return h @ w2 + b2


def reference_forward_bf16(x_nchw, params):
    """Pure-JAX reference following the kernel's bf16-input / f32-accumulate path."""
    w1, b1, w2, b2 = params
    x = x_nchw.reshape(x_nchw.shape[0], -1).astype(jnp.bfloat16)
    h = jnp.dot(x, w1.astype(jnp.bfloat16), preferred_element_type=jnp.float32) + b1
    h = jnp.maximum(h, 0.0).astype(jnp.bfloat16)
    return jnp.dot(h, w2.astype(jnp.bfloat16), preferred_element_type=jnp.float32) + b2


if __name__ == "__main__":
    key = jax.random.PRNGKey(0)
    kx, kp = jax.random.split(key)

    # Small shapes consistent with the module: D = C_in*H*W = 4*16*16 = 1024,
    # hidden fixed at 3000 by the module, C = 10 classes.
    B, C_in, H_img, W_img = 2, 4, 16, 16
    D = C_in * H_img * W_img
    num_classes = 10

    x = jax.random.normal(kx, (B, C_in, H_img, W_img), jnp.float32)
    params = init_params(kp, D, num_classes)            # f32 masters (reference)
    kparams = prepare_params(params)                    # padded + bf16 (kernel)

    out = mlp_forward(x, kparams, num_classes)
    out = jax.block_until_ready(out)

    assert out.shape == (B, num_classes)

    ref_bf16 = reference_forward_bf16(x, params)        # same numerics path
    ref_f32 = reference_forward(x, params)              # module semantics (f32)
    assert jnp.allclose(out, ref_bf16, atol=1e-2, rtol=1e-2), \
        "Pallas output mismatch vs bf16-path reference"
    assert jnp.allclose(out, ref_f32, atol=1e-1, rtol=1e-1), \
        "Pallas output mismatch vs f32 reference"

    print("KERNEL_OK")
</pallas_src>

<mosaic_0001>
module attributes {stable_mosaic.version = 11 : i64} {
  func.func @mlp_kernel(%arg0: i32, %arg1: memref<8x1024xbf16, #tpu.memory_space<vmem>>, %arg2: memref<1024x3072xbf16, #tpu.memory_space<vmem>>, %arg3: memref<1x3072xf32, #tpu.memory_space<vmem>>, %arg4: memref<3072x128xbf16, #tpu.memory_space<vmem>>, %arg5: memref<1x128xf32, #tpu.memory_space<vmem>>, %arg6: memref<8x128xf32, #tpu.memory_space<vmem>>) attributes {dimension_semantics = [#tpu.dimension_semantics<parallel>], iteration_bounds = array<i64: 1>, scalar_prefetch = 0 : i64, scratch_operands = 0 : i64, tpu.core_type = #tpu.core_type<tc>, window_params = [{transform_indices = @transform_0, window_bounds = array<i64: 8, 1024>}, {pipeline_mode = #tpu.pipeline_mode<synchronous>, transform_indices = @transform_1, window_bounds = array<i64: 1024, 3072>}, {pipeline_mode = #tpu.pipeline_mode<synchronous>, transform_indices = @transform_2, window_bounds = array<i64: 1, 3072>}, {pipeline_mode = #tpu.pipeline_mode<synchronous>, transform_indices = @transform_3, window_bounds = array<i64: 3072, 128>}, {pipeline_mode = #tpu.pipeline_mode<synchronous>, transform_indices = @transform_4, window_bounds = array<i64: 1, 128>}, {transform_indices = @transform_5, window_bounds = array<i64: 8, 128>}]} {
    %c0 = arith.constant 0 : index
    %c0_0 = arith.constant 0 : index
    %0 = vector.load %arg1[%c0, %c0_0] : memref<8x1024xbf16, #tpu.memory_space<vmem>>, vector<8x1024xbf16>
    %c0_1 = arith.constant 0 : index
    %c0_2 = arith.constant 0 : index
    %1 = vector.load %arg2[%c0_1, %c0_2] : memref<1024x3072xbf16, #tpu.memory_space<vmem>>, vector<1024x3072xbf16>
    %cst = arith.constant dense<0.000000e+00> : vector<8x3072xf32>
    %2 = tpu.matmul %0, %1, %cst {dimension_numbers = #tpu.dot_dimension_numbers<[1], [0], [0], [1], [0, 0, 1, 1], [], []>} : vector<8x1024xbf16>, vector<1024x3072xbf16>, vector<8x3072xf32> -> vector<8x3072xf32>
    %c0_3 = arith.constant 0 : index
    %c0_4 = arith.constant 0 : index
    %3 = vector.load %arg3[%c0_3, %c0_4] : memref<1x3072xf32, #tpu.memory_space<vmem>>, vector<1x3072xf32>
    %4 = vector.broadcast %3 : vector<1x3072xf32> to vector<8x3072xf32>
    %5 = arith.addf %2, %4 : vector<8x3072xf32>
    %cst_5 = arith.constant 0.000000e+00 : f32
    %6 = vector.broadcast %cst_5 : f32 to vector<8x3072xf32>
    %7 = arith.maximumf %5, %6 : vector<8x3072xf32>
    %8 = arith.truncf %7 : vector<8x3072xf32> to vector<8x3072xbf16>
    %c0_6 = arith.constant 0 : index
    %c0_7 = arith.constant 0 : index
    %9 = vector.load %arg4[%c0_6, %c0_7] : memref<3072x128xbf16, #tpu.memory_space<vmem>>, vector<3072x128xbf16>
    %cst_8 = arith.constant dense<0.000000e+00> : vector<8x128xf32>
    %10 = tpu.matmul %8, %9, %cst_8 {dimension_numbers = #tpu.dot_dimension_numbers<[1], [0], [0], [1], [0, 0, 1, 1], [], []>} : vector<8x3072xbf16>, vector<3072x128xbf16>, vector<8x128xf32> -> vector<8x128xf32>
    %c0_9 = arith.constant 0 : index
    %c0_10 = arith.constant 0 : index
    %11 = vector.load %arg5[%c0_9, %c0_10] : memref<1x128xf32, #tpu.memory_space<vmem>>, vector<1x128xf32>
    %12 = vector.broadcast %11 : vector<1x128xf32> to vector<8x128xf32>
    %13 = arith.addf %10, %12 : vector<8x128xf32>
    %c0_11 = arith.constant 0 : index
    %c0_12 = arith.constant 0 : index
    %14 = vector.load %arg6[%c0_11, %c0_12] : memref<8x128xf32, #tpu.memory_space<vmem>>, vector<8x128xf32>
    tpu.vector_store %arg6[%c0_11, %c0_12], %13 {strides = array<i32>} : memref<8x128xf32, #tpu.memory_space<vmem>>, vector<8x128xf32>,
    return
  }
  func.func @transform_0(%arg0: i32) -> (i32, i32) {
    %c0_i32 = arith.constant 0 : i32
    %c0_i32_0 = arith.constant 0 : i32
    return %arg0, %c0_i32 : i32, i32
  }
  func.func @transform_1(%arg0: i32) -> (i32, i32) {
    %c0_i32 = arith.constant 0 : i32
    %c0_i32_0 = arith.constant 0 : i32
    %c0_i32_1 = arith.constant 0 : i32
    return %c0_i32, %c0_i32_0 : i32, i32
  }
  func.func @transform_2(%arg0: i32) -> (i32, i32) {
    %c0_i32 = arith.constant 0 : i32
    %c0_i32_0 = arith.constant 0 : i32
    %c0_i32_1 = arith.constant 0 : i32
    return %c0_i32, %c0_i32_0 : i32, i32
  }
  func.func @transform_3(%arg0: i32) -> (i32, i32) {
    %c0_i32 = arith.constant 0 : i32
    %c0_i32_0 = arith.constant 0 : i32
    %c0_i32_1 = arith.constant 0 : i32
    return %c0_i32, %c0_i32_0 : i32, i32
  }
  func.func @transform_4(%arg0: i32) -> (i32, i32) {
    %c0_i32 = arith.constant 0 : i32
    %c0_i32_0 = arith.constant 0 : i32
    %c0_i32_1 = arith.constant 0 : i32
    return %c0_i32, %c0_i32_0 : i32, i32
  }
  func.func @transform_5(%arg0: i32) -> (i32, i32) {
    %c0_i32 = arith.constant 0 : i32
    %c0_i32_0 = arith.constant 0 : i32
    return %arg0, %c0_i32 : i32, i32
  }
}

</mosaic_0001>

<bundles_post_ra>
// kernel: tpu_custom_call.1
= control target key start
LH: loop header
LB: loop body
LE: loop exit
PB: predicated region body
PF: predicated region fallthrough
CT: control target
= control target key end

     0   :  { %10 = vsyncpa [#allocation3], 0  ;;  %s16422_s0 = inlined_call_operand.hbm [shape: bf16[8,1024], index: 0, kind: input, shape index: {}]   ;;  %s16423_s1 = inlined_call_operand.hbm [shape: bf16[1024,3072], index: 1, kind: input, shape index: {}]   ;;  %s16424_s2 = inlined_call_operand.hbm [shape: f32[1,3072], index: 2, kind: input, shape index: {}]   ;;  %s16425_s3 = inlined_call_operand.hbm [shape: bf16[3072,128], index: 3, kind: input, shape index: {}]   ;;  %s16426_s4 = inlined_call_operand.hbm [shape: f32[1,128], index: 4, kind: input, shape index: {}]   ;;  %s16427_s5 = inlined_call_operand.hbm [shape: f32[8,128], index: 5, kind: output, shape index: {}]  }
   0x1   :  { %11 = vsyncpa [#allocation6], 0 }
   0x2   :  { %12 = vsyncpa [#allocation9], 0 }
   0x3   :  { %13 = vsyncpa [#allocation4], 0  ;;  %s16034_s18 = smov [#allocation5]   ;;  %s15894_s22 = scalar_lea.hbm %s16423_s1, 196608 }
   0x4   :  { %s29_s19 = sshll.u32 %s16034_s18, 4  ;;  %p15895_p0 = scmp.ne.s32.totalorder %s16423_s1, %s15894_s22  ;;  %s30_s19 = int_to_ptr.vmem [resolvable:$true] %s29_s19 }
   0x5   :  { %p15898_p1 = scmp.lt.u32.totalorder %s15894_s22, %s16423_s1 }
   0x7   :  { %p15900_p2 = pnand %p15898_p1, %p15895_p0 }
   0x9   :  { %15903 = shalt.err (!%p15900_p2)
}
   0xa   :  { %s15904_s27 = scalar_lea.vmem %s30_s19, 196608  ;;  %p15909_p4 = scmp.lt.s32.totalorder %s30_s19, %s30_s19 }
   0xb   :  { %p15905_p3 = scmp.ne.s32.totalorder %s30_s19, %s15904_s27  ;;  %p15910_p5 = scmp.lt.s32.totalorder %s15904_s27, %s15904_s27 }
   0xd   :  { %p15911_p6 = por %p15910_p5, %p15909_p4 }
   0xf   :  { %p15912_p7 = pnand %p15911_p6, %p15905_p3 }
  0x11   :  { %15915 = shalt.err (!%p15912_p7)
}
  0x12   :  { %s16035_s28 = smov 1536   ;;  %s16036_s29 = smov 96  }
  0x13   :  { %35 = dma.hbm_to_vmem [thread:$0]  %s16423_s1, 196608, %s30_s19, [#allocation6], %s16035_s28, %s16035_s28, %s16036_s29  }
  0x14   :  { %s16037_s7 = smov [#allocation8]   ;;  %s15916_s11 = scalar_lea.hbm %s16425_s3, 24576 }
  0x15   :  { %s51_s8 = sshll.u32 %s16037_s7, 4  ;;  %p15917_p8 = scmp.ne.s32.totalorder %s16425_s3, %s15916_s11  ;;  %s52_s8 = int_to_ptr.vmem [resolvable:$true] %s51_s8 }
  0x16   :  { %p15920_p9 = scmp.lt.u32.totalorder %s15916_s11, %s16425_s3 }
  0x18   :  { %p15922_p10 = pnand %p15920_p9, %p15917_p8 }
  0x1a   :  { %15925 = shalt.err (!%p15922_p10)
}
  0x1b   :  { %s15926_s16 = scalar_lea.vmem %s52_s8, 24576  ;;  %p15931_p12 = scmp.lt.s32.totalorder %s52_s8, %s52_s8 }
  0x1c   :  { %p15927_p11 = scmp.ne.s32.totalorder %s52_s8, %s15926_s16  ;;  %p15932_p13 = scmp.lt.s32.totalorder %s15926_s16, %s15926_s16 }
  0x1e   :  { %p15933_p0 = por %p15932_p13, %p15931_p12 }
  0x20   :  { %p15934_p1 = pnand %p15933_p0, %p15927_p11 }
  0x22   :  { %15937 = shalt.err (!%p15934_p1)
}
  0x23   :  { %s16038_s1 = smov 64   ;;  %s16039_s17 = smov 4  }
  0x24   :  { %57 = dma.hbm_to_vmem [thread:$0]  %s16425_s3, 24576, %s52_s8, [#allocation9], %s16038_s1, %s16038_s1, %s16039_s17  }
  0x25   :  { %s16040_s20 = smov [#allocation2]   ;;  %s16041_s22 = smov [#allocation7]  }
  0x26   :  { %s20_s21 = sshll.u32 %s16040_s20, 4  ;;  %s42_s23 = sshll.u32 %s16041_s22, 4  ;;  %s21_s21 = int_to_ptr.vmem [resolvable:$true] %s20_s21  ;;  %s43_s23 = int_to_ptr.vmem [resolvable:$true] %s42_s23 }
  0x27   :  { %s15938_s26 = scalar_lea.hbm %s16422_s0, 512 }
  0x28   :  { %p15939_p2 = scmp.ne.s32.totalorder %s16422_s0, %s15938_s26  ;;  %p15942_p3 = scmp.lt.u32.totalorder %s15938_s26, %s16422_s0 }
  0x2a   :  { %p15944_p4 = pnand %p15942_p3, %p15939_p2 }
  0x2c   :  { %15947 = shalt.err (!%p15944_p4)
}
  0x2d   :  { %s15948_s3 = scalar_lea.vmem %s21_s21, 512  ;;  %p15953_p6 = scmp.lt.s32.totalorder %s21_s21, %s21_s21 }
  0x2e   :  { %p15949_p5 = scmp.ne.s32.totalorder %s21_s21, %s15948_s3  ;;  %p15954_p7 = scmp.lt.s32.totalorder %s15948_s3, %s15948_s3 }
  0x30   :  { %p15955_p8 = por %p15954_p7, %p15953_p6 }
  0x32   :  { %p15956_p9 = pnand %p15955_p8, %p15949_p5 }
  0x34   :  { %15959 = shalt.err (!%p15956_p9)
}
  0x35   :  { %23 = dma.hbm_to_vmem [thread:$0]  %s16422_s0, 512, %s21_s21, [#allocation3]  }
  0x36   :  { %s15960_s10 = scalar_lea.hbm %s16424_s2, 384 }
  0x37   :  { %p15961_p10 = scmp.ne.s32.totalorder %s16424_s2, %s15960_s10  ;;  %p15964_p11 = scmp.lt.u32.totalorder %s15960_s10, %s16424_s2 }
  0x39   :  { %p15966_p12 = pnand %p15964_p11, %p15961_p10 }
  0x3b   :  { %15969 = shalt.err (!%p15966_p12)
}
  0x3c   :  { %s15970_s15 = scalar_lea.vmem %s43_s23, 384  ;;  %p15975_p0 = scmp.lt.s32.totalorder %s43_s23, %s43_s23 }
  0x3d   :  { %p15971_p13 = scmp.ne.s32.totalorder %s43_s23, %s15970_s15  ;;  %p15976_p1 = scmp.lt.s32.totalorder %s15970_s15, %s15970_s15 }
  0x3f   :  { %p15977_p2 = por %p15976_p1, %p15975_p0 }
  0x41   :  { %p15978_p3 = pnand %p15977_p2, %p15971_p13 }
  0x43   :  { %15981 = shalt.err (!%p15978_p3)
}
  0x44   :  { %45 = dma.hbm_to_vmem [thread:$0]  %s16424_s2, 384, %s43_s23, [#allocation6]  }
  0x45   :  { %s16042_s1 = smov [#allocation10]   ;;  %s15982_s20 = scalar_lea.hbm %s16426_s4, 16 }
  0x46   :  { %s64_s17 = sshll.u32 %s16042_s1, 4  ;;  %p15983_p4 = scmp.ne.s32.totalorder %s16426_s4, %s15982_s20  ;;  %s65_s17 = int_to_ptr.vmem [resolvable:$true] %s64_s17 }
  0x47   :  { %p15986_p5 = scmp.lt.u32.totalorder %s15982_s20, %s16426_s4 }
  0x49   :  { %p15988_p6 = pnand %p15986_p5, %p15983_p4 }
  0x4b   :  { %15991 = shalt.err (!%p15988_p6)
}
  0x4c   :  { %s15992_s26 = scalar_lea.vmem %s65_s17, 16  ;;  %s15996_s2 = scalar_lea.vmem %s65_s17, 32 }
  0x4d   :  { %p15993_p7 = scmp.ne.s32.totalorder %s65_s17, %s15992_s26  ;;  %p15997_p8 = scmp.lt.s32.totalorder %s65_s17, %s65_s17 }
  0x4e   :  { %p15998_p9 = scmp.lt.s32.totalorder %s15996_s2, %s15992_s26 }
  0x50   :  { %p15999_p10 = por %p15998_p9, %p15997_p8 }
  0x52   :  { %p16000_p11 = pnand %p15999_p10, %p15993_p7 }
  0x54   :  { %16003 = shalt.err (!%p16000_p11)
}
  0x55   :  { %67 = dma.hbm_to_vmem [thread:$0]  %s16426_s4, 16, %s65_s17, [#allocation9]  }
  0x56   :  { %16026 = dma.done.wait [#allocation3], 512  }
  0x57   :  { %16027 = vsyncadd [#allocation3], 4294966784 }
  0x58   :  { %16028 = dma.done.wait [#allocation6], 196992  }
  0x59   :  { %16029 = vsyncadd [#allocation6], 4294770304 }
  0x5a   :  { %16030 = dma.done.wait [#allocation9], 24592  }
  0x5b   :  { %16031 = vsyncadd [#allocation9], 4294942704  ;;  %v88_v0 = vld [vmem:[#allocation5] sm:$0xff]  ;;  %v89_v2 = vld [vmem:[#allocation5 + $0x8] sm:$0xff]  ;;  %s16043_s4 = smov [#allocation11]  }
  0x5c   :  { %v100_v1 = vld [vmem:[#allocation5 + $0x60] sm:$0xff]  ;;  %v101_v4 = vld [vmem:[#allocation5 + $0x68] sm:$0xff]  ;;  %s13504_s28 = sshll.u32 %s16043_s4, 4  ;;  %s13505_s28 = int_to_ptr.vmem [resolvable:$true] %s13504_s28 }
  0x5d   :  { %v13524_v3 = vcombine.high %v88_v0, %v100_v1  ;;  %v13523_v5 = vcombine.low %v88_v0, %v100_v1  ;;  %v112_v6 = vld [vmem:[#allocation5 + $0xc0] sm:$0xff]  ;;  %v13526_v8 = vcombine.high %v89_v2, %v101_v4  ;;  %v13525_v9 = vcombine.low %v89_v2, %v101_v4  ;;  %v113_v11 = vld [vmem:[#allocation5 + $0xc8] sm:$0xff]  ;;  %s16004_s29 = scalar_lea.vmem %s13505_s28, 128  ;;  %p16009_p13 = scmp.lt.s32.totalorder %s13505_s28, %s13505_s28 }
  0x5e   :  { %v124_v7 = vld [vmem:[#allocation5 + $0x120] sm:$0xff]  ;;  %v125_v12 = vld [vmem:[#allocation5 + $0x128] sm:$0xff]  ;;  %p16005_p12 = scmp.ne.s32.totalorder %s13505_s28, %s16004_s29  ;;  %p16010_p0 = scmp.lt.s32.totalorder %s16004_s29, %s16004_s29 }
  0x5f   :  { %v13548_v10 = vcombine.high %v112_v6, %v124_v7  ;;  %v136_v13 = vld [vmem:[#allocation5 + $0x180] sm:$0xff]  ;;  %9458 = vmatprep.subr.bf16.mxu0 %v13524_v3  ;;  %v13550_v14 = vcombine.high %v113_v11, %v125_v12  ;;  %v137_v16 = vld [vmem:[#allocation5 + $0x188] sm:$0xff]  ;;  %9622 = vmatprep.subr.bf16.mxu1 %v13526_v8  ;;  %v13547_v18 = vcombine.low %v112_v6, %v124_v7 }
  0x60   :  { %v148_v15 = vld [vmem:[#allocation5 + $0x1e0] sm:$0xff]  ;;  %v149_v17 = vld [vmem:[#allocation5 + $0x1e8] sm:$0xff]  ;;  %9459 = vmatpush1.bf16.msra.mxu0 %v13523_v5  ;;  %9623 = vmatpush1.bf16.msra.mxu1 %v13525_v9  ;;  %v13549_v19 = vcombine.low %v113_v11, %v125_v12  ;;  %p16011_p1 = por %p16010_p0, %p16009_p13 }
  0x61   :  { %9460 = vmatprep.subr.bf16.mxu0 %v13548_v10  ;;  %v13572_v20 = vcombine.high %v136_v13, %v148_v15  ;;  %9624 = vmatprep.subr.bf16.mxu1 %v13550_v14  ;;  %v13574_v21 = vcombine.high %v137_v16, %v149_v17  ;;  %v160_v22 = vld [vmem:[#allocation5 + $0x240] sm:$0xff]  ;;  %v161_v24 = vld [vmem:[#allocation5 + $0x248] sm:$0xff]  ;;  %v13571_v26 = vcombine.low %v136_v13, %v148_v15 }
  0x62   :  { %v172_v23 = vld [vmem:[#allocation5 + $0x2a0] sm:$0xff]  ;;  %v173_v25 = vld [vmem:[#allocation5 + $0x2a8] sm:$0xff]  ;;  %v13573_v27 = vcombine.low %v137_v16, %v149_v17  ;;  %p16012_p2 = pnand %p16011_p1, %p16005_p12 }
  0x63   :  { %v13596_v28 = vcombine.high %v160_v22, %v172_v23  ;;  %v13598_v29 = vcombine.high %v161_v24, %v173_v25  ;;  %v184_v30 = vld [vmem:[#allocation5 + $0x300] sm:$0xff]  ;;  %v185_v32 = vld [vmem:[#allocation5 + $0x308] sm:$0xff]  ;;  %v13595_v34 = vcombine.low %v160_v22, %v172_v23  ;;  %v13597_v35 = vcombine.low %v161_v24, %v173_v25 }
  0x64   :  { %9461 = vmatpush1.bf16.msra.mxu0 %v13547_v18  ;;  %9625 = vmatpush1.bf16.msra.mxu1 %v13549_v19  ;;  %v196_v31 = vld [vmem:[#allocation5 + $0x360] sm:$0xff]  ;;  %v197_v33 = vld [vmem:[#allocation5 + $0x368] sm:$0xff] }
  0x65   :  { %9462 = vmatprep.subr.bf16.mxu0 %v13572_v20  ;;  %9626 = vmatprep.subr.bf16.mxu1 %v13574_v21  ;;  %v13620_v36 = vcombine.high %v184_v30, %v196_v31  ;;  %v13622_v37 = vcombine.high %v185_v32, %v197_v33  ;;  %v208_v38 = vld [vmem:[#allocation5 + $0x3c0] sm:$0xff]  ;;  %v209_v40 = vld [vmem:[#allocation5 + $0x3c8] sm:$0xff]  ;;  %v13619_v42 = vcombine.low %v184_v30, %v196_v31 }
  0x66   :  { %v220_v39 = vld [vmem:[#allocation5 + $0x420] sm:$0xff]  ;;  %v221_v41 = vld [vmem:[#allocation5 + $0x428] sm:$0xff]  ;;  %v13621_v43 = vcombine.low %v185_v32, %v197_v33 }
  0x67   :  { %v13644_v44 = vcombine.high %v208_v38, %v220_v39  ;;  %v13646_v45 = vcombine.high %v209_v40, %v221_v41  ;;  %v232_v46 = vld [vmem:[#allocation5 + $0x480] sm:$0xff]  ;;  %v233_v48 = vld [vmem:[#allocation5 + $0x488] sm:$0xff]  ;;  %v13643_v50 = vcombine.low %v208_v38, %v220_v39  ;;  %v13645_v51 = vcombine.low %v209_v40, %v221_v41 }
  0x68   :  { %9463 = vmatpush1.bf16.msra.mxu0 %v13571_v26  ;;  %9627 = vmatpush1.bf16.msra.mxu1 %v13573_v27  ;;  %v244_v47 = vld [vmem:[#allocation5 + $0x4e0] sm:$0xff]  ;;  %v245_v49 = vld [vmem:[#allocation5 + $0x4e8] sm:$0xff] }
  0x69   :  { %9464 = vmatprep.subr.bf16.mxu0 %v13596_v28  ;;  %9628 = vmatprep.subr.bf16.mxu1 %v13598_v29  ;;  %v13668_v52 = vcombine.high %v232_v46, %v244_v47  ;;  %v16134_v53 = vld [vmem:[#allocation2] sm:$0xff]  ;;  %v13670_v54 = vcombine.high %v233_v48, %v245_v49  ;;  %v257_v58 = vld [vmem:[#allocation5 + $0x548] sm:$0xff]  ;;  %v13667_v60 = vcombine.low %v232_v46, %v244_v47 }
  0x6a   :  { %v256_v55 = vld [vmem:[#allocation5 + $0x540] sm:$0xff]  ;;  %v16138_v57 = vcombine.high %v16134_v53, %v16134_v53  ;;  %v269_v59 = vld [vmem:[#allocation5 + $0x5a8] sm:$0xff]  ;;  %v13669_v61 = vcombine.low %v233_v48, %v245_v49 }
  0x6b   :  { %v268_v56 = vld [vmem:[#allocation5 + $0x5a0] sm:$0xff]  ;;  %v13694_v63 = vcombine.high %v257_v58, %v269_v59  ;;  %v281_v2 = vld [vmem:[#allocation5 + $0x608] sm:$0xff]  ;;  %v13693_v5 = vcombine.low %v257_v58, %v269_v59 }
  0x6c   :  { %9465 = vmatpush1.bf16.msra.mxu0 %v13595_v34  ;;  %9629 = vmatpush1.bf16.msra.mxu1 %v13597_v35  ;;  %v13692_v62 = vcombine.high %v256_v55, %v268_v56  ;;  %v280_v0 = vld [vmem:[#allocation5 + $0x600] sm:$0xff]  ;;  %v293_v3 = vld [vmem:[#allocation5 + $0x668] sm:$0xff]  ;;  %v13691_v4 = vcombine.low %v256_v55, %v268_v56 }
  0x6d   :  { %9466 = vmatprep.subr.bf16.mxu0 %v13620_v36  ;;  %9630 = vmatprep.subr.bf16.mxu1 %v13622_v37  ;;  %v292_v1 = vld [vmem:[#allocation5 + $0x660] sm:$0xff]  ;;  %v13718_v7 = vcombine.high %v281_v2, %v293_v3  ;;  %v305_v10 = vld [vmem:[#allocation5 + $0x6c8] sm:$0xff]  ;;  %v13717_v13 = vcombine.low %v281_v2, %v293_v3 }
  0x6e   :  { %9490 = vmatprep.mubr.bf16.mxu0 %v16138_v57  ;;  %9654 = vmatprep.mubr.bf16.mxu1 %v16138_v57  ;;  %v13716_v6 = vcombine.high %v280_v0, %v292_v1  ;;  %v304_v8 = vld [vmem:[#allocation5 + $0x6c0] sm:$0xff]  ;;  %v317_v11 = vld [vmem:[#allocation5 + $0x728] sm:$0xff]  ;;  %v13715_v12 = vcombine.low %v280_v0, %v292_v1 }
  0x6f   :  { %v316_v9 = vld [vmem:[#allocation5 + $0x720] sm:$0xff]  ;;  %v13742_v15 = vcombine.high %v305_v10, %v317_v11  ;;  %v329_v18 = vld [vmem:[#allocation5 + $0x788] sm:$0xff]  ;;  %v13741_v21 = vcombine.low %v305_v10, %v317_v11 }
  0x70   :  { %9467 = vmatpush1.bf16.msra.mxu0 %v13619_v42  ;;  %9631 = vmatpush1.bf16.msra.mxu1 %v13621_v43  ;;  %v13740_v14 = vcombine.high %v304_v8, %v316_v9  ;;  %v328_v16 = vld [vmem:[#allocation5 + $0x780] sm:$0xff]  ;;  %v341_v19 = vld [vmem:[#allocation5 + $0x7e8] sm:$0xff]  ;;  %v13739_v20 = vcombine.low %v304_v8, %v316_v9 }
  0x71   :  { %9468 = vmatprep.subr.bf16.mxu0 %v13644_v44  ;;  %9632 = vmatprep.subr.bf16.mxu1 %v13646_v45  ;;  %v340_v17 = vld [vmem:[#allocation5 + $0x7e0] sm:$0xff]  ;;  %v13766_v23 = vcombine.high %v329_v18, %v341_v19  ;;  %v353_v26 = vld [vmem:[#allocation5 + $0x848] sm:$0xff]  ;;  %v13765_v29 = vcombine.low %v329_v18, %v341_v19 }
  0x72   :  { %v13764_v22 = vcombine.high %v328_v16, %v340_v17  ;;  %v352_v24 = vld [vmem:[#allocation5 + $0x840] sm:$0xff]  ;;  %v365_v27 = vld [vmem:[#allocation5 + $0x8a8] sm:$0xff]  ;;  %v13763_v28 = vcombine.low %v328_v16, %v340_v17 }
  0x73   :  { %v364_v25 = vld [vmem:[#allocation5 + $0x8a0] sm:$0xff]  ;;  %v13790_v31 = vcombine.high %v353_v26, %v365_v27  ;;  %v377_v34 = vld [vmem:[#allocation5 + $0x908] sm:$0xff]  ;;  %v13789_v37 = vcombine.low %v353_v26, %v365_v27 }
  0x74   :  { %9469 = vmatpush1.bf16.msra.mxu0 %v13643_v50  ;;  %9633 = vmatpush1.bf16.msra.mxu1 %v13645_v51  ;;  %v13788_v30 = vcombine.high %v352_v24, %v364_v25  ;;  %v376_v32 = vld [vmem:[#allocation5 + $0x900] sm:$0xff]  ;;  %v389_v35 = vld [vmem:[#allocation5 + $0x968] sm:$0xff]  ;;  %v13787_v36 = vcombine.low %v352_v24, %v364_v25 }
  0x75   :  { %9470 = vmatprep.subr.bf16.mxu0 %v13668_v52  ;;  %9634 = vmatprep.subr.bf16.mxu1 %v13670_v54  ;;  %v388_v33 = vld [vmem:[#allocation5 + $0x960] sm:$0xff]  ;;  %v13814_v39 = vcombine.high %v377_v34, %v389_v35  ;;  %v401_v42 = vld [vmem:[#allocation5 + $0x9c8] sm:$0xff]  ;;  %v13813_v45 = vcombine.low %v377_v34, %v389_v35 }
  0x76   :  { %v13812_v38 = vcombine.high %v376_v32, %v388_v33  ;;  %v400_v40 = vld [vmem:[#allocation5 + $0x9c0] sm:$0xff]  ;;  %v413_v43 = vld [vmem:[#allocation5 + $0xa28] sm:$0xff]  ;;  %v13811_v44 = vcombine.low %v376_v32, %v388_v33 }
  0x77   :  { %v412_v41 = vld [vmem:[#allocation5 + $0xa20] sm:$0xff]  ;;  %v13838_v47 = vcombine.high %v401_v42, %v413_v43  ;;  %v425_v50 = vld [vmem:[#allocation5 + $0xa88] sm:$0xff]  ;;  %v13837_v54 = vcombine.low %v401_v42, %v413_v43 }
  0x78   :  { %9471 = vmatpush1.bf16.msra.mxu0 %v13667_v60  ;;  %9635 = vmatpush1.bf16.msra.mxu1 %v13669_v61  ;;  %v13836_v46 = vcombine.high %v400_v40, %v412_v41  ;;  %v424_v48 = vld [vmem:[#allocation5 + $0xa80] sm:$0xff]  ;;  %v437_v51 = vld [vmem:[#allocation5 + $0xae8] sm:$0xff]  ;;  %v13835_v52 = vcombine.low %v400_v40, %v412_v41 }
  0x79   :  { %9472 = vmatprep.subr.bf16.mxu0 %v13692_v62  ;;  %9636 = vmatprep.subr.bf16.mxu1 %v13694_v63  ;;  %v436_v49 = vld [vmem:[#allocation5 + $0xae0] sm:$0xff]  ;;  %v13862_v56 = vcombine.high %v425_v50, %v437_v51  ;;  %v449_v60 = vld [vmem:[#allocation5 + $0xb48] sm:$0xff]  ;;  %v13861_v63 = vcombine.low %v425_v50, %v437_v51 }
  0x7a   :  { %v13860_v55 = vcombine.high %v424_v48, %v436_v49  ;;  %v448_v58 = vld [vmem:[#allocation5 + $0xb40] sm:$0xff]  ;;  %v461_v61 = vld [vmem:[#allocation5 + $0xba8] sm:$0xff]  ;;  %v13859_v62 = vcombine.low %v424_v48, %v436_v49 }
  0x7b   :  { %v460_v59 = vld [vmem:[#allocation5 + $0xba0] sm:$0xff]  ;;  %v13886_v1 = vcombine.high %v449_v60, %v461_v61 }
  0x7c   :  { %9473 = vmatpush1.bf16.msra.mxu0 %v13691_v4  ;;  %9637 = vmatpush1.bf16.msra.mxu1 %v13693_v5  ;;  %v13884_v0 = vcombine.high %v448_v58, %v460_v59  ;;  %v472_v2 = vld [vmem:[#allocation5 + $0xc00] sm:$0xff]  ;;  %v473_v4 = vld [vmem:[#allocation5 + $0xc08] sm:$0xff] }
  0x7d   :  { %9474 = vmatprep.subr.bf16.mxu0 %v13716_v6  ;;  %9638 = vmatprep.subr.bf16.mxu1 %v13718_v7  ;;  %v484_v3 = vld [vmem:[#allocation5 + $0xc60] sm:$0xff]  ;;  %v485_v5 = vld [vmem:[#allocation5 + $0xc68] sm:$0xff]  ;;  %v13883_v6 = vcombine.low %v448_v58, %v460_v59  ;;  %v13885_v7 = vcombine.low %v449_v60, %v461_v61 }
  0x7e   :  { %v13908_v8 = vcombine.high %v472_v2, %v484_v3  ;;  %v13910_v9 = vcombine.high %v473_v4, %v485_v5  ;;  %v496_v10 = vld [vmem:[#allocation5 + $0xcc0] sm:$0xff]  ;;  %v13907_v16 = vcombine.low %v472_v2, %v484_v3  ;;  %v13909_v17 = vcombine.low %v473_v4, %v485_v5 }
  0x7f   :  { %v508_v11 = vld [vmem:[#allocation5 + $0xd20] sm:$0xff] }
  0x80   :  { %9475 = vmatpush1.bf16.msra.mxu0 %v13715_v12  ;;  %9639 = vmatpush1.bf16.msra.mxu1 %v13717_v13  ;;  %v16144_v12 = vcombine.low %v16134_v53, %v16134_v53  ;;  %v497_v13 = vld [vmem:[#allocation5 + $0xcc8] sm:$0xff]  ;;  %v13932_v18 = vcombine.high %v496_v10, %v508_v11  ;;  %v520_v19 = vld [vmem:[#allocation5 + $0xd80] sm:$0xff]  ;;  %v13931_v24 = vcombine.low %v496_v10, %v508_v11 }
  0x81   :  { %9476 = vmatprep.subr.bf16.mxu0 %v13740_v14  ;;  %9640 = vmatprep.subr.bf16.mxu1 %v13742_v15  ;;  %v509_v14 = vld [vmem:[#allocation5 + $0xd28] sm:$0xff]  ;;  %v544_v27 = vld [vmem:[#allocation5 + $0xe40] sm:$0xff] }
  0x82   :  { %v16146_v15 = vld [vmem:[#allocation2 + $0x8] sm:$0xff]  ;;  %v13933_v25 = vcombine.low %v497_v13, %v509_v14  ;;  %v568_v35 = vld [vmem:[#allocation5 + $0xf00] sm:$0xff] }
  0x83   :  { %v16150_v53 = vcombine.high %v16146_v15, %v16146_v15  ;;  %v592_v43 = vld [vmem:[#allocation5 + $0xfc0] sm:$0xff] }
  0x84   :  { %9477 = vmatpush1.bf16.msra.mxu0 %v13739_v20  ;;  %9641 = vmatpush1.bf16.msra.mxu1 %v13741_v21  ;;  %v532_v20 = vld [vmem:[#allocation5 + $0xde0] sm:$0xff]  ;;  %v13934_v21 = vcombine.high %v497_v13, %v509_v14 }
  0x85   :  { %9478 = vmatprep.subr.bf16.mxu0 %v13764_v22  ;;  %9642 = vmatprep.subr.bf16.mxu1 %v13766_v23  ;;  %v521_v22 = vld [vmem:[#allocation5 + $0xd88] sm:$0xff]  ;;  %v13956_v26 = vcombine.high %v520_v19, %v532_v20  ;;  %v13955_v32 = vcombine.low %v520_v19, %v532_v20  ;;  %v616_v51 = vld [vmem:[#allocation5 + $0x1080] sm:$0xff] }
  0x86   :  { %v533_v23 = vld [vmem:[#allocation5 + $0xde8] sm:$0xff]  ;;  %v640_v61 = vld [vmem:[#allocation5 + $0x1140] sm:$0xff] }
  0x87   :  { %v13957_v33 = vcombine.low %v521_v22, %v533_v23  ;;  %v664_v5 = vld [vmem:[#allocation5 + $0x1200] sm:$0xff]  ;;  %v701_v19 = vld [vmem:[#allocation5 + $0x1328] sm:$0xff] }
  0x88   :  { %9479 = vmatpush1.bf16.msra.mxu0 %v13763_v28  ;;  %9643 = vmatpush1.bf16.msra.mxu1 %v13765_v29  ;;  %v556_v28 = vld [vmem:[#allocation5 + $0xea0] sm:$0xff]  ;;  %v545_v29 = vld [vmem:[#allocation5 + $0xe48] sm:$0xff] }
  0x89   :  { %9480 = vmatprep.subr.bf16.mxu0 %v13788_v30  ;;  %9644 = vmatprep.subr.bf16.mxu1 %v13790_v31  ;;  %v13958_v30 = vcombine.high %v521_v22, %v533_v23  ;;  %v557_v31 = vld [vmem:[#allocation5 + $0xea8] sm:$0xff]  ;;  %v13980_v34 = vcombine.high %v544_v27, %v556_v28  ;;  %v13979_v40 = vcombine.low %v544_v27, %v556_v28  ;;  %v688_v14 = vld [vmem:[#allocation5 + $0x12c0] sm:$0xff] }
  0x8a   :  { %v13981_v41 = vcombine.low %v545_v29, %v557_v31  ;;  %v712_v23 = vld [vmem:[#allocation5 + $0x1380] sm:$0xff]  ;;  %v725_v27 = vld [vmem:[#allocation5 + $0x13e8] sm:$0xff] }
  0x8c   :  { %9481 = vmatpush1.bf16.msra.mxu0 %v13787_v36  ;;  %9645 = vmatpush1.bf16.msra.mxu1 %v13789_v37  ;;  %v580_v36 = vld [vmem:[#allocation5 + $0xf60] sm:$0xff]  ;;  %v569_v37 = vld [vmem:[#allocation5 + $0xf08] sm:$0xff] }
  0x8d   :  { %9482 = vmatprep.subr.bf16.mxu0 %v13812_v38  ;;  %9646 = vmatprep.subr.bf16.mxu1 %v13814_v39  ;;  %v13982_v38 = vcombine.high %v545_v29, %v557_v31  ;;  %v581_v39 = vld [vmem:[#allocation5 + $0xf68] sm:$0xff]  ;;  %v14004_v42 = vcombine.high %v568_v35, %v580_v36  ;;  %v14003_v48 = vcombine.low %v568_v35, %v580_v36  ;;  %v736_v31 = vld [vmem:[#allocation5 + $0x1440] sm:$0xff] }
  0x8e   :  { %v14005_v49 = vcombine.low %v569_v37, %v581_v39  ;;  %v749_v35 = vld [vmem:[#allocation5 + $0x14a8] sm:$0xff] }
  0x90   :  { %9483 = vmatpush1.bf16.msra.mxu0 %v13811_v44  ;;  %9647 = vmatpush1.bf16.msra.mxu1 %v13813_v45  ;;  %v604_v44 = vld [vmem:[#allocation5 + $0x1020] sm:$0xff]  ;;  %v593_v45 = vld [vmem:[#allocation5 + $0xfc8] sm:$0xff] }
  0x91   :  { %9484 = vmatprep.subr.bf16.mxu0 %v13836_v46  ;;  %9648 = vmatprep.subr.bf16.mxu1 %v13838_v47  ;;  %v14006_v46 = vcombine.high %v569_v37, %v581_v39  ;;  %v605_v47 = vld [vmem:[#allocation5 + $0x1028] sm:$0xff]  ;;  %v14028_v50 = vcombine.high %v592_v43, %v604_v44  ;;  %v14027_v58 = vcombine.low %v592_v43, %v604_v44  ;;  %v760_v39 = vld [vmem:[#allocation5 + $0x1500] sm:$0xff] }
  0x92   :  { %v14029_v59 = vcombine.low %v593_v45, %v605_v47  ;;  %v773_v43 = vld [vmem:[#allocation5 + $0x1568] sm:$0xff] }
  0x94   :  { %9485 = vmatpush1.bf16.msra.mxu0 %v13835_v52  ;;  %9649 = vmatpush1.bf16.msra.mxu1 %v13837_v54  ;;  %v628_v52 = vld [vmem:[#allocation5 + $0x10e0] sm:$0xff]  ;;  %v617_v54 = vld [vmem:[#allocation5 + $0x1088] sm:$0xff] }
  0x95   :  { %9486 = vmatprep.subr.bf16.mxu0 %v13860_v55  ;;  %9650 = vmatprep.subr.bf16.mxu1 %v13862_v56  ;;  %v14030_v55 = vcombine.high %v593_v45, %v605_v47  ;;  %v629_v56 = vld [vmem:[#allocation5 + $0x10e8] sm:$0xff]  ;;  %v14052_v60 = vcombine.high %v616_v51, %v628_v52  ;;  %v14051_v2 = vcombine.low %v616_v51, %v628_v52  ;;  %v784_v47 = vld [vmem:[#allocation5 + $0x15c0] sm:$0xff] }
  0x96   :  { %v14053_v3 = vcombine.low %v617_v54, %v629_v56  ;;  %v797_v51 = vld [vmem:[#allocation5 + $0x1628] sm:$0xff] }
  0x98   :  { %9487 = vmatpush1.bf16.msra.mxu0 %v13859_v62  ;;  %9651 = vmatpush1.bf16.msra.mxu1 %v13861_v63  ;;  %v652_v62 = vld [vmem:[#allocation5 + $0x11a0] sm:$0xff]  ;;  %v641_v63 = vld [vmem:[#allocation5 + $0x1148] sm:$0xff] }
  0x99   :  { %9488 = vmatprep.subr.bf16.mxu0 %v13884_v0  ;;  %9652 = vmatprep.subr.bf16.mxu1 %v13886_v1  ;;  %v14054_v0 = vcombine.high %v617_v54, %v629_v56  ;;  %v653_v1 = vld [vmem:[#allocation5 + $0x11a8] sm:$0xff]  ;;  %v14076_v4 = vcombine.high %v640_v61, %v652_v62  ;;  %v14075_v10 = vcombine.low %v640_v61, %v652_v62  ;;  %v808_v56 = vld [vmem:[#allocation5 + $0x1680] sm:$0xff] }
  0x9a   :  { %v14077_v11 = vcombine.low %v641_v63, %v653_v1  ;;  %v821_v61 = vld [vmem:[#allocation5 + $0x16e8] sm:$0xff] }
  0x9c   :  { %9489 = vmatpush1.bf16.msra.mxu0 %v13883_v6  ;;  %9653 = vmatpush1.bf16.msra.mxu1 %v13885_v7  ;;  %v676_v6 = vld [vmem:[#allocation5 + $0x1260] sm:$0xff]  ;;  %v665_v7 = vld [vmem:[#allocation5 + $0x1208] sm:$0xff] }
  0x9d   :  { %9499 = vmatprep.subr.bf16.mxu0 %v13908_v8  ;;  %9663 = vmatprep.subr.bf16.mxu1 %v13910_v9  ;;  %v14078_v8 = vcombine.high %v641_v63, %v653_v1  ;;  %v677_v9 = vld [vmem:[#allocation5 + $0x1268] sm:$0xff]  ;;  %v14100_v13 = vcombine.high %v664_v5, %v676_v6  ;;  %v14099_v20 = vcombine.low %v664_v5, %v676_v6  ;;  %v832_v1 = vld [vmem:[#allocation5 + $0x1740] sm:$0xff] }
  0x9e   :  { %v845_v5 = vld [vmem:[#allocation5 + $0x17a8] sm:$0xff] }
  0x9f   :  { %9491 = vmatmul.mubr.bf16.vlgmr.msra.gmra.mrb[0].mxu0 %v16144_v12  ;;  %9655 = vmatmul.mubr.bf16.vlgmr.msra.gmra.mrb[0].mxu1 %v16144_v12 }
  0xa0   :  { %9500 = vmatpush1.bf16.msra.mxu0 %v13907_v16  ;;  %9664 = vmatpush1.bf16.msra.mxu1 %v13909_v17  ;;  %v700_v16 = vld [vmem:[#allocation5 + $0x1320] sm:$0xff]  ;;  %v689_v17 = vld [vmem:[#allocation5 + $0x12c8] sm:$0xff] }
  0xa1   :  { %9501 = vmatprep.subr.bf16.mxu0 %v13932_v18  ;;  %9665 = vmatprep.subr.bf16.mxu1 %v13934_v21  ;;  %v14102_v18 = vcombine.high %v665_v7, %v677_v9  ;;  %v14101_v21 = vcombine.low %v665_v7, %v677_v9  ;;  %v14124_v22 = vcombine.high %v688_v14, %v700_v16  ;;  %v856_v9 = vld [vmem:[#allocation5 + $0x1800] sm:$0xff] }
  0xa2   :  { %9531 = vmatprep.mubr.bf16.mxu0 %v16150_v53  ;;  %9695 = vmatprep.mubr.bf16.mxu1 %v16150_v53  ;;  %v14123_v28 = vcombine.low %v688_v14, %v700_v16  ;;  %v14125_v29 = vcombine.low %v689_v17, %v701_v19  ;;  %v869_v14 = vld [vmem:[#allocation5 + $0x1868] sm:$0xff] }
  0xa4   :  { %9502 = vmatpush1.bf16.msra.mxu0 %v13931_v24  ;;  %9666 = vmatpush1.bf16.msra.mxu1 %v13933_v25  ;;  %v724_v24 = vld [vmem:[#allocation5 + $0x13e0] sm:$0xff]  ;;  %v713_v25 = vld [vmem:[#allocation5 + $0x1388] sm:$0xff] }
  0xa5   :  { %9503 = vmatprep.subr.bf16.mxu0 %v13956_v26  ;;  %9667 = vmatprep.subr.bf16.mxu1 %v13958_v30  ;;  %v14126_v26 = vcombine.high %v689_v17, %v701_v19  ;;  %v14148_v30 = vcombine.high %v712_v23, %v724_v24  ;;  %v14147_v36 = vcombine.low %v712_v23, %v724_v24  ;;  %v880_v17 = vld [vmem:[#allocation5 + $0x18c0] sm:$0xff]  ;;  %v16156_v24 = vld [vmem:[#allocation2 + $0x10] sm:$0xff] }
  0xa6   :  { %v14149_v37 = vcombine.low %v713_v25, %v725_v27 }
  0xa8   :  { %9504 = vmatpush1.bf16.msra.mxu0 %v13955_v32  ;;  %9668 = vmatpush1.bf16.msra.mxu1 %v13957_v33  ;;  %v748_v32 = vld [vmem:[#allocation5 + $0x14a0] sm:$0xff]  ;;  %v737_v33 = vld [vmem:[#allocation5 + $0x1448] sm:$0xff] }
  0xa9   :  { %9505 = vmatprep.subr.bf16.mxu0 %v13980_v34  ;;  %9669 = vmatprep.subr.bf16.mxu1 %v13982_v38  ;;  %v14150_v34 = vcombine.high %v713_v25, %v725_v27  ;;  %v14172_v38 = vcombine.high %v736_v31, %v748_v32  ;;  %v14171_v44 = vcombine.low %v736_v31, %v748_v32  ;;  %v905_v31 = vld [vmem:[#allocation5 + $0x1988] sm:$0xff] }
  0xaa   :  { %v14173_v45 = vcombine.low %v737_v33, %v749_v35  ;;  %v16160_v25 = vcombine.low %v16146_v15, %v16146_v15 }
  0xac   :  { %9506 = vmatpush1.bf16.msra.mxu0 %v13979_v40  ;;  %9670 = vmatpush1.bf16.msra.mxu1 %v13981_v41  ;;  %v772_v40 = vld [vmem:[#allocation5 + $0x1560] sm:$0xff]  ;;  %v761_v41 = vld [vmem:[#allocation5 + $0x1508] sm:$0xff] }
  0xad   :  { %9507 = vmatprep.subr.bf16.mxu0 %v14004_v42  ;;  %9671 = vmatprep.subr.bf16.mxu1 %v14006_v46  ;;  %v14174_v42 = vcombine.high %v737_v33, %v749_v35  ;;  %v14196_v46 = vcombine.high %v760_v39, %v772_v40  ;;  %v14195_v52 = vcombine.low %v760_v39, %v772_v40  ;;  %v917_v33 = vld [vmem:[#allocation5 + $0x19e8] sm:$0xff] }
  0xae   :  { %v14197_v54 = vcombine.low %v761_v41, %v773_v43  ;;  %v929_v39 = vld [vmem:[#allocation5 + $0x1a48] sm:$0xff]  ;;  %v14342_v40 = vcombine.high %v905_v31, %v917_v33 }
  0xb0   :  { %9508 = vmatpush1.bf16.msra.mxu0 %v14003_v48  ;;  %9672 = vmatpush1.bf16.msra.mxu1 %v14005_v49  ;;  %v796_v48 = vld [vmem:[#allocation5 + $0x1620] sm:$0xff]  ;;  %v785_v49 = vld [vmem:[#allocation5 + $0x15c8] sm:$0xff] }
  0xb1   :  { %9509 = vmatprep.subr.bf16.mxu0 %v14028_v50  ;;  %9673 = vmatprep.subr.bf16.mxu1 %v14030_v55  ;;  %v14198_v50 = vcombine.high %v761_v41, %v773_v43  ;;  %v14220_v55 = vcombine.high %v784_v47, %v796_v48  ;;  %v14219_v62 = vcombine.low %v784_v47, %v796_v48  ;;  %v941_v41 = vld [vmem:[#allocation5 + $0x1aa8] sm:$0xff] }
  0xb2   :  { %v14221_v63 = vcombine.low %v785_v49, %v797_v51  ;;  %v14341_v43 = vcombine.low %v905_v31, %v917_v33  ;;  %v953_v47 = vld [vmem:[#allocation5 + $0x1b08] sm:$0xff]  ;;  %v14366_v48 = vcombine.high %v929_v39, %v941_v41 }
  0xb3   :  { %v1085_v31 = vld [vmem:[#allocation5 + $0x1f28] sm:$0xff] }
  0xb4   :  { %9510 = vmatpush1.bf16.msra.mxu0 %v14027_v58  ;;  %9674 = vmatpush1.bf16.msra.mxu1 %v14029_v59  ;;  %v820_v58 = vld [vmem:[#allocation5 + $0x16e0] sm:$0xff]  ;;  %v809_v59 = vld [vmem:[#allocation5 + $0x1688] sm:$0xff] }
  0xb5   :  { %9511 = vmatprep.subr.bf16.mxu0 %v14052_v60  ;;  %9675 = vmatprep.subr.bf16.mxu1 %v14054_v0  ;;  %v14222_v60 = vcombine.high %v785_v49, %v797_v51  ;;  %v14244_v0 = vcombine.high %v808_v56, %v820_v58  ;;  %v14243_v6 = vcombine.low %v808_v56, %v820_v58  ;;  %v965_v49 = vld [vmem:[#allocation5 + $0x1b68] sm:$0xff] }
  0xb6   :  { %v14245_v7 = vcombine.low %v809_v59, %v821_v61  ;;  %v14365_v51 = vcombine.low %v929_v39, %v941_v41  ;;  %v977_v56 = vld [vmem:[#allocation5 + $0x1bc8] sm:$0xff]  ;;  %v14390_v58 = vcombine.high %v953_v47, %v965_v49 }
  0xb7   :  { %v1109_v39 = vld [vmem:[#allocation5 + $0x1fe8] sm:$0xff] }
  0xb8   :  { %9512 = vmatpush1.bf16.msra.mxu0 %v14051_v2  ;;  %9676 = vmatpush1.bf16.msra.mxu1 %v14053_v3  ;;  %v844_v2 = vld [vmem:[#allocation5 + $0x17a0] sm:$0xff]  ;;  %v833_v3 = vld [vmem:[#allocation5 + $0x1748] sm:$0xff] }
  0xb9   :  { %9513 = vmatprep.subr.bf16.mxu0 %v14076_v4  ;;  %9677 = vmatprep.subr.bf16.mxu1 %v14078_v8  ;;  %v14246_v4 = vcombine.high %v809_v59, %v821_v61  ;;  %v14268_v8 = vcombine.high %v832_v1, %v844_v2  ;;  %v14267_v16 = vcombine.low %v832_v1, %v844_v2  ;;  %v989_v59 = vld [vmem:[#allocation5 + $0x1c28] sm:$0xff] }
  0xba   :  { %v14389_v61 = vcombine.low %v953_v47, %v965_v49  ;;  %v1001_v1 = vld [vmem:[#allocation5 + $0x1c88] sm:$0xff]  ;;  %v14414_v2 = vcombine.high %v977_v56, %v989_v59 }
  0xbb   :  { %v1133_v47 = vld [vmem:[#allocation5 + $0x20a8] sm:$0xff] }
  0xbc   :  { %9514 = vmatpush1.bf16.msra.mxu0 %v14075_v10  ;;  %9678 = vmatpush1.bf16.msra.mxu1 %v14077_v11  ;;  %v868_v10 = vld [vmem:[#allocation5 + $0x1860] sm:$0xff]  ;;  %v857_v11 = vld [vmem:[#allocation5 + $0x1808] sm:$0xff] }
  0xbd   :  { %9515 = vmatprep.subr.bf16.mxu0 %v14100_v13  ;;  %9679 = vmatprep.subr.bf16.mxu1 %v14102_v18  ;;  %v14270_v13 = vcombine.high %v833_v3, %v845_v5  ;;  %v14269_v18 = vcombine.low %v833_v3, %v845_v5  ;;  %v14292_v19 = vcombine.high %v856_v9, %v868_v10  ;;  %v1013_v3 = vld [vmem:[#allocation5 + $0x1ce8] sm:$0xff] }
  0xbe   :  { %v14294_v23 = vcombine.high %v857_v11, %v869_v14  ;;  %v14293_v27 = vcombine.low %v857_v11, %v869_v14  ;;  %v14413_v5 = vcombine.low %v977_v56, %v989_v59  ;;  %v1037_v11 = vld [vmem:[#allocation5 + $0x1da8] sm:$0xff]  ;;  %v14437_v14 = vcombine.low %v1001_v1, %v1013_v3 }
  0xbf   :  { %v1157_v56 = vld [vmem:[#allocation5 + $0x2168] sm:$0xff] }
  0xc0   :  { %9516 = vmatpush1.bf16.msra.mxu0 %v14099_v20  ;;  %9680 = vmatpush1.bf16.msra.mxu1 %v14101_v21  ;;  %v892_v20 = vld [vmem:[#allocation5 + $0x1920] sm:$0xff]  ;;  %v881_v21 = vld [vmem:[#allocation5 + $0x18c8] sm:$0xff] }
  0xc1   :  { %9517 = vmatprep.subr.bf16.mxu0 %v14124_v22  ;;  %9681 = vmatprep.subr.bf16.mxu1 %v14126_v26  ;;  %v893_v22 = vld [vmem:[#allocation5 + $0x1928] sm:$0xff]  ;;  %v14291_v26 = vcombine.low %v856_v9, %v868_v10  ;;  %v14315_v15 = vcombine.low %v880_v17, %v892_v20  ;;  %v14438_v10 = vcombine.high %v1001_v1, %v1013_v3 }
  0xc2   :  { %v14318_v32 = vcombine.high %v881_v21, %v893_v22  ;;  %v14317_v35 = vcombine.low %v881_v21, %v893_v22  ;;  %v1025_v9 = vld [vmem:[#allocation5 + $0x1d48] sm:$0xff] }
  0xc3   :  { %v1061_v21 = vld [vmem:[#allocation5 + $0x1e68] sm:$0xff] }
  0xc4   :  { %9518 = vmatpush1.bf16.msra.mxu0 %v14123_v28  ;;  %9682 = vmatpush1.bf16.msra.mxu1 %v14125_v29  ;;  %v14316_v28 = vcombine.high %v880_v17, %v892_v20  ;;  %v904_v29 = vld [vmem:[#allocation5 + $0x1980] sm:$0xff]  ;;  %v14462_v20 = vcombine.high %v1025_v9, %v1037_v11  ;;  %v1181_v1 = vld [vmem:[#allocation5 + $0x2228] sm:$0xff] }
  0xc5   :  { %9519 = vmatprep.subr.bf16.mxu0 %v14148_v30  ;;  %9683 = vmatprep.subr.bf16.mxu1 %v14150_v34  ;;  %v916_v30 = vld [vmem:[#allocation5 + $0x19e0] sm:$0xff]  ;;  %v16164_v34 = vcombine.high %v16156_v24, %v16156_v24 }
  0xc6   :  { %v1048_v17 = vld [vmem:[#allocation5 + $0x1e00] sm:$0xff] }
  0xc8   :  { %9520 = vmatpush1.bf16.msra.mxu0 %v14147_v36  ;;  %9684 = vmatpush1.bf16.msra.mxu1 %v14149_v37  ;;  %v14340_v36 = vcombine.high %v904_v29, %v916_v30  ;;  %v928_v37 = vld [vmem:[#allocation5 + $0x1a40] sm:$0xff] }
  0xc9   :  { %9521 = vmatprep.subr.bf16.mxu0 %v14172_v38  ;;  %9685 = vmatprep.subr.bf16.mxu1 %v14174_v42  ;;  %v940_v38 = vld [vmem:[#allocation5 + $0x1aa0] sm:$0xff]  ;;  %v14339_v42 = vcombine.low %v904_v29, %v916_v30  ;;  %v1073_v29 = vld [vmem:[#allocation5 + $0x1ec8] sm:$0xff] }
  0xca   :  { %v14509_v41 = vcombine.low %v1073_v29, %v1085_v31 }
  0xcc   :  { %9522 = vmatpush1.bf16.msra.mxu0 %v14171_v44  ;;  %9686 = vmatpush1.bf16.msra.mxu1 %v14173_v45  ;;  %v14364_v44 = vcombine.high %v928_v37, %v940_v38  ;;  %v952_v45 = vld [vmem:[#allocation5 + $0x1b00] sm:$0xff] }
  0xcd   :  { %9523 = vmatprep.subr.bf16.mxu0 %v14196_v46  ;;  %9687 = vmatprep.subr.bf16.mxu1 %v14198_v50  ;;  %v964_v46 = vld [vmem:[#allocation5 + $0x1b60] sm:$0xff]  ;;  %v14363_v50 = vcombine.low %v928_v37, %v940_v38  ;;  %v1097_v37 = vld [vmem:[#allocation5 + $0x1f88] sm:$0xff]  ;;  %v14510_v38 = vcombine.high %v1073_v29, %v1085_v31 }
  0xce   :  { %v14533_v49 = vcombine.low %v1097_v37, %v1109_v39  ;;  %v1253_v29 = vld [vmem:[#allocation5 + $0x2468] sm:$0xff]  ;;  %v1264_v31 = vld [vmem:[#allocation5 + $0x24c0] sm:$0xff] }
  0xd0   :  { %9524 = vmatpush1.bf16.msra.mxu0 %v14195_v52  ;;  %9688 = vmatpush1.bf16.msra.mxu1 %v14197_v54  ;;  %v14388_v52 = vcombine.high %v952_v45, %v964_v46  ;;  %v976_v54 = vld [vmem:[#allocation5 + $0x1bc0] sm:$0xff] }
  0xd1   :  { %9525 = vmatprep.subr.bf16.mxu0 %v14220_v55  ;;  %9689 = vmatprep.subr.bf16.mxu1 %v14222_v60  ;;  %v988_v55 = vld [vmem:[#allocation5 + $0x1c20] sm:$0xff]  ;;  %v14387_v60 = vcombine.low %v952_v45, %v964_v46  ;;  %v1121_v45 = vld [vmem:[#allocation5 + $0x2048] sm:$0xff]  ;;  %v14534_v46 = vcombine.high %v1097_v37, %v1109_v39  ;;  %v16174_v39 = vcombine.low %v16156_v24, %v16156_v24 }
  0xd2   :  { %v14557_v59 = vcombine.low %v1121_v45, %v1133_v47 }
  0xd4   :  { %9526 = vmatpush1.bf16.msra.mxu0 %v14219_v62  ;;  %9690 = vmatpush1.bf16.msra.mxu1 %v14221_v63  ;;  %v14412_v62 = vcombine.high %v976_v54, %v988_v55  ;;  %v1000_v63 = vld [vmem:[#allocation5 + $0x1c80] sm:$0xff] }
  0xd5   :  { %9527 = vmatprep.subr.bf16.mxu0 %v14244_v0  ;;  %9691 = vmatprep.subr.bf16.mxu1 %v14246_v4  ;;  %v1012_v0 = vld [vmem:[#allocation5 + $0x1ce0] sm:$0xff]  ;;  %v14411_v4 = vcombine.low %v976_v54, %v988_v55  ;;  %v1145_v54 = vld [vmem:[#allocation5 + $0x2108] sm:$0xff]  ;;  %v14558_v55 = vcombine.high %v1121_v45, %v1133_v47 }
  0xd6   :  { %v14581_v3 = vcombine.low %v1145_v54, %v1157_v56  ;;  %v1289_v45 = vld [vmem:[#allocation5 + $0x2588] sm:$0xff] }
  0xd7   :  { %v1301_v47 = vld [vmem:[#allocation5 + $0x25e8] sm:$0xff] }
  0xd8   :  { %9528 = vmatpush1.bf16.msra.mxu0 %v14243_v6  ;;  %9692 = vmatpush1.bf16.msra.mxu1 %v14245_v7  ;;  %v14436_v6 = vcombine.high %v1000_v63, %v1012_v0  ;;  %v1024_v7 = vld [vmem:[#allocation5 + $0x1d40] sm:$0xff] }
  0xd9   :  { %9529 = vmatprep.subr.bf16.mxu0 %v14268_v8  ;;  %9693 = vmatprep.subr.bf16.mxu1 %v14270_v13  ;;  %v1036_v8 = vld [vmem:[#allocation5 + $0x1da0] sm:$0xff]  ;;  %v14435_v13 = vcombine.low %v1000_v63, %v1012_v0  ;;  %v1169_v63 = vld [vmem:[#allocation5 + $0x21c8] sm:$0xff]  ;;  %v14582_v0 = vcombine.high %v1145_v54, %v1157_v56 }
  0xda   :  { %v14459_v22 = vcombine.low %v1024_v7, %v1036_v8  ;;  %v1313_v54 = vld [vmem:[#allocation5 + $0x2648] sm:$0xff] }
  0xdb   :  { %v1325_v56 = vld [vmem:[#allocation5 + $0x26a8] sm:$0xff] }
  0xdc   :  { %9530 = vmatpush1.bf16.msra.mxu0 %v14267_v16  ;;  %9694 = vmatpush1.bf16.msra.mxu1 %v14269_v18  ;;  %v14460_v16 = vcombine.high %v1024_v7, %v1036_v8  ;;  %v1060_v18 = vld [vmem:[#allocation5 + $0x1e60] sm:$0xff]  ;;  %v1193_v7 = vld [vmem:[#allocation5 + $0x2288] sm:$0xff]  ;;  %v14606_v8 = vcombine.high %v1169_v63, %v1181_v1 }
  0xdd   :  { %9540 = vmatprep.subr.bf16.mxu0 %v14292_v19  ;;  %9704 = vmatprep.subr.bf16.mxu1 %v14294_v23  ;;  %v1049_v19 = vld [vmem:[#allocation5 + $0x1e08] sm:$0xff]  ;;  %v14461_v23 = vcombine.low %v1025_v9, %v1037_v11  ;;  %v14605_v11 = vcombine.low %v1169_v63, %v1181_v1 }
  0xde   :  { %v14486_v30 = vcombine.high %v1049_v19, %v1061_v21  ;;  %v14485_v33 = vcombine.low %v1049_v19, %v1061_v21  ;;  %v1205_v9 = vld [vmem:[#allocation5 + $0x22e8] sm:$0xff] }
  0xdf   :  { %9532 = vmatmul.mubr.bf16.vlgmr.msra.gmra.mrb[0].mxu0 %v16160_v25  ;;  %9696 = vmatmul.mubr.bf16.vlgmr.msra.gmra.mrb[0].mxu1 %v16160_v25  ;;  %v1229_v19 = vld [vmem:[#allocation5 + $0x23a8] sm:$0xff]  ;;  %v14629_v21 = vcombine.low %v1193_v7, %v1205_v9 }
  0xe0   :  { %9541 = vmatpush1.bf16.msra.mxu0 %v14291_v26  ;;  %9705 = vmatpush1.bf16.msra.mxu1 %v14293_v27  ;;  %v14484_v26 = vcombine.high %v1048_v17, %v1060_v18  ;;  %v1072_v27 = vld [vmem:[#allocation5 + $0x1ec0] sm:$0xff]  ;;  %v1337_v63 = vld [vmem:[#allocation5 + $0x2708] sm:$0xff] }
  0xe1   :  { %9542 = vmatprep.subr.bf16.mxu0 %v14316_v28  ;;  %9706 = vmatprep.subr.bf16.mxu1 %v14318_v32  ;;  %v1084_v28 = vld [vmem:[#allocation5 + $0x1f20] sm:$0xff]  ;;  %v14483_v32 = vcombine.low %v1048_v17, %v1060_v18  ;;  %v1217_v17 = vld [vmem:[#allocation5 + $0x2348] sm:$0xff]  ;;  %v14630_v18 = vcombine.high %v1193_v7, %v1205_v9 }
  0xe2   :  { %9572 = vmatprep.mubr.bf16.mxu0 %v16164_v34  ;;  %9736 = vmatprep.mubr.bf16.mxu1 %v16164_v34  ;;  %v1349_v1 = vld [vmem:[#allocation5 + $0x2768] sm:$0xff] }
  0xe3   :  { %v1361_v7 = vld [vmem:[#allocation5 + $0x27c8] sm:$0xff] }
  0xe4   :  { %9543 = vmatpush1.bf16.msra.mxu0 %v14315_v15  ;;  %9707 = vmatpush1.bf16.msra.mxu1 %v14317_v35  ;;  %v14508_v15 = vcombine.high %v1072_v27, %v1084_v28  ;;  %v1096_v35 = vld [vmem:[#allocation5 + $0x1f80] sm:$0xff]  ;;  %v1373_v9 = vld [vmem:[#allocation5 + $0x2828] sm:$0xff] }
  0xe5   :  { %9544 = vmatprep.subr.bf16.mxu0 %v14340_v36  ;;  %9708 = vmatprep.subr.bf16.mxu1 %v14342_v40  ;;  %v1108_v36 = vld [vmem:[#allocation5 + $0x1fe0] sm:$0xff]  ;;  %v14507_v40 = vcombine.low %v1072_v27, %v1084_v28  ;;  %v1241_v27 = vld [vmem:[#allocation5 + $0x2408] sm:$0xff]  ;;  %v14654_v28 = vcombine.high %v1217_v17, %v1229_v19 }
  0xe6   :  { %v14678_v37 = vcombine.high %v1241_v27, %v1253_v29 }
  0xe8   :  { %9545 = vmatpush1.bf16.msra.mxu0 %v14339_v42  ;;  %9709 = vmatpush1.bf16.msra.mxu1 %v14341_v43  ;;  %v14532_v42 = vcombine.high %v1096_v35, %v1108_v36  ;;  %v1120_v43 = vld [vmem:[#allocation5 + $0x2040] sm:$0xff] }
  0xe9   :  { %9546 = vmatprep.subr.bf16.mxu0 %v14364_v44  ;;  %9710 = vmatprep.subr.bf16.mxu1 %v14366_v48  ;;  %v1132_v44 = vld [vmem:[#allocation5 + $0x20a0] sm:$0xff]  ;;  %v14531_v48 = vcombine.low %v1096_v35, %v1108_v36  ;;  %v1265_v35 = vld [vmem:[#allocation5 + $0x24c8] sm:$0xff] }
  0xea   :  { %v1277_v36 = vld [vmem:[#allocation5 + $0x2528] sm:$0xff] }
  0xec   :  { %9547 = vmatpush1.bf16.msra.mxu0 %v14363_v50  ;;  %9711 = vmatpush1.bf16.msra.mxu1 %v14365_v51  ;;  %v14556_v50 = vcombine.high %v1120_v43, %v1132_v44  ;;  %v1144_v51 = vld [vmem:[#allocation5 + $0x2100] sm:$0xff] }
  0xed   :  { %9548 = vmatprep.subr.bf16.mxu0 %v14388_v52  ;;  %9712 = vmatprep.subr.bf16.mxu1 %v14390_v58  ;;  %v1156_v52 = vld [vmem:[#allocation5 + $0x2160] sm:$0xff]  ;;  %v14555_v58 = vcombine.low %v1120_v43, %v1132_v44 }
  0xee   :  { %v1288_v43 = vld [vmem:[#allocation5 + $0x2580] sm:$0xff] }
  0xef   :  { %v1300_v44 = vld [vmem:[#allocation5 + $0x25e0] sm:$0xff] }
  0xf0   :  { %9549 = vmatpush1.bf16.msra.mxu0 %v14387_v60  ;;  %9713 = vmatpush1.bf16.msra.mxu1 %v14389_v61  ;;  %v14580_v60 = vcombine.high %v1144_v51, %v1156_v52  ;;  %v1168_v61 = vld [vmem:[#allocation5 + $0x21c0] sm:$0xff] }
  0xf1   :  { %9550 = vmatprep.subr.bf16.mxu0 %v14412_v62  ;;  %9714 = vmatprep.subr.bf16.mxu1 %v14414_v2  ;;  %v1180_v62 = vld [vmem:[#allocation5 + $0x2220] sm:$0xff]  ;;  %v14579_v2 = vcombine.low %v1144_v51, %v1156_v52 }
  0xf2   :  { %v1312_v51 = vld [vmem:[#allocation5 + $0x2640] sm:$0xff] }
  0xf3   :  { %v1324_v52 = vld [vmem:[#allocation5 + $0x26a0] sm:$0xff] }
  0xf4   :  { %9551 = vmatpush1.bf16.msra.mxu0 %v14411_v4  ;;  %9715 = vmatpush1.bf16.msra.mxu1 %v14413_v5  ;;  %v14604_v4 = vcombine.high %v1168_v61, %v1180_v62  ;;  %v1192_v5 = vld [vmem:[#allocation5 + $0x2280] sm:$0xff] }
  0xf5   :  { %9552 = vmatprep.subr.bf16.mxu0 %v14436_v6  ;;  %9716 = vmatprep.subr.bf16.mxu1 %v14438_v10  ;;  %v1204_v6 = vld [vmem:[#allocation5 + $0x22e0] sm:$0xff]  ;;  %v14603_v10 = vcombine.low %v1168_v61, %v1180_v62 }
  0xf6   :  { %v1336_v61 = vld [vmem:[#allocation5 + $0x2700] sm:$0xff] }
  0xf7   :  { %v1348_v62 = vld [vmem:[#allocation5 + $0x2760] sm:$0xff] }
  0xf8   :  { %9553 = vmatpush1.bf16.msra.mxu0 %v14435_v13  ;;  %9717 = vmatpush1.bf16.msra.mxu1 %v14437_v14  ;;  %v14628_v13 = vcombine.high %v1192_v5, %v1204_v6  ;;  %v1216_v14 = vld [vmem:[#allocation5 + $0x2340] sm:$0xff] }
  0xf9   :  { %9554 = vmatprep.subr.bf16.mxu0 %v14460_v16  ;;  %9718 = vmatprep.subr.bf16.mxu1 %v14462_v20  ;;  %v1228_v16 = vld [vmem:[#allocation5 + $0x23a0] sm:$0xff]  ;;  %v14627_v20 = vcombine.low %v1192_v5, %v1204_v6 }
  0xfa   :  { %v1360_v5 = vld [vmem:[#allocation5 + $0x27c0] sm:$0xff] }
  0xfb   :  { %v1372_v6 = vld [vmem:[#allocation5 + $0x2820] sm:$0xff] }
  0xfc   :  { %9555 = vmatpush1.bf16.msra.mxu0 %v14459_v22  ;;  %9719 = vmatpush1.bf16.msra.mxu1 %v14461_v23  ;;  %v14652_v22 = vcombine.high %v1216_v14, %v1228_v16  ;;  %v1240_v23 = vld [vmem:[#allocation5 + $0x2400] sm:$0xff] }
  0xfd   :  { %9556 = vmatprep.subr.bf16.mxu0 %v14484_v26  ;;  %9720 = vmatprep.subr.bf16.mxu1 %v14486_v30  ;;  %v1252_v26 = vld [vmem:[#allocation5 + $0x2460] sm:$0xff]  ;;  %v14651_v30 = vcombine.low %v1216_v14, %v1228_v16 }
  0xfe   :  { %v1384_v14 = vld [vmem:[#allocation5 + $0x2880] sm:$0xff] }
  0xff   :  { %v1396_v16 = vld [vmem:[#allocation5 + $0x28e0] sm:$0xff] }
 0x100   :  { %9557 = vmatpush1.bf16.msra.mxu0 %v14483_v32  ;;  %9721 = vmatpush1.bf16.msra.mxu1 %v14485_v33  ;;  %v14653_v32 = vcombine.low %v1217_v17, %v1229_v19  ;;  %v14676_v33 = vcombine.high %v1240_v23, %v1252_v26  ;;  %v1385_v17 = vld [vmem:[#allocation5 + $0x2888] sm:$0xff] }
 0x101   :  { %9558 = vmatprep.subr.bf16.mxu0 %v14508_v15  ;;  %9722 = vmatprep.subr.bf16.mxu1 %v14510_v38  ;;  %v1276_v15 = vld [vmem:[#allocation5 + $0x2520] sm:$0xff]  ;;  %v16170_v38 = vld [vmem:[#allocation2 + $0x18] sm:$0xff]  ;;  %v1397_v19 = vld [vmem:[#allocation5 + $0x28e8] sm:$0xff] }
 0x102   :  { %v14699_v24 = vcombine.low %v1264_v31, %v1276_v15 }
 0x104   :  { %9559 = vmatpush1.bf16.msra.mxu0 %v14507_v40  ;;  %9723 = vmatpush1.bf16.msra.mxu1 %v14509_v41  ;;  %v14675_v40 = vcombine.low %v1240_v23, %v1252_v26  ;;  %v14677_v41 = vcombine.low %v1241_v27, %v1253_v29  ;;  %v1408_v23 = vld [vmem:[#allocation5 + $0x2940] sm:$0xff]  ;;  %v1409_v27 = vld [vmem:[#allocation5 + $0x2948] sm:$0xff] }
 0x105   :  { %9560 = vmatprep.subr.bf16.mxu0 %v14532_v42  ;;  %9724 = vmatprep.subr.bf16.mxu1 %v14534_v46  ;;  %v14700_v42 = vcombine.high %v1264_v31, %v1276_v15  ;;  %v14702_v46 = vcombine.high %v1265_v35, %v1277_v36  ;;  %v1420_v26 = vld [vmem:[#allocation5 + $0x29a0] sm:$0xff]  ;;  %v1421_v29 = vld [vmem:[#allocation5 + $0x29a8] sm:$0xff]  ;;  %v14821_v31 = vcombine.low %v1385_v17, %v1397_v19 }
 0x106   :  { %v1444_v15 = vld [vmem:[#allocation5 + $0x2a60] sm:$0xff] }
 0x108   :  { %9561 = vmatpush1.bf16.msra.mxu0 %v14531_v48  ;;  %9725 = vmatpush1.bf16.msra.mxu1 %v14533_v49  ;;  %v16178_v48 = vcombine.high %v16170_v38, %v16170_v38  ;;  %v14701_v49 = vcombine.low %v1265_v35, %v1277_v36  ;;  %v1433_v35 = vld [vmem:[#allocation5 + $0x2a08] sm:$0xff]  ;;  %v14846_v36 = vcombine.high %v1409_v27, %v1421_v29 }
 0x109   :  { %9562 = vmatprep.subr.bf16.mxu0 %v14556_v50  ;;  %9726 = vmatprep.subr.bf16.mxu1 %v14558_v55  ;;  %v14724_v50 = vcombine.high %v1288_v43, %v1300_v44  ;;  %v14726_v55 = vcombine.high %v1289_v45, %v1301_v47 }
 0x10c   :  { %9563 = vmatpush1.bf16.msra.mxu0 %v14555_v58  ;;  %9727 = vmatpush1.bf16.msra.mxu1 %v14557_v59  ;;  %v14723_v58 = vcombine.low %v1288_v43, %v1300_v44  ;;  %v14725_v59 = vcombine.low %v1289_v45, %v1301_v47  ;;  %v1456_v43 = vld [vmem:[#allocation5 + $0x2ac0] sm:$0xff]  ;;  %v1457_v45 = vld [vmem:[#allocation5 + $0x2ac8] sm:$0xff] }
 0x10d   :  { %9564 = vmatprep.subr.bf16.mxu0 %v14580_v60  ;;  %9728 = vmatprep.subr.bf16.mxu1 %v14582_v0  ;;  %v14748_v60 = vcombine.high %v1312_v51, %v1324_v52  ;;  %v14750_v0 = vcombine.high %v1313_v54, %v1325_v56  ;;  %v1468_v44 = vld [vmem:[#allocation5 + $0x2b20] sm:$0xff]  ;;  %v1469_v47 = vld [vmem:[#allocation5 + $0x2b28] sm:$0xff] }
 0x110   :  { %9565 = vmatpush1.bf16.msra.mxu0 %v14579_v2  ;;  %9729 = vmatpush1.bf16.msra.mxu1 %v14581_v3  ;;  %v14747_v2 = vcombine.low %v1312_v51, %v1324_v52  ;;  %v14749_v3 = vcombine.low %v1313_v54, %v1325_v56  ;;  %v1480_v51 = vld [vmem:[#allocation5 + $0x2b80] sm:$0xff]  ;;  %v1481_v54 = vld [vmem:[#allocation5 + $0x2b88] sm:$0xff] }
 0x111   :  { %9566 = vmatprep.subr.bf16.mxu0 %v14604_v4  ;;  %9730 = vmatprep.subr.bf16.mxu1 %v14606_v8  ;;  %v14772_v4 = vcombine.high %v1336_v61, %v1348_v62  ;;  %v14774_v8 = vcombine.high %v1337_v63, %v1349_v1  ;;  %v1492_v52 = vld [vmem:[#allocation5 + $0x2be0] sm:$0xff]  ;;  %v1493_v56 = vld [vmem:[#allocation5 + $0x2be8] sm:$0xff] }
 0x114   :  { %9567 = vmatpush1.bf16.msra.mxu0 %v14603_v10  ;;  %9731 = vmatpush1.bf16.msra.mxu1 %v14605_v11  ;;  %v14771_v10 = vcombine.low %v1336_v61, %v1348_v62  ;;  %v14773_v11 = vcombine.low %v1337_v63, %v1349_v1  ;;  %v1504_v61 = vld [vmem:[#allocation5 + $0x2c40] sm:$0xff]  ;;  %v1505_v63 = vld [vmem:[#allocation5 + $0x2c48] sm:$0xff] }
 0x115   :  { %9568 = vmatprep.subr.bf16.mxu0 %v14628_v13  ;;  %9732 = vmatprep.subr.bf16.mxu1 %v14630_v18  ;;  %v14796_v13 = vcombine.high %v1360_v5, %v1372_v6  ;;  %v14798_v18 = vcombine.high %v1361_v7, %v1373_v9  ;;  %v1516_v62 = vld [vmem:[#allocation5 + $0x2ca0] sm:$0xff]  ;;  %v1517_v1 = vld [vmem:[#allocation5 + $0x2ca8] sm:$0xff] }
 0x118   :  { %9569 = vmatpush1.bf16.msra.mxu0 %v14627_v20  ;;  %9733 = vmatpush1.bf16.msra.mxu1 %v14629_v21  ;;  %v14795_v20 = vcombine.low %v1360_v5, %v1372_v6  ;;  %v14797_v21 = vcombine.low %v1361_v7, %v1373_v9  ;;  %v1528_v5 = vld [vmem:[#allocation5 + $0x2d00] sm:$0xff]  ;;  %v1529_v7 = vld [vmem:[#allocation5 + $0x2d08] sm:$0xff] }
 0x119   :  { %9570 = vmatprep.subr.bf16.mxu0 %v14652_v22  ;;  %9734 = vmatprep.subr.bf16.mxu1 %v14654_v28  ;;  %v14820_v22 = vcombine.high %v1384_v14, %v1396_v16  ;;  %v14822_v28 = vcombine.high %v1385_v17, %v1397_v19  ;;  %v1540_v6 = vld [vmem:[#allocation5 + $0x2d60] sm:$0xff]  ;;  %v1541_v9 = vld [vmem:[#allocation5 + $0x2d68] sm:$0xff] }
 0x11a   :  { %v1553_v17 = vld [vmem:[#allocation5 + $0x2dc8] sm:$0xff] }
 0x11b   :  { %v1565_v19 = vld [vmem:[#allocation5 + $0x2e28] sm:$0xff] }
 0x11c   :  { %9571 = vmatpush1.bf16.msra.mxu0 %v14651_v30  ;;  %9735 = vmatpush1.bf16.msra.mxu1 %v14653_v32  ;;  %v14819_v30 = vcombine.low %v1384_v14, %v1396_v16  ;;  %v14844_v32 = vcombine.high %v1408_v23, %v1420_v26  ;;  %v1552_v14 = vld [vmem:[#allocation5 + $0x2dc0] sm:$0xff] }
 0x11d   :  { %9581 = vmatprep.subr.bf16.mxu0 %v14676_v33  ;;  %9745 = vmatprep.subr.bf16.mxu1 %v14678_v37  ;;  %v1432_v33 = vld [vmem:[#allocation5 + $0x2a00] sm:$0xff]  ;;  %v1445_v37 = vld [vmem:[#allocation5 + $0x2a68] sm:$0xff] }
 0x11e   :  { %v1564_v16 = vld [vmem:[#allocation5 + $0x2e20] sm:$0xff] }
 0x11f   :  { %9573 = vmatmul.mubr.bf16.vlgmr.msra.gmra.mrb[0].mxu0 %v16174_v39  ;;  %9737 = vmatmul.mubr.bf16.vlgmr.msra.gmra.mrb[0].mxu1 %v16174_v39 }
 0x120   :  { %9582 = vmatpush1.bf16.msra.mxu0 %v14675_v40  ;;  %9746 = vmatpush1.bf16.msra.mxu1 %v14677_v41  ;;  %v14843_v40 = vcombine.low %v1408_v23, %v1420_v26  ;;  %v14845_v41 = vcombine.low %v1409_v27, %v1421_v29  ;;  %v1576_v23 = vld [vmem:[#allocation5 + $0x2e80] sm:$0xff]  ;;  %v1577_v27 = vld [vmem:[#allocation5 + $0x2e88] sm:$0xff] }
 0x121   :  { %9583 = vmatprep.subr.bf16.mxu0 %v14700_v42  ;;  %9747 = vmatprep.subr.bf16.mxu1 %v14702_v46  ;;  %v14868_v42 = vcombine.high %v1432_v33, %v1444_v15  ;;  %v14870_v46 = vcombine.high %v1433_v35, %v1445_v37  ;;  %v1588_v26 = vld [vmem:[#allocation5 + $0x2ee0] sm:$0xff]  ;;  %v1589_v29 = vld [vmem:[#allocation5 + $0x2ee8] sm:$0xff] }
 0x122   :  { %9613 = vmatprep.mubr.bf16.mxu0 %v16178_v48  ;;  %9777 = vmatprep.mubr.bf16.mxu1 %v16178_v48 }
 0x124   :  { %9584 = vmatpush1.bf16.msra.mxu0 %v14699_v24  ;;  %9748 = vmatpush1.bf16.msra.mxu1 %v14701_v49  ;;  %v14867_v24 = vcombine.low %v1432_v33, %v1444_v15  ;;  %v14869_v49 = vcombine.low %v1433_v35, %v1445_v37  ;;  %v1600_v33 = vld [vmem:[#allocation5 + $0x2f40] sm:$0xff]  ;;  %v1601_v35 = vld [vmem:[#allocation5 + $0x2f48] sm:$0xff] }
 0x125   :  { %9585 = vmatprep.subr.bf16.mxu0 %v14724_v50  ;;  %9749 = vmatprep.subr.bf16.mxu1 %v14726_v55  ;;  %v14892_v50 = vcombine.high %v1456_v43, %v1468_v44  ;;  %v14894_v55 = vcombine.high %v1457_v45, %v1469_v47  ;;  %v1612_v15 = vld [vmem:[#allocation5 + $0x2fa0] sm:$0xff]  ;;  %v1613_v37 = vld [vmem:[#allocation5 + $0x2fa8] sm:$0xff] }
 0x128   :  { %9586 = vmatpush1.bf16.msra.mxu0 %v14723_v58  ;;  %9750 = vmatpush1.bf16.msra.mxu1 %v14725_v59  ;;  %v14891_v58 = vcombine.low %v1456_v43, %v1468_v44  ;;  %v14893_v59 = vcombine.low %v1457_v45, %v1469_v47  ;;  %v90_v43 = vld [vmem:[#allocation5 + $0x10] sm:$0xff]  ;;  %v91_v45 = vld [vmem:[#allocation5 + $0x18] sm:$0xff] }
 0x129   :  { %9587 = vmatprep.subr.bf16.mxu0 %v14748_v60  ;;  %9751 = vmatprep.subr.bf16.mxu1 %v14750_v0  ;;  %v14916_v60 = vcombine.high %v1480_v51, %v1492_v52  ;;  %v14918_v0 = vcombine.high %v1481_v54, %v1493_v56  ;;  %v102_v44 = vld [vmem:[#allocation5 + $0x70] sm:$0xff]  ;;  %v103_v47 = vld [vmem:[#allocation5 + $0x78] sm:$0xff] }
 0x12c   :  { %9588 = vmatpush1.bf16.msra.mxu0 %v14747_v2  ;;  %9752 = vmatpush1.bf16.msra.mxu1 %v14749_v3  ;;  %v14915_v2 = vcombine.low %v1480_v51, %v1492_v52  ;;  %v14917_v3 = vcombine.low %v1481_v54, %v1493_v56  ;;  %v114_v51 = vld [vmem:[#allocation5 + $0xd0] sm:$0xff]  ;;  %v115_v54 = vld [vmem:[#allocation5 + $0xd8] sm:$0xff] }
 0x12d   :  { %9589 = vmatprep.subr.bf16.mxu0 %v14772_v4  ;;  %9753 = vmatprep.subr.bf16.mxu1 %v14774_v8  ;;  %v14940_v4 = vcombine.high %v1504_v61, %v1516_v62  ;;  %v14942_v8 = vcombine.high %v1505_v63, %v1517_v1  ;;  %v126_v52 = vld [vmem:[#allocation5 + $0x130] sm:$0xff]  ;;  %v127_v56 = vld [vmem:[#allocation5 + $0x138] sm:$0xff] }
 0x130   :  { %9590 = vmatpush1.bf16.msra.mxu0 %v14771_v10  ;;  %9754 = vmatpush1.bf16.msra.mxu1 %v14773_v11  ;;  %v14939_v10 = vcombine.low %v1504_v61, %v1516_v62  ;;  %v14941_v11 = vcombine.low %v1505_v63, %v1517_v1  ;;  %v13552_v61 = vcombine.high %v114_v51, %v126_v52  ;;  %v138_v63 = vld [vmem:[#allocation5 + $0x190] sm:$0xff]  ;;  %v139_v1 = vld [vmem:[#allocation5 + $0x198] sm:$0xff] }
 0x131   :  { %9591 = vmatprep.subr.bf16.mxu0 %v14796_v13  ;;  %9755 = vmatprep.subr.bf16.mxu1 %v14798_v18  ;;  %v14964_v13 = vcombine.high %v1528_v5, %v1540_v6  ;;  %v14966_v18 = vcombine.high %v1529_v7, %v1541_v9  ;;  %v13554_v62 = vcombine.high %v115_v54, %v127_v56 }
 0x134   :  { %9592 = vmatpush1.bf16.msra.mxu0 %v14795_v20  ;;  %9756 = vmatpush1.bf16.msra.mxu1 %v14797_v21  ;;  %v14963_v20 = vcombine.low %v1528_v5, %v1540_v6  ;;  %v14965_v21 = vcombine.low %v1529_v7, %v1541_v9  ;;  %v162_v6 = vld [vmem:[#allocation5 + $0x250] sm:$0xff]  ;;  %v175_v9 = vld [vmem:[#allocation5 + $0x2b8] sm:$0xff] }
 0x135   :  { %9593 = vmatprep.subr.bf16.mxu0 %v14820_v22  ;;  %9757 = vmatprep.subr.bf16.mxu1 %v14822_v28  ;;  %v14988_v22 = vcombine.high %v1552_v14, %v1564_v16  ;;  %v14990_v28 = vcombine.high %v1553_v17, %v1565_v19  ;;  %v174_v7 = vld [vmem:[#allocation5 + $0x2b0] sm:$0xff] }
 0x138   :  { %9594 = vmatpush1.bf16.msra.mxu0 %v14819_v30  ;;  %9758 = vmatpush1.bf16.msra.mxu1 %v14821_v31  ;;  %v14987_v30 = vcombine.low %v1552_v14, %v1564_v16  ;;  %v14989_v31 = vcombine.low %v1553_v17, %v1565_v19  ;;  %v186_v16 = vld [vmem:[#allocation5 + $0x310] sm:$0xff]  ;;  %v199_v19 = vld [vmem:[#allocation5 + $0x378] sm:$0xff] }
 0x139   :  { %9595 = vmatprep.subr.bf16.mxu0 %v14844_v32  ;;  %9759 = vmatprep.subr.bf16.mxu1 %v14846_v36  ;;  %v15012_v32 = vcombine.high %v1576_v23, %v1588_v26  ;;  %v15014_v36 = vcombine.high %v1577_v27, %v1589_v29  ;;  %v198_v17 = vld [vmem:[#allocation5 + $0x370] sm:$0xff] }
 0x13c   :  { %9596 = vmatpush1.bf16.msra.mxu0 %v14843_v40  ;;  %9760 = vmatpush1.bf16.msra.mxu1 %v14845_v41  ;;  %v15011_v40 = vcombine.low %v1576_v23, %v1588_v26  ;;  %v15013_v41 = vcombine.low %v1577_v27, %v1589_v29  ;;  %v210_v26 = vld [vmem:[#allocation5 + $0x3d0] sm:$0xff]  ;;  %v223_v29 = vld [vmem:[#allocation5 + $0x438] sm:$0xff] }
 0x13d   :  { %9597 = vmatprep.subr.bf16.mxu0 %v14868_v42  ;;  %9761 = vmatprep.subr.bf16.mxu1 %v14870_v46  ;;  %v15036_v42 = vcombine.high %v1600_v33, %v1612_v15  ;;  %v15038_v46 = vcombine.high %v1601_v35, %v1613_v37  ;;  %v222_v27 = vld [vmem:[#allocation5 + $0x430] sm:$0xff] }
 0x140   :  { %9598 = vmatpush1.bf16.msra.mxu0 %v14867_v24  ;;  %9762 = vmatpush1.bf16.msra.mxu1 %v14869_v49  ;;  %v15035_v24 = vcombine.low %v1600_v33, %v1612_v15  ;;  %v15037_v49 = vcombine.low %v1601_v35, %v1613_v37  ;;  %v234_v15 = vld [vmem:[#allocation5 + $0x490] sm:$0xff]  ;;  %v247_v37 = vld [vmem:[#allocation5 + $0x4f8] sm:$0xff] }
 0x141   :  { %9599 = vmatprep.subr.bf16.mxu0 %v14892_v50  ;;  %9763 = vmatprep.subr.bf16.mxu1 %v14894_v55  ;;  %v13528_v50 = vcombine.high %v90_v43, %v102_v44  ;;  %v13530_v55 = vcombine.high %v91_v45, %v103_v47  ;;  %v246_v35 = vld [vmem:[#allocation5 + $0x4f0] sm:$0xff] }
 0x144   :  { %9600 = vmatpush1.bf16.msra.mxu0 %v14891_v58  ;;  %9764 = vmatpush1.bf16.msra.mxu1 %v14893_v59  ;;  %v16186_v58 = vcombine.low %v16170_v38, %v16170_v38  ;;  %v13527_v59 = vcombine.low %v90_v43, %v102_v44  ;;  %v13553_v38 = vcombine.low %v115_v54, %v127_v56  ;;  %v258_v44 = vld [vmem:[#allocation5 + $0x550] sm:$0xff]  ;;  %v295_v56 = vld [vmem:[#allocation5 + $0x678] sm:$0xff] }
 0x145   :  { %9601 = vmatprep.subr.bf16.mxu0 %v14916_v60  ;;  %9765 = vmatprep.subr.bf16.mxu1 %v14918_v0  ;;  %v13529_v60 = vcombine.low %v91_v45, %v103_v47  ;;  %v150_v0 = vld [vmem:[#allocation5 + $0x1f0] sm:$0xff]  ;;  %v271_v47 = vld [vmem:[#allocation5 + $0x5b8] sm:$0xff] }
 0x146   :  { %v270_v45 = vld [vmem:[#allocation5 + $0x5b0] sm:$0xff] }
 0x147   :  { %v294_v54 = vld [vmem:[#allocation5 + $0x670] sm:$0xff] }
 0x148   :  { %9602 = vmatpush1.bf16.msra.mxu0 %v14915_v2  ;;  %9766 = vmatpush1.bf16.msra.mxu1 %v14917_v3  ;;  %v151_v2 = vld [vmem:[#allocation5 + $0x1f8] sm:$0xff]  ;;  %v13551_v3 = vcombine.low %v114_v51, %v126_v52  ;;  %v282_v52 = vld [vmem:[#allocation5 + $0x610] sm:$0xff] }
 0x149   :  { %9603 = vmatprep.subr.bf16.mxu0 %v14940_v4  ;;  %9767 = vmatprep.subr.bf16.mxu1 %v14942_v8  ;;  %v13576_v4 = vcombine.high %v138_v63, %v150_v0  ;;  %v13578_v5 = vcombine.high %v139_v1, %v151_v2  ;;  %v163_v8 = vld [vmem:[#allocation5 + $0x258] sm:$0xff] }
 0x14a   :  { %v13602_v14 = vcombine.high %v163_v8, %v175_v9 }
 0x14c   :  { %9604 = vmatpush1.bf16.msra.mxu0 %v14939_v10  ;;  %9768 = vmatpush1.bf16.msra.mxu1 %v14941_v11  ;;  %v13575_v10 = vcombine.low %v138_v63, %v150_v0  ;;  %v13577_v11 = vcombine.low %v139_v1, %v151_v2  ;;  %v306_v63 = vld [vmem:[#allocation5 + $0x6d0] sm:$0xff]  ;;  %v307_v1 = vld [vmem:[#allocation5 + $0x6d8] sm:$0xff] }
 0x14d   :  { %9605 = vmatprep.subr.bf16.mxu0 %v14964_v13  ;;  %9769 = vmatprep.subr.bf16.mxu1 %v14966_v18  ;;  %v13600_v13 = vcombine.high %v162_v6, %v174_v7  ;;  %v187_v18 = vld [vmem:[#allocation5 + $0x318] sm:$0xff]  ;;  %v318_v0 = vld [vmem:[#allocation5 + $0x730] sm:$0xff] }
 0x14e   :  { %v13626_v23 = vcombine.high %v187_v18, %v199_v19  ;;  %v319_v2 = vld [vmem:[#allocation5 + $0x738] sm:$0xff] }
 0x150   :  { %9606 = vmatpush1.bf16.msra.mxu0 %v14963_v20  ;;  %9770 = vmatpush1.bf16.msra.mxu1 %v14965_v21  ;;  %v13599_v20 = vcombine.low %v162_v6, %v174_v7  ;;  %v13601_v21 = vcombine.low %v163_v8, %v175_v9  ;;  %v330_v6 = vld [vmem:[#allocation5 + $0x790] sm:$0xff]  ;;  %v331_v8 = vld [vmem:[#allocation5 + $0x798] sm:$0xff] }
 0x151   :  { %9607 = vmatprep.subr.bf16.mxu0 %v14988_v22  ;;  %9771 = vmatprep.subr.bf16.mxu1 %v14990_v28  ;;  %v13624_v22 = vcombine.high %v186_v16, %v198_v17  ;;  %v211_v28 = vld [vmem:[#allocation5 + $0x3d8] sm:$0xff]  ;;  %v342_v7 = vld [vmem:[#allocation5 + $0x7f0] sm:$0xff] }
 0x152   :  { %v13650_v33 = vcombine.high %v211_v28, %v223_v29  ;;  %v343_v9 = vld [vmem:[#allocation5 + $0x7f8] sm:$0xff] }
 0x154   :  { %9608 = vmatpush1.bf16.msra.mxu0 %v14987_v30  ;;  %9772 = vmatpush1.bf16.msra.mxu1 %v14989_v31  ;;  %v13623_v30 = vcombine.low %v186_v16, %v198_v17  ;;  %v13625_v31 = vcombine.low %v187_v18, %v199_v19  ;;  %v354_v16 = vld [vmem:[#allocation5 + $0x850] sm:$0xff]  ;;  %v355_v18 = vld [vmem:[#allocation5 + $0x858] sm:$0xff] }
 0x155   :  { %9609 = vmatprep.subr.bf16.mxu0 %v15012_v32  ;;  %9773 = vmatprep.subr.bf16.mxu1 %v15014_v36  ;;  %v13648_v32 = vcombine.high %v210_v26, %v222_v27  ;;  %v235_v36 = vld [vmem:[#allocation5 + $0x498] sm:$0xff]  ;;  %v366_v17 = vld [vmem:[#allocation5 + $0x8b0] sm:$0xff] }
 0x156   :  { %v13674_v43 = vcombine.high %v235_v36, %v247_v37  ;;  %v367_v19 = vld [vmem:[#allocation5 + $0x8b8] sm:$0xff] }
 0x158   :  { %9610 = vmatpush1.bf16.msra.mxu0 %v15011_v40  ;;  %9774 = vmatpush1.bf16.msra.mxu1 %v15013_v41  ;;  %v13647_v40 = vcombine.low %v210_v26, %v222_v27  ;;  %v13649_v41 = vcombine.low %v211_v28, %v223_v29  ;;  %v378_v26 = vld [vmem:[#allocation5 + $0x910] sm:$0xff]  ;;  %v379_v28 = vld [vmem:[#allocation5 + $0x918] sm:$0xff] }
 0x159   :  { %9611 = vmatprep.subr.bf16.mxu0 %v15036_v42  ;;  %9775 = vmatprep.subr.bf16.mxu1 %v15038_v46  ;;  %v13672_v42 = vcombine.high %v234_v15, %v246_v35  ;;  %v259_v46 = vld [vmem:[#allocation5 + $0x558] sm:$0xff]  ;;  %v390_v27 = vld [vmem:[#allocation5 + $0x970] sm:$0xff] }
 0x15a   :  { %v13698_v51 = vcombine.high %v259_v46, %v271_v47  ;;  %v391_v29 = vld [vmem:[#allocation5 + $0x978] sm:$0xff] }
 0x15c   :  { %9612 = vmatpush1.bf16.msra.mxu0 %v15035_v24  ;;  %9776 = vmatpush1.bf16.msra.mxu1 %v15037_v49  ;;  %v13671_v24 = vcombine.low %v234_v15, %v246_v35  ;;  %v13673_v49 = vcombine.low %v235_v36, %v247_v37  ;;  %v402_v15 = vld [vmem:[#allocation5 + $0x9d0] sm:$0xff]  ;;  %v403_v36 = vld [vmem:[#allocation5 + $0x9d8] sm:$0xff] }
 0x15d   :  { %9786 = vmatprep.subr.bf16.mxu0 %v13528_v50  ;;  %9950 = vmatprep.subr.bf16.mxu1 %v13530_v55  ;;  %v13696_v50 = vcombine.high %v258_v44, %v270_v45  ;;  %v283_v55 = vld [vmem:[#allocation5 + $0x618] sm:$0xff]  ;;  %v414_v35 = vld [vmem:[#allocation5 + $0xa30] sm:$0xff] }
 0x15e   :  { %v415_v37 = vld [vmem:[#allocation5 + $0xa38] sm:$0xff] }
 0x15f   :  { %9614 = vmatmul.mubr.bf16.vlgmr.msra.gmra.mrb[0].mxu0 %v16186_v58  ;;  %9778 = vmatmul.mubr.bf16.vlgmr.msra.gmra.mrb[0].mxu1 %v16186_v58 }
 0x160   :  { %9787 = vmatpush1.bf16.msra.mxu0 %v13527_v59  ;;  %9951 = vmatpush1.bf16.msra.mxu1 %v13529_v60  ;;  %v13695_v59 = vcombine.low %v258_v44, %v270_v45  ;;  %v13697_v60 = vcombine.low %v259_v46, %v271_v47  ;;  %v426_v44 = vld [vmem:[#allocation5 + $0xa90] sm:$0xff]  ;;  %v427_v46 = vld [vmem:[#allocation5 + $0xa98] sm:$0xff] }
 0x161   :  { %9788 = vmatprep.subr.bf16.mxu0 %v13552_v61  ;;  %9952 = vmatprep.subr.bf16.mxu1 %v13554_v62  ;;  %v13720_v61 = vcombine.high %v282_v52, %v294_v54  ;;  %v13722_v62 = vcombine.high %v283_v55, %v295_v56  ;;  %v438_v45 = vld [vmem:[#allocation5 + $0xaf0] sm:$0xff]  ;;  %v439_v47 = vld [vmem:[#allocation5 + $0xaf8] sm:$0xff] }
 0x162   :  { %9818 = vmatprep.mubr.bf16.mxu0 %v16138_v57  ;;  %9982 = vmatprep.mubr.bf16.mxu1 %v16138_v57 }
 0x164   :  { %9789 = vmatpush1.bf16.msra.mxu0 %v13551_v3  ;;  %9953 = vmatpush1.bf16.msra.mxu1 %v13553_v38  ;;  %v13719_v3 = vcombine.low %v282_v52, %v294_v54  ;;  %v13721_v38 = vcombine.low %v283_v55, %v295_v56  ;;  %v450_v52 = vld [vmem:[#allocation5 + $0xb50] sm:$0xff]  ;;  %v451_v55 = vld [vmem:[#allocation5 + $0xb58] sm:$0xff] }
 0x165   :  { %9790 = vmatprep.subr.bf16.mxu0 %v13576_v4  ;;  %9954 = vmatprep.subr.bf16.mxu1 %v13578_v5  ;;  %v13744_v4 = vcombine.high %v306_v63, %v318_v0  ;;  %v13746_v5 = vcombine.high %v307_v1, %v319_v2  ;;  %v462_v54 = vld [vmem:[#allocation5 + $0xbb0] sm:$0xff]  ;;  %v463_v56 = vld [vmem:[#allocation5 + $0xbb8] sm:$0xff] }
 0x168   :  { %9791 = vmatpush1.bf16.msra.mxu0 %v13575_v10  ;;  %9955 = vmatpush1.bf16.msra.mxu1 %v13577_v11  ;;  %v13743_v10 = vcombine.low %v306_v63, %v318_v0  ;;  %v13745_v11 = vcombine.low %v307_v1, %v319_v2  ;;  %v474_v63 = vld [vmem:[#allocation5 + $0xc10] sm:$0xff]  ;;  %v475_v1 = vld [vmem:[#allocation5 + $0xc18] sm:$0xff] }
 0x169   :  { %9792 = vmatprep.subr.bf16.mxu0 %v13600_v13  ;;  %9956 = vmatprep.subr.bf16.mxu1 %v13602_v14  ;;  %v13768_v13 = vcombine.high %v330_v6, %v342_v7  ;;  %v13770_v14 = vcombine.high %v331_v8, %v343_v9  ;;  %v486_v0 = vld [vmem:[#allocation5 + $0xc70] sm:$0xff]  ;;  %v487_v2 = vld [vmem:[#allocation5 + $0xc78] sm:$0xff] }
 0x16c   :  { %9793 = vmatpush1.bf16.msra.mxu0 %v13599_v20  ;;  %9957 = vmatpush1.bf16.msra.mxu1 %v13601_v21  ;;  %v13767_v20 = vcombine.low %v330_v6, %v342_v7  ;;  %v13769_v21 = vcombine.low %v331_v8, %v343_v9  ;;  %v498_v6 = vld [vmem:[#allocation5 + $0xcd0] sm:$0xff]  ;;  %v499_v8 = vld [vmem:[#allocation5 + $0xcd8] sm:$0xff] }
 0x16d   :  { %9794 = vmatprep.subr.bf16.mxu0 %v13624_v22  ;;  %9958 = vmatprep.subr.bf16.mxu1 %v13626_v23  ;;  %v13792_v22 = vcombine.high %v354_v16, %v366_v17  ;;  %v13794_v23 = vcombine.high %v355_v18, %v367_v19  ;;  %v510_v7 = vld [vmem:[#allocation5 + $0xd30] sm:$0xff]  ;;  %v511_v9 = vld [vmem:[#allocation5 + $0xd38] sm:$0xff] }
 0x170   :  { %9795 = vmatpush1.bf16.msra.mxu0 %v13623_v30  ;;  %9959 = vmatpush1.bf16.msra.mxu1 %v13625_v31  ;;  %v13791_v30 = vcombine.low %v354_v16, %v366_v17  ;;  %v13793_v31 = vcombine.low %v355_v18, %v367_v19  ;;  %v522_v16 = vld [vmem:[#allocation5 + $0xd90] sm:$0xff]  ;;  %v523_v18 = vld [vmem:[#allocation5 + $0xd98] sm:$0xff] }
 0x171   :  { %9796 = vmatprep.subr.bf16.mxu0 %v13648_v32  ;;  %9960 = vmatprep.subr.bf16.mxu1 %v13650_v33  ;;  %v13816_v32 = vcombine.high %v378_v26, %v390_v27  ;;  %v13818_v33 = vcombine.high %v379_v28, %v391_v29  ;;  %v534_v17 = vld [vmem:[#allocation5 + $0xdf0] sm:$0xff]  ;;  %v535_v19 = vld [vmem:[#allocation5 + $0xdf8] sm:$0xff] }
 0x174   :  { %9797 = vmatpush1.bf16.msra.mxu0 %v13647_v40  ;;  %9961 = vmatpush1.bf16.msra.mxu1 %v13649_v41  ;;  %v13815_v40 = vcombine.low %v378_v26, %v390_v27  ;;  %v13817_v41 = vcombine.low %v379_v28, %v391_v29  ;;  %v546_v26 = vld [vmem:[#allocation5 + $0xe50] sm:$0xff]  ;;  %v547_v28 = vld [vmem:[#allocation5 + $0xe58] sm:$0xff] }
 0x175   :  { %9798 = vmatprep.subr.bf16.mxu0 %v13672_v42  ;;  %9962 = vmatprep.subr.bf16.mxu1 %v13674_v43  ;;  %v13840_v42 = vcombine.high %v402_v15, %v414_v35  ;;  %v13842_v43 = vcombine.high %v403_v36, %v415_v37  ;;  %v558_v27 = vld [vmem:[#allocation5 + $0xeb0] sm:$0xff]  ;;  %v559_v29 = vld [vmem:[#allocation5 + $0xeb8] sm:$0xff] }
 0x178   :  { %9799 = vmatpush1.bf16.msra.mxu0 %v13671_v24  ;;  %9963 = vmatpush1.bf16.msra.mxu1 %v13673_v49  ;;  %v13839_v24 = vcombine.low %v402_v15, %v414_v35  ;;  %v13841_v49 = vcombine.low %v403_v36, %v415_v37  ;;  %v570_v15 = vld [vmem:[#allocation5 + $0xf10] sm:$0xff]  ;;  %v571_v36 = vld [vmem:[#allocation5 + $0xf18] sm:$0xff] }
 0x179   :  { %9800 = vmatprep.subr.bf16.mxu0 %v13696_v50  ;;  %9964 = vmatprep.subr.bf16.mxu1 %v13698_v51  ;;  %v13864_v50 = vcombine.high %v426_v44, %v438_v45  ;;  %v13866_v51 = vcombine.high %v427_v46, %v439_v47  ;;  %v582_v35 = vld [vmem:[#allocation5 + $0xf70] sm:$0xff]  ;;  %v583_v37 = vld [vmem:[#allocation5 + $0xf78] sm:$0xff] }
 0x17c   :  { %9801 = vmatpush1.bf16.msra.mxu0 %v13695_v59  ;;  %9965 = vmatpush1.bf16.msra.mxu1 %v13697_v60  ;;  %v13863_v59 = vcombine.low %v426_v44, %v438_v45  ;;  %v13865_v60 = vcombine.low %v427_v46, %v439_v47  ;;  %v594_v44 = vld [vmem:[#allocation5 + $0xfd0] sm:$0xff]  ;;  %v595_v46 = vld [vmem:[#allocation5 + $0xfd8] sm:$0xff] }
 0x17d   :  { %9802 = vmatprep.subr.bf16.mxu0 %v13720_v61  ;;  %9966 = vmatprep.subr.bf16.mxu1 %v13722_v62  ;;  %v13888_v61 = vcombine.high %v450_v52, %v462_v54  ;;  %v13890_v62 = vcombine.high %v451_v55, %v463_v56  ;;  %v606_v45 = vld [vmem:[#allocation5 + $0x1030] sm:$0xff]  ;;  %v607_v47 = vld [vmem:[#allocation5 + $0x1038] sm:$0xff] }
 0x180   :  { %9803 = vmatpush1.bf16.msra.mxu0 %v13719_v3  ;;  %9967 = vmatpush1.bf16.msra.mxu1 %v13721_v38  ;;  %v13887_v3 = vcombine.low %v450_v52, %v462_v54  ;;  %v13889_v38 = vcombine.low %v451_v55, %v463_v56  ;;  %v618_v52 = vld [vmem:[#allocation5 + $0x1090] sm:$0xff]  ;;  %v619_v55 = vld [vmem:[#allocation5 + $0x1098] sm:$0xff] }
 0x181   :  { %9804 = vmatprep.subr.bf16.mxu0 %v13744_v4  ;;  %9968 = vmatprep.subr.bf16.mxu1 %v13746_v5  ;;  %v13912_v4 = vcombine.high %v474_v63, %v486_v0  ;;  %v13914_v5 = vcombine.high %v475_v1, %v487_v2  ;;  %v630_v54 = vld [vmem:[#allocation5 + $0x10f0] sm:$0xff]  ;;  %v631_v56 = vld [vmem:[#allocation5 + $0x10f8] sm:$0xff] }
 0x184   :  { %9805 = vmatpush1.bf16.msra.mxu0 %v13743_v10  ;;  %9969 = vmatpush1.bf16.msra.mxu1 %v13745_v11  ;;  %v13911_v10 = vcombine.low %v474_v63, %v486_v0  ;;  %v13913_v11 = vcombine.low %v475_v1, %v487_v2  ;;  %v642_v63 = vld [vmem:[#allocation5 + $0x1150] sm:$0xff]  ;;  %v643_v1 = vld [vmem:[#allocation5 + $0x1158] sm:$0xff] }
 0x185   :  { %9806 = vmatprep.subr.bf16.mxu0 %v13768_v13  ;;  %9970 = vmatprep.subr.bf16.mxu1 %v13770_v14  ;;  %v13936_v13 = vcombine.high %v498_v6, %v510_v7  ;;  %v13938_v14 = vcombine.high %v499_v8, %v511_v9  ;;  %v654_v0 = vld [vmem:[#allocation5 + $0x11b0] sm:$0xff]  ;;  %v655_v2 = vld [vmem:[#allocation5 + $0x11b8] sm:$0xff] }
 0x188   :  { %9807 = vmatpush1.bf16.msra.mxu0 %v13767_v20  ;;  %9971 = vmatpush1.bf16.msra.mxu1 %v13769_v21  ;;  %v13935_v20 = vcombine.low %v498_v6, %v510_v7  ;;  %v13937_v21 = vcombine.low %v499_v8, %v511_v9  ;;  %v666_v6 = vld [vmem:[#allocation5 + $0x1210] sm:$0xff]  ;;  %v667_v8 = vld [vmem:[#allocation5 + $0x1218] sm:$0xff] }
 0x189   :  { %9808 = vmatprep.subr.bf16.mxu0 %v13792_v22  ;;  %9972 = vmatprep.subr.bf16.mxu1 %v13794_v23  ;;  %v13960_v22 = vcombine.high %v522_v16, %v534_v17  ;;  %v13962_v23 = vcombine.high %v523_v18, %v535_v19  ;;  %v678_v7 = vld [vmem:[#allocation5 + $0x1270] sm:$0xff]  ;;  %v679_v9 = vld [vmem:[#allocation5 + $0x1278] sm:$0xff] }
 0x18c   :  { %9809 = vmatpush1.bf16.msra.mxu0 %v13791_v30  ;;  %9973 = vmatpush1.bf16.msra.mxu1 %v13793_v31  ;;  %v13959_v30 = vcombine.low %v522_v16, %v534_v17  ;;  %v13961_v31 = vcombine.low %v523_v18, %v535_v19  ;;  %v690_v16 = vld [vmem:[#allocation5 + $0x12d0] sm:$0xff]  ;;  %v691_v18 = vld [vmem:[#allocation5 + $0x12d8] sm:$0xff] }
 0x18d   :  { %9810 = vmatprep.subr.bf16.mxu0 %v13816_v32  ;;  %9974 = vmatprep.subr.bf16.mxu1 %v13818_v33  ;;  %v13984_v32 = vcombine.high %v546_v26, %v558_v27  ;;  %v13986_v33 = vcombine.high %v547_v28, %v559_v29  ;;  %v702_v17 = vld [vmem:[#allocation5 + $0x1330] sm:$0xff]  ;;  %v703_v19 = vld [vmem:[#allocation5 + $0x1338] sm:$0xff] }
 0x190   :  { %9811 = vmatpush1.bf16.msra.mxu0 %v13815_v40  ;;  %9975 = vmatpush1.bf16.msra.mxu1 %v13817_v41  ;;  %v13983_v40 = vcombine.low %v546_v26, %v558_v27  ;;  %v13985_v41 = vcombine.low %v547_v28, %v559_v29  ;;  %v714_v26 = vld [vmem:[#allocation5 + $0x1390] sm:$0xff]  ;;  %v715_v28 = vld [vmem:[#allocation5 + $0x1398] sm:$0xff] }
 0x191   :  { %9812 = vmatprep.subr.bf16.mxu0 %v13840_v42  ;;  %9976 = vmatprep.subr.bf16.mxu1 %v13842_v43  ;;  %v14008_v42 = vcombine.high %v570_v15, %v582_v35  ;;  %v14010_v43 = vcombine.high %v571_v36, %v583_v37  ;;  %v726_v27 = vld [vmem:[#allocation5 + $0x13f0] sm:$0xff]  ;;  %v727_v29 = vld [vmem:[#allocation5 + $0x13f8] sm:$0xff] }
 0x194   :  { %9813 = vmatpush1.bf16.msra.mxu0 %v13839_v24  ;;  %9977 = vmatpush1.bf16.msra.mxu1 %v13841_v49  ;;  %v14007_v24 = vcombine.low %v570_v15, %v582_v35  ;;  %v14009_v49 = vcombine.low %v571_v36, %v583_v37  ;;  %v738_v15 = vld [vmem:[#allocation5 + $0x1450] sm:$0xff]  ;;  %v739_v36 = vld [vmem:[#allocation5 + $0x1458] sm:$0xff] }
 0x195   :  { %9814 = vmatprep.subr.bf16.mxu0 %v13864_v50  ;;  %9978 = vmatprep.subr.bf16.mxu1 %v13866_v51  ;;  %v14032_v50 = vcombine.high %v594_v44, %v606_v45  ;;  %v14034_v51 = vcombine.high %v595_v46, %v607_v47  ;;  %v750_v35 = vld [vmem:[#allocation5 + $0x14b0] sm:$0xff]  ;;  %v751_v37 = vld [vmem:[#allocation5 + $0x14b8] sm:$0xff] }
 0x198   :  { %9815 = vmatpush1.bf16.msra.mxu0 %v13863_v59  ;;  %9979 = vmatpush1.bf16.msra.mxu1 %v13865_v60  ;;  %v14031_v59 = vcombine.low %v594_v44, %v606_v45  ;;  %v14033_v60 = vcombine.low %v595_v46, %v607_v47  ;;  %v762_v44 = vld [vmem:[#allocation5 + $0x1510] sm:$0xff]  ;;  %v763_v46 = vld [vmem:[#allocation5 + $0x1518] sm:$0xff] }
 0x199   :  { %9816 = vmatprep.subr.bf16.mxu0 %v13888_v61  ;;  %9980 = vmatprep.subr.bf16.mxu1 %v13890_v62  ;;  %v14056_v61 = vcombine.high %v618_v52, %v630_v54  ;;  %v14058_v62 = vcombine.high %v619_v55, %v631_v56  ;;  %v774_v45 = vld [vmem:[#allocation5 + $0x1570] sm:$0xff]  ;;  %v775_v47 = vld [vmem:[#allocation5 + $0x1578] sm:$0xff] }
 0x19c   :  { %9817 = vmatpush1.bf16.msra.mxu0 %v13887_v3  ;;  %9981 = vmatpush1.bf16.msra.mxu1 %v13889_v38  ;;  %v14055_v3 = vcombine.low %v618_v52, %v630_v54  ;;  %v14057_v38 = vcombine.low %v619_v55, %v631_v56  ;;  %v786_v52 = vld [vmem:[#allocation5 + $0x15d0] sm:$0xff]  ;;  %v787_v55 = vld [vmem:[#allocation5 + $0x15d8] sm:$0xff] }
 0x19d   :  { %9827 = vmatprep.subr.bf16.mxu0 %v13912_v4  ;;  %9991 = vmatprep.subr.bf16.mxu1 %v13914_v5  ;;  %v14080_v4 = vcombine.high %v642_v63, %v654_v0  ;;  %v14082_v5 = vcombine.high %v643_v1, %v655_v2  ;;  %v798_v54 = vld [vmem:[#allocation5 + $0x1630] sm:$0xff]  ;;  %v799_v56 = vld [vmem:[#allocation5 + $0x1638] sm:$0xff] }
 0x19f   :  { %9819 = vmatmul.mubr.bf16.vlgmr.msra.gmra.mrb[4].mxu0 %v16144_v12  ;;  %9983 = vmatmul.mubr.bf16.vlgmr.msra.gmra.mrb[4].mxu1 %v16144_v12 }
 0x1a0   :  { %9828 = vmatpush1.bf16.msra.mxu0 %v13911_v10  ;;  %9992 = vmatpush1.bf16.msra.mxu1 %v13913_v11  ;;  %v14079_v10 = vcombine.low %v642_v63, %v654_v0  ;;  %v14081_v11 = vcombine.low %v643_v1, %v655_v2  ;;  %v810_v63 = vld [vmem:[#allocation5 + $0x1690] sm:$0xff]  ;;  %v811_v1 = vld [vmem:[#allocation5 + $0x1698] sm:$0xff] }
 0x1a1   :  { %9829 = vmatprep.subr.bf16.mxu0 %v13936_v13  ;;  %9993 = vmatprep.subr.bf16.mxu1 %v13938_v14  ;;  %v14104_v13 = vcombine.high %v666_v6, %v678_v7  ;;  %v14106_v14 = vcombine.high %v667_v8, %v679_v9  ;;  %v822_v0 = vld [vmem:[#allocation5 + $0x16f0] sm:$0xff]  ;;  %v823_v2 = vld [vmem:[#allocation5 + $0x16f8] sm:$0xff] }
 0x1a2   :  { %9859 = vmatprep.mubr.bf16.mxu0 %v16150_v53  ;;  %10023 = vmatprep.mubr.bf16.mxu1 %v16150_v53 }
 0x1a4   :  { %9830 = vmatpush1.bf16.msra.mxu0 %v13935_v20  ;;  %9994 = vmatpush1.bf16.msra.mxu1 %v13937_v21  ;;  %v14103_v20 = vcombine.low %v666_v6, %v678_v7  ;;  %v14105_v21 = vcombine.low %v667_v8, %v679_v9  ;;  %v834_v6 = vld [vmem:[#allocation5 + $0x1750] sm:$0xff]  ;;  %v835_v8 = vld [vmem:[#allocation5 + $0x1758] sm:$0xff] }
 0x1a5   :  { %9831 = vmatprep.subr.bf16.mxu0 %v13960_v22  ;;  %9995 = vmatprep.subr.bf16.mxu1 %v13962_v23  ;;  %v14128_v22 = vcombine.high %v690_v16, %v702_v17  ;;  %v14130_v23 = vcombine.high %v691_v18, %v703_v19  ;;  %v846_v7 = vld [vmem:[#allocation5 + $0x17b0] sm:$0xff]  ;;  %v847_v9 = vld [vmem:[#allocation5 + $0x17b8] sm:$0xff] }
 0x1a8   :  { %9832 = vmatpush1.bf16.msra.mxu0 %v13959_v30  ;;  %9996 = vmatpush1.bf16.msra.mxu1 %v13961_v31  ;;  %v14127_v30 = vcombine.low %v690_v16, %v702_v17  ;;  %v14129_v31 = vcombine.low %v691_v18, %v703_v19  ;;  %v858_v16 = vld [vmem:[#allocation5 + $0x1810] sm:$0xff]  ;;  %v859_v18 = vld [vmem:[#allocation5 + $0x1818] sm:$0xff] }
 0x1a9   :  { %9833 = vmatprep.subr.bf16.mxu0 %v13984_v32  ;;  %9997 = vmatprep.subr.bf16.mxu1 %v13986_v33  ;;  %v14152_v32 = vcombine.high %v714_v26, %v726_v27  ;;  %v14154_v33 = vcombine.high %v715_v28, %v727_v29  ;;  %v870_v17 = vld [vmem:[#allocation5 + $0x1870] sm:$0xff]  ;;  %v871_v19 = vld [vmem:[#allocation5 + $0x1878] sm:$0xff] }
 0x1ac   :  { %9834 = vmatpush1.bf16.msra.mxu0 %v13983_v40  ;;  %9998 = vmatpush1.bf16.msra.mxu1 %v13985_v41  ;;  %v14151_v40 = vcombine.low %v714_v26, %v726_v27  ;;  %v14153_v41 = vcombine.low %v715_v28, %v727_v29  ;;  %v882_v26 = vld [vmem:[#allocation5 + $0x18d0] sm:$0xff]  ;;  %v883_v28 = vld [vmem:[#allocation5 + $0x18d8] sm:$0xff] }
 0x1ad   :  { %9835 = vmatprep.subr.bf16.mxu0 %v14008_v42  ;;  %9999 = vmatprep.subr.bf16.mxu1 %v14010_v43  ;;  %v14176_v42 = vcombine.high %v738_v15, %v750_v35  ;;  %v14178_v43 = vcombine.high %v739_v36, %v751_v37  ;;  %v894_v27 = vld [vmem:[#allocation5 + $0x1930] sm:$0xff]  ;;  %v895_v29 = vld [vmem:[#allocation5 + $0x1938] sm:$0xff] }
 0x1b0   :  { %9836 = vmatpush1.bf16.msra.mxu0 %v14007_v24  ;;  %10000 = vmatpush1.bf16.msra.mxu1 %v14009_v49  ;;  %v14175_v24 = vcombine.low %v738_v15, %v750_v35  ;;  %v14177_v49 = vcombine.low %v739_v36, %v751_v37  ;;  %v906_v15 = vld [vmem:[#allocation5 + $0x1990] sm:$0xff]  ;;  %v907_v36 = vld [vmem:[#allocation5 + $0x1998] sm:$0xff] }
 0x1b1   :  { %9837 = vmatprep.subr.bf16.mxu0 %v14032_v50  ;;  %10001 = vmatprep.subr.bf16.mxu1 %v14034_v51  ;;  %v14200_v50 = vcombine.high %v762_v44, %v774_v45  ;;  %v14202_v51 = vcombine.high %v763_v46, %v775_v47  ;;  %v918_v35 = vld [vmem:[#allocation5 + $0x19f0] sm:$0xff]  ;;  %v919_v37 = vld [vmem:[#allocation5 + $0x19f8] sm:$0xff] }
 0x1b4   :  { %9838 = vmatpush1.bf16.msra.mxu0 %v14031_v59  ;;  %10002 = vmatpush1.bf16.msra.mxu1 %v14033_v60  ;;  %v14199_v59 = vcombine.low %v762_v44, %v774_v45  ;;  %v14201_v60 = vcombine.low %v763_v46, %v775_v47  ;;  %v930_v44 = vld [vmem:[#allocation5 + $0x1a50] sm:$0xff]  ;;  %v931_v46 = vld [vmem:[#allocation5 + $0x1a58] sm:$0xff] }
 0x1b5   :  { %9839 = vmatprep.subr.bf16.mxu0 %v14056_v61  ;;  %10003 = vmatprep.subr.bf16.mxu1 %v14058_v62  ;;  %v14224_v61 = vcombine.high %v786_v52, %v798_v54  ;;  %v14226_v62 = vcombine.high %v787_v55, %v799_v56  ;;  %v942_v45 = vld [vmem:[#allocation5 + $0x1ab0] sm:$0xff]  ;;  %v943_v47 = vld [vmem:[#allocation5 + $0x1ab8] sm:$0xff] }
 0x1b8   :  { %9840 = vmatpush1.bf16.msra.mxu0 %v14055_v3  ;;  %10004 = vmatpush1.bf16.msra.mxu1 %v14057_v38  ;;  %v14223_v3 = vcombine.low %v786_v52, %v798_v54  ;;  %v14225_v38 = vcombine.low %v787_v55, %v799_v56  ;;  %v954_v52 = vld [vmem:[#allocation5 + $0x1b10] sm:$0xff]  ;;  %v955_v55 = vld [vmem:[#allocation5 + $0x1b18] sm:$0xff] }
 0x1b9   :  { %9841 = vmatprep.subr.bf16.mxu0 %v14080_v4  ;;  %10005 = vmatprep.subr.bf16.mxu1 %v14082_v5  ;;  %v14248_v4 = vcombine.high %v810_v63, %v822_v0  ;;  %v14250_v5 = vcombine.high %v811_v1, %v823_v2  ;;  %v966_v54 = vld [vmem:[#allocation5 + $0x1b70] sm:$0xff]  ;;  %v967_v56 = vld [vmem:[#allocation5 + $0x1b78] sm:$0xff] }
 0x1bc   :  { %9842 = vmatpush1.bf16.msra.mxu0 %v14079_v10  ;;  %10006 = vmatpush1.bf16.msra.mxu1 %v14081_v11  ;;  %v14247_v10 = vcombine.low %v810_v63, %v822_v0  ;;  %v14249_v11 = vcombine.low %v811_v1, %v823_v2  ;;  %v978_v63 = vld [vmem:[#allocation5 + $0x1bd0] sm:$0xff]  ;;  %v979_v1 = vld [vmem:[#allocation5 + $0x1bd8] sm:$0xff] }
 0x1bd   :  { %9843 = vmatprep.subr.bf16.mxu0 %v14104_v13  ;;  %10007 = vmatprep.subr.bf16.mxu1 %v14106_v14  ;;  %v14272_v13 = vcombine.high %v834_v6, %v846_v7  ;;  %v14274_v14 = vcombine.high %v835_v8, %v847_v9  ;;  %v990_v0 = vld [vmem:[#allocation5 + $0x1c30] sm:$0xff]  ;;  %v991_v2 = vld [vmem:[#allocation5 + $0x1c38] sm:$0xff] }
 0x1c0   :  { %9844 = vmatpush1.bf16.msra.mxu0 %v14103_v20  ;;  %10008 = vmatpush1.bf16.msra.mxu1 %v14105_v21  ;;  %v14271_v20 = vcombine.low %v834_v6, %v846_v7  ;;  %v14273_v21 = vcombine.low %v835_v8, %v847_v9  ;;  %v1002_v6 = vld [vmem:[#allocation5 + $0x1c90] sm:$0xff]  ;;  %v1003_v8 = vld [vmem:[#allocation5 + $0x1c98] sm:$0xff] }
 0x1c1   :  { %9845 = vmatprep.subr.bf16.mxu0 %v14128_v22  ;;  %10009 = vmatprep.subr.bf16.mxu1 %v14130_v23  ;;  %v14296_v22 = vcombine.high %v858_v16, %v870_v17  ;;  %v14298_v23 = vcombine.high %v859_v18, %v871_v19  ;;  %v1014_v7 = vld [vmem:[#allocation5 + $0x1cf0] sm:$0xff]  ;;  %v1015_v9 = vld [vmem:[#allocation5 + $0x1cf8] sm:$0xff] }
 0x1c4   :  { %9846 = vmatpush1.bf16.msra.mxu0 %v14127_v30  ;;  %10010 = vmatpush1.bf16.msra.mxu1 %v14129_v31  ;;  %v14295_v30 = vcombine.low %v858_v16, %v870_v17  ;;  %v14297_v31 = vcombine.low %v859_v18, %v871_v19  ;;  %v1026_v16 = vld [vmem:[#allocation5 + $0x1d50] sm:$0xff]  ;;  %v1027_v18 = vld [vmem:[#allocation5 + $0x1d58] sm:$0xff] }
 0x1c5   :  { %9847 = vmatprep.subr.bf16.mxu0 %v14152_v32  ;;  %10011 = vmatprep.subr.bf16.mxu1 %v14154_v33  ;;  %v14320_v32 = vcombine.high %v882_v26, %v894_v27  ;;  %v14322_v33 = vcombine.high %v883_v28, %v895_v29  ;;  %v1038_v17 = vld [vmem:[#allocation5 + $0x1db0] sm:$0xff]  ;;  %v1039_v19 = vld [vmem:[#allocation5 + $0x1db8] sm:$0xff] }
 0x1c8   :  { %9848 = vmatpush1.bf16.msra.mxu0 %v14151_v40  ;;  %10012 = vmatpush1.bf16.msra.mxu1 %v14153_v41  ;;  %v14319_v40 = vcombine.low %v882_v26, %v894_v27  ;;  %v14321_v41 = vcombine.low %v883_v28, %v895_v29  ;;  %v1050_v26 = vld [vmem:[#allocation5 + $0x1e10] sm:$0xff]  ;;  %v1051_v28 = vld [vmem:[#allocation5 + $0x1e18] sm:$0xff] }
 0x1c9   :  { %9849 = vmatprep.subr.bf16.mxu0 %v14176_v42  ;;  %10013 = vmatprep.subr.bf16.mxu1 %v14178_v43  ;;  %v14344_v42 = vcombine.high %v906_v15, %v918_v35  ;;  %v14346_v43 = vcombine.high %v907_v36, %v919_v37  ;;  %v1062_v27 = vld [vmem:[#allocation5 + $0x1e70] sm:$0xff]  ;;  %v1063_v29 = vld [vmem:[#allocation5 + $0x1e78] sm:$0xff] }
 0x1cc   :  { %9850 = vmatpush1.bf16.msra.mxu0 %v14175_v24  ;;  %10014 = vmatpush1.bf16.msra.mxu1 %v14177_v49  ;;  %v14343_v24 = vcombine.low %v906_v15, %v918_v35  ;;  %v14345_v49 = vcombine.low %v907_v36, %v919_v37  ;;  %v1074_v15 = vld [vmem:[#allocation5 + $0x1ed0] sm:$0xff]  ;;  %v1075_v36 = vld [vmem:[#allocation5 + $0x1ed8] sm:$0xff] }
 0x1cd   :  { %9851 = vmatprep.subr.bf16.mxu0 %v14200_v50  ;;  %10015 = vmatprep.subr.bf16.mxu1 %v14202_v51  ;;  %v14368_v50 = vcombine.high %v930_v44, %v942_v45  ;;  %v14370_v51 = vcombine.high %v931_v46, %v943_v47  ;;  %v1086_v35 = vld [vmem:[#allocation5 + $0x1f30] sm:$0xff]  ;;  %v1087_v37 = vld [vmem:[#allocation5 + $0x1f38] sm:$0xff] }
 0x1d0   :  { %9852 = vmatpush1.bf16.msra.mxu0 %v14199_v59  ;;  %10016 = vmatpush1.bf16.msra.mxu1 %v14201_v60  ;;  %v14367_v59 = vcombine.low %v930_v44, %v942_v45  ;;  %v14369_v60 = vcombine.low %v931_v46, %v943_v47  ;;  %v1098_v44 = vld [vmem:[#allocation5 + $0x1f90] sm:$0xff]  ;;  %v1099_v46 = vld [vmem:[#allocation5 + $0x1f98] sm:$0xff] }
 0x1d1   :  { %9853 = vmatprep.subr.bf16.mxu0 %v14224_v61  ;;  %10017 = vmatprep.subr.bf16.mxu1 %v14226_v62  ;;  %v14392_v61 = vcombine.high %v954_v52, %v966_v54  ;;  %v14394_v62 = vcombine.high %v955_v55, %v967_v56  ;;  %v1110_v45 = vld [vmem:[#allocation5 + $0x1ff0] sm:$0xff]  ;;  %v1111_v47 = vld [vmem:[#allocation5 + $0x1ff8] sm:$0xff] }
 0x1d4   :  { %9854 = vmatpush1.bf16.msra.mxu0 %v14223_v3  ;;  %10018 = vmatpush1.bf16.msra.mxu1 %v14225_v38  ;;  %v14391_v3 = vcombine.low %v954_v52, %v966_v54  ;;  %v14393_v38 = vcombine.low %v955_v55, %v967_v56  ;;  %v1122_v52 = vld [vmem:[#allocation5 + $0x2050] sm:$0xff]  ;;  %v1123_v55 = vld [vmem:[#allocation5 + $0x2058] sm:$0xff] }
 0x1d5   :  { %9855 = vmatprep.subr.bf16.mxu0 %v14248_v4  ;;  %10019 = vmatprep.subr.bf16.mxu1 %v14250_v5  ;;  %v14416_v4 = vcombine.high %v978_v63, %v990_v0  ;;  %v14418_v5 = vcombine.high %v979_v1, %v991_v2  ;;  %v1134_v54 = vld [vmem:[#allocation5 + $0x20b0] sm:$0xff]  ;;  %v1135_v56 = vld [vmem:[#allocation5 + $0x20b8] sm:$0xff] }
 0x1d8   :  { %9856 = vmatpush1.bf16.msra.mxu0 %v14247_v10  ;;  %10020 = vmatpush1.bf16.msra.mxu1 %v14249_v11  ;;  %v14415_v10 = vcombine.low %v978_v63, %v990_v0  ;;  %v14417_v11 = vcombine.low %v979_v1, %v991_v2  ;;  %v1146_v63 = vld [vmem:[#allocation5 + $0x2110] sm:$0xff]  ;;  %v1147_v1 = vld [vmem:[#allocation5 + $0x2118] sm:$0xff] }
 0x1d9   :  { %9857 = vmatprep.subr.bf16.mxu0 %v14272_v13  ;;  %10021 = vmatprep.subr.bf16.mxu1 %v14274_v14  ;;  %v14440_v13 = vcombine.high %v1002_v6, %v1014_v7  ;;  %v14442_v14 = vcombine.high %v1003_v8, %v1015_v9  ;;  %v1158_v0 = vld [vmem:[#allocation5 + $0x2170] sm:$0xff]  ;;  %v1159_v2 = vld [vmem:[#allocation5 + $0x2178] sm:$0xff] }
 0x1dc   :  { %9858 = vmatpush1.bf16.msra.mxu0 %v14271_v20  ;;  %10022 = vmatpush1.bf16.msra.mxu1 %v14273_v21  ;;  %v14439_v20 = vcombine.low %v1002_v6, %v1014_v7  ;;  %v14441_v21 = vcombine.low %v1003_v8, %v1015_v9  ;;  %v1170_v6 = vld [vmem:[#allocation5 + $0x21d0] sm:$0xff]  ;;  %v1171_v8 = vld [vmem:[#allocation5 + $0x21d8] sm:$0xff] }
 0x1dd   :  { %9868 = vmatprep.subr.bf16.mxu0 %v14296_v22  ;;  %10032 = vmatprep.subr.bf16.mxu1 %v14298_v23  ;;  %v14464_v22 = vcombine.high %v1026_v16, %v1038_v17  ;;  %v14466_v23 = vcombine.high %v1027_v18, %v1039_v19  ;;  %v1182_v7 = vld [vmem:[#allocation5 + $0x2230] sm:$0xff]  ;;  %v1183_v9 = vld [vmem:[#allocation5 + $0x2238] sm:$0xff] }
 0x1df   :  { %9860 = vmatmul.mubr.bf16.vlgmr.msra.gmra.mrb[4].mxu0 %v16160_v25  ;;  %10024 = vmatmul.mubr.bf16.vlgmr.msra.gmra.mrb[4].mxu1 %v16160_v25 }
 0x1e0   :  { %9869 = vmatpush1.bf16.msra.mxu0 %v14295_v30  ;;  %10033 = vmatpush1.bf16.msra.mxu1 %v14297_v31  ;;  %v14463_v30 = vcombine.low %v1026_v16, %v1038_v17  ;;  %v14465_v31 = vcombine.low %v1027_v18, %v1039_v19  ;;  %v1194_v16 = vld [vmem:[#allocation5 + $0x2290] sm:$0xff]  ;;  %v1195_v18 = vld [vmem:[#allocation5 + $0x2298] sm:$0xff] }
 0x1e1   :  { %9870 = vmatprep.subr.bf16.mxu0 %v14320_v32  ;;  %10034 = vmatprep.subr.bf16.mxu1 %v14322_v33  ;;  %v14488_v32 = vcombine.high %v1050_v26, %v1062_v27  ;;  %v14490_v33 = vcombine.high %v1051_v28, %v1063_v29  ;;  %v1206_v17 = vld [vmem:[#allocation5 + $0x22f0] sm:$0xff]  ;;  %v1207_v19 = vld [vmem:[#allocation5 + $0x22f8] sm:$0xff] }
 0x1e2   :  { %9900 = vmatprep.mubr.bf16.mxu0 %v16164_v34  ;;  %10064 = vmatprep.mubr.bf16.mxu1 %v16164_v34 }
 0x1e4   :  { %9871 = vmatpush1.bf16.msra.mxu0 %v14319_v40  ;;  %10035 = vmatpush1.bf16.msra.mxu1 %v14321_v41  ;;  %v14487_v40 = vcombine.low %v1050_v26, %v1062_v27  ;;  %v14489_v41 = vcombine.low %v1051_v28, %v1063_v29  ;;  %v1218_v26 = vld [vmem:[#allocation5 + $0x2350] sm:$0xff]  ;;  %v1219_v28 = vld [vmem:[#allocation5 + $0x2358] sm:$0xff] }
 0x1e5   :  { %9872 = vmatprep.subr.bf16.mxu0 %v14344_v42  ;;  %10036 = vmatprep.subr.bf16.mxu1 %v14346_v43  ;;  %v14512_v42 = vcombine.high %v1074_v15, %v1086_v35  ;;  %v14514_v43 = vcombine.high %v1075_v36, %v1087_v37  ;;  %v1230_v27 = vld [vmem:[#allocation5 + $0x23b0] sm:$0xff]  ;;  %v1231_v29 = vld [vmem:[#allocation5 + $0x23b8] sm:$0xff] }
 0x1e8   :  { %9873 = vmatpush1.bf16.msra.mxu0 %v14343_v24  ;;  %10037 = vmatpush1.bf16.msra.mxu1 %v14345_v49  ;;  %v14511_v24 = vcombine.low %v1074_v15, %v1086_v35  ;;  %v14513_v49 = vcombine.low %v1075_v36, %v1087_v37  ;;  %v1242_v15 = vld [vmem:[#allocation5 + $0x2410] sm:$0xff]  ;;  %v1243_v36 = vld [vmem:[#allocation5 + $0x2418] sm:$0xff] }
 0x1e9   :  { %9874 = vmatprep.subr.bf16.mxu0 %v14368_v50  ;;  %10038 = vmatprep.subr.bf16.mxu1 %v14370_v51  ;;  %v14536_v50 = vcombine.high %v1098_v44, %v1110_v45  ;;  %v14538_v51 = vcombine.high %v1099_v46, %v1111_v47  ;;  %v1254_v35 = vld [vmem:[#allocation5 + $0x2470] sm:$0xff]  ;;  %v1255_v37 = vld [vmem:[#allocation5 + $0x2478] sm:$0xff] }
 0x1ec   :  { %9875 = vmatpush1.bf16.msra.mxu0 %v14367_v59  ;;  %10039 = vmatpush1.bf16.msra.mxu1 %v14369_v60  ;;  %v14535_v59 = vcombine.low %v1098_v44, %v1110_v45  ;;  %v14537_v60 = vcombine.low %v1099_v46, %v1111_v47  ;;  %v1266_v44 = vld [vmem:[#allocation5 + $0x24d0] sm:$0xff]  ;;  %v1267_v46 = vld [vmem:[#allocation5 + $0x24d8] sm:$0xff] }
 0x1ed   :  { %9876 = vmatprep.subr.bf16.mxu0 %v14392_v61  ;;  %10040 = vmatprep.subr.bf16.mxu1 %v14394_v62  ;;  %v14560_v61 = vcombine.high %v1122_v52, %v1134_v54  ;;  %v14562_v62 = vcombine.high %v1123_v55, %v1135_v56  ;;  %v1278_v45 = vld [vmem:[#allocation5 + $0x2530] sm:$0xff]  ;;  %v1279_v47 = vld [vmem:[#allocation5 + $0x2538] sm:$0xff] }
 0x1f0   :  { %9877 = vmatpush1.bf16.msra.mxu0 %v14391_v3  ;;  %10041 = vmatpush1.bf16.msra.mxu1 %v14393_v38  ;;  %v14559_v3 = vcombine.low %v1122_v52, %v1134_v54  ;;  %v14561_v38 = vcombine.low %v1123_v55, %v1135_v56  ;;  %v1290_v52 = vld [vmem:[#allocation5 + $0x2590] sm:$0xff]  ;;  %v1291_v55 = vld [vmem:[#allocation5 + $0x2598] sm:$0xff] }
 0x1f1   :  { %9878 = vmatprep.subr.bf16.mxu0 %v14416_v4  ;;  %10042 = vmatprep.subr.bf16.mxu1 %v14418_v5  ;;  %v14584_v4 = vcombine.high %v1146_v63, %v1158_v0  ;;  %v14586_v5 = vcombine.high %v1147_v1, %v1159_v2  ;;  %v1302_v54 = vld [vmem:[#allocation5 + $0x25f0] sm:$0xff]  ;;  %v1303_v56 = vld [vmem:[#allocation5 + $0x25f8] sm:$0xff] }
 0x1f4   :  { %9879 = vmatpush1.bf16.msra.mxu0 %v14415_v10  ;;  %10043 = vmatpush1.bf16.msra.mxu1 %v14417_v11  ;;  %v14583_v10 = vcombine.low %v1146_v63, %v1158_v0  ;;  %v14585_v11 = vcombine.low %v1147_v1, %v1159_v2  ;;  %v1314_v63 = vld [vmem:[#allocation5 + $0x2650] sm:$0xff]  ;;  %v1315_v1 = vld [vmem:[#allocation5 + $0x2658] sm:$0xff] }
 0x1f5   :  { %9880 = vmatprep.subr.bf16.mxu0 %v14440_v13  ;;  %10044 = vmatprep.subr.bf16.mxu1 %v14442_v14  ;;  %v14608_v13 = vcombine.high %v1170_v6, %v1182_v7  ;;  %v14610_v14 = vcombine.high %v1171_v8, %v1183_v9  ;;  %v1326_v0 = vld [vmem:[#allocation5 + $0x26b0] sm:$0xff]  ;;  %v1327_v2 = vld [vmem:[#allocation5 + $0x26b8] sm:$0xff] }
 0x1f8   :  { %9881 = vmatpush1.bf16.msra.mxu0 %v14439_v20  ;;  %10045 = vmatpush1.bf16.msra.mxu1 %v14441_v21  ;;  %v14607_v20 = vcombine.low %v1170_v6, %v1182_v7  ;;  %v14609_v21 = vcombine.low %v1171_v8, %v1183_v9  ;;  %v1338_v6 = vld [vmem:[#allocation5 + $0x2710] sm:$0xff]  ;;  %v1339_v8 = vld [vmem:[#allocation5 + $0x2718] sm:$0xff] }
 0x1f9   :  { %9882 = vmatprep.subr.bf16.mxu0 %v14464_v22  ;;  %10046 = vmatprep.subr.bf16.mxu1 %v14466_v23  ;;  %v14632_v22 = vcombine.high %v1194_v16, %v1206_v17  ;;  %v14634_v23 = vcombine.high %v1195_v18, %v1207_v19  ;;  %v1350_v7 = vld [vmem:[#allocation5 + $0x2770] sm:$0xff]  ;;  %v1351_v9 = vld [vmem:[#allocation5 + $0x2778] sm:$0xff] }
 0x1fc   :  { %9883 = vmatpush1.bf16.msra.mxu0 %v14463_v30  ;;  %10047 = vmatpush1.bf16.msra.mxu1 %v14465_v31  ;;  %v14631_v30 = vcombine.low %v1194_v16, %v1206_v17  ;;  %v14633_v31 = vcombine.low %v1195_v18, %v1207_v19  ;;  %v1362_v16 = vld [vmem:[#allocation5 + $0x27d0] sm:$0xff]  ;;  %v1363_v18 = vld [vmem:[#allocation5 + $0x27d8] sm:$0xff] }
 0x1fd   :  { %9884 = vmatprep.subr.bf16.mxu0 %v14488_v32  ;;  %10048 = vmatprep.subr.bf16.mxu1 %v14490_v33  ;;  %v14656_v32 = vcombine.high %v1218_v26, %v1230_v27  ;;  %v14658_v33 = vcombine.high %v1219_v28, %v1231_v29  ;;  %v1374_v17 = vld [vmem:[#allocation5 + $0x2830] sm:$0xff]  ;;  %v1375_v19 = vld [vmem:[#allocation5 + $0x2838] sm:$0xff] }
 0x200   :  { %9885 = vmatpush1.bf16.msra.mxu0 %v14487_v40  ;;  %10049 = vmatpush1.bf16.msra.mxu1 %v14489_v41  ;;  %v14655_v40 = vcombine.low %v1218_v26, %v1230_v27  ;;  %v14657_v41 = vcombine.low %v1219_v28, %v1231_v29  ;;  %v1386_v26 = vld [vmem:[#allocation5 + $0x2890] sm:$0xff]  ;;  %v1387_v28 = vld [vmem:[#allocation5 + $0x2898] sm:$0xff] }
 0x201   :  { %9886 = vmatprep.subr.bf16.mxu0 %v14512_v42  ;;  %10050 = vmatprep.subr.bf16.mxu1 %v14514_v43  ;;  %v14680_v42 = vcombine.high %v1242_v15, %v1254_v35  ;;  %v14682_v43 = vcombine.high %v1243_v36, %v1255_v37  ;;  %v1398_v27 = vld [vmem:[#allocation5 + $0x28f0] sm:$0xff]  ;;  %v1399_v29 = vld [vmem:[#allocation5 + $0x28f8] sm:$0xff] }
 0x204   :  { %9887 = vmatpush1.bf16.msra.mxu0 %v14511_v24  ;;  %10051 = vmatpush1.bf16.msra.mxu1 %v14513_v49  ;;  %v14679_v24 = vcombine.low %v1242_v15, %v1254_v35  ;;  %v14681_v49 = vcombine.low %v1243_v36, %v1255_v37  ;;  %v14826_v15 = vcombine.high %v1387_v28, %v1399_v29  ;;  %v1410_v35 = vld [vmem:[#allocation5 + $0x2950] sm:$0xff] }
 0x205   :  { %9888 = vmatprep.subr.bf16.mxu0 %v14536_v50  ;;  %10052 = vmatprep.subr.bf16.mxu1 %v14538_v51  ;;  %v14704_v50 = vcombine.high %v1266_v44, %v1278_v45  ;;  %v14706_v51 = vcombine.high %v1267_v46, %v1279_v47  ;;  %v1422_v36 = vld [vmem:[#allocation5 + $0x29b0] sm:$0xff] }
 0x208   :  { %9889 = vmatpush1.bf16.msra.mxu0 %v14535_v59  ;;  %10053 = vmatpush1.bf16.msra.mxu1 %v14537_v60  ;;  %v14703_v59 = vcombine.low %v1266_v44, %v1278_v45  ;;  %v14705_v60 = vcombine.low %v1267_v46, %v1279_v47  ;;  %v14823_v45 = vcombine.low %v1386_v26, %v1398_v27 }
 0x209   :  { %9890 = vmatprep.subr.bf16.mxu0 %v14560_v61  ;;  %10054 = vmatprep.subr.bf16.mxu1 %v14562_v62  ;;  %v14728_v61 = vcombine.high %v1290_v52, %v1302_v54  ;;  %v14730_v62 = vcombine.high %v1291_v55, %v1303_v56 }
 0x20c   :  { %9891 = vmatpush1.bf16.msra.mxu0 %v14559_v3  ;;  %10055 = vmatpush1.bf16.msra.mxu1 %v14561_v38  ;;  %v14727_v3 = vcombine.low %v1290_v52, %v1302_v54  ;;  %v14729_v38 = vcombine.low %v1291_v55, %v1303_v56  ;;  %v1434_v52 = vld [vmem:[#allocation5 + $0x2a10] sm:$0xff]  ;;  %v1435_v55 = vld [vmem:[#allocation5 + $0x2a18] sm:$0xff] }
 0x20d   :  { %9892 = vmatprep.subr.bf16.mxu0 %v14584_v4  ;;  %10056 = vmatprep.subr.bf16.mxu1 %v14586_v5  ;;  %v14752_v4 = vcombine.high %v1314_v63, %v1326_v0  ;;  %v14754_v5 = vcombine.high %v1315_v1, %v1327_v2  ;;  %v1446_v54 = vld [vmem:[#allocation5 + $0x2a70] sm:$0xff]  ;;  %v1447_v56 = vld [vmem:[#allocation5 + $0x2a78] sm:$0xff] }
 0x210   :  { %9893 = vmatpush1.bf16.msra.mxu0 %v14583_v10  ;;  %10057 = vmatpush1.bf16.msra.mxu1 %v14585_v11  ;;  %v14751_v10 = vcombine.low %v1314_v63, %v1326_v0  ;;  %v14753_v11 = vcombine.low %v1315_v1, %v1327_v2  ;;  %v1458_v63 = vld [vmem:[#allocation5 + $0x2ad0] sm:$0xff]  ;;  %v1459_v1 = vld [vmem:[#allocation5 + $0x2ad8] sm:$0xff] }
 0x211   :  { %9894 = vmatprep.subr.bf16.mxu0 %v14608_v13  ;;  %10058 = vmatprep.subr.bf16.mxu1 %v14610_v14  ;;  %v14776_v13 = vcombine.high %v1338_v6, %v1350_v7  ;;  %v14778_v14 = vcombine.high %v1339_v8, %v1351_v9  ;;  %v1470_v0 = vld [vmem:[#allocation5 + $0x2b30] sm:$0xff]  ;;  %v1471_v2 = vld [vmem:[#allocation5 + $0x2b38] sm:$0xff] }
 0x214   :  { %9895 = vmatpush1.bf16.msra.mxu0 %v14607_v20  ;;  %10059 = vmatpush1.bf16.msra.mxu1 %v14609_v21  ;;  %v14775_v20 = vcombine.low %v1338_v6, %v1350_v7  ;;  %v14777_v21 = vcombine.low %v1339_v8, %v1351_v9  ;;  %v1482_v6 = vld [vmem:[#allocation5 + $0x2b90] sm:$0xff]  ;;  %v1483_v8 = vld [vmem:[#allocation5 + $0x2b98] sm:$0xff] }
 0x215   :  { %9896 = vmatprep.subr.bf16.mxu0 %v14632_v22  ;;  %10060 = vmatprep.subr.bf16.mxu1 %v14634_v23  ;;  %v14800_v22 = vcombine.high %v1362_v16, %v1374_v17  ;;  %v14802_v23 = vcombine.high %v1363_v18, %v1375_v19  ;;  %v1494_v7 = vld [vmem:[#allocation5 + $0x2bf0] sm:$0xff]  ;;  %v1495_v9 = vld [vmem:[#allocation5 + $0x2bf8] sm:$0xff] }
 0x218   :  { %9897 = vmatpush1.bf16.msra.mxu0 %v14631_v30  ;;  %10061 = vmatpush1.bf16.msra.mxu1 %v14633_v31  ;;  %v14799_v30 = vcombine.low %v1362_v16, %v1374_v17  ;;  %v14801_v31 = vcombine.low %v1363_v18, %v1375_v19  ;;  %v1506_v16 = vld [vmem:[#allocation5 + $0x2c50] sm:$0xff]  ;;  %v1507_v18 = vld [vmem:[#allocation5 + $0x2c58] sm:$0xff] }
 0x219   :  { %9898 = vmatprep.subr.bf16.mxu0 %v14656_v32  ;;  %10062 = vmatprep.subr.bf16.mxu1 %v14658_v33  ;;  %v14824_v32 = vcombine.high %v1386_v26, %v1398_v27  ;;  %v1518_v17 = vld [vmem:[#allocation5 + $0x2cb0] sm:$0xff]  ;;  %v1519_v19 = vld [vmem:[#allocation5 + $0x2cb8] sm:$0xff] }
 0x21a   :  { %v1530_v26 = vld [vmem:[#allocation5 + $0x2d10] sm:$0xff] }
 0x21b   :  { %v1542_v27 = vld [vmem:[#allocation5 + $0x2d70] sm:$0xff] }
 0x21c   :  { %9899 = vmatpush1.bf16.msra.mxu0 %v14655_v40  ;;  %10063 = vmatpush1.bf16.msra.mxu1 %v14657_v41  ;;  %v1411_v41 = vld [vmem:[#allocation5 + $0x2958] sm:$0xff] }
 0x21d   :  { %9909 = vmatprep.subr.bf16.mxu0 %v14680_v42  ;;  %10073 = vmatprep.subr.bf16.mxu1 %v14682_v43  ;;  %v1423_v42 = vld [vmem:[#allocation5 + $0x29b8] sm:$0xff] }
 0x21f   :  { %9901 = vmatmul.mubr.bf16.vlgmr.msra.gmra.mrb[4].mxu0 %v16174_v39  ;;  %10065 = vmatmul.mubr.bf16.vlgmr.msra.gmra.mrb[4].mxu1 %v16174_v39 }
 0x220   :  { %9910 = vmatpush1.bf16.msra.mxu0 %v14679_v24  ;;  %10074 = vmatpush1.bf16.msra.mxu1 %v14681_v49  ;;  %v14825_v24 = vcombine.low %v1387_v28, %v1399_v29  ;;  %v14848_v49 = vcombine.high %v1410_v35, %v1422_v36  ;;  %v1531_v28 = vld [vmem:[#allocation5 + $0x2d18] sm:$0xff] }
 0x221   :  { %9911 = vmatprep.subr.bf16.mxu0 %v14704_v50  ;;  %10075 = vmatprep.subr.bf16.mxu1 %v14706_v51  ;;  %v14850_v51 = vcombine.high %v1411_v41, %v1423_v42  ;;  %v1543_v29 = vld [vmem:[#allocation5 + $0x2d78] sm:$0xff] }
 0x222   :  { %9941 = vmatprep.mubr.bf16.mxu0 %v16178_v48  ;;  %10105 = vmatprep.mubr.bf16.mxu1 %v16178_v48 }
 0x224   :  { %9912 = vmatpush1.bf16.msra.mxu0 %v14703_v59  ;;  %10076 = vmatpush1.bf16.msra.mxu1 %v14705_v60  ;;  %v14847_v59 = vcombine.low %v1410_v35, %v1422_v36  ;;  %v14849_v60 = vcombine.low %v1411_v41, %v1423_v42  ;;  %v1554_v35 = vld [vmem:[#allocation5 + $0x2dd0] sm:$0xff]  ;;  %v1555_v41 = vld [vmem:[#allocation5 + $0x2dd8] sm:$0xff] }
 0x225   :  { %9913 = vmatprep.subr.bf16.mxu0 %v14728_v61  ;;  %10077 = vmatprep.subr.bf16.mxu1 %v14730_v62  ;;  %v14872_v61 = vcombine.high %v1434_v52, %v1446_v54  ;;  %v14874_v62 = vcombine.high %v1435_v55, %v1447_v56  ;;  %v1566_v36 = vld [vmem:[#allocation5 + $0x2e30] sm:$0xff]  ;;  %v1567_v42 = vld [vmem:[#allocation5 + $0x2e38] sm:$0xff] }
 0x228   :  { %9914 = vmatpush1.bf16.msra.mxu0 %v14727_v3  ;;  %10078 = vmatpush1.bf16.msra.mxu1 %v14729_v38  ;;  %v14871_v3 = vcombine.low %v1434_v52, %v1446_v54  ;;  %v14873_v38 = vcombine.low %v1435_v55, %v1447_v56  ;;  %v14991_v52 = vcombine.low %v1554_v35, %v1566_v36 }
 0x229   :  { %9915 = vmatprep.subr.bf16.mxu0 %v14752_v4  ;;  %10079 = vmatprep.subr.bf16.mxu1 %v14754_v5  ;;  %v14896_v4 = vcombine.high %v1458_v63, %v1470_v0  ;;  %v14898_v5 = vcombine.high %v1459_v1, %v1471_v2  ;;  %v14993_v54 = vcombine.low %v1555_v41, %v1567_v42 }
 0x22c   :  { %9916 = vmatpush1.bf16.msra.mxu0 %v14751_v10  ;;  %10080 = vmatpush1.bf16.msra.mxu1 %v14753_v11  ;;  %v14895_v10 = vcombine.low %v1458_v63, %v1470_v0  ;;  %v14897_v11 = vcombine.low %v1459_v1, %v1471_v2 }
 0x22d   :  { %9917 = vmatprep.subr.bf16.mxu0 %v14776_v13  ;;  %10081 = vmatprep.subr.bf16.mxu1 %v14778_v14  ;;  %v14920_v13 = vcombine.high %v1482_v6, %v1494_v7  ;;  %v14922_v14 = vcombine.high %v1483_v8, %v1495_v9 }
 0x230   :  { %9918 = vmatpush1.bf16.msra.mxu0 %v14775_v20  ;;  %10082 = vmatpush1.bf16.msra.mxu1 %v14777_v21  ;;  %v14919_v20 = vcombine.low %v1482_v6, %v1494_v7  ;;  %v14921_v21 = vcombine.low %v1483_v8, %v1495_v9 }
 0x231   :  { %9919 = vmatprep.subr.bf16.mxu0 %v14800_v22  ;;  %10083 = vmatprep.subr.bf16.mxu1 %v14802_v23  ;;  %v14944_v22 = vcombine.high %v1506_v16, %v1518_v17  ;;  %v14946_v23 = vcombine.high %v1507_v18, %v1519_v19 }
 0x232   :  { %v16204_v33 = vpop.f32.mrb[0].mxu0  ;;  %v16206_v37 = vpop.f32.mrb[0].mxu1 }
 0x233   :  { %v16208_v40 = vpop.f32.mrb[1].mxu0  ;;  %v16210_v43 = vpop.f32.mrb[1].mxu1 }
 0x234   :  { %v9619_v44 = vpop.f32.mrb[2].mxu0  ;;  %9920 = vmatpush1.bf16.msra.mxu0 %v14799_v30  ;;  %v9783_v46 = vpop.f32.mrb[2].mxu1  ;;  %10084 = vmatpush1.bf16.msra.mxu1 %v14801_v31  ;;  %v14943_v30 = vcombine.low %v1506_v16, %v1518_v17  ;;  %v14945_v31 = vcombine.low %v1507_v18, %v1519_v19 }
 0x235   :  { %v9620_v47 = vpop.f32.mrb[3].mxu0  ;;  %9921 = vmatprep.subr.bf16.mxu0 %v14824_v32  ;;  %v9784_v50 = vpop.f32.mrb[3].mxu1  ;;  %10085 = vmatprep.subr.bf16.mxu1 %v14826_v15  ;;  %v14968_v32 = vcombine.high %v1530_v26, %v1542_v27  ;;  %v14970_v15 = vcombine.high %v1531_v28, %v1543_v29  ;;  %v14967_v44 = vcombine.low %v1530_v26, %v1542_v27 }
 0x236   :  { %v14992_v46 = vcombine.high %v1554_v35, %v1566_v36  ;;  %v14994_v47 = vcombine.high %v1555_v41, %v1567_v42  ;;  %v1579_v50 = vld [vmem:[#allocation5 + $0x2e98] sm:$0xff] }
 0x238   :  { %9922 = vmatpush1.bf16.msra.mxu0 %v14823_v45  ;;  %10086 = vmatpush1.bf16.msra.mxu1 %v14825_v24  ;;  %v14969_v45 = vcombine.low %v1531_v28, %v1543_v29  ;;  %v1578_v24 = vld [vmem:[#allocation5 + $0x2e90] sm:$0xff] }
 0x239   :  { %9923 = vmatprep.subr.bf16.mxu0 %v14848_v49  ;;  %10087 = vmatprep.subr.bf16.mxu1 %v14850_v51  ;;  %v1590_v49 = vld [vmem:[#allocation5 + $0x2ef0] sm:$0xff]  ;;  %v1591_v51 = vld [vmem:[#allocation5 + $0x2ef8] sm:$0xff] }
 0x23a   :  { %v15016_v55 = vcombine.high %v1578_v24, %v1590_v49  ;;  %v15018_v56 = vcombine.high %v1579_v50, %v1591_v51  ;;  %v15015_v63 = vcombine.low %v1578_v24, %v1590_v49  ;;  %v15017_v0 = vcombine.low %v1579_v50, %v1591_v51 }
 0x23c   :  { %9924 = vmatpush1.bf16.msra.mxu0 %v14847_v59  ;;  %10088 = vmatpush1.bf16.msra.mxu1 %v14849_v60  ;;  %v1602_v59 = vld [vmem:[#allocation5 + $0x2f50] sm:$0xff] }
 0x23d   :  { %9925 = vmatprep.subr.bf16.mxu0 %v14872_v61  ;;  %10089 = vmatprep.subr.bf16.mxu1 %v14874_v62  ;;  %v1614_v60 = vld [vmem:[#allocation5 + $0x2fb0] sm:$0xff]  ;;  %v1603_v61 = vld [vmem:[#allocation5 + $0x2f58] sm:$0xff] }
 0x23e   :  { %v1615_v62 = vld [vmem:[#allocation5 + $0x2fb8] sm:$0xff]  ;;  %v15040_v1 = vcombine.high %v1602_v59, %v1614_v60  ;;  %v15039_v6 = vcombine.low %v1602_v59, %v1614_v60 }
 0x23f   :  { %v15042_v2 = vcombine.high %v1603_v61, %v1615_v62  ;;  %v15041_v7 = vcombine.low %v1603_v61, %v1615_v62 }
 0x240   :  { %9926 = vmatpush1.bf16.msra.mxu0 %v14871_v3  ;;  %10090 = vmatpush1.bf16.msra.mxu1 %v14873_v38  ;;  %v92_v3 = vld [vmem:[#allocation5 + $0x20] sm:$0xff] }
 0x241   :  { %9927 = vmatprep.subr.bf16.mxu0 %v14896_v4  ;;  %10091 = vmatprep.subr.bf16.mxu1 %v14898_v5  ;;  %v104_v38 = vld [vmem:[#allocation5 + $0x80] sm:$0xff]  ;;  %v93_v4 = vld [vmem:[#allocation5 + $0x28] sm:$0xff] }
 0x242   :  { %v105_v5 = vld [vmem:[#allocation5 + $0x88] sm:$0xff]  ;;  %v13532_v8 = vcombine.high %v92_v3, %v104_v38  ;;  %v13531_v16 = vcombine.low %v92_v3, %v104_v38 }
 0x243   :  { %v13534_v9 = vcombine.high %v93_v4, %v105_v5  ;;  %v13533_v17 = vcombine.low %v93_v4, %v105_v5 }
 0x244   :  { %9928 = vmatpush1.bf16.msra.mxu0 %v14895_v10  ;;  %10092 = vmatpush1.bf16.msra.mxu1 %v14897_v11  ;;  %v116_v10 = vld [vmem:[#allocation5 + $0xe0] sm:$0xff] }
 0x245   :  { %9929 = vmatprep.subr.bf16.mxu0 %v14920_v13  ;;  %10093 = vmatprep.subr.bf16.mxu1 %v14922_v14  ;;  %v128_v11 = vld [vmem:[#allocation5 + $0x140] sm:$0xff]  ;;  %v117_v13 = vld [vmem:[#allocation5 + $0xe8] sm:$0xff] }
 0x246   :  { %v129_v14 = vld [vmem:[#allocation5 + $0x148] sm:$0xff]  ;;  %v13556_v18 = vcombine.high %v116_v10, %v128_v11  ;;  %v13555_v26 = vcombine.low %v116_v10, %v128_v11 }
 0x247   :  { %v13558_v19 = vcombine.high %v117_v13, %v129_v14  ;;  %v13557_v27 = vcombine.low %v117_v13, %v129_v14 }
 0x248   :  { %9930 = vmatpush1.bf16.msra.mxu0 %v14919_v20  ;;  %10094 = vmatpush1.bf16.msra.mxu1 %v14921_v21  ;;  %v140_v20 = vld [vmem:[#allocation5 + $0x1a0] sm:$0xff] }
 0x249   :  { %9931 = vmatprep.subr.bf16.mxu0 %v14944_v22  ;;  %10095 = vmatprep.subr.bf16.mxu1 %v14946_v23  ;;  %v152_v21 = vld [vmem:[#allocation5 + $0x200] sm:$0xff]  ;;  %v141_v22 = vld [vmem:[#allocation5 + $0x1a8] sm:$0xff] }
 0x24a   :  { %v153_v23 = vld [vmem:[#allocation5 + $0x208] sm:$0xff]  ;;  %v13580_v28 = vcombine.high %v140_v20, %v152_v21  ;;  %v13579_v35 = vcombine.low %v140_v20, %v152_v21 }
 0x24b   :  { %v13582_v29 = vcombine.high %v141_v22, %v153_v23  ;;  %v13581_v36 = vcombine.low %v141_v22, %v153_v23 }
 0x24c   :  { %9932 = vmatpush1.bf16.msra.mxu0 %v14943_v30  ;;  %10096 = vmatpush1.bf16.msra.mxu1 %v14945_v31  ;;  %v164_v30 = vld [vmem:[#allocation5 + $0x260] sm:$0xff] }
 0x24d   :  { %9933 = vmatprep.subr.bf16.mxu0 %v14968_v32  ;;  %10097 = vmatprep.subr.bf16.mxu1 %v14970_v15  ;;  %v176_v31 = vld [vmem:[#allocation5 + $0x2c0] sm:$0xff]  ;;  %v165_v32 = vld [vmem:[#allocation5 + $0x268] sm:$0xff] }
 0x24e   :  { %v177_v15 = vld [vmem:[#allocation5 + $0x2c8] sm:$0xff]  ;;  %v13604_v41 = vcombine.high %v164_v30, %v176_v31  ;;  %v13603_v24 = vcombine.low %v164_v30, %v176_v31 }
 0x24f   :  { %v13606_v42 = vcombine.high %v165_v32, %v177_v15  ;;  %v13605_v49 = vcombine.low %v165_v32, %v177_v15 }
 0x250   :  { %9934 = vmatpush1.bf16.msra.mxu0 %v14967_v44  ;;  %10098 = vmatpush1.bf16.msra.mxu1 %v14969_v45  ;;  %v188_v44 = vld [vmem:[#allocation5 + $0x320] sm:$0xff] }
 0x251   :  { %9935 = vmatprep.subr.bf16.mxu0 %v14992_v46  ;;  %10099 = vmatprep.subr.bf16.mxu1 %v14994_v47  ;;  %v200_v45 = vld [vmem:[#allocation5 + $0x380] sm:$0xff]  ;;  %v189_v46 = vld [vmem:[#allocation5 + $0x328] sm:$0xff] }
 0x252   :  { %v201_v47 = vld [vmem:[#allocation5 + $0x388] sm:$0xff]  ;;  %v13628_v50 = vcombine.high %v188_v44, %v200_v45  ;;  %v13627_v59 = vcombine.low %v188_v44, %v200_v45 }
 0x253   :  { %v13630_v51 = vcombine.high %v189_v46, %v201_v47  ;;  %v13629_v60 = vcombine.low %v189_v46, %v201_v47 }
 0x254   :  { %9936 = vmatpush1.bf16.msra.mxu0 %v14991_v52  ;;  %10100 = vmatpush1.bf16.msra.mxu1 %v14993_v54  ;;  %v212_v52 = vld [vmem:[#allocation5 + $0x3e0] sm:$0xff] }
 0x255   :  { %9937 = vmatprep.subr.bf16.mxu0 %v15016_v55  ;;  %10101 = vmatprep.subr.bf16.mxu1 %v15018_v56  ;;  %v224_v54 = vld [vmem:[#allocation5 + $0x440] sm:$0xff]  ;;  %v213_v55 = vld [vmem:[#allocation5 + $0x3e8] sm:$0xff] }
 0x256   :  { %v225_v56 = vld [vmem:[#allocation5 + $0x448] sm:$0xff]  ;;  %v13652_v61 = vcombine.high %v212_v52, %v224_v54  ;;  %v13651_v3 = vcombine.low %v212_v52, %v224_v54 }
 0x257   :  { %v13654_v62 = vcombine.high %v213_v55, %v225_v56  ;;  %v13653_v38 = vcombine.low %v213_v55, %v225_v56 }
 0x258   :  { %9938 = vmatpush1.bf16.msra.mxu0 %v15015_v63  ;;  %10102 = vmatpush1.bf16.msra.mxu1 %v15017_v0  ;;  %v236_v63 = vld [vmem:[#allocation5 + $0x4a0] sm:$0xff] }
 0x259   :  { %9939 = vmatprep.subr.bf16.mxu0 %v15040_v1  ;;  %10103 = vmatprep.subr.bf16.mxu1 %v15042_v2  ;;  %v248_v0 = vld [vmem:[#allocation5 + $0x500] sm:$0xff]  ;;  %v237_v1 = vld [vmem:[#allocation5 + $0x4a8] sm:$0xff] }
 0x25a   :  { %v249_v2 = vld [vmem:[#allocation5 + $0x508] sm:$0xff]  ;;  %v13676_v4 = vcombine.high %v236_v63, %v248_v0  ;;  %v13675_v10 = vcombine.low %v236_v63, %v248_v0 }
 0x25b   :  { %v13678_v5 = vcombine.high %v237_v1, %v249_v2  ;;  %v13677_v11 = vcombine.low %v237_v1, %v249_v2 }
 0x25c   :  { %9940 = vmatpush1.bf16.msra.mxu0 %v15039_v6  ;;  %10104 = vmatpush1.bf16.msra.mxu1 %v15041_v7  ;;  %v260_v6 = vld [vmem:[#allocation5 + $0x560] sm:$0xff] }
 0x25d   :  { %10114 = vmatprep.subr.bf16.mxu0 %v13532_v8  ;;  %10278 = vmatprep.subr.bf16.mxu1 %v13534_v9  ;;  %v272_v7 = vld [vmem:[#allocation5 + $0x5c0] sm:$0xff]  ;;  %v261_v8 = vld [vmem:[#allocation5 + $0x568] sm:$0xff] }
 0x25e   :  { %v273_v9 = vld [vmem:[#allocation5 + $0x5c8] sm:$0xff]  ;;  %v13700_v13 = vcombine.high %v260_v6, %v272_v7  ;;  %v13699_v20 = vcombine.low %v260_v6, %v272_v7 }
 0x25f   :  { %9942 = vmatmul.mubr.bf16.vlgmr.msra.gmra.mrb[4].mxu0 %v16186_v58  ;;  %10106 = vmatmul.mubr.bf16.vlgmr.msra.gmra.mrb[4].mxu1 %v16186_v58  ;;  %v13702_v14 = vcombine.high %v261_v8, %v273_v9  ;;  %v13701_v21 = vcombine.low %v261_v8, %v273_v9 }
 0x260   :  { %10115 = vmatpush1.bf16.msra.mxu0 %v13531_v16  ;;  %10279 = vmatpush1.bf16.msra.mxu1 %v13533_v17  ;;  %v284_v16 = vld [vmem:[#allocation5 + $0x620] sm:$0xff] }
 0x261   :  { %10116 = vmatprep.subr.bf16.mxu0 %v13556_v18  ;;  %10280 = vmatprep.subr.bf16.mxu1 %v13558_v19  ;;  %v296_v17 = vld [vmem:[#allocation5 + $0x680] sm:$0xff]  ;;  %v285_v18 = vld [vmem:[#allocation5 + $0x628] sm:$0xff] }
 0x262   :  { %10146 = vmatprep.mubr.bf16.mxu0 %v16138_v57  ;;  %10310 = vmatprep.mubr.bf16.mxu1 %v16138_v57  ;;  %v297_v19 = vld [vmem:[#allocation5 + $0x688] sm:$0xff]  ;;  %v13724_v22 = vcombine.high %v284_v16, %v296_v17  ;;  %v13723_v30 = vcombine.low %v284_v16, %v296_v17 }
 0x263   :  { %v13726_v23 = vcombine.high %v285_v18, %v297_v19  ;;  %v13725_v31 = vcombine.low %v285_v18, %v297_v19 }
 0x264   :  { %10117 = vmatpush1.bf16.msra.mxu0 %v13555_v26  ;;  %10281 = vmatpush1.bf16.msra.mxu1 %v13557_v27  ;;  %v308_v26 = vld [vmem:[#allocation5 + $0x6e0] sm:$0xff] }
 0x265   :  { %10118 = vmatprep.subr.bf16.mxu0 %v13580_v28  ;;  %10282 = vmatprep.subr.bf16.mxu1 %v13582_v29  ;;  %v320_v27 = vld [vmem:[#allocation5 + $0x740] sm:$0xff]  ;;  %v309_v28 = vld [vmem:[#allocation5 + $0x6e8] sm:$0xff] }
 0x266   :  { %v321_v29 = vld [vmem:[#allocation5 + $0x748] sm:$0xff]  ;;  %v13748_v32 = vcombine.high %v308_v26, %v320_v27  ;;  %v13747_v44 = vcombine.low %v308_v26, %v320_v27 }
 0x267   :  { %v13750_v15 = vcombine.high %v309_v28, %v321_v29  ;;  %v13749_v45 = vcombine.low %v309_v28, %v321_v29 }
 0x268   :  { %10119 = vmatpush1.bf16.msra.mxu0 %v13579_v35  ;;  %10283 = vmatpush1.bf16.msra.mxu1 %v13581_v36  ;;  %v332_v35 = vld [vmem:[#allocation5 + $0x7a0] sm:$0xff] }
 0x269   :  { %10120 = vmatprep.subr.bf16.mxu0 %v13604_v41  ;;  %10284 = vmatprep.subr.bf16.mxu1 %v13606_v42  ;;  %v344_v36 = vld [vmem:[#allocation5 + $0x800] sm:$0xff]  ;;  %v333_v41 = vld [vmem:[#allocation5 + $0x7a8] sm:$0xff] }
 0x26a   :  { %v345_v42 = vld [vmem:[#allocation5 + $0x808] sm:$0xff]  ;;  %v13772_v46 = vcombine.high %v332_v35, %v344_v36  ;;  %v13771_v52 = vcombine.low %v332_v35, %v344_v36 }
 0x26b   :  { %v13774_v47 = vcombine.high %v333_v41, %v345_v42  ;;  %v13773_v54 = vcombine.low %v333_v41, %v345_v42 }
 0x26c   :  { %10121 = vmatpush1.bf16.msra.mxu0 %v13603_v24  ;;  %10285 = vmatpush1.bf16.msra.mxu1 %v13605_v49  ;;  %v356_v24 = vld [vmem:[#allocation5 + $0x860] sm:$0xff] }
 0x26d   :  { %10122 = vmatprep.subr.bf16.mxu0 %v13628_v50  ;;  %10286 = vmatprep.subr.bf16.mxu1 %v13630_v51  ;;  %v368_v49 = vld [vmem:[#allocation5 + $0x8c0] sm:$0xff]  ;;  %v357_v50 = vld [vmem:[#allocation5 + $0x868] sm:$0xff] }
 0x26e   :  { %v369_v51 = vld [vmem:[#allocation5 + $0x8c8] sm:$0xff]  ;;  %v13796_v55 = vcombine.high %v356_v24, %v368_v49  ;;  %v13795_v63 = vcombine.low %v356_v24, %v368_v49 }
 0x26f   :  { %v13798_v56 = vcombine.high %v357_v50, %v369_v51  ;;  %v13797_v0 = vcombine.low %v357_v50, %v369_v51 }
 0x270   :  { %10123 = vmatpush1.bf16.msra.mxu0 %v13627_v59  ;;  %10287 = vmatpush1.bf16.msra.mxu1 %v13629_v60  ;;  %v380_v59 = vld [vmem:[#allocation5 + $0x920] sm:$0xff] }
 0x271   :  { %10124 = vmatprep.subr.bf16.mxu0 %v13652_v61  ;;  %10288 = vmatprep.subr.bf16.mxu1 %v13654_v62  ;;  %v392_v60 = vld [vmem:[#allocation5 + $0x980] sm:$0xff]  ;;  %v381_v61 = vld [vmem:[#allocation5 + $0x928] sm:$0xff] }
 0x272   :  { %v393_v62 = vld [vmem:[#allocation5 + $0x988] sm:$0xff]  ;;  %v13820_v1 = vcombine.high %v380_v59, %v392_v60  ;;  %v13819_v6 = vcombine.low %v380_v59, %v392_v60 }
 0x273   :  { %v13822_v2 = vcombine.high %v381_v61, %v393_v62  ;;  %v13821_v7 = vcombine.low %v381_v61, %v393_v62 }
 0x274   :  { %10125 = vmatpush1.bf16.msra.mxu0 %v13651_v3  ;;  %10289 = vmatpush1.bf16.msra.mxu1 %v13653_v38  ;;  %v404_v3 = vld [vmem:[#allocation5 + $0x9e0] sm:$0xff] }
 0x275   :  { %10126 = vmatprep.subr.bf16.mxu0 %v13676_v4  ;;  %10290 = vmatprep.subr.bf16.mxu1 %v13678_v5  ;;  %v416_v38 = vld [vmem:[#allocation5 + $0xa40] sm:$0xff]  ;;  %v405_v4 = vld [vmem:[#allocation5 + $0x9e8] sm:$0xff] }
 0x276   :  { %v417_v5 = vld [vmem:[#allocation5 + $0xa48] sm:$0xff]  ;;  %v13844_v8 = vcombine.high %v404_v3, %v416_v38  ;;  %v13843_v16 = vcombine.low %v404_v3, %v416_v38 }
 0x277   :  { %v13846_v9 = vcombine.high %v405_v4, %v417_v5  ;;  %v13845_v17 = vcombine.low %v405_v4, %v417_v5 }
 0x278   :  { %10127 = vmatpush1.bf16.msra.mxu0 %v13675_v10  ;;  %10291 = vmatpush1.bf16.msra.mxu1 %v13677_v11  ;;  %v428_v10 = vld [vmem:[#allocation5 + $0xaa0] sm:$0xff] }
 0x279   :  { %10128 = vmatprep.subr.bf16.mxu0 %v13700_v13  ;;  %10292 = vmatprep.subr.bf16.mxu1 %v13702_v14  ;;  %v440_v11 = vld [vmem:[#allocation5 + $0xb00] sm:$0xff]  ;;  %v429_v13 = vld [vmem:[#allocation5 + $0xaa8] sm:$0xff] }
 0x27a   :  { %v441_v14 = vld [vmem:[#allocation5 + $0xb08] sm:$0xff]  ;;  %v13868_v18 = vcombine.high %v428_v10, %v440_v11  ;;  %v13867_v26 = vcombine.low %v428_v10, %v440_v11 }
 0x27b   :  { %v13870_v19 = vcombine.high %v429_v13, %v441_v14  ;;  %v13869_v27 = vcombine.low %v429_v13, %v441_v14 }
 0x27c   :  { %10129 = vmatpush1.bf16.msra.mxu0 %v13699_v20  ;;  %10293 = vmatpush1.bf16.msra.mxu1 %v13701_v21  ;;  %v452_v20 = vld [vmem:[#allocation5 + $0xb60] sm:$0xff] }
 0x27d   :  { %10130 = vmatprep.subr.bf16.mxu0 %v13724_v22  ;;  %10294 = vmatprep.subr.bf16.mxu1 %v13726_v23  ;;  %v464_v21 = vld [vmem:[#allocation5 + $0xbc0] sm:$0xff]  ;;  %v453_v22 = vld [vmem:[#allocation5 + $0xb68] sm:$0xff] }
 0x27e   :  { %v465_v23 = vld [vmem:[#allocation5 + $0xbc8] sm:$0xff]  ;;  %v13892_v28 = vcombine.high %v452_v20, %v464_v21  ;;  %v13891_v35 = vcombine.low %v452_v20, %v464_v21 }
 0x27f   :  { %v13894_v29 = vcombine.high %v453_v22, %v465_v23  ;;  %v13893_v36 = vcombine.low %v453_v22, %v465_v23 }
 0x280   :  { %10131 = vmatpush1.bf16.msra.mxu0 %v13723_v30  ;;  %10295 = vmatpush1.bf16.msra.mxu1 %v13725_v31  ;;  %v476_v30 = vld [vmem:[#allocation5 + $0xc20] sm:$0xff] }
 0x281   :  { %10132 = vmatprep.subr.bf16.mxu0 %v13748_v32  ;;  %10296 = vmatprep.subr.bf16.mxu1 %v13750_v15  ;;  %v488_v31 = vld [vmem:[#allocation5 + $0xc80] sm:$0xff]  ;;  %v477_v32 = vld [vmem:[#allocation5 + $0xc28] sm:$0xff] }
 0x282   :  { %v489_v15 = vld [vmem:[#allocation5 + $0xc88] sm:$0xff]  ;;  %v13916_v41 = vcombine.high %v476_v30, %v488_v31  ;;  %v13915_v24 = vcombine.low %v476_v30, %v488_v31 }
 0x283   :  { %v13918_v42 = vcombine.high %v477_v32, %v489_v15  ;;  %v13917_v49 = vcombine.low %v477_v32, %v489_v15 }
 0x284   :  { %10133 = vmatpush1.bf16.msra.mxu0 %v13747_v44  ;;  %10297 = vmatpush1.bf16.msra.mxu1 %v13749_v45  ;;  %v500_v44 = vld [vmem:[#allocation5 + $0xce0] sm:$0xff] }
 0x285   :  { %10134 = vmatprep.subr.bf16.mxu0 %v13772_v46  ;;  %10298 = vmatprep.subr.bf16.mxu1 %v13774_v47  ;;  %v512_v45 = vld [vmem:[#allocation5 + $0xd40] sm:$0xff]  ;;  %v501_v46 = vld [vmem:[#allocation5 + $0xce8] sm:$0xff] }
 0x286   :  { %v513_v47 = vld [vmem:[#allocation5 + $0xd48] sm:$0xff]  ;;  %v13940_v50 = vcombine.high %v500_v44, %v512_v45  ;;  %v13939_v59 = vcombine.low %v500_v44, %v512_v45 }
 0x287   :  { %v13942_v51 = vcombine.high %v501_v46, %v513_v47  ;;  %v13941_v60 = vcombine.low %v501_v46, %v513_v47 }
 0x288   :  { %10135 = vmatpush1.bf16.msra.mxu0 %v13771_v52  ;;  %10299 = vmatpush1.bf16.msra.mxu1 %v13773_v54  ;;  %v524_v52 = vld [vmem:[#allocation5 + $0xda0] sm:$0xff] }
 0x289   :  { %10136 = vmatprep.subr.bf16.mxu0 %v13796_v55  ;;  %10300 = vmatprep.subr.bf16.mxu1 %v13798_v56  ;;  %v536_v54 = vld [vmem:[#allocation5 + $0xe00] sm:$0xff]  ;;  %v525_v55 = vld [vmem:[#allocation5 + $0xda8] sm:$0xff] }
 0x28a   :  { %v537_v56 = vld [vmem:[#allocation5 + $0xe08] sm:$0xff]  ;;  %v13964_v61 = vcombine.high %v524_v52, %v536_v54  ;;  %v13963_v3 = vcombine.low %v524_v52, %v536_v54 }
 0x28b   :  { %v13966_v62 = vcombine.high %v525_v55, %v537_v56  ;;  %v13965_v38 = vcombine.low %v525_v55, %v537_v56 }
 0x28c   :  { %10137 = vmatpush1.bf16.msra.mxu0 %v13795_v63  ;;  %10301 = vmatpush1.bf16.msra.mxu1 %v13797_v0  ;;  %v548_v63 = vld [vmem:[#allocation5 + $0xe60] sm:$0xff] }
 0x28d   :  { %10138 = vmatprep.subr.bf16.mxu0 %v13820_v1  ;;  %10302 = vmatprep.subr.bf16.mxu1 %v13822_v2  ;;  %v560_v0 = vld [vmem:[#allocation5 + $0xec0] sm:$0xff]  ;;  %v549_v1 = vld [vmem:[#allocation5 + $0xe68] sm:$0xff] }
 0x28e   :  { %v561_v2 = vld [vmem:[#allocation5 + $0xec8] sm:$0xff]  ;;  %v13988_v4 = vcombine.high %v548_v63, %v560_v0  ;;  %v13987_v10 = vcombine.low %v548_v63, %v560_v0 }
 0x28f   :  { %v13990_v5 = vcombine.high %v549_v1, %v561_v2  ;;  %v13989_v11 = vcombine.low %v549_v1, %v561_v2 }
 0x290   :  { %10139 = vmatpush1.bf16.msra.mxu0 %v13819_v6  ;;  %10303 = vmatpush1.bf16.msra.mxu1 %v13821_v7  ;;  %v572_v6 = vld [vmem:[#allocation5 + $0xf20] sm:$0xff] }
 0x291   :  { %10140 = vmatprep.subr.bf16.mxu0 %v13844_v8  ;;  %10304 = vmatprep.subr.bf16.mxu1 %v13846_v9  ;;  %v584_v7 = vld [vmem:[#allocation5 + $0xf80] sm:$0xff]  ;;  %v573_v8 = vld [vmem:[#allocation5 + $0xf28] sm:$0xff] }
 0x292   :  { %v585_v9 = vld [vmem:[#allocation5 + $0xf88] sm:$0xff]  ;;  %v14012_v13 = vcombine.high %v572_v6, %v584_v7  ;;  %v14011_v20 = vcombine.low %v572_v6, %v584_v7 }
 0x293   :  { %v14014_v14 = vcombine.high %v573_v8, %v585_v9  ;;  %v14013_v21 = vcombine.low %v573_v8, %v585_v9 }
 0x294   :  { %10141 = vmatpush1.bf16.msra.mxu0 %v13843_v16  ;;  %10305 = vmatpush1.bf16.msra.mxu1 %v13845_v17  ;;  %v596_v16 = vld [vmem:[#allocation5 + $0xfe0] sm:$0xff] }
 0x295   :  { %10142 = vmatprep.subr.bf16.mxu0 %v13868_v18  ;;  %10306 = vmatprep.subr.bf16.mxu1 %v13870_v19  ;;  %v608_v17 = vld [vmem:[#allocation5 + $0x1040] sm:$0xff]  ;;  %v597_v18 = vld [vmem:[#allocation5 + $0xfe8] sm:$0xff] }
 0x296   :  { %v609_v19 = vld [vmem:[#allocation5 + $0x1048] sm:$0xff]  ;;  %v14036_v22 = vcombine.high %v596_v16, %v608_v17  ;;  %v14035_v30 = vcombine.low %v596_v16, %v608_v17 }
 0x297   :  { %v14038_v23 = vcombine.high %v597_v18, %v609_v19  ;;  %v14037_v31 = vcombine.low %v597_v18, %v609_v19 }
 0x298   :  { %10143 = vmatpush1.bf16.msra.mxu0 %v13867_v26  ;;  %10307 = vmatpush1.bf16.msra.mxu1 %v13869_v27  ;;  %v620_v26 = vld [vmem:[#allocation5 + $0x10a0] sm:$0xff] }
 0x299   :  { %10144 = vmatprep.subr.bf16.mxu0 %v13892_v28  ;;  %10308 = vmatprep.subr.bf16.mxu1 %v13894_v29  ;;  %v632_v27 = vld [vmem:[#allocation5 + $0x1100] sm:$0xff]  ;;  %v621_v28 = vld [vmem:[#allocation5 + $0x10a8] sm:$0xff] }
 0x29a   :  { %v633_v29 = vld [vmem:[#allocation5 + $0x1108] sm:$0xff]  ;;  %v14060_v32 = vcombine.high %v620_v26, %v632_v27  ;;  %v14059_v44 = vcombine.low %v620_v26, %v632_v27 }
 0x29b   :  { %v14062_v15 = vcombine.high %v621_v28, %v633_v29  ;;  %v14061_v45 = vcombine.low %v621_v28, %v633_v29 }
 0x29c   :  { %10145 = vmatpush1.bf16.msra.mxu0 %v13891_v35  ;;  %10309 = vmatpush1.bf16.msra.mxu1 %v13893_v36  ;;  %v644_v35 = vld [vmem:[#allocation5 + $0x1160] sm:$0xff] }
 0x29d   :  { %10155 = vmatprep.subr.bf16.mxu0 %v13916_v41  ;;  %10319 = vmatprep.subr.bf16.mxu1 %v13918_v42  ;;  %v656_v36 = vld [vmem:[#allocation5 + $0x11c0] sm:$0xff]  ;;  %v645_v41 = vld [vmem:[#allocation5 + $0x1168] sm:$0xff] }
 0x29e   :  { %v657_v42 = vld [vmem:[#allocation5 + $0x11c8] sm:$0xff]  ;;  %v14084_v46 = vcombine.high %v644_v35, %v656_v36  ;;  %v14083_v52 = vcombine.low %v644_v35, %v656_v36 }
 0x29f   :  { %10147 = vmatmul.mubr.bf16.vlgmr.msra.gmra.mrb[8].mxu0 %v16144_v12  ;;  %10311 = vmatmul.mubr.bf16.vlgmr.msra.gmra.mrb[8].mxu1 %v16144_v12  ;;  %v14086_v47 = vcombine.high %v645_v41, %v657_v42  ;;  %v14085_v54 = vcombine.low %v645_v41, %v657_v42 }
 0x2a0   :  { %10156 = vmatpush1.bf16.msra.mxu0 %v13915_v24  ;;  %10320 = vmatpush1.bf16.msra.mxu1 %v13917_v49  ;;  %v668_v24 = vld [vmem:[#allocation5 + $0x1220] sm:$0xff] }
 0x2a1   :  { %10157 = vmatprep.subr.bf16.mxu0 %v13940_v50  ;;  %10321 = vmatprep.subr.bf16.mxu1 %v13942_v51  ;;  %v680_v49 = vld [vmem:[#allocation5 + $0x1280] sm:$0xff]  ;;  %v669_v50 = vld [vmem:[#allocation5 + $0x1228] sm:$0xff] }
 0x2a2   :  { %10187 = vmatprep.mubr.bf16.mxu0 %v16150_v53  ;;  %10351 = vmatprep.mubr.bf16.mxu1 %v16150_v53  ;;  %v681_v51 = vld [vmem:[#allocation5 + $0x1288] sm:$0xff]  ;;  %v14108_v55 = vcombine.high %v668_v24, %v680_v49  ;;  %v14107_v63 = vcombine.low %v668_v24, %v680_v49 }
 0x2a3   :  { %v14110_v56 = vcombine.high %v669_v50, %v681_v51  ;;  %v14109_v0 = vcombine.low %v669_v50, %v681_v51 }
 0x2a4   :  { %10158 = vmatpush1.bf16.msra.mxu0 %v13939_v59  ;;  %10322 = vmatpush1.bf16.msra.mxu1 %v13941_v60  ;;  %v692_v59 = vld [vmem:[#allocation5 + $0x12e0] sm:$0xff] }
 0x2a5   :  { %10159 = vmatprep.subr.bf16.mxu0 %v13964_v61  ;;  %10323 = vmatprep.subr.bf16.mxu1 %v13966_v62  ;;  %v704_v60 = vld [vmem:[#allocation5 + $0x1340] sm:$0xff]  ;;  %v693_v61 = vld [vmem:[#allocation5 + $0x12e8] sm:$0xff] }
 0x2a6   :  { %v705_v62 = vld [vmem:[#allocation5 + $0x1348] sm:$0xff]  ;;  %v14132_v1 = vcombine.high %v692_v59, %v704_v60  ;;  %v14131_v6 = vcombine.low %v692_v59, %v704_v60 }
 0x2a7   :  { %v14134_v2 = vcombine.high %v693_v61, %v705_v62  ;;  %v14133_v7 = vcombine.low %v693_v61, %v705_v62 }
 0x2a8   :  { %10160 = vmatpush1.bf16.msra.mxu0 %v13963_v3  ;;  %10324 = vmatpush1.bf16.msra.mxu1 %v13965_v38  ;;  %v716_v3 = vld [vmem:[#allocation5 + $0x13a0] sm:$0xff] }
 0x2a9   :  { %10161 = vmatprep.subr.bf16.mxu0 %v13988_v4  ;;  %10325 = vmatprep.subr.bf16.mxu1 %v13990_v5  ;;  %v728_v38 = vld [vmem:[#allocation5 + $0x1400] sm:$0xff]  ;;  %v717_v4 = vld [vmem:[#allocation5 + $0x13a8] sm:$0xff] }
 0x2aa   :  { %v729_v5 = vld [vmem:[#allocation5 + $0x1408] sm:$0xff]  ;;  %v14156_v8 = vcombine.high %v716_v3, %v728_v38  ;;  %v14155_v16 = vcombine.low %v716_v3, %v728_v38 }
 0x2ab   :  { %v14158_v9 = vcombine.high %v717_v4, %v729_v5  ;;  %v14157_v17 = vcombine.low %v717_v4, %v729_v5 }
 0x2ac   :  { %10162 = vmatpush1.bf16.msra.mxu0 %v13987_v10  ;;  %10326 = vmatpush1.bf16.msra.mxu1 %v13989_v11  ;;  %v740_v10 = vld [vmem:[#allocation5 + $0x1460] sm:$0xff] }
 0x2ad   :  { %10163 = vmatprep.subr.bf16.mxu0 %v14012_v13  ;;  %10327 = vmatprep.subr.bf16.mxu1 %v14014_v14  ;;  %v752_v11 = vld [vmem:[#allocation5 + $0x14c0] sm:$0xff]  ;;  %v741_v13 = vld [vmem:[#allocation5 + $0x1468] sm:$0xff] }
 0x2ae   :  { %v753_v14 = vld [vmem:[#allocation5 + $0x14c8] sm:$0xff]  ;;  %v14180_v18 = vcombine.high %v740_v10, %v752_v11  ;;  %v14179_v26 = vcombine.low %v740_v10, %v752_v11 }
 0x2af   :  { %v14182_v19 = vcombine.high %v741_v13, %v753_v14  ;;  %v14181_v27 = vcombine.low %v741_v13, %v753_v14 }
 0x2b0   :  { %10164 = vmatpush1.bf16.msra.mxu0 %v14011_v20  ;;  %10328 = vmatpush1.bf16.msra.mxu1 %v14013_v21  ;;  %v764_v20 = vld [vmem:[#allocation5 + $0x1520] sm:$0xff] }
 0x2b1   :  { %10165 = vmatprep.subr.bf16.mxu0 %v14036_v22  ;;  %10329 = vmatprep.subr.bf16.mxu1 %v14038_v23  ;;  %v776_v21 = vld [vmem:[#allocation5 + $0x1580] sm:$0xff]  ;;  %v765_v22 = vld [vmem:[#allocation5 + $0x1528] sm:$0xff] }
 0x2b2   :  { %v777_v23 = vld [vmem:[#allocation5 + $0x1588] sm:$0xff]  ;;  %v14204_v28 = vcombine.high %v764_v20, %v776_v21  ;;  %v14203_v35 = vcombine.low %v764_v20, %v776_v21 }
 0x2b3   :  { %v14206_v29 = vcombine.high %v765_v22, %v777_v23  ;;  %v14205_v36 = vcombine.low %v765_v22, %v777_v23 }
 0x2b4   :  { %10166 = vmatpush1.bf16.msra.mxu0 %v14035_v30  ;;  %10330 = vmatpush1.bf16.msra.mxu1 %v14037_v31  ;;  %v788_v30 = vld [vmem:[#allocation5 + $0x15e0] sm:$0xff] }
 0x2b5   :  { %10167 = vmatprep.subr.bf16.mxu0 %v14060_v32  ;;  %10331 = vmatprep.subr.bf16.mxu1 %v14062_v15  ;;  %v800_v31 = vld [vmem:[#allocation5 + $0x1640] sm:$0xff]  ;;  %v789_v32 = vld [vmem:[#allocation5 + $0x15e8] sm:$0xff] }
 0x2b6   :  { %v801_v15 = vld [vmem:[#allocation5 + $0x1648] sm:$0xff]  ;;  %v14228_v41 = vcombine.high %v788_v30, %v800_v31  ;;  %v14227_v24 = vcombine.low %v788_v30, %v800_v31 }
 0x2b7   :  { %v14230_v42 = vcombine.high %v789_v32, %v801_v15  ;;  %v14229_v49 = vcombine.low %v789_v32, %v801_v15 }
 0x2b8   :  { %10168 = vmatpush1.bf16.msra.mxu0 %v14059_v44  ;;  %10332 = vmatpush1.bf16.msra.mxu1 %v14061_v45  ;;  %v812_v44 = vld [vmem:[#allocation5 + $0x16a0] sm:$0xff] }
 0x2b9   :  { %10169 = vmatprep.subr.bf16.mxu0 %v14084_v46  ;;  %10333 = vmatprep.subr.bf16.mxu1 %v14086_v47  ;;  %v824_v45 = vld [vmem:[#allocation5 + $0x1700] sm:$0xff]  ;;  %v813_v46 = vld [vmem:[#allocation5 + $0x16a8] sm:$0xff] }
 0x2ba   :  { %v825_v47 = vld [vmem:[#allocation5 + $0x1708] sm:$0xff]  ;;  %v14252_v50 = vcombine.high %v812_v44, %v824_v45  ;;  %v14251_v59 = vcombine.low %v812_v44, %v824_v45 }
 0x2bb   :  { %v14254_v51 = vcombine.high %v813_v46, %v825_v47  ;;  %v14253_v60 = vcombine.low %v813_v46, %v825_v47 }
 0x2bc   :  { %10170 = vmatpush1.bf16.msra.mxu0 %v14083_v52  ;;  %10334 = vmatpush1.bf16.msra.mxu1 %v14085_v54  ;;  %v836_v52 = vld [vmem:[#allocation5 + $0x1760] sm:$0xff] }
 0x2bd   :  { %10171 = vmatprep.subr.bf16.mxu0 %v14108_v55  ;;  %10335 = vmatprep.subr.bf16.mxu1 %v14110_v56  ;;  %v848_v54 = vld [vmem:[#allocation5 + $0x17c0] sm:$0xff]  ;;  %v837_v55 = vld [vmem:[#allocation5 + $0x1768] sm:$0xff] }
 0x2be   :  { %v849_v56 = vld [vmem:[#allocation5 + $0x17c8] sm:$0xff]  ;;  %v14276_v61 = vcombine.high %v836_v52, %v848_v54  ;;  %v14275_v3 = vcombine.low %v836_v52, %v848_v54 }
 0x2bf   :  { %v14278_v62 = vcombine.high %v837_v55, %v849_v56  ;;  %v14277_v38 = vcombine.low %v837_v55, %v849_v56 }
 0x2c0   :  { %10172 = vmatpush1.bf16.msra.mxu0 %v14107_v63  ;;  %10336 = vmatpush1.bf16.msra.mxu1 %v14109_v0  ;;  %v860_v63 = vld [vmem:[#allocation5 + $0x1820] sm:$0xff] }
 0x2c1   :  { %10173 = vmatprep.subr.bf16.mxu0 %v14132_v1  ;;  %10337 = vmatprep.subr.bf16.mxu1 %v14134_v2  ;;  %v872_v0 = vld [vmem:[#allocation5 + $0x1880] sm:$0xff]  ;;  %v861_v1 = vld [vmem:[#allocation5 + $0x1828] sm:$0xff] }
 0x2c2   :  { %v873_v2 = vld [vmem:[#allocation5 + $0x1888] sm:$0xff]  ;;  %v14300_v4 = vcombine.high %v860_v63, %v872_v0  ;;  %v14299_v10 = vcombine.low %v860_v63, %v872_v0 }
 0x2c3   :  { %v14302_v5 = vcombine.high %v861_v1, %v873_v2  ;;  %v14301_v11 = vcombine.low %v861_v1, %v873_v2 }
 0x2c4   :  { %10174 = vmatpush1.bf16.msra.mxu0 %v14131_v6  ;;  %10338 = vmatpush1.bf16.msra.mxu1 %v14133_v7  ;;  %v884_v6 = vld [vmem:[#allocation5 + $0x18e0] sm:$0xff] }
 0x2c5   :  { %10175 = vmatprep.subr.bf16.mxu0 %v14156_v8  ;;  %10339 = vmatprep.subr.bf16.mxu1 %v14158_v9  ;;  %v896_v7 = vld [vmem:[#allocation5 + $0x1940] sm:$0xff]  ;;  %v885_v8 = vld [vmem:[#allocation5 + $0x18e8] sm:$0xff] }
 0x2c6   :  { %v897_v9 = vld [vmem:[#allocation5 + $0x1948] sm:$0xff]  ;;  %v14324_v13 = vcombine.high %v884_v6, %v896_v7  ;;  %v14323_v20 = vcombine.low %v884_v6, %v896_v7 }
 0x2c7   :  { %v14326_v14 = vcombine.high %v885_v8, %v897_v9  ;;  %v14325_v21 = vcombine.low %v885_v8, %v897_v9 }
 0x2c8   :  { %10176 = vmatpush1.bf16.msra.mxu0 %v14155_v16  ;;  %10340 = vmatpush1.bf16.msra.mxu1 %v14157_v17  ;;  %v908_v16 = vld [vmem:[#allocation5 + $0x19a0] sm:$0xff] }
 0x2c9   :  { %10177 = vmatprep.subr.bf16.mxu0 %v14180_v18  ;;  %10341 = vmatprep.subr.bf16.mxu1 %v14182_v19  ;;  %v920_v17 = vld [vmem:[#allocation5 + $0x1a00] sm:$0xff]  ;;  %v909_v18 = vld [vmem:[#allocation5 + $0x19a8] sm:$0xff] }
 0x2ca   :  { %v921_v19 = vld [vmem:[#allocation5 + $0x1a08] sm:$0xff]  ;;  %v14348_v22 = vcombine.high %v908_v16, %v920_v17  ;;  %v14347_v30 = vcombine.low %v908_v16, %v920_v17 }
 0x2cb   :  { %v14350_v23 = vcombine.high %v909_v18, %v921_v19  ;;  %v14349_v31 = vcombine.low %v909_v18, %v921_v19 }
 0x2cc   :  { %10178 = vmatpush1.bf16.msra.mxu0 %v14179_v26  ;;  %10342 = vmatpush1.bf16.msra.mxu1 %v14181_v27  ;;  %v932_v26 = vld [vmem:[#allocation5 + $0x1a60] sm:$0xff] }
 0x2cd   :  { %10179 = vmatprep.subr.bf16.mxu0 %v14204_v28  ;;  %10343 = vmatprep.subr.bf16.mxu1 %v14206_v29  ;;  %v944_v27 = vld [vmem:[#allocation5 + $0x1ac0] sm:$0xff]  ;;  %v933_v28 = vld [vmem:[#allocation5 + $0x1a68] sm:$0xff] }
 0x2ce   :  { %v945_v29 = vld [vmem:[#allocation5 + $0x1ac8] sm:$0xff]  ;;  %v14372_v32 = vcombine.high %v932_v26, %v944_v27  ;;  %v14371_v44 = vcombine.low %v932_v26, %v944_v27 }
 0x2cf   :  { %v14374_v15 = vcombine.high %v933_v28, %v945_v29  ;;  %v14373_v45 = vcombine.low %v933_v28, %v945_v29 }
 0x2d0   :  { %10180 = vmatpush1.bf16.msra.mxu0 %v14203_v35  ;;  %10344 = vmatpush1.bf16.msra.mxu1 %v14205_v36  ;;  %v956_v35 = vld [vmem:[#allocation5 + $0x1b20] sm:$0xff] }
 0x2d1   :  { %10181 = vmatprep.subr.bf16.mxu0 %v14228_v41  ;;  %10345 = vmatprep.subr.bf16.mxu1 %v14230_v42  ;;  %v968_v36 = vld [vmem:[#allocation5 + $0x1b80] sm:$0xff]  ;;  %v957_v41 = vld [vmem:[#allocation5 + $0x1b28] sm:$0xff] }
 0x2d2   :  { %v969_v42 = vld [vmem:[#allocation5 + $0x1b88] sm:$0xff]  ;;  %v14396_v46 = vcombine.high %v956_v35, %v968_v36  ;;  %v14395_v52 = vcombine.low %v956_v35, %v968_v36 }
 0x2d3   :  { %v14398_v47 = vcombine.high %v957_v41, %v969_v42  ;;  %v14397_v54 = vcombine.low %v957_v41, %v969_v42 }
 0x2d4   :  { %10182 = vmatpush1.bf16.msra.mxu0 %v14227_v24  ;;  %10346 = vmatpush1.bf16.msra.mxu1 %v14229_v49  ;;  %v980_v24 = vld [vmem:[#allocation5 + $0x1be0] sm:$0xff] }
 0x2d5   :  { %10183 = vmatprep.subr.bf16.mxu0 %v14252_v50  ;;  %10347 = vmatprep.subr.bf16.mxu1 %v14254_v51  ;;  %v992_v49 = vld [vmem:[#allocation5 + $0x1c40] sm:$0xff]  ;;  %v981_v50 = vld [vmem:[#allocation5 + $0x1be8] sm:$0xff] }
 0x2d6   :  { %v993_v51 = vld [vmem:[#allocation5 + $0x1c48] sm:$0xff]  ;;  %v14420_v55 = vcombine.high %v980_v24, %v992_v49  ;;  %v14419_v63 = vcombine.low %v980_v24, %v992_v49 }
 0x2d7   :  { %v14422_v56 = vcombine.high %v981_v50, %v993_v51  ;;  %v14421_v0 = vcombine.low %v981_v50, %v993_v51 }
 0x2d8   :  { %10184 = vmatpush1.bf16.msra.mxu0 %v14251_v59  ;;  %10348 = vmatpush1.bf16.msra.mxu1 %v14253_v60  ;;  %v1004_v59 = vld [vmem:[#allocation5 + $0x1ca0] sm:$0xff] }
 0x2d9   :  { %10185 = vmatprep.subr.bf16.mxu0 %v14276_v61  ;;  %10349 = vmatprep.subr.bf16.mxu1 %v14278_v62  ;;  %v1016_v60 = vld [vmem:[#allocation5 + $0x1d00] sm:$0xff]  ;;  %v1005_v61 = vld [vmem:[#allocation5 + $0x1ca8] sm:$0xff] }
 0x2da   :  { %v1017_v62 = vld [vmem:[#allocation5 + $0x1d08] sm:$0xff]  ;;  %v14444_v1 = vcombine.high %v1004_v59, %v1016_v60  ;;  %v14443_v6 = vcombine.low %v1004_v59, %v1016_v60 }
 0x2db   :  { %v14446_v2 = vcombine.high %v1005_v61, %v1017_v62  ;;  %v14445_v7 = vcombine.low %v1005_v61, %v1017_v62 }
 0x2dc   :  { %10186 = vmatpush1.bf16.msra.mxu0 %v14275_v3  ;;  %10350 = vmatpush1.bf16.msra.mxu1 %v14277_v38  ;;  %v1028_v3 = vld [vmem:[#allocation5 + $0x1d60] sm:$0xff] }
 0x2dd   :  { %10196 = vmatprep.subr.bf16.mxu0 %v14300_v4  ;;  %10360 = vmatprep.subr.bf16.mxu1 %v14302_v5  ;;  %v1040_v38 = vld [vmem:[#allocation5 + $0x1dc0] sm:$0xff]  ;;  %v1029_v4 = vld [vmem:[#allocation5 + $0x1d68] sm:$0xff] }
 0x2de   :  { %v1041_v5 = vld [vmem:[#allocation5 + $0x1dc8] sm:$0xff]  ;;  %v14468_v8 = vcombine.high %v1028_v3, %v1040_v38  ;;  %v14467_v16 = vcombine.low %v1028_v3, %v1040_v38 }
 0x2df   :  { %10188 = vmatmul.mubr.bf16.vlgmr.msra.gmra.mrb[8].mxu0 %v16160_v25  ;;  %10352 = vmatmul.mubr.bf16.vlgmr.msra.gmra.mrb[8].mxu1 %v16160_v25  ;;  %v14470_v9 = vcombine.high %v1029_v4, %v1041_v5  ;;  %v14469_v17 = vcombine.low %v1029_v4, %v1041_v5 }
 0x2e0   :  { %10197 = vmatpush1.bf16.msra.mxu0 %v14299_v10  ;;  %10361 = vmatpush1.bf16.msra.mxu1 %v14301_v11  ;;  %v1052_v10 = vld [vmem:[#allocation5 + $0x1e20] sm:$0xff] }
 0x2e1   :  { %10198 = vmatprep.subr.bf16.mxu0 %v14324_v13  ;;  %10362 = vmatprep.subr.bf16.mxu1 %v14326_v14  ;;  %v1064_v11 = vld [vmem:[#allocation5 + $0x1e80] sm:$0xff]  ;;  %v1053_v13 = vld [vmem:[#allocation5 + $0x1e28] sm:$0xff] }
 0x2e2   :  { %10228 = vmatprep.mubr.bf16.mxu0 %v16164_v34  ;;  %10392 = vmatprep.mubr.bf16.mxu1 %v16164_v34  ;;  %v1065_v14 = vld [vmem:[#allocation5 + $0x1e88] sm:$0xff]  ;;  %v14492_v18 = vcombine.high %v1052_v10, %v1064_v11  ;;  %v14491_v26 = vcombine.low %v1052_v10, %v1064_v11 }
 0x2e3   :  { %v14494_v19 = vcombine.high %v1053_v13, %v1065_v14  ;;  %v14493_v27 = vcombine.low %v1053_v13, %v1065_v14 }
 0x2e4   :  { %10199 = vmatpush1.bf16.msra.mxu0 %v14323_v20  ;;  %10363 = vmatpush1.bf16.msra.mxu1 %v14325_v21  ;;  %v1076_v20 = vld [vmem:[#allocation5 + $0x1ee0] sm:$0xff] }
 0x2e5   :  { %10200 = vmatprep.subr.bf16.mxu0 %v14348_v22  ;;  %10364 = vmatprep.subr.bf16.mxu1 %v14350_v23  ;;  %v1088_v21 = vld [vmem:[#allocation5 + $0x1f40] sm:$0xff]  ;;  %v1077_v22 = vld [vmem:[#allocation5 + $0x1ee8] sm:$0xff] }
 0x2e6   :  { %v1089_v23 = vld [vmem:[#allocation5 + $0x1f48] sm:$0xff]  ;;  %v14516_v28 = vcombine.high %v1076_v20, %v1088_v21  ;;  %v14515_v35 = vcombine.low %v1076_v20, %v1088_v21 }
 0x2e7   :  { %v14518_v29 = vcombine.high %v1077_v22, %v1089_v23  ;;  %v14517_v36 = vcombine.low %v1077_v22, %v1089_v23 }
 0x2e8   :  { %10201 = vmatpush1.bf16.msra.mxu0 %v14347_v30  ;;  %10365 = vmatpush1.bf16.msra.mxu1 %v14349_v31  ;;  %v1100_v30 = vld [vmem:[#allocation5 + $0x1fa0] sm:$0xff] }
 0x2e9   :  { %10202 = vmatprep.subr.bf16.mxu0 %v14372_v32  ;;  %10366 = vmatprep.subr.bf16.mxu1 %v14374_v15  ;;  %v1112_v31 = vld [vmem:[#allocation5 + $0x2000] sm:$0xff]  ;;  %v1101_v32 = vld [vmem:[#allocation5 + $0x1fa8] sm:$0xff] }
 0x2ea   :  { %v1113_v15 = vld [vmem:[#allocation5 + $0x2008] sm:$0xff]  ;;  %v14540_v41 = vcombine.high %v1100_v30, %v1112_v31  ;;  %v14539_v24 = vcombine.low %v1100_v30, %v1112_v31 }
 0x2eb   :  { %v14542_v42 = vcombine.high %v1101_v32, %v1113_v15  ;;  %v14541_v49 = vcombine.low %v1101_v32, %v1113_v15 }
 0x2ec   :  { %10203 = vmatpush1.bf16.msra.mxu0 %v14371_v44  ;;  %10367 = vmatpush1.bf16.msra.mxu1 %v14373_v45  ;;  %v1124_v44 = vld [vmem:[#allocation5 + $0x2060] sm:$0xff] }
 0x2ed   :  { %10204 = vmatprep.subr.bf16.mxu0 %v14396_v46  ;;  %10368 = vmatprep.subr.bf16.mxu1 %v14398_v47  ;;  %v1136_v45 = vld [vmem:[#allocation5 + $0x20c0] sm:$0xff]  ;;  %v1125_v46 = vld [vmem:[#allocation5 + $0x2068] sm:$0xff] }
 0x2ee   :  { %v1137_v47 = vld [vmem:[#allocation5 + $0x20c8] sm:$0xff]  ;;  %v14564_v50 = vcombine.high %v1124_v44, %v1136_v45  ;;  %v14563_v59 = vcombine.low %v1124_v44, %v1136_v45 }
 0x2ef   :  { %v14566_v51 = vcombine.high %v1125_v46, %v1137_v47  ;;  %v14565_v60 = vcombine.low %v1125_v46, %v1137_v47 }
 0x2f0   :  { %10205 = vmatpush1.bf16.msra.mxu0 %v14395_v52  ;;  %10369 = vmatpush1.bf16.msra.mxu1 %v14397_v54  ;;  %v1148_v52 = vld [vmem:[#allocation5 + $0x2120] sm:$0xff] }
 0x2f1   :  { %10206 = vmatprep.subr.bf16.mxu0 %v14420_v55  ;;  %10370 = vmatprep.subr.bf16.mxu1 %v14422_v56  ;;  %v1160_v54 = vld [vmem:[#allocation5 + $0x2180] sm:$0xff]  ;;  %v1149_v55 = vld [vmem:[#allocation5 + $0x2128] sm:$0xff] }
 0x2f2   :  { %v1161_v56 = vld [vmem:[#allocation5 + $0x2188] sm:$0xff]  ;;  %v14588_v61 = vcombine.high %v1148_v52, %v1160_v54  ;;  %v14587_v3 = vcombine.low %v1148_v52, %v1160_v54 }
 0x2f3   :  { %v14590_v62 = vcombine.high %v1149_v55, %v1161_v56  ;;  %v14589_v38 = vcombine.low %v1149_v55, %v1161_v56 }
 0x2f4   :  { %10207 = vmatpush1.bf16.msra.mxu0 %v14419_v63  ;;  %10371 = vmatpush1.bf16.msra.mxu1 %v14421_v0  ;;  %v1172_v63 = vld [vmem:[#allocation5 + $0x21e0] sm:$0xff] }
 0x2f5   :  { %10208 = vmatprep.subr.bf16.mxu0 %v14444_v1  ;;  %10372 = vmatprep.subr.bf16.mxu1 %v14446_v2  ;;  %v1184_v0 = vld [vmem:[#allocation5 + $0x2240] sm:$0xff]  ;;  %v1173_v1 = vld [vmem:[#allocation5 + $0x21e8] sm:$0xff] }
 0x2f6   :  { %v1185_v2 = vld [vmem:[#allocation5 + $0x2248] sm:$0xff]  ;;  %v14612_v4 = vcombine.high %v1172_v63, %v1184_v0  ;;  %v14611_v10 = vcombine.low %v1172_v63, %v1184_v0 }
 0x2f7   :  { %v14614_v5 = vcombine.high %v1173_v1, %v1185_v2  ;;  %v14613_v11 = vcombine.low %v1173_v1, %v1185_v2 }
 0x2f8   :  { %10209 = vmatpush1.bf16.msra.mxu0 %v14443_v6  ;;  %10373 = vmatpush1.bf16.msra.mxu1 %v14445_v7  ;;  %v1196_v6 = vld [vmem:[#allocation5 + $0x22a0] sm:$0xff] }
 0x2f9   :  { %10210 = vmatprep.subr.bf16.mxu0 %v14468_v8  ;;  %10374 = vmatprep.subr.bf16.mxu1 %v14470_v9  ;;  %v1208_v7 = vld [vmem:[#allocation5 + $0x2300] sm:$0xff]  ;;  %v1197_v8 = vld [vmem:[#allocation5 + $0x22a8] sm:$0xff] }
 0x2fa   :  { %v1209_v9 = vld [vmem:[#allocation5 + $0x2308] sm:$0xff]  ;;  %v14636_v13 = vcombine.high %v1196_v6, %v1208_v7  ;;  %v14635_v20 = vcombine.low %v1196_v6, %v1208_v7 }
 0x2fb   :  { %v14638_v14 = vcombine.high %v1197_v8, %v1209_v9  ;;  %v14637_v21 = vcombine.low %v1197_v8, %v1209_v9 }
 0x2fc   :  { %10211 = vmatpush1.bf16.msra.mxu0 %v14467_v16  ;;  %10375 = vmatpush1.bf16.msra.mxu1 %v14469_v17  ;;  %v1220_v16 = vld [vmem:[#allocation5 + $0x2360] sm:$0xff] }
 0x2fd   :  { %10212 = vmatprep.subr.bf16.mxu0 %v14492_v18  ;;  %10376 = vmatprep.subr.bf16.mxu1 %v14494_v19  ;;  %v1232_v17 = vld [vmem:[#allocation5 + $0x23c0] sm:$0xff]  ;;  %v1221_v18 = vld [vmem:[#allocation5 + $0x2368] sm:$0xff] }
 0x2fe   :  { %v1233_v19 = vld [vmem:[#allocation5 + $0x23c8] sm:$0xff]  ;;  %v14660_v22 = vcombine.high %v1220_v16, %v1232_v17  ;;  %v14659_v30 = vcombine.low %v1220_v16, %v1232_v17 }
 0x2ff   :  { %v14662_v23 = vcombine.high %v1221_v18, %v1233_v19  ;;  %v14661_v31 = vcombine.low %v1221_v18, %v1233_v19 }
 0x300   :  { %10213 = vmatpush1.bf16.msra.mxu0 %v14491_v26  ;;  %10377 = vmatpush1.bf16.msra.mxu1 %v14493_v27  ;;  %v1244_v26 = vld [vmem:[#allocation5 + $0x2420] sm:$0xff] }
 0x301   :  { %10214 = vmatprep.subr.bf16.mxu0 %v14516_v28  ;;  %10378 = vmatprep.subr.bf16.mxu1 %v14518_v29  ;;  %v1256_v27 = vld [vmem:[#allocation5 + $0x2480] sm:$0xff]  ;;  %v1245_v28 = vld [vmem:[#allocation5 + $0x2428] sm:$0xff] }
 0x302   :  { %v1257_v29 = vld [vmem:[#allocation5 + $0x2488] sm:$0xff]  ;;  %v14684_v32 = vcombine.high %v1244_v26, %v1256_v27  ;;  %v14683_v44 = vcombine.low %v1244_v26, %v1256_v27 }
 0x303   :  { %v14686_v15 = vcombine.high %v1245_v28, %v1257_v29  ;;  %v14685_v45 = vcombine.low %v1245_v28, %v1257_v29 }
 0x304   :  { %10215 = vmatpush1.bf16.msra.mxu0 %v14515_v35  ;;  %10379 = vmatpush1.bf16.msra.mxu1 %v14517_v36  ;;  %v1268_v35 = vld [vmem:[#allocation5 + $0x24e0] sm:$0xff] }
 0x305   :  { %10216 = vmatprep.subr.bf16.mxu0 %v14540_v41  ;;  %10380 = vmatprep.subr.bf16.mxu1 %v14542_v42  ;;  %v1280_v36 = vld [vmem:[#allocation5 + $0x2540] sm:$0xff]  ;;  %v1269_v41 = vld [vmem:[#allocation5 + $0x24e8] sm:$0xff] }
 0x306   :  { %v1281_v42 = vld [vmem:[#allocation5 + $0x2548] sm:$0xff]  ;;  %v14708_v46 = vcombine.high %v1268_v35, %v1280_v36  ;;  %v14707_v52 = vcombine.low %v1268_v35, %v1280_v36 }
 0x307   :  { %v14710_v47 = vcombine.high %v1269_v41, %v1281_v42  ;;  %v14709_v54 = vcombine.low %v1269_v41, %v1281_v42  ;;  %v1413_v36 = vld [vmem:[#allocation5 + $0x2968] sm:$0xff] }
 0x308   :  { %10217 = vmatpush1.bf16.msra.mxu0 %v14539_v24  ;;  %10381 = vmatpush1.bf16.msra.mxu1 %v14541_v49  ;;  %v1292_v24 = vld [vmem:[#allocation5 + $0x25a0] sm:$0xff]  ;;  %v1425_v41 = vld [vmem:[#allocation5 + $0x29c8] sm:$0xff] }
 0x309   :  { %10218 = vmatprep.subr.bf16.mxu0 %v14564_v50  ;;  %10382 = vmatprep.subr.bf16.mxu1 %v14566_v51  ;;  %v1304_v49 = vld [vmem:[#allocation5 + $0x2600] sm:$0xff]  ;;  %v1293_v50 = vld [vmem:[#allocation5 + $0x25a8] sm:$0xff] }
 0x30a   :  { %v1305_v51 = vld [vmem:[#allocation5 + $0x2608] sm:$0xff]  ;;  %v14732_v55 = vcombine.high %v1292_v24, %v1304_v49  ;;  %v14731_v63 = vcombine.low %v1292_v24, %v1304_v49 }
 0x30b   :  { %v14734_v56 = vcombine.high %v1293_v50, %v1305_v51  ;;  %v14733_v0 = vcombine.low %v1293_v50, %v1305_v51  ;;  %v14854_v51 = vcombine.high %v1413_v36, %v1425_v41 }
 0x30c   :  { %10219 = vmatpush1.bf16.msra.mxu0 %v14563_v59  ;;  %10383 = vmatpush1.bf16.msra.mxu1 %v14565_v60  ;;  %v1316_v59 = vld [vmem:[#allocation5 + $0x2660] sm:$0xff] }
 0x30d   :  { %10220 = vmatprep.subr.bf16.mxu0 %v14588_v61  ;;  %10384 = vmatprep.subr.bf16.mxu1 %v14590_v62  ;;  %v1328_v60 = vld [vmem:[#allocation5 + $0x26c0] sm:$0xff]  ;;  %v1317_v61 = vld [vmem:[#allocation5 + $0x2668] sm:$0xff] }
 0x30e   :  { %v1329_v62 = vld [vmem:[#allocation5 + $0x26c8] sm:$0xff]  ;;  %v14756_v1 = vcombine.high %v1316_v59, %v1328_v60  ;;  %v14755_v6 = vcombine.low %v1316_v59, %v1328_v60  ;;  %v14853_v60 = vcombine.low %v1413_v36, %v1425_v41 }
 0x30f   :  { %v14758_v2 = vcombine.high %v1317_v61, %v1329_v62  ;;  %v14757_v7 = vcombine.low %v1317_v61, %v1329_v62 }
 0x310   :  { %10221 = vmatpush1.bf16.msra.mxu0 %v14587_v3  ;;  %10385 = vmatpush1.bf16.msra.mxu1 %v14589_v38  ;;  %v1340_v3 = vld [vmem:[#allocation5 + $0x2720] sm:$0xff] }
 0x311   :  { %10222 = vmatprep.subr.bf16.mxu0 %v14612_v4  ;;  %10386 = vmatprep.subr.bf16.mxu1 %v14614_v5  ;;  %v1352_v38 = vld [vmem:[#allocation5 + $0x2780] sm:$0xff]  ;;  %v1341_v4 = vld [vmem:[#allocation5 + $0x2728] sm:$0xff] }
 0x312   :  { %v1353_v5 = vld [vmem:[#allocation5 + $0x2788] sm:$0xff]  ;;  %v14780_v8 = vcombine.high %v1340_v3, %v1352_v38  ;;  %v14779_v16 = vcombine.low %v1340_v3, %v1352_v38 }
 0x313   :  { %v14782_v9 = vcombine.high %v1341_v4, %v1353_v5  ;;  %v14781_v17 = vcombine.low %v1341_v4, %v1353_v5 }
 0x314   :  { %10223 = vmatpush1.bf16.msra.mxu0 %v14611_v10  ;;  %10387 = vmatpush1.bf16.msra.mxu1 %v14613_v11  ;;  %v1364_v10 = vld [vmem:[#allocation5 + $0x27e0] sm:$0xff] }
 0x315   :  { %10224 = vmatprep.subr.bf16.mxu0 %v14636_v13  ;;  %10388 = vmatprep.subr.bf16.mxu1 %v14638_v14  ;;  %v1376_v11 = vld [vmem:[#allocation5 + $0x2840] sm:$0xff]  ;;  %v1365_v13 = vld [vmem:[#allocation5 + $0x27e8] sm:$0xff] }
 0x316   :  { %v1377_v14 = vld [vmem:[#allocation5 + $0x2848] sm:$0xff]  ;;  %v14804_v18 = vcombine.high %v1364_v10, %v1376_v11  ;;  %v14803_v26 = vcombine.low %v1364_v10, %v1376_v11 }
 0x317   :  { %v14806_v19 = vcombine.high %v1365_v13, %v1377_v14  ;;  %v14805_v27 = vcombine.low %v1365_v13, %v1377_v14 }
 0x318   :  { %10225 = vmatpush1.bf16.msra.mxu0 %v14635_v20  ;;  %10389 = vmatpush1.bf16.msra.mxu1 %v14637_v21  ;;  %v1388_v20 = vld [vmem:[#allocation5 + $0x28a0] sm:$0xff] }
 0x319   :  { %10226 = vmatprep.subr.bf16.mxu0 %v14660_v22  ;;  %10390 = vmatprep.subr.bf16.mxu1 %v14662_v23  ;;  %v1400_v21 = vld [vmem:[#allocation5 + $0x2900] sm:$0xff]  ;;  %v1389_v22 = vld [vmem:[#allocation5 + $0x28a8] sm:$0xff] }
 0x31a   :  { %v1401_v23 = vld [vmem:[#allocation5 + $0x2908] sm:$0xff]  ;;  %v14828_v28 = vcombine.high %v1388_v20, %v1400_v21 }
 0x31b   :  { %v14829_v24 = vcombine.low %v1389_v22, %v1401_v23 }
 0x31c   :  { %10227 = vmatpush1.bf16.msra.mxu0 %v14659_v30  ;;  %10391 = vmatpush1.bf16.msra.mxu1 %v14661_v31  ;;  %v14830_v30 = vcombine.high %v1389_v22, %v1401_v23  ;;  %v1412_v31 = vld [vmem:[#allocation5 + $0x2960] sm:$0xff] }
 0x31d   :  { %10237 = vmatprep.subr.bf16.mxu0 %v14684_v32  ;;  %10401 = vmatprep.subr.bf16.mxu1 %v14686_v15  ;;  %v1424_v32 = vld [vmem:[#allocation5 + $0x29c0] sm:$0xff] }
 0x31e   :  { %v14852_v49 = vcombine.high %v1412_v31, %v1424_v32  ;;  %v14851_v59 = vcombine.low %v1412_v31, %v1424_v32 }
 0x31f   :  { %10229 = vmatmul.mubr.bf16.vlgmr.msra.gmra.mrb[8].mxu0 %v16174_v39  ;;  %10393 = vmatmul.mubr.bf16.vlgmr.msra.gmra.mrb[8].mxu1 %v16174_v39 }
 0x320   :  { %10238 = vmatpush1.bf16.msra.mxu0 %v14683_v44  ;;  %10402 = vmatpush1.bf16.msra.mxu1 %v14685_v45  ;;  %v14827_v45 = vcombine.low %v1388_v20, %v1400_v21 }
 0x321   :  { %10239 = vmatprep.subr.bf16.mxu0 %v14708_v46  ;;  %10403 = vmatprep.subr.bf16.mxu1 %v14710_v47 }
 0x322   :  { %10269 = vmatprep.mubr.bf16.mxu0 %v16178_v48  ;;  %10433 = vmatprep.mubr.bf16.mxu1 %v16178_v48 }
 0x324   :  { %10240 = vmatpush1.bf16.msra.mxu0 %v14707_v52  ;;  %10404 = vmatpush1.bf16.msra.mxu1 %v14709_v54  ;;  %v1436_v52 = vld [vmem:[#allocation5 + $0x2a20] sm:$0xff] }
 0x325   :  { %10241 = vmatprep.subr.bf16.mxu0 %v14732_v55  ;;  %10405 = vmatprep.subr.bf16.mxu1 %v14734_v56  ;;  %v1448_v54 = vld [vmem:[#allocation5 + $0x2a80] sm:$0xff]  ;;  %v1437_v55 = vld [vmem:[#allocation5 + $0x2a28] sm:$0xff] }
 0x326   :  { %v1449_v56 = vld [vmem:[#allocation5 + $0x2a88] sm:$0xff]  ;;  %v14876_v61 = vcombine.high %v1436_v52, %v1448_v54  ;;  %v14875_v3 = vcombine.low %v1436_v52, %v1448_v54  ;;  %v1580_v52 = vld [vmem:[#allocation5 + $0x2ea0] sm:$0xff] }
 0x327   :  { %v14878_v62 = vcombine.high %v1437_v55, %v1449_v56  ;;  %v14877_v38 = vcombine.low %v1437_v55, %v1449_v56  ;;  %v1592_v54 = vld [vmem:[#allocation5 + $0x2f00] sm:$0xff]  ;;  %v1581_v55 = vld [vmem:[#allocation5 + $0x2ea8] sm:$0xff] }
 0x328   :  { %10242 = vmatpush1.bf16.msra.mxu0 %v14731_v63  ;;  %10406 = vmatpush1.bf16.msra.mxu1 %v14733_v0  ;;  %v1460_v63 = vld [vmem:[#allocation5 + $0x2ae0] sm:$0xff]  ;;  %v1593_v56 = vld [vmem:[#allocation5 + $0x2f08] sm:$0xff] }
 0x329   :  { %10243 = vmatprep.subr.bf16.mxu0 %v14756_v1  ;;  %10407 = vmatprep.subr.bf16.mxu1 %v14758_v2  ;;  %v1472_v0 = vld [vmem:[#allocation5 + $0x2b40] sm:$0xff]  ;;  %v1461_v1 = vld [vmem:[#allocation5 + $0x2ae8] sm:$0xff] }
 0x32a   :  { %v1473_v2 = vld [vmem:[#allocation5 + $0x2b48] sm:$0xff]  ;;  %v14900_v4 = vcombine.high %v1460_v63, %v1472_v0  ;;  %v14899_v10 = vcombine.low %v1460_v63, %v1472_v0  ;;  %v1604_v63 = vld [vmem:[#allocation5 + $0x2f60] sm:$0xff] }
 0x32b   :  { %v14902_v5 = vcombine.high %v1461_v1, %v1473_v2  ;;  %v14901_v11 = vcombine.low %v1461_v1, %v1473_v2  ;;  %v1616_v0 = vld [vmem:[#allocation5 + $0x2fc0] sm:$0xff]  ;;  %v1605_v1 = vld [vmem:[#allocation5 + $0x2f68] sm:$0xff] }
 0x32c   :  { %10244 = vmatpush1.bf16.msra.mxu0 %v14755_v6  ;;  %10408 = vmatpush1.bf16.msra.mxu1 %v14757_v7  ;;  %v1484_v6 = vld [vmem:[#allocation5 + $0x2ba0] sm:$0xff]  ;;  %v1617_v2 = vld [vmem:[#allocation5 + $0x2fc8] sm:$0xff] }
 0x32d   :  { %10245 = vmatprep.subr.bf16.mxu0 %v14780_v8  ;;  %10409 = vmatprep.subr.bf16.mxu1 %v14782_v9  ;;  %v1496_v7 = vld [vmem:[#allocation5 + $0x2c00] sm:$0xff]  ;;  %v1485_v8 = vld [vmem:[#allocation5 + $0x2ba8] sm:$0xff] }
 0x32e   :  { %v1497_v9 = vld [vmem:[#allocation5 + $0x2c08] sm:$0xff]  ;;  %v14924_v13 = vcombine.high %v1484_v6, %v1496_v7  ;;  %v14923_v20 = vcombine.low %v1484_v6, %v1496_v7  ;;  %v94_v6 = vld [vmem:[#allocation5 + $0x30] sm:$0xff] }
 0x32f   :  { %v14926_v14 = vcombine.high %v1485_v8, %v1497_v9  ;;  %v14925_v21 = vcombine.low %v1485_v8, %v1497_v9  ;;  %v106_v7 = vld [vmem:[#allocation5 + $0x90] sm:$0xff]  ;;  %v95_v8 = vld [vmem:[#allocation5 + $0x38] sm:$0xff] }
 0x330   :  { %10246 = vmatpush1.bf16.msra.mxu0 %v14779_v16  ;;  %10410 = vmatpush1.bf16.msra.mxu1 %v14781_v17  ;;  %v1508_v16 = vld [vmem:[#allocation5 + $0x2c60] sm:$0xff]  ;;  %v107_v9 = vld [vmem:[#allocation5 + $0x98] sm:$0xff] }
 0x331   :  { %10247 = vmatprep.subr.bf16.mxu0 %v14804_v18  ;;  %10411 = vmatprep.subr.bf16.mxu1 %v14806_v19  ;;  %v1520_v17 = vld [vmem:[#allocation5 + $0x2cc0] sm:$0xff]  ;;  %v1509_v18 = vld [vmem:[#allocation5 + $0x2c68] sm:$0xff] }
 0x332   :  { %v16228_v29 = vpop.f32.mrb[4].mxu0  ;;  %v16230_v15 = vpop.f32.mrb[4].mxu1  ;;  %v1521_v19 = vld [vmem:[#allocation5 + $0x2cc8] sm:$0xff]  ;;  %v14948_v22 = vcombine.high %v1508_v16, %v1520_v17  ;;  %v14947_v31 = vcombine.low %v1508_v16, %v1520_v17  ;;  %v118_v16 = vld [vmem:[#allocation5 + $0xf0] sm:$0xff] }
 0x333   :  { %v16232_v35 = vpop.f32.mrb[5].mxu0  ;;  %v16234_v42 = vpop.f32.mrb[5].mxu1  ;;  %v14950_v23 = vcombine.high %v1509_v18, %v1521_v19  ;;  %v14949_v32 = vcombine.low %v1509_v18, %v1521_v19  ;;  %v130_v17 = vld [vmem:[#allocation5 + $0x150] sm:$0xff]  ;;  %v119_v18 = vld [vmem:[#allocation5 + $0xf8] sm:$0xff] }
 0x334   :  { %v9947_v44 = vpop.f32.mrb[6].mxu0  ;;  %10248 = vmatpush1.bf16.msra.mxu0 %v14803_v26  ;;  %v10111_v46 = vpop.f32.mrb[6].mxu1  ;;  %10412 = vmatpush1.bf16.msra.mxu1 %v14805_v27  ;;  %v1532_v26 = vld [vmem:[#allocation5 + $0x2d20] sm:$0xff]  ;;  %v131_v19 = vld [vmem:[#allocation5 + $0x158] sm:$0xff] }
 0x335   :  { %v9948_v47 = vpop.f32.mrb[7].mxu0  ;;  %10249 = vmatprep.subr.bf16.mxu0 %v14828_v28  ;;  %v10112_v50 = vpop.f32.mrb[7].mxu1  ;;  %10413 = vmatprep.subr.bf16.mxu1 %v14830_v30  ;;  %v1544_v27 = vld [vmem:[#allocation5 + $0x2d80] sm:$0xff]  ;;  %v1533_v28 = vld [vmem:[#allocation5 + $0x2d28] sm:$0xff] }
 0x336   :  { %v1545_v30 = vld [vmem:[#allocation5 + $0x2d88] sm:$0xff]  ;;  %v14972_v36 = vcombine.high %v1532_v26, %v1544_v27  ;;  %v1556_v44 = vld [vmem:[#allocation5 + $0x2de0] sm:$0xff] }
 0x337   :  { %v14974_v41 = vcombine.high %v1533_v28, %v1545_v30  ;;  %v1557_v46 = vld [vmem:[#allocation5 + $0x2de8] sm:$0xff] }
 0x338   :  { %10250 = vmatpush1.bf16.msra.mxu0 %v14827_v45  ;;  %10414 = vmatpush1.bf16.msra.mxu1 %v14829_v24  ;;  %v1568_v45 = vld [vmem:[#allocation5 + $0x2e40] sm:$0xff]  ;;  %v1569_v47 = vld [vmem:[#allocation5 + $0x2e48] sm:$0xff]  ;;  %v14971_v24 = vcombine.low %v1532_v26, %v1544_v27  ;;  %v142_v26 = vld [vmem:[#allocation5 + $0x1b0] sm:$0xff] }
 0x339   :  { %10251 = vmatprep.subr.bf16.mxu0 %v14852_v49  ;;  %10415 = vmatprep.subr.bf16.mxu1 %v14854_v51  ;;  %v14973_v49 = vcombine.low %v1533_v28, %v1545_v30  ;;  %v14996_v50 = vcombine.high %v1556_v44, %v1568_v45  ;;  %v14998_v51 = vcombine.high %v1557_v46, %v1569_v47  ;;  %v154_v27 = vld [vmem:[#allocation5 + $0x210] sm:$0xff]  ;;  %v143_v28 = vld [vmem:[#allocation5 + $0x1b8] sm:$0xff] }
 0x33a   :  { %v155_v30 = vld [vmem:[#allocation5 + $0x218] sm:$0xff] }
 0x33c   :  { %10252 = vmatpush1.bf16.msra.mxu0 %v14851_v59  ;;  %10416 = vmatpush1.bf16.msra.mxu1 %v14853_v60  ;;  %v14995_v59 = vcombine.low %v1556_v44, %v1568_v45  ;;  %v14997_v60 = vcombine.low %v1557_v46, %v1569_v47  ;;  %v166_v44 = vld [vmem:[#allocation5 + $0x270] sm:$0xff]  ;;  %v167_v46 = vld [vmem:[#allocation5 + $0x278] sm:$0xff] }
 0x33d   :  { %10253 = vmatprep.subr.bf16.mxu0 %v14876_v61  ;;  %10417 = vmatprep.subr.bf16.mxu1 %v14878_v62  ;;  %v15020_v61 = vcombine.high %v1580_v52, %v1592_v54  ;;  %v15022_v62 = vcombine.high %v1581_v55, %v1593_v56  ;;  %v178_v45 = vld [vmem:[#allocation5 + $0x2d0] sm:$0xff]  ;;  %v179_v47 = vld [vmem:[#allocation5 + $0x2d8] sm:$0xff] }
 0x340   :  { %10254 = vmatpush1.bf16.msra.mxu0 %v14875_v3  ;;  %10418 = vmatpush1.bf16.msra.mxu1 %v14877_v38  ;;  %v15019_v3 = vcombine.low %v1580_v52, %v1592_v54  ;;  %v15021_v38 = vcombine.low %v1581_v55, %v1593_v56  ;;  %v190_v52 = vld [vmem:[#allocation5 + $0x330] sm:$0xff]  ;;  %v191_v55 = vld [vmem:[#allocation5 + $0x338] sm:$0xff] }
 0x341   :  { %10255 = vmatprep.subr.bf16.mxu0 %v14900_v4  ;;  %10419 = vmatprep.subr.bf16.mxu1 %v14902_v5  ;;  %v15044_v4 = vcombine.high %v1604_v63, %v1616_v0  ;;  %v15046_v5 = vcombine.high %v1605_v1, %v1617_v2  ;;  %v202_v54 = vld [vmem:[#allocation5 + $0x390] sm:$0xff]  ;;  %v203_v56 = vld [vmem:[#allocation5 + $0x398] sm:$0xff] }
 0x344   :  { %10256 = vmatpush1.bf16.msra.mxu0 %v14899_v10  ;;  %10420 = vmatpush1.bf16.msra.mxu1 %v14901_v11  ;;  %v15043_v10 = vcombine.low %v1604_v63, %v1616_v0  ;;  %v15045_v11 = vcombine.low %v1605_v1, %v1617_v2  ;;  %v214_v63 = vld [vmem:[#allocation5 + $0x3f0] sm:$0xff]  ;;  %v215_v1 = vld [vmem:[#allocation5 + $0x3f8] sm:$0xff] }
 0x345   :  { %10257 = vmatprep.subr.bf16.mxu0 %v14924_v13  ;;  %10421 = vmatprep.subr.bf16.mxu1 %v14926_v14  ;;  %v13536_v13 = vcombine.high %v94_v6, %v106_v7  ;;  %v13538_v14 = vcombine.high %v95_v8, %v107_v9  ;;  %v226_v0 = vld [vmem:[#allocation5 + $0x450] sm:$0xff]  ;;  %v227_v2 = vld [vmem:[#allocation5 + $0x458] sm:$0xff] }
 0x348   :  { %10258 = vmatpush1.bf16.msra.mxu0 %v14923_v20  ;;  %10422 = vmatpush1.bf16.msra.mxu1 %v14925_v21  ;;  %v13535_v20 = vcombine.low %v94_v6, %v106_v7  ;;  %v13537_v21 = vcombine.low %v95_v8, %v107_v9  ;;  %v238_v6 = vld [vmem:[#allocation5 + $0x4b0] sm:$0xff]  ;;  %v239_v8 = vld [vmem:[#allocation5 + $0x4b8] sm:$0xff] }
 0x349   :  { %10259 = vmatprep.subr.bf16.mxu0 %v14948_v22  ;;  %10423 = vmatprep.subr.bf16.mxu1 %v14950_v23  ;;  %v13560_v22 = vcombine.high %v118_v16, %v130_v17  ;;  %v13562_v23 = vcombine.high %v119_v18, %v131_v19  ;;  %v250_v7 = vld [vmem:[#allocation5 + $0x510] sm:$0xff]  ;;  %v251_v9 = vld [vmem:[#allocation5 + $0x518] sm:$0xff] }
 0x34c   :  { %10260 = vmatpush1.bf16.msra.mxu0 %v14947_v31  ;;  %10424 = vmatpush1.bf16.msra.mxu1 %v14949_v32  ;;  %v13559_v31 = vcombine.low %v118_v16, %v130_v17  ;;  %v13561_v32 = vcombine.low %v119_v18, %v131_v19  ;;  %v262_v16 = vld [vmem:[#allocation5 + $0x570] sm:$0xff]  ;;  %v263_v18 = vld [vmem:[#allocation5 + $0x578] sm:$0xff] }
 0x34d   :  { %10261 = vmatprep.subr.bf16.mxu0 %v14972_v36  ;;  %10425 = vmatprep.subr.bf16.mxu1 %v14974_v41  ;;  %v13584_v36 = vcombine.high %v142_v26, %v154_v27  ;;  %v13586_v41 = vcombine.high %v143_v28, %v155_v30  ;;  %v274_v17 = vld [vmem:[#allocation5 + $0x5d0] sm:$0xff]  ;;  %v275_v19 = vld [vmem:[#allocation5 + $0x5d8] sm:$0xff] }
 0x350   :  { %10262 = vmatpush1.bf16.msra.mxu0 %v14971_v24  ;;  %10426 = vmatpush1.bf16.msra.mxu1 %v14973_v49  ;;  %v13583_v24 = vcombine.low %v142_v26, %v154_v27  ;;  %v13585_v49 = vcombine.low %v143_v28, %v155_v30  ;;  %v286_v26 = vld [vmem:[#allocation5 + $0x630] sm:$0xff]  ;;  %v287_v28 = vld [vmem:[#allocation5 + $0x638] sm:$0xff] }
 0x351   :  { %10263 = vmatprep.subr.bf16.mxu0 %v14996_v50  ;;  %10427 = vmatprep.subr.bf16.mxu1 %v14998_v51  ;;  %v13608_v50 = vcombine.high %v166_v44, %v178_v45  ;;  %v13610_v51 = vcombine.high %v167_v46, %v179_v47  ;;  %v298_v27 = vld [vmem:[#allocation5 + $0x690] sm:$0xff]  ;;  %v299_v30 = vld [vmem:[#allocation5 + $0x698] sm:$0xff] }
 0x354   :  { %10264 = vmatpush1.bf16.msra.mxu0 %v14995_v59  ;;  %10428 = vmatpush1.bf16.msra.mxu1 %v14997_v60  ;;  %v13607_v59 = vcombine.low %v166_v44, %v178_v45  ;;  %v13609_v60 = vcombine.low %v167_v46, %v179_v47  ;;  %v310_v44 = vld [vmem:[#allocation5 + $0x6f0] sm:$0xff]  ;;  %v311_v46 = vld [vmem:[#allocation5 + $0x6f8] sm:$0xff] }
 0x355   :  { %10265 = vmatprep.subr.bf16.mxu0 %v15020_v61  ;;  %10429 = vmatprep.subr.bf16.mxu1 %v15022_v62  ;;  %v13632_v61 = vcombine.high %v190_v52, %v202_v54  ;;  %v13634_v62 = vcombine.high %v191_v55, %v203_v56  ;;  %v322_v45 = vld [vmem:[#allocation5 + $0x750] sm:$0xff]  ;;  %v323_v47 = vld [vmem:[#allocation5 + $0x758] sm:$0xff] }
 0x358   :  { %10266 = vmatpush1.bf16.msra.mxu0 %v15019_v3  ;;  %10430 = vmatpush1.bf16.msra.mxu1 %v15021_v38  ;;  %v13631_v3 = vcombine.low %v190_v52, %v202_v54  ;;  %v13633_v38 = vcombine.low %v191_v55, %v203_v56  ;;  %v334_v52 = vld [vmem:[#allocation5 + $0x7b0] sm:$0xff]  ;;  %v335_v55 = vld [vmem:[#allocation5 + $0x7b8] sm:$0xff] }
 0x359   :  { %10267 = vmatprep.subr.bf16.mxu0 %v15044_v4  ;;  %10431 = vmatprep.subr.bf16.mxu1 %v15046_v5  ;;  %v13656_v4 = vcombine.high %v214_v63, %v226_v0  ;;  %v13658_v5 = vcombine.high %v215_v1, %v227_v2  ;;  %v346_v54 = vld [vmem:[#allocation5 + $0x810] sm:$0xff]  ;;  %v347_v56 = vld [vmem:[#allocation5 + $0x818] sm:$0xff] }
 0x35c   :  { %10268 = vmatpush1.bf16.msra.mxu0 %v15043_v10  ;;  %10432 = vmatpush1.bf16.msra.mxu1 %v15045_v11  ;;  %v13655_v10 = vcombine.low %v214_v63, %v226_v0  ;;  %v13657_v11 = vcombine.low %v215_v1, %v227_v2  ;;  %v358_v63 = vld [vmem:[#allocation5 + $0x870] sm:$0xff]  ;;  %v359_v1 = vld [vmem:[#allocation5 + $0x878] sm:$0xff] }
 0x35d   :  { %10442 = vmatprep.subr.bf16.mxu0 %v13536_v13  ;;  %10606 = vmatprep.subr.bf16.mxu1 %v13538_v14  ;;  %v13680_v13 = vcombine.high %v238_v6, %v250_v7  ;;  %v13682_v14 = vcombine.high %v239_v8, %v251_v9  ;;  %v370_v0 = vld [vmem:[#allocation5 + $0x8d0] sm:$0xff]  ;;  %v371_v2 = vld [vmem:[#allocation5 + $0x8d8] sm:$0xff] }
 0x35f   :  { %10270 = vmatmul.mubr.bf16.vlgmr.msra.gmra.mrb[8].mxu0 %v16186_v58  ;;  %10434 = vmatmul.mubr.bf16.vlgmr.msra.gmra.mrb[8].mxu1 %v16186_v58 }
 0x360   :  { %10443 = vmatpush1.bf16.msra.mxu0 %v13535_v20  ;;  %10607 = vmatpush1.bf16.msra.mxu1 %v13537_v21  ;;  %v13679_v20 = vcombine.low %v238_v6, %v250_v7  ;;  %v13681_v21 = vcombine.low %v239_v8, %v251_v9  ;;  %v382_v6 = vld [vmem:[#allocation5 + $0x930] sm:$0xff]  ;;  %v383_v8 = vld [vmem:[#allocation5 + $0x938] sm:$0xff] }
 0x361   :  { %10444 = vmatprep.subr.bf16.mxu0 %v13560_v22  ;;  %10608 = vmatprep.subr.bf16.mxu1 %v13562_v23  ;;  %v13704_v22 = vcombine.high %v262_v16, %v274_v17  ;;  %v13706_v23 = vcombine.high %v263_v18, %v275_v19  ;;  %v394_v7 = vld [vmem:[#allocation5 + $0x990] sm:$0xff]  ;;  %v395_v9 = vld [vmem:[#allocation5 + $0x998] sm:$0xff] }
 0x362   :  { %10474 = vmatprep.mubr.bf16.mxu0 %v16138_v57  ;;  %10638 = vmatprep.mubr.bf16.mxu1 %v16138_v57 }
 0x364   :  { %10445 = vmatpush1.bf16.msra.mxu0 %v13559_v31  ;;  %10609 = vmatpush1.bf16.msra.mxu1 %v13561_v32  ;;  %v13703_v31 = vcombine.low %v262_v16, %v274_v17  ;;  %v13705_v32 = vcombine.low %v263_v18, %v275_v19  ;;  %v406_v16 = vld [vmem:[#allocation5 + $0x9f0] sm:$0xff]  ;;  %v407_v18 = vld [vmem:[#allocation5 + $0x9f8] sm:$0xff] }
 0x365   :  { %10446 = vmatprep.subr.bf16.mxu0 %v13584_v36  ;;  %10610 = vmatprep.subr.bf16.mxu1 %v13586_v41  ;;  %v13728_v36 = vcombine.high %v286_v26, %v298_v27  ;;  %v13730_v41 = vcombine.high %v287_v28, %v299_v30  ;;  %v418_v17 = vld [vmem:[#allocation5 + $0xa50] sm:$0xff]  ;;  %v419_v19 = vld [vmem:[#allocation5 + $0xa58] sm:$0xff] }
 0x368   :  { %10447 = vmatpush1.bf16.msra.mxu0 %v13583_v24  ;;  %10611 = vmatpush1.bf16.msra.mxu1 %v13585_v49  ;;  %v13727_v24 = vcombine.low %v286_v26, %v298_v27  ;;  %v13729_v49 = vcombine.low %v287_v28, %v299_v30  ;;  %v430_v26 = vld [vmem:[#allocation5 + $0xab0] sm:$0xff]  ;;  %v431_v28 = vld [vmem:[#allocation5 + $0xab8] sm:$0xff] }
 0x369   :  { %10448 = vmatprep.subr.bf16.mxu0 %v13608_v50  ;;  %10612 = vmatprep.subr.bf16.mxu1 %v13610_v51  ;;  %v13752_v50 = vcombine.high %v310_v44, %v322_v45  ;;  %v13754_v51 = vcombine.high %v311_v46, %v323_v47  ;;  %v442_v27 = vld [vmem:[#allocation5 + $0xb10] sm:$0xff]  ;;  %v443_v30 = vld [vmem:[#allocation5 + $0xb18] sm:$0xff] }
 0x36c   :  { %10449 = vmatpush1.bf16.msra.mxu0 %v13607_v59  ;;  %10613 = vmatpush1.bf16.msra.mxu1 %v13609_v60  ;;  %v13751_v59 = vcombine.low %v310_v44, %v322_v45  ;;  %v13753_v60 = vcombine.low %v311_v46, %v323_v47  ;;  %v454_v44 = vld [vmem:[#allocation5 + $0xb70] sm:$0xff]  ;;  %v455_v46 = vld [vmem:[#allocation5 + $0xb78] sm:$0xff] }
 0x36d   :  { %10450 = vmatprep.subr.bf16.mxu0 %v13632_v61  ;;  %10614 = vmatprep.subr.bf16.mxu1 %v13634_v62  ;;  %v13776_v61 = vcombine.high %v334_v52, %v346_v54  ;;  %v13778_v62 = vcombine.high %v335_v55, %v347_v56  ;;  %v466_v45 = vld [vmem:[#allocation5 + $0xbd0] sm:$0xff]  ;;  %v467_v47 = vld [vmem:[#allocation5 + $0xbd8] sm:$0xff] }
 0x370   :  { %10451 = vmatpush1.bf16.msra.mxu0 %v13631_v3  ;;  %10615 = vmatpush1.bf16.msra.mxu1 %v13633_v38  ;;  %v13775_v3 = vcombine.low %v334_v52, %v346_v54  ;;  %v13777_v38 = vcombine.low %v335_v55, %v347_v56  ;;  %v478_v52 = vld [vmem:[#allocation5 + $0xc30] sm:$0xff]  ;;  %v479_v55 = vld [vmem:[#allocation5 + $0xc38] sm:$0xff] }
 0x371   :  { %10452 = vmatprep.subr.bf16.mxu0 %v13656_v4  ;;  %10616 = vmatprep.subr.bf16.mxu1 %v13658_v5  ;;  %v13800_v4 = vcombine.high %v358_v63, %v370_v0  ;;  %v13802_v5 = vcombine.high %v359_v1, %v371_v2  ;;  %v490_v54 = vld [vmem:[#allocation5 + $0xc90] sm:$0xff]  ;;  %v491_v56 = vld [vmem:[#allocation5 + $0xc98] sm:$0xff] }
 0x374   :  { %10453 = vmatpush1.bf16.msra.mxu0 %v13655_v10  ;;  %10617 = vmatpush1.bf16.msra.mxu1 %v13657_v11  ;;  %v13799_v10 = vcombine.low %v358_v63, %v370_v0  ;;  %v13801_v11 = vcombine.low %v359_v1, %v371_v2  ;;  %v502_v63 = vld [vmem:[#allocation5 + $0xcf0] sm:$0xff]  ;;  %v503_v1 = vld [vmem:[#allocation5 + $0xcf8] sm:$0xff] }
 0x375   :  { %10454 = vmatprep.subr.bf16.mxu0 %v13680_v13  ;;  %10618 = vmatprep.subr.bf16.mxu1 %v13682_v14  ;;  %v13824_v13 = vcombine.high %v382_v6, %v394_v7  ;;  %v13826_v14 = vcombine.high %v383_v8, %v395_v9  ;;  %v514_v0 = vld [vmem:[#allocation5 + $0xd50] sm:$0xff]  ;;  %v515_v2 = vld [vmem:[#allocation5 + $0xd58] sm:$0xff] }
 0x378   :  { %10455 = vmatpush1.bf16.msra.mxu0 %v13679_v20  ;;  %10619 = vmatpush1.bf16.msra.mxu1 %v13681_v21  ;;  %v13823_v20 = vcombine.low %v382_v6, %v394_v7  ;;  %v13825_v21 = vcombine.low %v383_v8, %v395_v9  ;;  %v526_v6 = vld [vmem:[#allocation5 + $0xdb0] sm:$0xff]  ;;  %v527_v8 = vld [vmem:[#allocation5 + $0xdb8] sm:$0xff] }
 0x379   :  { %10456 = vmatprep.subr.bf16.mxu0 %v13704_v22  ;;  %10620 = vmatprep.subr.bf16.mxu1 %v13706_v23  ;;  %v13848_v22 = vcombine.high %v406_v16, %v418_v17  ;;  %v13850_v23 = vcombine.high %v407_v18, %v419_v19  ;;  %v538_v7 = vld [vmem:[#allocation5 + $0xe10] sm:$0xff]  ;;  %v539_v9 = vld [vmem:[#allocation5 + $0xe18] sm:$0xff] }
 0x37c   :  { %10457 = vmatpush1.bf16.msra.mxu0 %v13703_v31  ;;  %10621 = vmatpush1.bf16.msra.mxu1 %v13705_v32  ;;  %v13847_v31 = vcombine.low %v406_v16, %v418_v17  ;;  %v13849_v32 = vcombine.low %v407_v18, %v419_v19  ;;  %v550_v16 = vld [vmem:[#allocation5 + $0xe70] sm:$0xff]  ;;  %v551_v18 = vld [vmem:[#allocation5 + $0xe78] sm:$0xff] }
 0x37d   :  { %10458 = vmatprep.subr.bf16.mxu0 %v13728_v36  ;;  %10622 = vmatprep.subr.bf16.mxu1 %v13730_v41  ;;  %v13872_v36 = vcombine.high %v430_v26, %v442_v27  ;;  %v13874_v41 = vcombine.high %v431_v28, %v443_v30  ;;  %v562_v17 = vld [vmem:[#allocation5 + $0xed0] sm:$0xff]  ;;  %v563_v19 = vld [vmem:[#allocation5 + $0xed8] sm:$0xff] }
 0x380   :  { %10459 = vmatpush1.bf16.msra.mxu0 %v13727_v24  ;;  %10623 = vmatpush1.bf16.msra.mxu1 %v13729_v49  ;;  %v13871_v24 = vcombine.low %v430_v26, %v442_v27  ;;  %v13873_v49 = vcombine.low %v431_v28, %v443_v30  ;;  %v574_v26 = vld [vmem:[#allocation5 + $0xf30] sm:$0xff]  ;;  %v575_v28 = vld [vmem:[#allocation5 + $0xf38] sm:$0xff] }
 0x381   :  { %10460 = vmatprep.subr.bf16.mxu0 %v13752_v50  ;;  %10624 = vmatprep.subr.bf16.mxu1 %v13754_v51  ;;  %v13896_v50 = vcombine.high %v454_v44, %v466_v45  ;;  %v13898_v51 = vcombine.high %v455_v46, %v467_v47  ;;  %v586_v27 = vld [vmem:[#allocation5 + $0xf90] sm:$0xff]  ;;  %v587_v30 = vld [vmem:[#allocation5 + $0xf98] sm:$0xff] }
 0x384   :  { %10461 = vmatpush1.bf16.msra.mxu0 %v13751_v59  ;;  %10625 = vmatpush1.bf16.msra.mxu1 %v13753_v60  ;;  %v13895_v59 = vcombine.low %v454_v44, %v466_v45  ;;  %v13897_v60 = vcombine.low %v455_v46, %v467_v47  ;;  %v598_v44 = vld [vmem:[#allocation5 + $0xff0] sm:$0xff]  ;;  %v599_v46 = vld [vmem:[#allocation5 + $0xff8] sm:$0xff] }
 0x385   :  { %10462 = vmatprep.subr.bf16.mxu0 %v13776_v61  ;;  %10626 = vmatprep.subr.bf16.mxu1 %v13778_v62  ;;  %v13920_v61 = vcombine.high %v478_v52, %v490_v54  ;;  %v13922_v62 = vcombine.high %v479_v55, %v491_v56  ;;  %v610_v45 = vld [vmem:[#allocation5 + $0x1050] sm:$0xff]  ;;  %v611_v47 = vld [vmem:[#allocation5 + $0x1058] sm:$0xff] }
 0x388   :  { %10463 = vmatpush1.bf16.msra.mxu0 %v13775_v3  ;;  %10627 = vmatpush1.bf16.msra.mxu1 %v13777_v38  ;;  %v13919_v3 = vcombine.low %v478_v52, %v490_v54  ;;  %v13921_v38 = vcombine.low %v479_v55, %v491_v56  ;;  %v622_v52 = vld [vmem:[#allocation5 + $0x10b0] sm:$0xff]  ;;  %v623_v55 = vld [vmem:[#allocation5 + $0x10b8] sm:$0xff] }
 0x389   :  { %10464 = vmatprep.subr.bf16.mxu0 %v13800_v4  ;;  %10628 = vmatprep.subr.bf16.mxu1 %v13802_v5  ;;  %v13944_v4 = vcombine.high %v502_v63, %v514_v0  ;;  %v13946_v5 = vcombine.high %v503_v1, %v515_v2  ;;  %v634_v54 = vld [vmem:[#allocation5 + $0x1110] sm:$0xff]  ;;  %v635_v56 = vld [vmem:[#allocation5 + $0x1118] sm:$0xff] }
 0x38c   :  { %10465 = vmatpush1.bf16.msra.mxu0 %v13799_v10  ;;  %10629 = vmatpush1.bf16.msra.mxu1 %v13801_v11  ;;  %v13943_v10 = vcombine.low %v502_v63, %v514_v0  ;;  %v13945_v11 = vcombine.low %v503_v1, %v515_v2  ;;  %v646_v63 = vld [vmem:[#allocation5 + $0x1170] sm:$0xff]  ;;  %v647_v1 = vld [vmem:[#allocation5 + $0x1178] sm:$0xff] }
 0x38d   :  { %10466 = vmatprep.subr.bf16.mxu0 %v13824_v13  ;;  %10630 = vmatprep.subr.bf16.mxu1 %v13826_v14  ;;  %v13968_v13 = vcombine.high %v526_v6, %v538_v7  ;;  %v13970_v14 = vcombine.high %v527_v8, %v539_v9  ;;  %v658_v0 = vld [vmem:[#allocation5 + $0x11d0] sm:$0xff]  ;;  %v659_v2 = vld [vmem:[#allocation5 + $0x11d8] sm:$0xff] }
 0x390   :  { %10467 = vmatpush1.bf16.msra.mxu0 %v13823_v20  ;;  %10631 = vmatpush1.bf16.msra.mxu1 %v13825_v21  ;;  %v13967_v20 = vcombine.low %v526_v6, %v538_v7  ;;  %v13969_v21 = vcombine.low %v527_v8, %v539_v9  ;;  %v670_v6 = vld [vmem:[#allocation5 + $0x1230] sm:$0xff]  ;;  %v671_v8 = vld [vmem:[#allocation5 + $0x1238] sm:$0xff] }
 0x391   :  { %10468 = vmatprep.subr.bf16.mxu0 %v13848_v22  ;;  %10632 = vmatprep.subr.bf16.mxu1 %v13850_v23  ;;  %v13992_v22 = vcombine.high %v550_v16, %v562_v17  ;;  %v13994_v23 = vcombine.high %v551_v18, %v563_v19  ;;  %v682_v7 = vld [vmem:[#allocation5 + $0x1290] sm:$0xff]  ;;  %v683_v9 = vld [vmem:[#allocation5 + $0x1298] sm:$0xff] }
 0x394   :  { %10469 = vmatpush1.bf16.msra.mxu0 %v13847_v31  ;;  %10633 = vmatpush1.bf16.msra.mxu1 %v13849_v32  ;;  %v13991_v31 = vcombine.low %v550_v16, %v562_v17  ;;  %v13993_v32 = vcombine.low %v551_v18, %v563_v19  ;;  %v694_v16 = vld [vmem:[#allocation5 + $0x12f0] sm:$0xff]  ;;  %v695_v18 = vld [vmem:[#allocation5 + $0x12f8] sm:$0xff] }
 0x395   :  { %10470 = vmatprep.subr.bf16.mxu0 %v13872_v36  ;;  %10634 = vmatprep.subr.bf16.mxu1 %v13874_v41  ;;  %v14016_v36 = vcombine.high %v574_v26, %v586_v27  ;;  %v14018_v41 = vcombine.high %v575_v28, %v587_v30  ;;  %v706_v17 = vld [vmem:[#allocation5 + $0x1350] sm:$0xff]  ;;  %v707_v19 = vld [vmem:[#allocation5 + $0x1358] sm:$0xff] }
 0x398   :  { %10471 = vmatpush1.bf16.msra.mxu0 %v13871_v24  ;;  %10635 = vmatpush1.bf16.msra.mxu1 %v13873_v49  ;;  %v14015_v24 = vcombine.low %v574_v26, %v586_v27  ;;  %v14017_v49 = vcombine.low %v575_v28, %v587_v30  ;;  %v718_v26 = vld [vmem:[#allocation5 + $0x13b0] sm:$0xff]  ;;  %v719_v28 = vld [vmem:[#allocation5 + $0x13b8] sm:$0xff] }
 0x399   :  { %10472 = vmatprep.subr.bf16.mxu0 %v13896_v50  ;;  %10636 = vmatprep.subr.bf16.mxu1 %v13898_v51  ;;  %v14040_v50 = vcombine.high %v598_v44, %v610_v45  ;;  %v14042_v51 = vcombine.high %v599_v46, %v611_v47  ;;  %v730_v27 = vld [vmem:[#allocation5 + $0x1410] sm:$0xff]  ;;  %v731_v30 = vld [vmem:[#allocation5 + $0x1418] sm:$0xff] }
 0x39c   :  { %10473 = vmatpush1.bf16.msra.mxu0 %v13895_v59  ;;  %10637 = vmatpush1.bf16.msra.mxu1 %v13897_v60  ;;  %v14039_v59 = vcombine.low %v598_v44, %v610_v45  ;;  %v14041_v60 = vcombine.low %v599_v46, %v611_v47  ;;  %v742_v44 = vld [vmem:[#allocation5 + $0x1470] sm:$0xff]  ;;  %v743_v46 = vld [vmem:[#allocation5 + $0x1478] sm:$0xff] }
 0x39d   :  { %10483 = vmatprep.subr.bf16.mxu0 %v13920_v61  ;;  %10647 = vmatprep.subr.bf16.mxu1 %v13922_v62  ;;  %v14064_v61 = vcombine.high %v622_v52, %v634_v54  ;;  %v14066_v62 = vcombine.high %v623_v55, %v635_v56  ;;  %v754_v45 = vld [vmem:[#allocation5 + $0x14d0] sm:$0xff]  ;;  %v755_v47 = vld [vmem:[#allocation5 + $0x14d8] sm:$0xff] }
 0x39f   :  { %10475 = vmatmul.mubr.bf16.vlgmr.msra.gmra.mrb[12].mxu0 %v16144_v12  ;;  %10639 = vmatmul.mubr.bf16.vlgmr.msra.gmra.mrb[12].mxu1 %v16144_v12 }
 0x3a0   :  { %10484 = vmatpush1.bf16.msra.mxu0 %v13919_v3  ;;  %10648 = vmatpush1.bf16.msra.mxu1 %v13921_v38  ;;  %v14063_v3 = vcombine.low %v622_v52, %v634_v54  ;;  %v14065_v38 = vcombine.low %v623_v55, %v635_v56  ;;  %v766_v52 = vld [vmem:[#allocation5 + $0x1530] sm:$0xff]  ;;  %v767_v55 = vld [vmem:[#allocation5 + $0x1538] sm:$0xff] }
 0x3a1   :  { %10485 = vmatprep.subr.bf16.mxu0 %v13944_v4  ;;  %10649 = vmatprep.subr.bf16.mxu1 %v13946_v5  ;;  %v14088_v4 = vcombine.high %v646_v63, %v658_v0  ;;  %v14090_v5 = vcombine.high %v647_v1, %v659_v2  ;;  %v778_v54 = vld [vmem:[#allocation5 + $0x1590] sm:$0xff]  ;;  %v779_v56 = vld [vmem:[#allocation5 + $0x1598] sm:$0xff] }
 0x3a2   :  { %10515 = vmatprep.mubr.bf16.mxu0 %v16150_v53  ;;  %10679 = vmatprep.mubr.bf16.mxu1 %v16150_v53 }
 0x3a4   :  { %10486 = vmatpush1.bf16.msra.mxu0 %v13943_v10  ;;  %10650 = vmatpush1.bf16.msra.mxu1 %v13945_v11  ;;  %v14087_v10 = vcombine.low %v646_v63, %v658_v0  ;;  %v14089_v11 = vcombine.low %v647_v1, %v659_v2  ;;  %v790_v63 = vld [vmem:[#allocation5 + $0x15f0] sm:$0xff]  ;;  %v791_v1 = vld [vmem:[#allocation5 + $0x15f8] sm:$0xff] }
 0x3a5   :  { %10487 = vmatprep.subr.bf16.mxu0 %v13968_v13  ;;  %10651 = vmatprep.subr.bf16.mxu1 %v13970_v14  ;;  %v14112_v13 = vcombine.high %v670_v6, %v682_v7  ;;  %v14114_v14 = vcombine.high %v671_v8, %v683_v9  ;;  %v802_v0 = vld [vmem:[#allocation5 + $0x1650] sm:$0xff]  ;;  %v803_v2 = vld [vmem:[#allocation5 + $0x1658] sm:$0xff] }
 0x3a8   :  { %10488 = vmatpush1.bf16.msra.mxu0 %v13967_v20  ;;  %10652 = vmatpush1.bf16.msra.mxu1 %v13969_v21  ;;  %v14111_v20 = vcombine.low %v670_v6, %v682_v7  ;;  %v14113_v21 = vcombine.low %v671_v8, %v683_v9  ;;  %v814_v6 = vld [vmem:[#allocation5 + $0x16b0] sm:$0xff]  ;;  %v815_v8 = vld [vmem:[#allocation5 + $0x16b8] sm:$0xff] }
 0x3a9   :  { %10489 = vmatprep.subr.bf16.mxu0 %v13992_v22  ;;  %10653 = vmatprep.subr.bf16.mxu1 %v13994_v23  ;;  %v14136_v22 = vcombine.high %v694_v16, %v706_v17  ;;  %v14138_v23 = vcombine.high %v695_v18, %v707_v19  ;;  %v826_v7 = vld [vmem:[#allocation5 + $0x1710] sm:$0xff]  ;;  %v827_v9 = vld [vmem:[#allocation5 + $0x1718] sm:$0xff] }
 0x3ac   :  { %10490 = vmatpush1.bf16.msra.mxu0 %v13991_v31  ;;  %10654 = vmatpush1.bf16.msra.mxu1 %v13993_v32  ;;  %v14135_v31 = vcombine.low %v694_v16, %v706_v17  ;;  %v14137_v32 = vcombine.low %v695_v18, %v707_v19  ;;  %v838_v16 = vld [vmem:[#allocation5 + $0x1770] sm:$0xff]  ;;  %v839_v18 = vld [vmem:[#allocation5 + $0x1778] sm:$0xff] }
 0x3ad   :  { %10491 = vmatprep.subr.bf16.mxu0 %v14016_v36  ;;  %10655 = vmatprep.subr.bf16.mxu1 %v14018_v41  ;;  %v14160_v36 = vcombine.high %v718_v26, %v730_v27  ;;  %v14162_v41 = vcombine.high %v719_v28, %v731_v30  ;;  %v850_v17 = vld [vmem:[#allocation5 + $0x17d0] sm:$0xff]  ;;  %v851_v19 = vld [vmem:[#allocation5 + $0x17d8] sm:$0xff] }
 0x3b0   :  { %10492 = vmatpush1.bf16.msra.mxu0 %v14015_v24  ;;  %10656 = vmatpush1.bf16.msra.mxu1 %v14017_v49  ;;  %v14159_v24 = vcombine.low %v718_v26, %v730_v27  ;;  %v14161_v49 = vcombine.low %v719_v28, %v731_v30  ;;  %v862_v26 = vld [vmem:[#allocation5 + $0x1830] sm:$0xff]  ;;  %v863_v28 = vld [vmem:[#allocation5 + $0x1838] sm:$0xff] }
 0x3b1   :  { %10493 = vmatprep.subr.bf16.mxu0 %v14040_v50  ;;  %10657 = vmatprep.subr.bf16.mxu1 %v14042_v51  ;;  %v14184_v50 = vcombine.high %v742_v44, %v754_v45  ;;  %v14186_v51 = vcombine.high %v743_v46, %v755_v47  ;;  %v874_v27 = vld [vmem:[#allocation5 + $0x1890] sm:$0xff]  ;;  %v875_v30 = vld [vmem:[#allocation5 + $0x1898] sm:$0xff] }
 0x3b4   :  { %10494 = vmatpush1.bf16.msra.mxu0 %v14039_v59  ;;  %10658 = vmatpush1.bf16.msra.mxu1 %v14041_v60  ;;  %v14183_v59 = vcombine.low %v742_v44, %v754_v45  ;;  %v14185_v60 = vcombine.low %v743_v46, %v755_v47  ;;  %v886_v44 = vld [vmem:[#allocation5 + $0x18f0] sm:$0xff]  ;;  %v887_v46 = vld [vmem:[#allocation5 + $0x18f8] sm:$0xff] }
 0x3b5   :  { %10495 = vmatprep.subr.bf16.mxu0 %v14064_v61  ;;  %10659 = vmatprep.subr.bf16.mxu1 %v14066_v62  ;;  %v14208_v61 = vcombine.high %v766_v52, %v778_v54  ;;  %v14210_v62 = vcombine.high %v767_v55, %v779_v56  ;;  %v898_v45 = vld [vmem:[#allocation5 + $0x1950] sm:$0xff]  ;;  %v899_v47 = vld [vmem:[#allocation5 + $0x1958] sm:$0xff] }
 0x3b8   :  { %10496 = vmatpush1.bf16.msra.mxu0 %v14063_v3  ;;  %10660 = vmatpush1.bf16.msra.mxu1 %v14065_v38  ;;  %v14207_v3 = vcombine.low %v766_v52, %v778_v54  ;;  %v14209_v38 = vcombine.low %v767_v55, %v779_v56  ;;  %v910_v52 = vld [vmem:[#allocation5 + $0x19b0] sm:$0xff]  ;;  %v911_v55 = vld [vmem:[#allocation5 + $0x19b8] sm:$0xff] }
 0x3b9   :  { %10497 = vmatprep.subr.bf16.mxu0 %v14088_v4  ;;  %10661 = vmatprep.subr.bf16.mxu1 %v14090_v5  ;;  %v14232_v4 = vcombine.high %v790_v63, %v802_v0  ;;  %v14234_v5 = vcombine.high %v791_v1, %v803_v2  ;;  %v922_v54 = vld [vmem:[#allocation5 + $0x1a10] sm:$0xff]  ;;  %v923_v56 = vld [vmem:[#allocation5 + $0x1a18] sm:$0xff] }
 0x3bc   :  { %10498 = vmatpush1.bf16.msra.mxu0 %v14087_v10  ;;  %10662 = vmatpush1.bf16.msra.mxu1 %v14089_v11  ;;  %v14231_v10 = vcombine.low %v790_v63, %v802_v0  ;;  %v14233_v11 = vcombine.low %v791_v1, %v803_v2  ;;  %v934_v63 = vld [vmem:[#allocation5 + $0x1a70] sm:$0xff]  ;;  %v935_v1 = vld [vmem:[#allocation5 + $0x1a78] sm:$0xff] }
 0x3bd   :  { %10499 = vmatprep.subr.bf16.mxu0 %v14112_v13  ;;  %10663 = vmatprep.subr.bf16.mxu1 %v14114_v14  ;;  %v14256_v13 = vcombine.high %v814_v6, %v826_v7  ;;  %v14258_v14 = vcombine.high %v815_v8, %v827_v9  ;;  %v946_v0 = vld [vmem:[#allocation5 + $0x1ad0] sm:$0xff]  ;;  %v947_v2 = vld [vmem:[#allocation5 + $0x1ad8] sm:$0xff] }
 0x3c0   :  { %10500 = vmatpush1.bf16.msra.mxu0 %v14111_v20  ;;  %10664 = vmatpush1.bf16.msra.mxu1 %v14113_v21  ;;  %v14255_v20 = vcombine.low %v814_v6, %v826_v7  ;;  %v14257_v21 = vcombine.low %v815_v8, %v827_v9  ;;  %v958_v6 = vld [vmem:[#allocation5 + $0x1b30] sm:$0xff]  ;;  %v959_v8 = vld [vmem:[#allocation5 + $0x1b38] sm:$0xff] }
 0x3c1   :  { %10501 = vmatprep.subr.bf16.mxu0 %v14136_v22  ;;  %10665 = vmatprep.subr.bf16.mxu1 %v14138_v23  ;;  %v14280_v22 = vcombine.high %v838_v16, %v850_v17  ;;  %v14282_v23 = vcombine.high %v839_v18, %v851_v19  ;;  %v970_v7 = vld [vmem:[#allocation5 + $0x1b90] sm:$0xff]  ;;  %v971_v9 = vld [vmem:[#allocation5 + $0x1b98] sm:$0xff] }
 0x3c4   :  { %10502 = vmatpush1.bf16.msra.mxu0 %v14135_v31  ;;  %10666 = vmatpush1.bf16.msra.mxu1 %v14137_v32  ;;  %v14279_v31 = vcombine.low %v838_v16, %v850_v17  ;;  %v14281_v32 = vcombine.low %v839_v18, %v851_v19  ;;  %v982_v16 = vld [vmem:[#allocation5 + $0x1bf0] sm:$0xff]  ;;  %v983_v18 = vld [vmem:[#allocation5 + $0x1bf8] sm:$0xff] }
 0x3c5   :  { %10503 = vmatprep.subr.bf16.mxu0 %v14160_v36  ;;  %10667 = vmatprep.subr.bf16.mxu1 %v14162_v41  ;;  %v14304_v36 = vcombine.high %v862_v26, %v874_v27  ;;  %v14306_v41 = vcombine.high %v863_v28, %v875_v30  ;;  %v994_v17 = vld [vmem:[#allocation5 + $0x1c50] sm:$0xff]  ;;  %v995_v19 = vld [vmem:[#allocation5 + $0x1c58] sm:$0xff] }
 0x3c8   :  { %10504 = vmatpush1.bf16.msra.mxu0 %v14159_v24  ;;  %10668 = vmatpush1.bf16.msra.mxu1 %v14161_v49  ;;  %v14303_v24 = vcombine.low %v862_v26, %v874_v27  ;;  %v14305_v49 = vcombine.low %v863_v28, %v875_v30  ;;  %v1006_v26 = vld [vmem:[#allocation5 + $0x1cb0] sm:$0xff]  ;;  %v1007_v28 = vld [vmem:[#allocation5 + $0x1cb8] sm:$0xff] }
 0x3c9   :  { %10505 = vmatprep.subr.bf16.mxu0 %v14184_v50  ;;  %10669 = vmatprep.subr.bf16.mxu1 %v14186_v51  ;;  %v14328_v50 = vcombine.high %v886_v44, %v898_v45  ;;  %v14330_v51 = vcombine.high %v887_v46, %v899_v47  ;;  %v1018_v27 = vld [vmem:[#allocation5 + $0x1d10] sm:$0xff]  ;;  %v1019_v30 = vld [vmem:[#allocation5 + $0x1d18] sm:$0xff] }
 0x3cc   :  { %10506 = vmatpush1.bf16.msra.mxu0 %v14183_v59  ;;  %10670 = vmatpush1.bf16.msra.mxu1 %v14185_v60  ;;  %v14327_v59 = vcombine.low %v886_v44, %v898_v45  ;;  %v14329_v60 = vcombine.low %v887_v46, %v899_v47  ;;  %v1030_v44 = vld [vmem:[#allocation5 + $0x1d70] sm:$0xff]  ;;  %v1031_v46 = vld [vmem:[#allocation5 + $0x1d78] sm:$0xff] }
 0x3cd   :  { %10507 = vmatprep.subr.bf16.mxu0 %v14208_v61  ;;  %10671 = vmatprep.subr.bf16.mxu1 %v14210_v62  ;;  %v14352_v61 = vcombine.high %v910_v52, %v922_v54  ;;  %v14354_v62 = vcombine.high %v911_v55, %v923_v56  ;;  %v1042_v45 = vld [vmem:[#allocation5 + $0x1dd0] sm:$0xff]  ;;  %v1043_v47 = vld [vmem:[#allocation5 + $0x1dd8] sm:$0xff] }
 0x3d0   :  { %10508 = vmatpush1.bf16.msra.mxu0 %v14207_v3  ;;  %10672 = vmatpush1.bf16.msra.mxu1 %v14209_v38  ;;  %v14351_v3 = vcombine.low %v910_v52, %v922_v54  ;;  %v14353_v38 = vcombine.low %v911_v55, %v923_v56  ;;  %v1054_v52 = vld [vmem:[#allocation5 + $0x1e30] sm:$0xff]  ;;  %v1055_v55 = vld [vmem:[#allocation5 + $0x1e38] sm:$0xff] }
 0x3d1   :  { %10509 = vmatprep.subr.bf16.mxu0 %v14232_v4  ;;  %10673 = vmatprep.subr.bf16.mxu1 %v14234_v5  ;;  %v14376_v4 = vcombine.high %v934_v63, %v946_v0  ;;  %v14378_v5 = vcombine.high %v935_v1, %v947_v2  ;;  %v1066_v54 = vld [vmem:[#allocation5 + $0x1e90] sm:$0xff]  ;;  %v1067_v56 = vld [vmem:[#allocation5 + $0x1e98] sm:$0xff] }
 0x3d4   :  { %10510 = vmatpush1.bf16.msra.mxu0 %v14231_v10  ;;  %10674 = vmatpush1.bf16.msra.mxu1 %v14233_v11  ;;  %v14375_v10 = vcombine.low %v934_v63, %v946_v0  ;;  %v14377_v11 = vcombine.low %v935_v1, %v947_v2  ;;  %v1078_v63 = vld [vmem:[#allocation5 + $0x1ef0] sm:$0xff]  ;;  %v1079_v1 = vld [vmem:[#allocation5 + $0x1ef8] sm:$0xff] }
 0x3d5   :  { %10511 = vmatprep.subr.bf16.mxu0 %v14256_v13  ;;  %10675 = vmatprep.subr.bf16.mxu1 %v14258_v14  ;;  %v14400_v13 = vcombine.high %v958_v6, %v970_v7  ;;  %v14402_v14 = vcombine.high %v959_v8, %v971_v9  ;;  %v1090_v0 = vld [vmem:[#allocation5 + $0x1f50] sm:$0xff]  ;;  %v1091_v2 = vld [vmem:[#allocation5 + $0x1f58] sm:$0xff] }
 0x3d8   :  { %10512 = vmatpush1.bf16.msra.mxu0 %v14255_v20  ;;  %10676 = vmatpush1.bf16.msra.mxu1 %v14257_v21  ;;  %v14399_v20 = vcombine.low %v958_v6, %v970_v7  ;;  %v14401_v21 = vcombine.low %v959_v8, %v971_v9  ;;  %v1102_v6 = vld [vmem:[#allocation5 + $0x1fb0] sm:$0xff]  ;;  %v1103_v8 = vld [vmem:[#allocation5 + $0x1fb8] sm:$0xff] }
 0x3d9   :  { %10513 = vmatprep.subr.bf16.mxu0 %v14280_v22  ;;  %10677 = vmatprep.subr.bf16.mxu1 %v14282_v23  ;;  %v14424_v22 = vcombine.high %v982_v16, %v994_v17  ;;  %v14426_v23 = vcombine.high %v983_v18, %v995_v19  ;;  %v1114_v7 = vld [vmem:[#allocation5 + $0x2010] sm:$0xff]  ;;  %v1115_v9 = vld [vmem:[#allocation5 + $0x2018] sm:$0xff] }
 0x3dc   :  { %10514 = vmatpush1.bf16.msra.mxu0 %v14279_v31  ;;  %10678 = vmatpush1.bf16.msra.mxu1 %v14281_v32  ;;  %v14423_v31 = vcombine.low %v982_v16, %v994_v17  ;;  %v14425_v32 = vcombine.low %v983_v18, %v995_v19  ;;  %v1126_v16 = vld [vmem:[#allocation5 + $0x2070] sm:$0xff]  ;;  %v1127_v18 = vld [vmem:[#allocation5 + $0x2078] sm:$0xff] }
 0x3dd   :  { %10524 = vmatprep.subr.bf16.mxu0 %v14304_v36  ;;  %10688 = vmatprep.subr.bf16.mxu1 %v14306_v41  ;;  %v14448_v36 = vcombine.high %v1006_v26, %v1018_v27  ;;  %v14450_v41 = vcombine.high %v1007_v28, %v1019_v30  ;;  %v1138_v17 = vld [vmem:[#allocation5 + $0x20d0] sm:$0xff]  ;;  %v1139_v19 = vld [vmem:[#allocation5 + $0x20d8] sm:$0xff] }
 0x3df   :  { %10516 = vmatmul.mubr.bf16.vlgmr.msra.gmra.mrb[12].mxu0 %v16160_v25  ;;  %10680 = vmatmul.mubr.bf16.vlgmr.msra.gmra.mrb[12].mxu1 %v16160_v25 }
 0x3e0   :  { %10525 = vmatpush1.bf16.msra.mxu0 %v14303_v24  ;;  %10689 = vmatpush1.bf16.msra.mxu1 %v14305_v49  ;;  %v14447_v24 = vcombine.low %v1006_v26, %v1018_v27  ;;  %v14449_v49 = vcombine.low %v1007_v28, %v1019_v30  ;;  %v1150_v26 = vld [vmem:[#allocation5 + $0x2130] sm:$0xff]  ;;  %v1151_v28 = vld [vmem:[#allocation5 + $0x2138] sm:$0xff] }
 0x3e1   :  { %10526 = vmatprep.subr.bf16.mxu0 %v14328_v50  ;;  %10690 = vmatprep.subr.bf16.mxu1 %v14330_v51  ;;  %v14472_v50 = vcombine.high %v1030_v44, %v1042_v45  ;;  %v14474_v51 = vcombine.high %v1031_v46, %v1043_v47  ;;  %v1162_v27 = vld [vmem:[#allocation5 + $0x2190] sm:$0xff]  ;;  %v1163_v30 = vld [vmem:[#allocation5 + $0x2198] sm:$0xff] }
 0x3e2   :  { %10556 = vmatprep.mubr.bf16.mxu0 %v16164_v34  ;;  %10720 = vmatprep.mubr.bf16.mxu1 %v16164_v34 }
 0x3e4   :  { %10527 = vmatpush1.bf16.msra.mxu0 %v14327_v59  ;;  %10691 = vmatpush1.bf16.msra.mxu1 %v14329_v60  ;;  %v14471_v59 = vcombine.low %v1030_v44, %v1042_v45  ;;  %v14473_v60 = vcombine.low %v1031_v46, %v1043_v47  ;;  %v1174_v44 = vld [vmem:[#allocation5 + $0x21f0] sm:$0xff]  ;;  %v1175_v46 = vld [vmem:[#allocation5 + $0x21f8] sm:$0xff] }
 0x3e5   :  { %10528 = vmatprep.subr.bf16.mxu0 %v14352_v61  ;;  %10692 = vmatprep.subr.bf16.mxu1 %v14354_v62  ;;  %v14496_v61 = vcombine.high %v1054_v52, %v1066_v54  ;;  %v14498_v62 = vcombine.high %v1055_v55, %v1067_v56  ;;  %v1186_v45 = vld [vmem:[#allocation5 + $0x2250] sm:$0xff]  ;;  %v1187_v47 = vld [vmem:[#allocation5 + $0x2258] sm:$0xff] }
 0x3e8   :  { %10529 = vmatpush1.bf16.msra.mxu0 %v14351_v3  ;;  %10693 = vmatpush1.bf16.msra.mxu1 %v14353_v38  ;;  %v14495_v3 = vcombine.low %v1054_v52, %v1066_v54  ;;  %v14497_v38 = vcombine.low %v1055_v55, %v1067_v56  ;;  %v1198_v52 = vld [vmem:[#allocation5 + $0x22b0] sm:$0xff]  ;;  %v1199_v55 = vld [vmem:[#allocation5 + $0x22b8] sm:$0xff] }
 0x3e9   :  { %10530 = vmatprep.subr.bf16.mxu0 %v14376_v4  ;;  %10694 = vmatprep.subr.bf16.mxu1 %v14378_v5  ;;  %v14520_v4 = vcombine.high %v1078_v63, %v1090_v0  ;;  %v14522_v5 = vcombine.high %v1079_v1, %v1091_v2  ;;  %v1210_v54 = vld [vmem:[#allocation5 + $0x2310] sm:$0xff]  ;;  %v1211_v56 = vld [vmem:[#allocation5 + $0x2318] sm:$0xff] }
 0x3ec   :  { %10531 = vmatpush1.bf16.msra.mxu0 %v14375_v10  ;;  %10695 = vmatpush1.bf16.msra.mxu1 %v14377_v11  ;;  %v14519_v10 = vcombine.low %v1078_v63, %v1090_v0  ;;  %v14521_v11 = vcombine.low %v1079_v1, %v1091_v2  ;;  %v1222_v63 = vld [vmem:[#allocation5 + $0x2370] sm:$0xff]  ;;  %v1223_v1 = vld [vmem:[#allocation5 + $0x2378] sm:$0xff] }
 0x3ed   :  { %10532 = vmatprep.subr.bf16.mxu0 %v14400_v13  ;;  %10696 = vmatprep.subr.bf16.mxu1 %v14402_v14  ;;  %v14544_v13 = vcombine.high %v1102_v6, %v1114_v7  ;;  %v14546_v14 = vcombine.high %v1103_v8, %v1115_v9  ;;  %v1234_v0 = vld [vmem:[#allocation5 + $0x23d0] sm:$0xff]  ;;  %v1235_v2 = vld [vmem:[#allocation5 + $0x23d8] sm:$0xff] }
 0x3f0   :  { %10533 = vmatpush1.bf16.msra.mxu0 %v14399_v20  ;;  %10697 = vmatpush1.bf16.msra.mxu1 %v14401_v21  ;;  %v14543_v20 = vcombine.low %v1102_v6, %v1114_v7  ;;  %v14545_v21 = vcombine.low %v1103_v8, %v1115_v9  ;;  %v1246_v6 = vld [vmem:[#allocation5 + $0x2430] sm:$0xff]  ;;  %v1247_v8 = vld [vmem:[#allocation5 + $0x2438] sm:$0xff] }
 0x3f1   :  { %10534 = vmatprep.subr.bf16.mxu0 %v14424_v22  ;;  %10698 = vmatprep.subr.bf16.mxu1 %v14426_v23  ;;  %v14568_v22 = vcombine.high %v1126_v16, %v1138_v17  ;;  %v14570_v23 = vcombine.high %v1127_v18, %v1139_v19  ;;  %v1258_v7 = vld [vmem:[#allocation5 + $0x2490] sm:$0xff]  ;;  %v1259_v9 = vld [vmem:[#allocation5 + $0x2498] sm:$0xff] }
 0x3f4   :  { %10535 = vmatpush1.bf16.msra.mxu0 %v14423_v31  ;;  %10699 = vmatpush1.bf16.msra.mxu1 %v14425_v32  ;;  %v14567_v31 = vcombine.low %v1126_v16, %v1138_v17  ;;  %v14569_v32 = vcombine.low %v1127_v18, %v1139_v19  ;;  %v1270_v16 = vld [vmem:[#allocation5 + $0x24f0] sm:$0xff]  ;;  %v1271_v18 = vld [vmem:[#allocation5 + $0x24f8] sm:$0xff] }
 0x3f5   :  { %10536 = vmatprep.subr.bf16.mxu0 %v14448_v36  ;;  %10700 = vmatprep.subr.bf16.mxu1 %v14450_v41  ;;  %v14592_v36 = vcombine.high %v1150_v26, %v1162_v27  ;;  %v14594_v41 = vcombine.high %v1151_v28, %v1163_v30  ;;  %v1282_v17 = vld [vmem:[#allocation5 + $0x2550] sm:$0xff]  ;;  %v1283_v19 = vld [vmem:[#allocation5 + $0x2558] sm:$0xff] }
 0x3f8   :  { %10537 = vmatpush1.bf16.msra.mxu0 %v14447_v24  ;;  %10701 = vmatpush1.bf16.msra.mxu1 %v14449_v49  ;;  %v14591_v24 = vcombine.low %v1150_v26, %v1162_v27  ;;  %v14593_v49 = vcombine.low %v1151_v28, %v1163_v30  ;;  %v1294_v26 = vld [vmem:[#allocation5 + $0x25b0] sm:$0xff]  ;;  %v1295_v28 = vld [vmem:[#allocation5 + $0x25b8] sm:$0xff] }
 0x3f9   :  { %10538 = vmatprep.subr.bf16.mxu0 %v14472_v50  ;;  %10702 = vmatprep.subr.bf16.mxu1 %v14474_v51  ;;  %v14616_v50 = vcombine.high %v1174_v44, %v1186_v45  ;;  %v14618_v51 = vcombine.high %v1175_v46, %v1187_v47  ;;  %v1306_v27 = vld [vmem:[#allocation5 + $0x2610] sm:$0xff]  ;;  %v1307_v30 = vld [vmem:[#allocation5 + $0x2618] sm:$0xff] }
 0x3fc   :  { %10539 = vmatpush1.bf16.msra.mxu0 %v14471_v59  ;;  %10703 = vmatpush1.bf16.msra.mxu1 %v14473_v60  ;;  %v14615_v59 = vcombine.low %v1174_v44, %v1186_v45  ;;  %v14617_v60 = vcombine.low %v1175_v46, %v1187_v47  ;;  %v1318_v44 = vld [vmem:[#allocation5 + $0x2670] sm:$0xff]  ;;  %v1319_v46 = vld [vmem:[#allocation5 + $0x2678] sm:$0xff] }
 0x3fd   :  { %10540 = vmatprep.subr.bf16.mxu0 %v14496_v61  ;;  %10704 = vmatprep.subr.bf16.mxu1 %v14498_v62  ;;  %v14640_v61 = vcombine.high %v1198_v52, %v1210_v54  ;;  %v14642_v62 = vcombine.high %v1199_v55, %v1211_v56  ;;  %v1330_v45 = vld [vmem:[#allocation5 + $0x26d0] sm:$0xff]  ;;  %v1331_v47 = vld [vmem:[#allocation5 + $0x26d8] sm:$0xff] }
 0x400   :  { %10541 = vmatpush1.bf16.msra.mxu0 %v14495_v3  ;;  %10705 = vmatpush1.bf16.msra.mxu1 %v14497_v38  ;;  %v14639_v3 = vcombine.low %v1198_v52, %v1210_v54  ;;  %v14641_v38 = vcombine.low %v1199_v55, %v1211_v56  ;;  %v1342_v52 = vld [vmem:[#allocation5 + $0x2730] sm:$0xff]  ;;  %v1343_v55 = vld [vmem:[#allocation5 + $0x2738] sm:$0xff] }
 0x401   :  { %10542 = vmatprep.subr.bf16.mxu0 %v14520_v4  ;;  %10706 = vmatprep.subr.bf16.mxu1 %v14522_v5  ;;  %v14664_v4 = vcombine.high %v1222_v63, %v1234_v0  ;;  %v14666_v5 = vcombine.high %v1223_v1, %v1235_v2  ;;  %v1354_v54 = vld [vmem:[#allocation5 + $0x2790] sm:$0xff]  ;;  %v1355_v56 = vld [vmem:[#allocation5 + $0x2798] sm:$0xff] }
 0x404   :  { %10543 = vmatpush1.bf16.msra.mxu0 %v14519_v10  ;;  %10707 = vmatpush1.bf16.msra.mxu1 %v14521_v11  ;;  %v14663_v10 = vcombine.low %v1222_v63, %v1234_v0  ;;  %v14665_v11 = vcombine.low %v1223_v1, %v1235_v2  ;;  %v1366_v63 = vld [vmem:[#allocation5 + $0x27f0] sm:$0xff]  ;;  %v1367_v1 = vld [vmem:[#allocation5 + $0x27f8] sm:$0xff] }
 0x405   :  { %10544 = vmatprep.subr.bf16.mxu0 %v14544_v13  ;;  %10708 = vmatprep.subr.bf16.mxu1 %v14546_v14  ;;  %v14688_v13 = vcombine.high %v1246_v6, %v1258_v7  ;;  %v14690_v14 = vcombine.high %v1247_v8, %v1259_v9  ;;  %v1378_v0 = vld [vmem:[#allocation5 + $0x2850] sm:$0xff]  ;;  %v1379_v2 = vld [vmem:[#allocation5 + $0x2858] sm:$0xff] }
 0x408   :  { %10545 = vmatpush1.bf16.msra.mxu0 %v14543_v20  ;;  %10709 = vmatpush1.bf16.msra.mxu1 %v14545_v21  ;;  %v14687_v20 = vcombine.low %v1246_v6, %v1258_v7  ;;  %v14689_v21 = vcombine.low %v1247_v8, %v1259_v9  ;;  %v1390_v6 = vld [vmem:[#allocation5 + $0x28b0] sm:$0xff]  ;;  %v1391_v8 = vld [vmem:[#allocation5 + $0x28b8] sm:$0xff] }
 0x409   :  { %10546 = vmatprep.subr.bf16.mxu0 %v14568_v22  ;;  %10710 = vmatprep.subr.bf16.mxu1 %v14570_v23  ;;  %v14712_v22 = vcombine.high %v1270_v16, %v1282_v17  ;;  %v14714_v23 = vcombine.high %v1271_v18, %v1283_v19  ;;  %v1402_v7 = vld [vmem:[#allocation5 + $0x2910] sm:$0xff]  ;;  %v1403_v9 = vld [vmem:[#allocation5 + $0x2918] sm:$0xff] }
 0x40c   :  { %10547 = vmatpush1.bf16.msra.mxu0 %v14567_v31  ;;  %10711 = vmatpush1.bf16.msra.mxu1 %v14569_v32  ;;  %v14711_v31 = vcombine.low %v1270_v16, %v1282_v17  ;;  %v14713_v32 = vcombine.low %v1271_v18, %v1283_v19  ;;  %v14834_v16 = vcombine.high %v1391_v8, %v1403_v9  ;;  %v1414_v17 = vld [vmem:[#allocation5 + $0x2970] sm:$0xff] }
 0x40d   :  { %10548 = vmatprep.subr.bf16.mxu0 %v14592_v36  ;;  %10712 = vmatprep.subr.bf16.mxu1 %v14594_v41  ;;  %v14736_v36 = vcombine.high %v1294_v26, %v1306_v27  ;;  %v14738_v41 = vcombine.high %v1295_v28, %v1307_v30  ;;  %v1426_v18 = vld [vmem:[#allocation5 + $0x29d0] sm:$0xff] }
 0x410   :  { %10549 = vmatpush1.bf16.msra.mxu0 %v14591_v24  ;;  %10713 = vmatpush1.bf16.msra.mxu1 %v14593_v49  ;;  %v14735_v24 = vcombine.low %v1294_v26, %v1306_v27  ;;  %v14737_v49 = vcombine.low %v1295_v28, %v1307_v30  ;;  %v14831_v27 = vcombine.low %v1390_v6, %v1402_v7 }
 0x411   :  { %10550 = vmatprep.subr.bf16.mxu0 %v14616_v50  ;;  %10714 = vmatprep.subr.bf16.mxu1 %v14618_v51  ;;  %v14760_v50 = vcombine.high %v1318_v44, %v1330_v45  ;;  %v14762_v51 = vcombine.high %v1319_v46, %v1331_v47 }
 0x414   :  { %10551 = vmatpush1.bf16.msra.mxu0 %v14615_v59  ;;  %10715 = vmatpush1.bf16.msra.mxu1 %v14617_v60  ;;  %v14759_v59 = vcombine.low %v1318_v44, %v1330_v45  ;;  %v14761_v60 = vcombine.low %v1319_v46, %v1331_v47  ;;  %v1438_v44 = vld [vmem:[#allocation5 + $0x2a30] sm:$0xff]  ;;  %v1439_v46 = vld [vmem:[#allocation5 + $0x2a38] sm:$0xff] }
 0x415   :  { %10552 = vmatprep.subr.bf16.mxu0 %v14640_v61  ;;  %10716 = vmatprep.subr.bf16.mxu1 %v14642_v62  ;;  %v14784_v61 = vcombine.high %v1342_v52, %v1354_v54  ;;  %v14786_v62 = vcombine.high %v1343_v55, %v1355_v56  ;;  %v1450_v45 = vld [vmem:[#allocation5 + $0x2a90] sm:$0xff]  ;;  %v1451_v47 = vld [vmem:[#allocation5 + $0x2a98] sm:$0xff] }
 0x418   :  { %10553 = vmatpush1.bf16.msra.mxu0 %v14639_v3  ;;  %10717 = vmatpush1.bf16.msra.mxu1 %v14641_v38  ;;  %v14783_v3 = vcombine.low %v1342_v52, %v1354_v54  ;;  %v14785_v38 = vcombine.low %v1343_v55, %v1355_v56  ;;  %v1462_v52 = vld [vmem:[#allocation5 + $0x2af0] sm:$0xff]  ;;  %v1463_v55 = vld [vmem:[#allocation5 + $0x2af8] sm:$0xff] }
 0x419   :  { %10554 = vmatprep.subr.bf16.mxu0 %v14664_v4  ;;  %10718 = vmatprep.subr.bf16.mxu1 %v14666_v5  ;;  %v14808_v4 = vcombine.high %v1366_v63, %v1378_v0  ;;  %v14810_v5 = vcombine.high %v1367_v1, %v1379_v2  ;;  %v1474_v54 = vld [vmem:[#allocation5 + $0x2b50] sm:$0xff]  ;;  %v1475_v56 = vld [vmem:[#allocation5 + $0x2b58] sm:$0xff] }
 0x41c   :  { %10555 = vmatpush1.bf16.msra.mxu0 %v14663_v10  ;;  %10719 = vmatpush1.bf16.msra.mxu1 %v14665_v11  ;;  %v14807_v10 = vcombine.low %v1366_v63, %v1378_v0  ;;  %v14809_v11 = vcombine.low %v1367_v1, %v1379_v2  ;;  %v1486_v63 = vld [vmem:[#allocation5 + $0x2bb0] sm:$0xff]  ;;  %v1487_v1 = vld [vmem:[#allocation5 + $0x2bb8] sm:$0xff] }
 0x41d   :  { %10565 = vmatprep.subr.bf16.mxu0 %v14688_v13  ;;  %10729 = vmatprep.subr.bf16.mxu1 %v14690_v14  ;;  %v14832_v13 = vcombine.high %v1390_v6, %v1402_v7  ;;  %v1498_v0 = vld [vmem:[#allocation5 + $0x2c10] sm:$0xff]  ;;  %v1499_v2 = vld [vmem:[#allocation5 + $0x2c18] sm:$0xff] }
 0x41e   :  { %v1510_v6 = vld [vmem:[#allocation5 + $0x2c70] sm:$0xff] }
 0x41f   :  { %10557 = vmatmul.mubr.bf16.vlgmr.msra.gmra.mrb[12].mxu0 %v16174_v39  ;;  %10721 = vmatmul.mubr.bf16.vlgmr.msra.gmra.mrb[12].mxu1 %v16174_v39  ;;  %v1522_v7 = vld [vmem:[#allocation5 + $0x2cd0] sm:$0xff] }
 0x420   :  { %10566 = vmatpush1.bf16.msra.mxu0 %v14687_v20  ;;  %10730 = vmatpush1.bf16.msra.mxu1 %v14689_v21  ;;  %v1415_v21 = vld [vmem:[#allocation5 + $0x2978] sm:$0xff] }
 0x421   :  { %10567 = vmatprep.subr.bf16.mxu0 %v14712_v22  ;;  %10731 = vmatprep.subr.bf16.mxu1 %v14714_v23  ;;  %v1427_v22 = vld [vmem:[#allocation5 + $0x29d8] sm:$0xff] }
 0x422   :  { %10597 = vmatprep.mubr.bf16.mxu0 %v16178_v48  ;;  %10761 = vmatprep.mubr.bf16.mxu1 %v16178_v48 }
 0x424   :  { %10568 = vmatpush1.bf16.msra.mxu0 %v14711_v31  ;;  %10732 = vmatpush1.bf16.msra.mxu1 %v14713_v32  ;;  %v14833_v31 = vcombine.low %v1391_v8, %v1403_v9  ;;  %v14856_v32 = vcombine.high %v1414_v17, %v1426_v18  ;;  %v1511_v8 = vld [vmem:[#allocation5 + $0x2c78] sm:$0xff] }
 0x425   :  { %10569 = vmatprep.subr.bf16.mxu0 %v14736_v36  ;;  %10733 = vmatprep.subr.bf16.mxu1 %v14738_v41  ;;  %v14858_v41 = vcombine.high %v1415_v21, %v1427_v22  ;;  %v1523_v9 = vld [vmem:[#allocation5 + $0x2cd8] sm:$0xff] }
 0x428   :  { %10570 = vmatpush1.bf16.msra.mxu0 %v14735_v24  ;;  %10734 = vmatpush1.bf16.msra.mxu1 %v14737_v49  ;;  %v14855_v24 = vcombine.low %v1414_v17, %v1426_v18  ;;  %v14857_v49 = vcombine.low %v1415_v21, %v1427_v22  ;;  %v1534_v17 = vld [vmem:[#allocation5 + $0x2d30] sm:$0xff]  ;;  %v1535_v21 = vld [vmem:[#allocation5 + $0x2d38] sm:$0xff] }
 0x429   :  { %10571 = vmatprep.subr.bf16.mxu0 %v14760_v50  ;;  %10735 = vmatprep.subr.bf16.mxu1 %v14762_v51  ;;  %v14880_v50 = vcombine.high %v1438_v44, %v1450_v45  ;;  %v14882_v51 = vcombine.high %v1439_v46, %v1451_v47  ;;  %v1546_v18 = vld [vmem:[#allocation5 + $0x2d90] sm:$0xff]  ;;  %v1547_v22 = vld [vmem:[#allocation5 + $0x2d98] sm:$0xff] }
 0x42c   :  { %10572 = vmatpush1.bf16.msra.mxu0 %v14759_v59  ;;  %10736 = vmatpush1.bf16.msra.mxu1 %v14761_v60  ;;  %v14879_v59 = vcombine.low %v1438_v44, %v1450_v45  ;;  %v14881_v60 = vcombine.low %v1439_v46, %v1451_v47  ;;  %v14975_v44 = vcombine.low %v1534_v17, %v1546_v18 }
 0x42d   :  { %10573 = vmatprep.subr.bf16.mxu0 %v14784_v61  ;;  %10737 = vmatprep.subr.bf16.mxu1 %v14786_v62  ;;  %v14904_v61 = vcombine.high %v1462_v52, %v1474_v54  ;;  %v14906_v62 = vcombine.high %v1463_v55, %v1475_v56  ;;  %v14977_v45 = vcombine.low %v1535_v21, %v1547_v22 }
 0x430   :  { %10574 = vmatpush1.bf16.msra.mxu0 %v14783_v3  ;;  %10738 = vmatpush1.bf16.msra.mxu1 %v14785_v38  ;;  %v14903_v3 = vcombine.low %v1462_v52, %v1474_v54  ;;  %v14905_v38 = vcombine.low %v1463_v55, %v1475_v56 }
 0x431   :  { %10575 = vmatprep.subr.bf16.mxu0 %v14808_v4  ;;  %10739 = vmatprep.subr.bf16.mxu1 %v14810_v5  ;;  %v14928_v4 = vcombine.high %v1486_v63, %v1498_v0  ;;  %v14930_v5 = vcombine.high %v1487_v1, %v1499_v2 }
 0x432   :  { %v16252_v14 = vpop.f32.mrb[8].mxu0  ;;  %v16254_v19 = vpop.f32.mrb[8].mxu1 }
 0x433   :  { %v16256_v20 = vpop.f32.mrb[9].mxu0  ;;  %v16258_v23 = vpop.f32.mrb[9].mxu1 }
 0x434   :  { %v10275_v26 = vpop.f32.mrb[10].mxu0  ;;  %10576 = vmatpush1.bf16.msra.mxu0 %v14807_v10  ;;  %v10439_v28 = vpop.f32.mrb[10].mxu1  ;;  %10740 = vmatpush1.bf16.msra.mxu1 %v14809_v11  ;;  %v14927_v10 = vcombine.low %v1486_v63, %v1498_v0  ;;  %v14929_v11 = vcombine.low %v1487_v1, %v1499_v2 }
 0x435   :  { %v10276_v30 = vpop.f32.mrb[11].mxu0  ;;  %10577 = vmatprep.subr.bf16.mxu0 %v14832_v13  ;;  %v10440_v36 = vpop.f32.mrb[11].mxu1  ;;  %10741 = vmatprep.subr.bf16.mxu1 %v14834_v16  ;;  %v14952_v13 = vcombine.high %v1510_v6, %v1522_v7  ;;  %v14954_v16 = vcombine.high %v1511_v8, %v1523_v9  ;;  %v14951_v26 = vcombine.low %v1510_v6, %v1522_v7 }
 0x436   :  { %v14976_v28 = vcombine.high %v1534_v17, %v1546_v18  ;;  %v14978_v30 = vcombine.high %v1535_v21, %v1547_v22  ;;  %v1559_v36 = vld [vmem:[#allocation5 + $0x2df8] sm:$0xff] }
 0x438   :  { %10578 = vmatpush1.bf16.msra.mxu0 %v14831_v27  ;;  %10742 = vmatpush1.bf16.msra.mxu1 %v14833_v31  ;;  %v14953_v27 = vcombine.low %v1511_v8, %v1523_v9  ;;  %v1558_v31 = vld [vmem:[#allocation5 + $0x2df0] sm:$0xff] }
 0x439   :  { %10579 = vmatprep.subr.bf16.mxu0 %v14856_v32  ;;  %10743 = vmatprep.subr.bf16.mxu1 %v14858_v41  ;;  %v1570_v32 = vld [vmem:[#allocation5 + $0x2e50] sm:$0xff]  ;;  %v1571_v41 = vld [vmem:[#allocation5 + $0x2e58] sm:$0xff] }
 0x43a   :  { %v15000_v46 = vcombine.high %v1558_v31, %v1570_v32  ;;  %v15002_v47 = vcombine.high %v1559_v36, %v1571_v41  ;;  %v14999_v52 = vcombine.low %v1558_v31, %v1570_v32  ;;  %v15001_v54 = vcombine.low %v1559_v36, %v1571_v41 }
 0x43c   :  { %10580 = vmatpush1.bf16.msra.mxu0 %v14855_v24  ;;  %10744 = vmatpush1.bf16.msra.mxu1 %v14857_v49  ;;  %v1582_v24 = vld [vmem:[#allocation5 + $0x2eb0] sm:$0xff] }
 0x43d   :  { %10581 = vmatprep.subr.bf16.mxu0 %v14880_v50  ;;  %10745 = vmatprep.subr.bf16.mxu1 %v14882_v51  ;;  %v1594_v49 = vld [vmem:[#allocation5 + $0x2f10] sm:$0xff]  ;;  %v1583_v50 = vld [vmem:[#allocation5 + $0x2eb8] sm:$0xff] }
 0x43e   :  { %v1595_v51 = vld [vmem:[#allocation5 + $0x2f18] sm:$0xff]  ;;  %v15024_v55 = vcombine.high %v1582_v24, %v1594_v49  ;;  %v15023_v63 = vcombine.low %v1582_v24, %v1594_v49 }
 0x43f   :  { %v15026_v56 = vcombine.high %v1583_v50, %v1595_v51  ;;  %v15025_v0 = vcombine.low %v1583_v50, %v1595_v51 }
 0x440   :  { %10582 = vmatpush1.bf16.msra.mxu0 %v14879_v59  ;;  %10746 = vmatpush1.bf16.msra.mxu1 %v14881_v60  ;;  %v1606_v59 = vld [vmem:[#allocation5 + $0x2f70] sm:$0xff] }
 0x441   :  { %10583 = vmatprep.subr.bf16.mxu0 %v14904_v61  ;;  %10747 = vmatprep.subr.bf16.mxu1 %v14906_v62  ;;  %v1618_v60 = vld [vmem:[#allocation5 + $0x2fd0] sm:$0xff]  ;;  %v1607_v61 = vld [vmem:[#allocation5 + $0x2f78] sm:$0xff] }
 0x442   :  { %v1619_v62 = vld [vmem:[#allocation5 + $0x2fd8] sm:$0xff]  ;;  %v15048_v1 = vcombine.high %v1606_v59, %v1618_v60  ;;  %v15047_v6 = vcombine.low %v1606_v59, %v1618_v60 }
 0x443   :  { %v15050_v2 = vcombine.high %v1607_v61, %v1619_v62  ;;  %v15049_v7 = vcombine.low %v1607_v61, %v1619_v62 }
 0x444   :  { %10584 = vmatpush1.bf16.msra.mxu0 %v14903_v3  ;;  %10748 = vmatpush1.bf16.msra.mxu1 %v14905_v38  ;;  %v96_v3 = vld [vmem:[#allocation5 + $0x40] sm:$0xff] }
 0x445   :  { %10585 = vmatprep.subr.bf16.mxu0 %v14928_v4  ;;  %10749 = vmatprep.subr.bf16.mxu1 %v14930_v5  ;;  %v108_v38 = vld [vmem:[#allocation5 + $0xa0] sm:$0xff]  ;;  %v97_v4 = vld [vmem:[#allocation5 + $0x48] sm:$0xff] }
 0x446   :  { %v109_v5 = vld [vmem:[#allocation5 + $0xa8] sm:$0xff]  ;;  %v13540_v8 = vcombine.high %v96_v3, %v108_v38  ;;  %v13539_v17 = vcombine.low %v96_v3, %v108_v38 }
 0x447   :  { %v13542_v9 = vcombine.high %v97_v4, %v109_v5  ;;  %v13541_v18 = vcombine.low %v97_v4, %v109_v5 }
 0x448   :  { %10586 = vmatpush1.bf16.msra.mxu0 %v14927_v10  ;;  %10750 = vmatpush1.bf16.msra.mxu1 %v14929_v11  ;;  %v120_v10 = vld [vmem:[#allocation5 + $0x100] sm:$0xff] }
 0x449   :  { %10587 = vmatprep.subr.bf16.mxu0 %v14952_v13  ;;  %10751 = vmatprep.subr.bf16.mxu1 %v14954_v16  ;;  %v132_v11 = vld [vmem:[#allocation5 + $0x160] sm:$0xff]  ;;  %v121_v13 = vld [vmem:[#allocation5 + $0x108] sm:$0xff] }
 0x44a   :  { %v133_v16 = vld [vmem:[#allocation5 + $0x168] sm:$0xff]  ;;  %v13564_v21 = vcombine.high %v120_v10, %v132_v11  ;;  %v13563_v31 = vcombine.low %v120_v10, %v132_v11 }
 0x44b   :  { %v13566_v22 = vcombine.high %v121_v13, %v133_v16  ;;  %v13565_v32 = vcombine.low %v121_v13, %v133_v16 }
 0x44c   :  { %10588 = vmatpush1.bf16.msra.mxu0 %v14951_v26  ;;  %10752 = vmatpush1.bf16.msra.mxu1 %v14953_v27  ;;  %v144_v26 = vld [vmem:[#allocation5 + $0x1c0] sm:$0xff] }
 0x44d   :  { %10589 = vmatprep.subr.bf16.mxu0 %v14976_v28  ;;  %10753 = vmatprep.subr.bf16.mxu1 %v14978_v30  ;;  %v156_v27 = vld [vmem:[#allocation5 + $0x220] sm:$0xff]  ;;  %v145_v28 = vld [vmem:[#allocation5 + $0x1c8] sm:$0xff] }
 0x44e   :  { %v157_v30 = vld [vmem:[#allocation5 + $0x228] sm:$0xff]  ;;  %v13588_v36 = vcombine.high %v144_v26, %v156_v27  ;;  %v13587_v24 = vcombine.low %v144_v26, %v156_v27 }
 0x44f   :  { %v13590_v41 = vcombine.high %v145_v28, %v157_v30  ;;  %v13589_v49 = vcombine.low %v145_v28, %v157_v30 }
 0x450   :  { %10590 = vmatpush1.bf16.msra.mxu0 %v14975_v44  ;;  %10754 = vmatpush1.bf16.msra.mxu1 %v14977_v45  ;;  %v168_v44 = vld [vmem:[#allocation5 + $0x280] sm:$0xff] }
 0x451   :  { %10591 = vmatprep.subr.bf16.mxu0 %v15000_v46  ;;  %10755 = vmatprep.subr.bf16.mxu1 %v15002_v47  ;;  %v180_v45 = vld [vmem:[#allocation5 + $0x2e0] sm:$0xff]  ;;  %v169_v46 = vld [vmem:[#allocation5 + $0x288] sm:$0xff] }
 0x452   :  { %v181_v47 = vld [vmem:[#allocation5 + $0x2e8] sm:$0xff]  ;;  %v13612_v50 = vcombine.high %v168_v44, %v180_v45  ;;  %v13611_v59 = vcombine.low %v168_v44, %v180_v45 }
 0x453   :  { %v13614_v51 = vcombine.high %v169_v46, %v181_v47  ;;  %v13613_v60 = vcombine.low %v169_v46, %v181_v47 }
 0x454   :  { %10592 = vmatpush1.bf16.msra.mxu0 %v14999_v52  ;;  %10756 = vmatpush1.bf16.msra.mxu1 %v15001_v54  ;;  %v192_v52 = vld [vmem:[#allocation5 + $0x340] sm:$0xff] }
 0x455   :  { %10593 = vmatprep.subr.bf16.mxu0 %v15024_v55  ;;  %10757 = vmatprep.subr.bf16.mxu1 %v15026_v56  ;;  %v204_v54 = vld [vmem:[#allocation5 + $0x3a0] sm:$0xff]  ;;  %v193_v55 = vld [vmem:[#allocation5 + $0x348] sm:$0xff] }
 0x456   :  { %v205_v56 = vld [vmem:[#allocation5 + $0x3a8] sm:$0xff]  ;;  %v13636_v61 = vcombine.high %v192_v52, %v204_v54  ;;  %v13635_v3 = vcombine.low %v192_v52, %v204_v54 }
 0x457   :  { %v13638_v62 = vcombine.high %v193_v55, %v205_v56  ;;  %v13637_v38 = vcombine.low %v193_v55, %v205_v56 }
 0x458   :  { %10594 = vmatpush1.bf16.msra.mxu0 %v15023_v63  ;;  %10758 = vmatpush1.bf16.msra.mxu1 %v15025_v0  ;;  %v216_v63 = vld [vmem:[#allocation5 + $0x400] sm:$0xff] }
 0x459   :  { %10595 = vmatprep.subr.bf16.mxu0 %v15048_v1  ;;  %10759 = vmatprep.subr.bf16.mxu1 %v15050_v2  ;;  %v228_v0 = vld [vmem:[#allocation5 + $0x460] sm:$0xff]  ;;  %v217_v1 = vld [vmem:[#allocation5 + $0x408] sm:$0xff] }
 0x45a   :  { %v229_v2 = vld [vmem:[#allocation5 + $0x468] sm:$0xff]  ;;  %v13660_v4 = vcombine.high %v216_v63, %v228_v0  ;;  %v13659_v10 = vcombine.low %v216_v63, %v228_v0 }
 0x45b   :  { %v13662_v5 = vcombine.high %v217_v1, %v229_v2  ;;  %v13661_v11 = vcombine.low %v217_v1, %v229_v2 }
 0x45c   :  { %10596 = vmatpush1.bf16.msra.mxu0 %v15047_v6  ;;  %10760 = vmatpush1.bf16.msra.mxu1 %v15049_v7  ;;  %v240_v6 = vld [vmem:[#allocation5 + $0x4c0] sm:$0xff] }
 0x45d   :  { %10770 = vmatprep.subr.bf16.mxu0 %v13540_v8  ;;  %10934 = vmatprep.subr.bf16.mxu1 %v13542_v9  ;;  %v252_v7 = vld [vmem:[#allocation5 + $0x520] sm:$0xff]  ;;  %v241_v8 = vld [vmem:[#allocation5 + $0x4c8] sm:$0xff] }
 0x45e   :  { %v253_v9 = vld [vmem:[#allocation5 + $0x528] sm:$0xff]  ;;  %v13684_v13 = vcombine.high %v240_v6, %v252_v7  ;;  %v13683_v26 = vcombine.low %v240_v6, %v252_v7 }
 0x45f   :  { %10598 = vmatmul.mubr.bf16.vlgmr.msra.gmra.mrb[12].mxu0 %v16186_v58  ;;  %10762 = vmatmul.mubr.bf16.vlgmr.msra.gmra.mrb[12].mxu1 %v16186_v58  ;;  %v13686_v16 = vcombine.high %v241_v8, %v253_v9  ;;  %v13685_v27 = vcombine.low %v241_v8, %v253_v9 }
 0x460   :  { %10771 = vmatpush1.bf16.msra.mxu0 %v13539_v17  ;;  %10935 = vmatpush1.bf16.msra.mxu1 %v13541_v18  ;;  %v264_v17 = vld [vmem:[#allocation5 + $0x580] sm:$0xff] }
 0x461   :  { %10772 = vmatprep.subr.bf16.mxu0 %v13564_v21  ;;  %10936 = vmatprep.subr.bf16.mxu1 %v13566_v22  ;;  %v276_v18 = vld [vmem:[#allocation5 + $0x5e0] sm:$0xff]  ;;  %v265_v21 = vld [vmem:[#allocation5 + $0x588] sm:$0xff] }
 0x462   :  { %10802 = vmatprep.mubr.bf16.mxu0 %v16138_v57  ;;  %10966 = vmatprep.mubr.bf16.mxu1 %v16138_v57  ;;  %v277_v22 = vld [vmem:[#allocation5 + $0x5e8] sm:$0xff]  ;;  %v13708_v28 = vcombine.high %v264_v17, %v276_v18  ;;  %v13707_v44 = vcombine.low %v264_v17, %v276_v18 }
 0x463   :  { %v13710_v30 = vcombine.high %v265_v21, %v277_v22  ;;  %v13709_v45 = vcombine.low %v265_v21, %v277_v22 }
 0x464   :  { %10773 = vmatpush1.bf16.msra.mxu0 %v13563_v31  ;;  %10937 = vmatpush1.bf16.msra.mxu1 %v13565_v32  ;;  %v288_v31 = vld [vmem:[#allocation5 + $0x640] sm:$0xff] }
 0x465   :  { %10774 = vmatprep.subr.bf16.mxu0 %v13588_v36  ;;  %10938 = vmatprep.subr.bf16.mxu1 %v13590_v41  ;;  %v300_v32 = vld [vmem:[#allocation5 + $0x6a0] sm:$0xff]  ;;  %v289_v36 = vld [vmem:[#allocation5 + $0x648] sm:$0xff] }
 0x466   :  { %v301_v41 = vld [vmem:[#allocation5 + $0x6a8] sm:$0xff]  ;;  %v13732_v46 = vcombine.high %v288_v31, %v300_v32  ;;  %v13731_v52 = vcombine.low %v288_v31, %v300_v32 }
 0x467   :  { %v13734_v47 = vcombine.high %v289_v36, %v301_v41  ;;  %v13733_v54 = vcombine.low %v289_v36, %v301_v41 }
 0x468   :  { %10775 = vmatpush1.bf16.msra.mxu0 %v13587_v24  ;;  %10939 = vmatpush1.bf16.msra.mxu1 %v13589_v49  ;;  %v312_v24 = vld [vmem:[#allocation5 + $0x700] sm:$0xff] }
 0x469   :  { %10776 = vmatprep.subr.bf16.mxu0 %v13612_v50  ;;  %10940 = vmatprep.subr.bf16.mxu1 %v13614_v51  ;;  %v324_v49 = vld [vmem:[#allocation5 + $0x760] sm:$0xff]  ;;  %v313_v50 = vld [vmem:[#allocation5 + $0x708] sm:$0xff] }
 0x46a   :  { %v325_v51 = vld [vmem:[#allocation5 + $0x768] sm:$0xff]  ;;  %v13756_v55 = vcombine.high %v312_v24, %v324_v49  ;;  %v13755_v63 = vcombine.low %v312_v24, %v324_v49 }
 0x46b   :  { %v13758_v56 = vcombine.high %v313_v50, %v325_v51  ;;  %v13757_v0 = vcombine.low %v313_v50, %v325_v51 }
 0x46c   :  { %10777 = vmatpush1.bf16.msra.mxu0 %v13611_v59  ;;  %10941 = vmatpush1.bf16.msra.mxu1 %v13613_v60  ;;  %v336_v59 = vld [vmem:[#allocation5 + $0x7c0] sm:$0xff] }
 0x46d   :  { %10778 = vmatprep.subr.bf16.mxu0 %v13636_v61  ;;  %10942 = vmatprep.subr.bf16.mxu1 %v13638_v62  ;;  %v348_v60 = vld [vmem:[#allocation5 + $0x820] sm:$0xff]  ;;  %v337_v61 = vld [vmem:[#allocation5 + $0x7c8] sm:$0xff] }
 0x46e   :  { %v349_v62 = vld [vmem:[#allocation5 + $0x828] sm:$0xff]  ;;  %v13780_v1 = vcombine.high %v336_v59, %v348_v60  ;;  %v13779_v6 = vcombine.low %v336_v59, %v348_v60 }
 0x46f   :  { %v13782_v2 = vcombine.high %v337_v61, %v349_v62  ;;  %v13781_v7 = vcombine.low %v337_v61, %v349_v62 }
 0x470   :  { %10779 = vmatpush1.bf16.msra.mxu0 %v13635_v3  ;;  %10943 = vmatpush1.bf16.msra.mxu1 %v13637_v38  ;;  %v360_v3 = vld [vmem:[#allocation5 + $0x880] sm:$0xff] }
 0x471   :  { %10780 = vmatprep.subr.bf16.mxu0 %v13660_v4  ;;  %10944 = vmatprep.subr.bf16.mxu1 %v13662_v5  ;;  %v372_v38 = vld [vmem:[#allocation5 + $0x8e0] sm:$0xff]  ;;  %v361_v4 = vld [vmem:[#allocation5 + $0x888] sm:$0xff] }
 0x472   :  { %v373_v5 = vld [vmem:[#allocation5 + $0x8e8] sm:$0xff]  ;;  %v13804_v8 = vcombine.high %v360_v3, %v372_v38  ;;  %v13803_v17 = vcombine.low %v360_v3, %v372_v38 }
 0x473   :  { %v13806_v9 = vcombine.high %v361_v4, %v373_v5  ;;  %v13805_v18 = vcombine.low %v361_v4, %v373_v5 }
 0x474   :  { %10781 = vmatpush1.bf16.msra.mxu0 %v13659_v10  ;;  %10945 = vmatpush1.bf16.msra.mxu1 %v13661_v11  ;;  %v384_v10 = vld [vmem:[#allocation5 + $0x940] sm:$0xff] }
 0x475   :  { %10782 = vmatprep.subr.bf16.mxu0 %v13684_v13  ;;  %10946 = vmatprep.subr.bf16.mxu1 %v13686_v16  ;;  %v396_v11 = vld [vmem:[#allocation5 + $0x9a0] sm:$0xff]  ;;  %v385_v13 = vld [vmem:[#allocation5 + $0x948] sm:$0xff] }
 0x476   :  { %v397_v16 = vld [vmem:[#allocation5 + $0x9a8] sm:$0xff]  ;;  %v13828_v21 = vcombine.high %v384_v10, %v396_v11  ;;  %v13827_v31 = vcombine.low %v384_v10, %v396_v11 }
 0x477   :  { %v13830_v22 = vcombine.high %v385_v13, %v397_v16  ;;  %v13829_v32 = vcombine.low %v385_v13, %v397_v16 }
 0x478   :  { %10783 = vmatpush1.bf16.msra.mxu0 %v13683_v26  ;;  %10947 = vmatpush1.bf16.msra.mxu1 %v13685_v27  ;;  %v408_v26 = vld [vmem:[#allocation5 + $0xa00] sm:$0xff] }
 0x479   :  { %10784 = vmatprep.subr.bf16.mxu0 %v13708_v28  ;;  %10948 = vmatprep.subr.bf16.mxu1 %v13710_v30  ;;  %v420_v27 = vld [vmem:[#allocation5 + $0xa60] sm:$0xff]  ;;  %v409_v28 = vld [vmem:[#allocation5 + $0xa08] sm:$0xff] }
 0x47a   :  { %v421_v30 = vld [vmem:[#allocation5 + $0xa68] sm:$0xff]  ;;  %v13852_v36 = vcombine.high %v408_v26, %v420_v27  ;;  %v13851_v24 = vcombine.low %v408_v26, %v420_v27 }
 0x47b   :  { %v13854_v41 = vcombine.high %v409_v28, %v421_v30  ;;  %v13853_v49 = vcombine.low %v409_v28, %v421_v30 }
 0x47c   :  { %10785 = vmatpush1.bf16.msra.mxu0 %v13707_v44  ;;  %10949 = vmatpush1.bf16.msra.mxu1 %v13709_v45  ;;  %v432_v44 = vld [vmem:[#allocation5 + $0xac0] sm:$0xff] }
 0x47d   :  { %10786 = vmatprep.subr.bf16.mxu0 %v13732_v46  ;;  %10950 = vmatprep.subr.bf16.mxu1 %v13734_v47  ;;  %v444_v45 = vld [vmem:[#allocation5 + $0xb20] sm:$0xff]  ;;  %v433_v46 = vld [vmem:[#allocation5 + $0xac8] sm:$0xff] }
 0x47e   :  { %v445_v47 = vld [vmem:[#allocation5 + $0xb28] sm:$0xff]  ;;  %v13876_v50 = vcombine.high %v432_v44, %v444_v45  ;;  %v13875_v59 = vcombine.low %v432_v44, %v444_v45 }
 0x47f   :  { %v13878_v51 = vcombine.high %v433_v46, %v445_v47  ;;  %v13877_v60 = vcombine.low %v433_v46, %v445_v47 }
 0x480   :  { %10787 = vmatpush1.bf16.msra.mxu0 %v13731_v52  ;;  %10951 = vmatpush1.bf16.msra.mxu1 %v13733_v54  ;;  %v456_v52 = vld [vmem:[#allocation5 + $0xb80] sm:$0xff] }
 0x481   :  { %10788 = vmatprep.subr.bf16.mxu0 %v13756_v55  ;;  %10952 = vmatprep.subr.bf16.mxu1 %v13758_v56  ;;  %v468_v54 = vld [vmem:[#allocation5 + $0xbe0] sm:$0xff]  ;;  %v457_v55 = vld [vmem:[#allocation5 + $0xb88] sm:$0xff] }
 0x482   :  { %v469_v56 = vld [vmem:[#allocation5 + $0xbe8] sm:$0xff]  ;;  %v13900_v61 = vcombine.high %v456_v52, %v468_v54  ;;  %v13899_v3 = vcombine.low %v456_v52, %v468_v54 }
 0x483   :  { %v13902_v62 = vcombine.high %v457_v55, %v469_v56  ;;  %v13901_v38 = vcombine.low %v457_v55, %v469_v56 }
 0x484   :  { %10789 = vmatpush1.bf16.msra.mxu0 %v13755_v63  ;;  %10953 = vmatpush1.bf16.msra.mxu1 %v13757_v0  ;;  %v480_v63 = vld [vmem:[#allocation5 + $0xc40] sm:$0xff] }
 0x485   :  { %10790 = vmatprep.subr.bf16.mxu0 %v13780_v1  ;;  %10954 = vmatprep.subr.bf16.mxu1 %v13782_v2  ;;  %v492_v0 = vld [vmem:[#allocation5 + $0xca0] sm:$0xff]  ;;  %v481_v1 = vld [vmem:[#allocation5 + $0xc48] sm:$0xff] }
 0x486   :  { %v493_v2 = vld [vmem:[#allocation5 + $0xca8] sm:$0xff]  ;;  %v13924_v4 = vcombine.high %v480_v63, %v492_v0  ;;  %v13923_v10 = vcombine.low %v480_v63, %v492_v0 }
 0x487   :  { %v13926_v5 = vcombine.high %v481_v1, %v493_v2  ;;  %v13925_v11 = vcombine.low %v481_v1, %v493_v2 }
 0x488   :  { %10791 = vmatpush1.bf16.msra.mxu0 %v13779_v6  ;;  %10955 = vmatpush1.bf16.msra.mxu1 %v13781_v7  ;;  %v504_v6 = vld [vmem:[#allocation5 + $0xd00] sm:$0xff] }
 0x489   :  { %10792 = vmatprep.subr.bf16.mxu0 %v13804_v8  ;;  %10956 = vmatprep.subr.bf16.mxu1 %v13806_v9  ;;  %v516_v7 = vld [vmem:[#allocation5 + $0xd60] sm:$0xff]  ;;  %v505_v8 = vld [vmem:[#allocation5 + $0xd08] sm:$0xff] }
 0x48a   :  { %v517_v9 = vld [vmem:[#allocation5 + $0xd68] sm:$0xff]  ;;  %v13948_v13 = vcombine.high %v504_v6, %v516_v7  ;;  %v13947_v26 = vcombine.low %v504_v6, %v516_v7 }
 0x48b   :  { %v13950_v16 = vcombine.high %v505_v8, %v517_v9  ;;  %v13949_v27 = vcombine.low %v505_v8, %v517_v9 }
 0x48c   :  { %10793 = vmatpush1.bf16.msra.mxu0 %v13803_v17  ;;  %10957 = vmatpush1.bf16.msra.mxu1 %v13805_v18  ;;  %v528_v17 = vld [vmem:[#allocation5 + $0xdc0] sm:$0xff] }
 0x48d   :  { %10794 = vmatprep.subr.bf16.mxu0 %v13828_v21  ;;  %10958 = vmatprep.subr.bf16.mxu1 %v13830_v22  ;;  %v540_v18 = vld [vmem:[#allocation5 + $0xe20] sm:$0xff]  ;;  %v529_v21 = vld [vmem:[#allocation5 + $0xdc8] sm:$0xff] }
 0x48e   :  { %v541_v22 = vld [vmem:[#allocation5 + $0xe28] sm:$0xff]  ;;  %v13972_v28 = vcombine.high %v528_v17, %v540_v18  ;;  %v13971_v44 = vcombine.low %v528_v17, %v540_v18 }
 0x48f   :  { %v13974_v30 = vcombine.high %v529_v21, %v541_v22  ;;  %v13973_v45 = vcombine.low %v529_v21, %v541_v22 }
 0x490   :  { %10795 = vmatpush1.bf16.msra.mxu0 %v13827_v31  ;;  %10959 = vmatpush1.bf16.msra.mxu1 %v13829_v32  ;;  %v552_v31 = vld [vmem:[#allocation5 + $0xe80] sm:$0xff] }
 0x491   :  { %10796 = vmatprep.subr.bf16.mxu0 %v13852_v36  ;;  %10960 = vmatprep.subr.bf16.mxu1 %v13854_v41  ;;  %v564_v32 = vld [vmem:[#allocation5 + $0xee0] sm:$0xff]  ;;  %v553_v36 = vld [vmem:[#allocation5 + $0xe88] sm:$0xff] }
 0x492   :  { %v565_v41 = vld [vmem:[#allocation5 + $0xee8] sm:$0xff]  ;;  %v13996_v46 = vcombine.high %v552_v31, %v564_v32  ;;  %v13995_v52 = vcombine.low %v552_v31, %v564_v32 }
 0x493   :  { %v13998_v47 = vcombine.high %v553_v36, %v565_v41  ;;  %v13997_v54 = vcombine.low %v553_v36, %v565_v41 }
 0x494   :  { %10797 = vmatpush1.bf16.msra.mxu0 %v13851_v24  ;;  %10961 = vmatpush1.bf16.msra.mxu1 %v13853_v49  ;;  %v576_v24 = vld [vmem:[#allocation5 + $0xf40] sm:$0xff] }
 0x495   :  { %10798 = vmatprep.subr.bf16.mxu0 %v13876_v50  ;;  %10962 = vmatprep.subr.bf16.mxu1 %v13878_v51  ;;  %v588_v49 = vld [vmem:[#allocation5 + $0xfa0] sm:$0xff]  ;;  %v577_v50 = vld [vmem:[#allocation5 + $0xf48] sm:$0xff] }
 0x496   :  { %v589_v51 = vld [vmem:[#allocation5 + $0xfa8] sm:$0xff]  ;;  %v14020_v55 = vcombine.high %v576_v24, %v588_v49  ;;  %v14019_v63 = vcombine.low %v576_v24, %v588_v49 }
 0x497   :  { %v14022_v56 = vcombine.high %v577_v50, %v589_v51  ;;  %v14021_v0 = vcombine.low %v577_v50, %v589_v51 }
 0x498   :  { %10799 = vmatpush1.bf16.msra.mxu0 %v13875_v59  ;;  %10963 = vmatpush1.bf16.msra.mxu1 %v13877_v60  ;;  %v600_v59 = vld [vmem:[#allocation5 + $0x1000] sm:$0xff] }
 0x499   :  { %10800 = vmatprep.subr.bf16.mxu0 %v13900_v61  ;;  %10964 = vmatprep.subr.bf16.mxu1 %v13902_v62  ;;  %v612_v60 = vld [vmem:[#allocation5 + $0x1060] sm:$0xff]  ;;  %v601_v61 = vld [vmem:[#allocation5 + $0x1008] sm:$0xff] }
 0x49a   :  { %v613_v62 = vld [vmem:[#allocation5 + $0x1068] sm:$0xff]  ;;  %v14044_v1 = vcombine.high %v600_v59, %v612_v60  ;;  %v14043_v6 = vcombine.low %v600_v59, %v612_v60 }
 0x49b   :  { %v14046_v2 = vcombine.high %v601_v61, %v613_v62  ;;  %v14045_v7 = vcombine.low %v601_v61, %v613_v62 }
 0x49c   :  { %10801 = vmatpush1.bf16.msra.mxu0 %v13899_v3  ;;  %10965 = vmatpush1.bf16.msra.mxu1 %v13901_v38  ;;  %v624_v3 = vld [vmem:[#allocation5 + $0x10c0] sm:$0xff] }
 0x49d   :  { %10811 = vmatprep.subr.bf16.mxu0 %v13924_v4  ;;  %10975 = vmatprep.subr.bf16.mxu1 %v13926_v5  ;;  %v636_v38 = vld [vmem:[#allocation5 + $0x1120] sm:$0xff]  ;;  %v625_v4 = vld [vmem:[#allocation5 + $0x10c8] sm:$0xff] }
 0x49e   :  { %v637_v5 = vld [vmem:[#allocation5 + $0x1128] sm:$0xff]  ;;  %v14068_v8 = vcombine.high %v624_v3, %v636_v38  ;;  %v14067_v17 = vcombine.low %v624_v3, %v636_v38 }
 0x49f   :  { %10803 = vmatmul.mubr.bf16.vlgmr.msra.gmra.mrb[16].mxu0 %v16144_v12  ;;  %10967 = vmatmul.mubr.bf16.vlgmr.msra.gmra.mrb[16].mxu1 %v16144_v12  ;;  %v14070_v9 = vcombine.high %v625_v4, %v637_v5  ;;  %v14069_v18 = vcombine.low %v625_v4, %v637_v5 }
 0x4a0   :  { %10812 = vmatpush1.bf16.msra.mxu0 %v13923_v10  ;;  %10976 = vmatpush1.bf16.msra.mxu1 %v13925_v11  ;;  %v648_v10 = vld [vmem:[#allocation5 + $0x1180] sm:$0xff] }
 0x4a1   :  { %10813 = vmatprep.subr.bf16.mxu0 %v13948_v13  ;;  %10977 = vmatprep.subr.bf16.mxu1 %v13950_v16  ;;  %v660_v11 = vld [vmem:[#allocation5 + $0x11e0] sm:$0xff]  ;;  %v649_v13 = vld [vmem:[#allocation5 + $0x1188] sm:$0xff] }
 0x4a2   :  { %10843 = vmatprep.mubr.bf16.mxu0 %v16150_v53  ;;  %11007 = vmatprep.mubr.bf16.mxu1 %v16150_v53  ;;  %v661_v16 = vld [vmem:[#allocation5 + $0x11e8] sm:$0xff]  ;;  %v14092_v21 = vcombine.high %v648_v10, %v660_v11  ;;  %v14091_v31 = vcombine.low %v648_v10, %v660_v11 }
 0x4a3   :  { %v14094_v22 = vcombine.high %v649_v13, %v661_v16  ;;  %v14093_v32 = vcombine.low %v649_v13, %v661_v16 }
 0x4a4   :  { %10814 = vmatpush1.bf16.msra.mxu0 %v13947_v26  ;;  %10978 = vmatpush1.bf16.msra.mxu1 %v13949_v27  ;;  %v672_v26 = vld [vmem:[#allocation5 + $0x1240] sm:$0xff] }
 0x4a5   :  { %10815 = vmatprep.subr.bf16.mxu0 %v13972_v28  ;;  %10979 = vmatprep.subr.bf16.mxu1 %v13974_v30  ;;  %v684_v27 = vld [vmem:[#allocation5 + $0x12a0] sm:$0xff]  ;;  %v673_v28 = vld [vmem:[#allocation5 + $0x1248] sm:$0xff] }
 0x4a6   :  { %v685_v30 = vld [vmem:[#allocation5 + $0x12a8] sm:$0xff]  ;;  %v14116_v36 = vcombine.high %v672_v26, %v684_v27  ;;  %v14115_v24 = vcombine.low %v672_v26, %v684_v27 }
 0x4a7   :  { %v14118_v41 = vcombine.high %v673_v28, %v685_v30  ;;  %v14117_v49 = vcombine.low %v673_v28, %v685_v30 }
 0x4a8   :  { %10816 = vmatpush1.bf16.msra.mxu0 %v13971_v44  ;;  %10980 = vmatpush1.bf16.msra.mxu1 %v13973_v45  ;;  %v696_v44 = vld [vmem:[#allocation5 + $0x1300] sm:$0xff] }
 0x4a9   :  { %10817 = vmatprep.subr.bf16.mxu0 %v13996_v46  ;;  %10981 = vmatprep.subr.bf16.mxu1 %v13998_v47  ;;  %v708_v45 = vld [vmem:[#allocation5 + $0x1360] sm:$0xff]  ;;  %v697_v46 = vld [vmem:[#allocation5 + $0x1308] sm:$0xff] }
 0x4aa   :  { %v709_v47 = vld [vmem:[#allocation5 + $0x1368] sm:$0xff]  ;;  %v14140_v50 = vcombine.high %v696_v44, %v708_v45  ;;  %v14139_v59 = vcombine.low %v696_v44, %v708_v45 }
 0x4ab   :  { %v14142_v51 = vcombine.high %v697_v46, %v709_v47  ;;  %v14141_v60 = vcombine.low %v697_v46, %v709_v47 }
 0x4ac   :  { %10818 = vmatpush1.bf16.msra.mxu0 %v13995_v52  ;;  %10982 = vmatpush1.bf16.msra.mxu1 %v13997_v54  ;;  %v720_v52 = vld [vmem:[#allocation5 + $0x13c0] sm:$0xff] }
 0x4ad   :  { %10819 = vmatprep.subr.bf16.mxu0 %v14020_v55  ;;  %10983 = vmatprep.subr.bf16.mxu1 %v14022_v56  ;;  %v732_v54 = vld [vmem:[#allocation5 + $0x1420] sm:$0xff]  ;;  %v721_v55 = vld [vmem:[#allocation5 + $0x13c8] sm:$0xff] }
 0x4ae   :  { %v733_v56 = vld [vmem:[#allocation5 + $0x1428] sm:$0xff]  ;;  %v14164_v61 = vcombine.high %v720_v52, %v732_v54  ;;  %v14163_v3 = vcombine.low %v720_v52, %v732_v54 }
 0x4af   :  { %v14166_v62 = vcombine.high %v721_v55, %v733_v56  ;;  %v14165_v38 = vcombine.low %v721_v55, %v733_v56 }
 0x4b0   :  { %10820 = vmatpush1.bf16.msra.mxu0 %v14019_v63  ;;  %10984 = vmatpush1.bf16.msra.mxu1 %v14021_v0  ;;  %v744_v63 = vld [vmem:[#allocation5 + $0x1480] sm:$0xff] }
 0x4b1   :  { %10821 = vmatprep.subr.bf16.mxu0 %v14044_v1  ;;  %10985 = vmatprep.subr.bf16.mxu1 %v14046_v2  ;;  %v756_v0 = vld [vmem:[#allocation5 + $0x14e0] sm:$0xff]  ;;  %v745_v1 = vld [vmem:[#allocation5 + $0x1488] sm:$0xff] }
 0x4b2   :  { %v757_v2 = vld [vmem:[#allocation5 + $0x14e8] sm:$0xff]  ;;  %v14188_v4 = vcombine.high %v744_v63, %v756_v0  ;;  %v14187_v10 = vcombine.low %v744_v63, %v756_v0 }
 0x4b3   :  { %v14190_v5 = vcombine.high %v745_v1, %v757_v2  ;;  %v14189_v11 = vcombine.low %v745_v1, %v757_v2 }
 0x4b4   :  { %10822 = vmatpush1.bf16.msra.mxu0 %v14043_v6  ;;  %10986 = vmatpush1.bf16.msra.mxu1 %v14045_v7  ;;  %v768_v6 = vld [vmem:[#allocation5 + $0x1540] sm:$0xff] }
 0x4b5   :  { %10823 = vmatprep.subr.bf16.mxu0 %v14068_v8  ;;  %10987 = vmatprep.subr.bf16.mxu1 %v14070_v9  ;;  %v780_v7 = vld [vmem:[#allocation5 + $0x15a0] sm:$0xff]  ;;  %v769_v8 = vld [vmem:[#allocation5 + $0x1548] sm:$0xff] }
 0x4b6   :  { %v781_v9 = vld [vmem:[#allocation5 + $0x15a8] sm:$0xff]  ;;  %v14212_v13 = vcombine.high %v768_v6, %v780_v7  ;;  %v14211_v26 = vcombine.low %v768_v6, %v780_v7 }
 0x4b7   :  { %v14214_v16 = vcombine.high %v769_v8, %v781_v9  ;;  %v14213_v27 = vcombine.low %v769_v8, %v781_v9 }
 0x4b8   :  { %10824 = vmatpush1.bf16.msra.mxu0 %v14067_v17  ;;  %10988 = vmatpush1.bf16.msra.mxu1 %v14069_v18  ;;  %v792_v17 = vld [vmem:[#allocation5 + $0x1600] sm:$0xff] }
 0x4b9   :  { %10825 = vmatprep.subr.bf16.mxu0 %v14092_v21  ;;  %10989 = vmatprep.subr.bf16.mxu1 %v14094_v22  ;;  %v804_v18 = vld [vmem:[#allocation5 + $0x1660] sm:$0xff]  ;;  %v793_v21 = vld [vmem:[#allocation5 + $0x1608] sm:$0xff] }
 0x4ba   :  { %v805_v22 = vld [vmem:[#allocation5 + $0x1668] sm:$0xff]  ;;  %v14236_v28 = vcombine.high %v792_v17, %v804_v18  ;;  %v14235_v44 = vcombine.low %v792_v17, %v804_v18 }
 0x4bb   :  { %v14238_v30 = vcombine.high %v793_v21, %v805_v22  ;;  %v14237_v45 = vcombine.low %v793_v21, %v805_v22 }
 0x4bc   :  { %10826 = vmatpush1.bf16.msra.mxu0 %v14091_v31  ;;  %10990 = vmatpush1.bf16.msra.mxu1 %v14093_v32  ;;  %v816_v31 = vld [vmem:[#allocation5 + $0x16c0] sm:$0xff] }
 0x4bd   :  { %10827 = vmatprep.subr.bf16.mxu0 %v14116_v36  ;;  %10991 = vmatprep.subr.bf16.mxu1 %v14118_v41  ;;  %v828_v32 = vld [vmem:[#allocation5 + $0x1720] sm:$0xff]  ;;  %v817_v36 = vld [vmem:[#allocation5 + $0x16c8] sm:$0xff] }
 0x4be   :  { %v829_v41 = vld [vmem:[#allocation5 + $0x1728] sm:$0xff]  ;;  %v14260_v46 = vcombine.high %v816_v31, %v828_v32  ;;  %v14259_v52 = vcombine.low %v816_v31, %v828_v32 }
 0x4bf   :  { %v14262_v47 = vcombine.high %v817_v36, %v829_v41  ;;  %v14261_v54 = vcombine.low %v817_v36, %v829_v41 }
 0x4c0   :  { %10828 = vmatpush1.bf16.msra.mxu0 %v14115_v24  ;;  %10992 = vmatpush1.bf16.msra.mxu1 %v14117_v49  ;;  %v840_v24 = vld [vmem:[#allocation5 + $0x1780] sm:$0xff] }
 0x4c1   :  { %10829 = vmatprep.subr.bf16.mxu0 %v14140_v50  ;;  %10993 = vmatprep.subr.bf16.mxu1 %v14142_v51  ;;  %v852_v49 = vld [vmem:[#allocation5 + $0x17e0] sm:$0xff]  ;;  %v841_v50 = vld [vmem:[#allocation5 + $0x1788] sm:$0xff] }
 0x4c2   :  { %v853_v51 = vld [vmem:[#allocation5 + $0x17e8] sm:$0xff]  ;;  %v14284_v55 = vcombine.high %v840_v24, %v852_v49  ;;  %v14283_v63 = vcombine.low %v840_v24, %v852_v49 }
 0x4c3   :  { %v14286_v56 = vcombine.high %v841_v50, %v853_v51  ;;  %v14285_v0 = vcombine.low %v841_v50, %v853_v51 }
 0x4c4   :  { %10830 = vmatpush1.bf16.msra.mxu0 %v14139_v59  ;;  %10994 = vmatpush1.bf16.msra.mxu1 %v14141_v60  ;;  %v864_v59 = vld [vmem:[#allocation5 + $0x1840] sm:$0xff] }
 0x4c5   :  { %10831 = vmatprep.subr.bf16.mxu0 %v14164_v61  ;;  %10995 = vmatprep.subr.bf16.mxu1 %v14166_v62  ;;  %v876_v60 = vld [vmem:[#allocation5 + $0x18a0] sm:$0xff]  ;;  %v865_v61 = vld [vmem:[#allocation5 + $0x1848] sm:$0xff] }
 0x4c6   :  { %v877_v62 = vld [vmem:[#allocation5 + $0x18a8] sm:$0xff]  ;;  %v14308_v1 = vcombine.high %v864_v59, %v876_v60  ;;  %v14307_v6 = vcombine.low %v864_v59, %v876_v60 }
 0x4c7   :  { %v14310_v2 = vcombine.high %v865_v61, %v877_v62  ;;  %v14309_v7 = vcombine.low %v865_v61, %v877_v62 }
 0x4c8   :  { %10832 = vmatpush1.bf16.msra.mxu0 %v14163_v3  ;;  %10996 = vmatpush1.bf16.msra.mxu1 %v14165_v38  ;;  %v888_v3 = vld [vmem:[#allocation5 + $0x1900] sm:$0xff] }
 0x4c9   :  { %10833 = vmatprep.subr.bf16.mxu0 %v14188_v4  ;;  %10997 = vmatprep.subr.bf16.mxu1 %v14190_v5  ;;  %v900_v38 = vld [vmem:[#allocation5 + $0x1960] sm:$0xff]  ;;  %v889_v4 = vld [vmem:[#allocation5 + $0x1908] sm:$0xff] }
 0x4ca   :  { %v901_v5 = vld [vmem:[#allocation5 + $0x1968] sm:$0xff]  ;;  %v14332_v8 = vcombine.high %v888_v3, %v900_v38  ;;  %v14331_v17 = vcombine.low %v888_v3, %v900_v38 }
 0x4cb   :  { %v14334_v9 = vcombine.high %v889_v4, %v901_v5  ;;  %v14333_v18 = vcombine.low %v889_v4, %v901_v5 }
 0x4cc   :  { %10834 = vmatpush1.bf16.msra.mxu0 %v14187_v10  ;;  %10998 = vmatpush1.bf16.msra.mxu1 %v14189_v11  ;;  %v912_v10 = vld [vmem:[#allocation5 + $0x19c0] sm:$0xff] }
 0x4cd   :  { %10835 = vmatprep.subr.bf16.mxu0 %v14212_v13  ;;  %10999 = vmatprep.subr.bf16.mxu1 %v14214_v16  ;;  %v924_v11 = vld [vmem:[#allocation5 + $0x1a20] sm:$0xff]  ;;  %v913_v13 = vld [vmem:[#allocation5 + $0x19c8] sm:$0xff] }
 0x4ce   :  { %v925_v16 = vld [vmem:[#allocation5 + $0x1a28] sm:$0xff]  ;;  %v14356_v21 = vcombine.high %v912_v10, %v924_v11  ;;  %v14355_v31 = vcombine.low %v912_v10, %v924_v11 }
 0x4cf   :  { %v14358_v22 = vcombine.high %v913_v13, %v925_v16  ;;  %v14357_v32 = vcombine.low %v913_v13, %v925_v16 }
 0x4d0   :  { %10836 = vmatpush1.bf16.msra.mxu0 %v14211_v26  ;;  %11000 = vmatpush1.bf16.msra.mxu1 %v14213_v27  ;;  %v936_v26 = vld [vmem:[#allocation5 + $0x1a80] sm:$0xff] }
 0x4d1   :  { %10837 = vmatprep.subr.bf16.mxu0 %v14236_v28  ;;  %11001 = vmatprep.subr.bf16.mxu1 %v14238_v30  ;;  %v948_v27 = vld [vmem:[#allocation5 + $0x1ae0] sm:$0xff]  ;;  %v937_v28 = vld [vmem:[#allocation5 + $0x1a88] sm:$0xff] }
 0x4d2   :  { %v949_v30 = vld [vmem:[#allocation5 + $0x1ae8] sm:$0xff]  ;;  %v14380_v36 = vcombine.high %v936_v26, %v948_v27  ;;  %v14379_v24 = vcombine.low %v936_v26, %v948_v27 }
 0x4d3   :  { %v14382_v41 = vcombine.high %v937_v28, %v949_v30  ;;  %v14381_v49 = vcombine.low %v937_v28, %v949_v30 }
 0x4d4   :  { %10838 = vmatpush1.bf16.msra.mxu0 %v14235_v44  ;;  %11002 = vmatpush1.bf16.msra.mxu1 %v14237_v45  ;;  %v960_v44 = vld [vmem:[#allocation5 + $0x1b40] sm:$0xff] }
 0x4d5   :  { %10839 = vmatprep.subr.bf16.mxu0 %v14260_v46  ;;  %11003 = vmatprep.subr.bf16.mxu1 %v14262_v47  ;;  %v972_v45 = vld [vmem:[#allocation5 + $0x1ba0] sm:$0xff]  ;;  %v961_v46 = vld [vmem:[#allocation5 + $0x1b48] sm:$0xff] }
 0x4d6   :  { %v973_v47 = vld [vmem:[#allocation5 + $0x1ba8] sm:$0xff]  ;;  %v14404_v50 = vcombine.high %v960_v44, %v972_v45  ;;  %v14403_v59 = vcombine.low %v960_v44, %v972_v45 }
 0x4d7   :  { %v14406_v51 = vcombine.high %v961_v46, %v973_v47  ;;  %v14405_v60 = vcombine.low %v961_v46, %v973_v47 }
 0x4d8   :  { %10840 = vmatpush1.bf16.msra.mxu0 %v14259_v52  ;;  %11004 = vmatpush1.bf16.msra.mxu1 %v14261_v54  ;;  %v984_v52 = vld [vmem:[#allocation5 + $0x1c00] sm:$0xff] }
 0x4d9   :  { %10841 = vmatprep.subr.bf16.mxu0 %v14284_v55  ;;  %11005 = vmatprep.subr.bf16.mxu1 %v14286_v56  ;;  %v996_v54 = vld [vmem:[#allocation5 + $0x1c60] sm:$0xff]  ;;  %v985_v55 = vld [vmem:[#allocation5 + $0x1c08] sm:$0xff] }
 0x4da   :  { %v997_v56 = vld [vmem:[#allocation5 + $0x1c68] sm:$0xff]  ;;  %v14428_v61 = vcombine.high %v984_v52, %v996_v54  ;;  %v14427_v3 = vcombine.low %v984_v52, %v996_v54 }
 0x4db   :  { %v14430_v62 = vcombine.high %v985_v55, %v997_v56  ;;  %v14429_v38 = vcombine.low %v985_v55, %v997_v56 }
 0x4dc   :  { %10842 = vmatpush1.bf16.msra.mxu0 %v14283_v63  ;;  %11006 = vmatpush1.bf16.msra.mxu1 %v14285_v0  ;;  %v1008_v63 = vld [vmem:[#allocation5 + $0x1cc0] sm:$0xff] }
 0x4dd   :  { %10852 = vmatprep.subr.bf16.mxu0 %v14308_v1  ;;  %11016 = vmatprep.subr.bf16.mxu1 %v14310_v2  ;;  %v1020_v0 = vld [vmem:[#allocation5 + $0x1d20] sm:$0xff]  ;;  %v1009_v1 = vld [vmem:[#allocation5 + $0x1cc8] sm:$0xff] }
 0x4de   :  { %v1021_v2 = vld [vmem:[#allocation5 + $0x1d28] sm:$0xff]  ;;  %v14452_v4 = vcombine.high %v1008_v63, %v1020_v0  ;;  %v14451_v10 = vcombine.low %v1008_v63, %v1020_v0 }
 0x4df   :  { %10844 = vmatmul.mubr.bf16.vlgmr.msra.gmra.mrb[16].mxu0 %v16160_v25  ;;  %11008 = vmatmul.mubr.bf16.vlgmr.msra.gmra.mrb[16].mxu1 %v16160_v25  ;;  %v14454_v5 = vcombine.high %v1009_v1, %v1021_v2  ;;  %v14453_v11 = vcombine.low %v1009_v1, %v1021_v2 }
 0x4e0   :  { %10853 = vmatpush1.bf16.msra.mxu0 %v14307_v6  ;;  %11017 = vmatpush1.bf16.msra.mxu1 %v14309_v7  ;;  %v1032_v6 = vld [vmem:[#allocation5 + $0x1d80] sm:$0xff] }
 0x4e1   :  { %10854 = vmatprep.subr.bf16.mxu0 %v14332_v8  ;;  %11018 = vmatprep.subr.bf16.mxu1 %v14334_v9  ;;  %v1044_v7 = vld [vmem:[#allocation5 + $0x1de0] sm:$0xff]  ;;  %v1033_v8 = vld [vmem:[#allocation5 + $0x1d88] sm:$0xff] }
 0x4e2   :  { %10884 = vmatprep.mubr.bf16.mxu0 %v16164_v34  ;;  %11048 = vmatprep.mubr.bf16.mxu1 %v16164_v34  ;;  %v1045_v9 = vld [vmem:[#allocation5 + $0x1de8] sm:$0xff]  ;;  %v14476_v13 = vcombine.high %v1032_v6, %v1044_v7  ;;  %v14475_v26 = vcombine.low %v1032_v6, %v1044_v7 }
 0x4e3   :  { %v14478_v16 = vcombine.high %v1033_v8, %v1045_v9  ;;  %v14477_v27 = vcombine.low %v1033_v8, %v1045_v9 }
 0x4e4   :  { %10855 = vmatpush1.bf16.msra.mxu0 %v14331_v17  ;;  %11019 = vmatpush1.bf16.msra.mxu1 %v14333_v18  ;;  %v1056_v17 = vld [vmem:[#allocation5 + $0x1e40] sm:$0xff] }
 0x4e5   :  { %10856 = vmatprep.subr.bf16.mxu0 %v14356_v21  ;;  %11020 = vmatprep.subr.bf16.mxu1 %v14358_v22  ;;  %v1068_v18 = vld [vmem:[#allocation5 + $0x1ea0] sm:$0xff]  ;;  %v1057_v21 = vld [vmem:[#allocation5 + $0x1e48] sm:$0xff] }
 0x4e6   :  { %v1069_v22 = vld [vmem:[#allocation5 + $0x1ea8] sm:$0xff]  ;;  %v14500_v28 = vcombine.high %v1056_v17, %v1068_v18  ;;  %v14499_v44 = vcombine.low %v1056_v17, %v1068_v18 }
 0x4e7   :  { %v14502_v30 = vcombine.high %v1057_v21, %v1069_v22  ;;  %v14501_v45 = vcombine.low %v1057_v21, %v1069_v22 }
 0x4e8   :  { %10857 = vmatpush1.bf16.msra.mxu0 %v14355_v31  ;;  %11021 = vmatpush1.bf16.msra.mxu1 %v14357_v32  ;;  %v1080_v31 = vld [vmem:[#allocation5 + $0x1f00] sm:$0xff] }
 0x4e9   :  { %10858 = vmatprep.subr.bf16.mxu0 %v14380_v36  ;;  %11022 = vmatprep.subr.bf16.mxu1 %v14382_v41  ;;  %v1092_v32 = vld [vmem:[#allocation5 + $0x1f60] sm:$0xff]  ;;  %v1081_v36 = vld [vmem:[#allocation5 + $0x1f08] sm:$0xff] }
 0x4ea   :  { %v1093_v41 = vld [vmem:[#allocation5 + $0x1f68] sm:$0xff]  ;;  %v14524_v46 = vcombine.high %v1080_v31, %v1092_v32  ;;  %v14523_v52 = vcombine.low %v1080_v31, %v1092_v32 }
 0x4eb   :  { %v14526_v47 = vcombine.high %v1081_v36, %v1093_v41  ;;  %v14525_v54 = vcombine.low %v1081_v36, %v1093_v41 }
 0x4ec   :  { %10859 = vmatpush1.bf16.msra.mxu0 %v14379_v24  ;;  %11023 = vmatpush1.bf16.msra.mxu1 %v14381_v49  ;;  %v1104_v24 = vld [vmem:[#allocation5 + $0x1fc0] sm:$0xff] }
 0x4ed   :  { %10860 = vmatprep.subr.bf16.mxu0 %v14404_v50  ;;  %11024 = vmatprep.subr.bf16.mxu1 %v14406_v51  ;;  %v1116_v49 = vld [vmem:[#allocation5 + $0x2020] sm:$0xff]  ;;  %v1105_v50 = vld [vmem:[#allocation5 + $0x1fc8] sm:$0xff] }
 0x4ee   :  { %v1117_v51 = vld [vmem:[#allocation5 + $0x2028] sm:$0xff]  ;;  %v14548_v55 = vcombine.high %v1104_v24, %v1116_v49  ;;  %v14547_v63 = vcombine.low %v1104_v24, %v1116_v49 }
 0x4ef   :  { %v14550_v56 = vcombine.high %v1105_v50, %v1117_v51  ;;  %v14549_v0 = vcombine.low %v1105_v50, %v1117_v51 }
 0x4f0   :  { %10861 = vmatpush1.bf16.msra.mxu0 %v14403_v59  ;;  %11025 = vmatpush1.bf16.msra.mxu1 %v14405_v60  ;;  %v1128_v59 = vld [vmem:[#allocation5 + $0x2080] sm:$0xff] }
 0x4f1   :  { %10862 = vmatprep.subr.bf16.mxu0 %v14428_v61  ;;  %11026 = vmatprep.subr.bf16.mxu1 %v14430_v62  ;;  %v1140_v60 = vld [vmem:[#allocation5 + $0x20e0] sm:$0xff]  ;;  %v1129_v61 = vld [vmem:[#allocation5 + $0x2088] sm:$0xff] }
 0x4f2   :  { %v1141_v62 = vld [vmem:[#allocation5 + $0x20e8] sm:$0xff]  ;;  %v14572_v1 = vcombine.high %v1128_v59, %v1140_v60  ;;  %v14571_v6 = vcombine.low %v1128_v59, %v1140_v60 }
 0x4f3   :  { %v14574_v2 = vcombine.high %v1129_v61, %v1141_v62  ;;  %v14573_v7 = vcombine.low %v1129_v61, %v1141_v62 }
 0x4f4   :  { %10863 = vmatpush1.bf16.msra.mxu0 %v14427_v3  ;;  %11027 = vmatpush1.bf16.msra.mxu1 %v14429_v38  ;;  %v1152_v3 = vld [vmem:[#allocation5 + $0x2140] sm:$0xff] }
 0x4f5   :  { %10864 = vmatprep.subr.bf16.mxu0 %v14452_v4  ;;  %11028 = vmatprep.subr.bf16.mxu1 %v14454_v5  ;;  %v1164_v38 = vld [vmem:[#allocation5 + $0x21a0] sm:$0xff]  ;;  %v1153_v4 = vld [vmem:[#allocation5 + $0x2148] sm:$0xff] }
 0x4f6   :  { %v1165_v5 = vld [vmem:[#allocation5 + $0x21a8] sm:$0xff]  ;;  %v14596_v8 = vcombine.high %v1152_v3, %v1164_v38  ;;  %v14595_v17 = vcombine.low %v1152_v3, %v1164_v38 }
 0x4f7   :  { %v14598_v9 = vcombine.high %v1153_v4, %v1165_v5  ;;  %v14597_v18 = vcombine.low %v1153_v4, %v1165_v5 }
 0x4f8   :  { %10865 = vmatpush1.bf16.msra.mxu0 %v14451_v10  ;;  %11029 = vmatpush1.bf16.msra.mxu1 %v14453_v11  ;;  %v1176_v10 = vld [vmem:[#allocation5 + $0x2200] sm:$0xff] }
 0x4f9   :  { %10866 = vmatprep.subr.bf16.mxu0 %v14476_v13  ;;  %11030 = vmatprep.subr.bf16.mxu1 %v14478_v16  ;;  %v1188_v11 = vld [vmem:[#allocation5 + $0x2260] sm:$0xff]  ;;  %v1177_v13 = vld [vmem:[#allocation5 + $0x2208] sm:$0xff] }
 0x4fa   :  { %v1189_v16 = vld [vmem:[#allocation5 + $0x2268] sm:$0xff]  ;;  %v14620_v21 = vcombine.high %v1176_v10, %v1188_v11  ;;  %v14619_v31 = vcombine.low %v1176_v10, %v1188_v11 }
 0x4fb   :  { %v14622_v22 = vcombine.high %v1177_v13, %v1189_v16  ;;  %v14621_v32 = vcombine.low %v1177_v13, %v1189_v16 }
 0x4fc   :  { %10867 = vmatpush1.bf16.msra.mxu0 %v14475_v26  ;;  %11031 = vmatpush1.bf16.msra.mxu1 %v14477_v27  ;;  %v1200_v26 = vld [vmem:[#allocation5 + $0x22c0] sm:$0xff] }
 0x4fd   :  { %10868 = vmatprep.subr.bf16.mxu0 %v14500_v28  ;;  %11032 = vmatprep.subr.bf16.mxu1 %v14502_v30  ;;  %v1212_v27 = vld [vmem:[#allocation5 + $0x2320] sm:$0xff]  ;;  %v1201_v28 = vld [vmem:[#allocation5 + $0x22c8] sm:$0xff] }
 0x4fe   :  { %v1213_v30 = vld [vmem:[#allocation5 + $0x2328] sm:$0xff]  ;;  %v14644_v36 = vcombine.high %v1200_v26, %v1212_v27  ;;  %v14643_v24 = vcombine.low %v1200_v26, %v1212_v27 }
 0x4ff   :  { %v14646_v41 = vcombine.high %v1201_v28, %v1213_v30  ;;  %v14645_v49 = vcombine.low %v1201_v28, %v1213_v30 }
 0x500   :  { %10869 = vmatpush1.bf16.msra.mxu0 %v14499_v44  ;;  %11033 = vmatpush1.bf16.msra.mxu1 %v14501_v45  ;;  %v1224_v44 = vld [vmem:[#allocation5 + $0x2380] sm:$0xff] }
 0x501   :  { %10870 = vmatprep.subr.bf16.mxu0 %v14524_v46  ;;  %11034 = vmatprep.subr.bf16.mxu1 %v14526_v47  ;;  %v1236_v45 = vld [vmem:[#allocation5 + $0x23e0] sm:$0xff]  ;;  %v1225_v46 = vld [vmem:[#allocation5 + $0x2388] sm:$0xff] }
 0x502   :  { %v1237_v47 = vld [vmem:[#allocation5 + $0x23e8] sm:$0xff]  ;;  %v14668_v50 = vcombine.high %v1224_v44, %v1236_v45  ;;  %v14667_v59 = vcombine.low %v1224_v44, %v1236_v45 }
 0x503   :  { %v14670_v51 = vcombine.high %v1225_v46, %v1237_v47  ;;  %v14669_v60 = vcombine.low %v1225_v46, %v1237_v47 }
 0x504   :  { %10871 = vmatpush1.bf16.msra.mxu0 %v14523_v52  ;;  %11035 = vmatpush1.bf16.msra.mxu1 %v14525_v54  ;;  %v1248_v52 = vld [vmem:[#allocation5 + $0x2440] sm:$0xff] }
 0x505   :  { %10872 = vmatprep.subr.bf16.mxu0 %v14548_v55  ;;  %11036 = vmatprep.subr.bf16.mxu1 %v14550_v56  ;;  %v1260_v54 = vld [vmem:[#allocation5 + $0x24a0] sm:$0xff]  ;;  %v1249_v55 = vld [vmem:[#allocation5 + $0x2448] sm:$0xff] }
 0x506   :  { %v1261_v56 = vld [vmem:[#allocation5 + $0x24a8] sm:$0xff]  ;;  %v14692_v61 = vcombine.high %v1248_v52, %v1260_v54  ;;  %v14691_v3 = vcombine.low %v1248_v52, %v1260_v54 }
 0x507   :  { %v14694_v62 = vcombine.high %v1249_v55, %v1261_v56  ;;  %v14693_v38 = vcombine.low %v1249_v55, %v1261_v56 }
 0x508   :  { %10873 = vmatpush1.bf16.msra.mxu0 %v14547_v63  ;;  %11037 = vmatpush1.bf16.msra.mxu1 %v14549_v0  ;;  %v1272_v63 = vld [vmem:[#allocation5 + $0x2500] sm:$0xff] }
 0x509   :  { %10874 = vmatprep.subr.bf16.mxu0 %v14572_v1  ;;  %11038 = vmatprep.subr.bf16.mxu1 %v14574_v2  ;;  %v1284_v0 = vld [vmem:[#allocation5 + $0x2560] sm:$0xff]  ;;  %v1273_v1 = vld [vmem:[#allocation5 + $0x2508] sm:$0xff] }
 0x50a   :  { %v1285_v2 = vld [vmem:[#allocation5 + $0x2568] sm:$0xff]  ;;  %v14716_v4 = vcombine.high %v1272_v63, %v1284_v0  ;;  %v14715_v10 = vcombine.low %v1272_v63, %v1284_v0 }
 0x50b   :  { %v14718_v5 = vcombine.high %v1273_v1, %v1285_v2  ;;  %v14717_v11 = vcombine.low %v1273_v1, %v1285_v2 }
 0x50c   :  { %10875 = vmatpush1.bf16.msra.mxu0 %v14571_v6  ;;  %11039 = vmatpush1.bf16.msra.mxu1 %v14573_v7  ;;  %v1296_v6 = vld [vmem:[#allocation5 + $0x25c0] sm:$0xff] }
 0x50d   :  { %10876 = vmatprep.subr.bf16.mxu0 %v14596_v8  ;;  %11040 = vmatprep.subr.bf16.mxu1 %v14598_v9  ;;  %v1308_v7 = vld [vmem:[#allocation5 + $0x2620] sm:$0xff]  ;;  %v1297_v8 = vld [vmem:[#allocation5 + $0x25c8] sm:$0xff] }
 0x50e   :  { %v1309_v9 = vld [vmem:[#allocation5 + $0x2628] sm:$0xff]  ;;  %v14740_v13 = vcombine.high %v1296_v6, %v1308_v7  ;;  %v14739_v26 = vcombine.low %v1296_v6, %v1308_v7 }
 0x50f   :  { %v14742_v16 = vcombine.high %v1297_v8, %v1309_v9  ;;  %v14741_v27 = vcombine.low %v1297_v8, %v1309_v9  ;;  %v1417_v7 = vld [vmem:[#allocation5 + $0x2988] sm:$0xff] }
 0x510   :  { %10877 = vmatpush1.bf16.msra.mxu0 %v14595_v17  ;;  %11041 = vmatpush1.bf16.msra.mxu1 %v14597_v18  ;;  %v1320_v17 = vld [vmem:[#allocation5 + $0x2680] sm:$0xff]  ;;  %v1429_v8 = vld [vmem:[#allocation5 + $0x29e8] sm:$0xff] }
 0x511   :  { %10878 = vmatprep.subr.bf16.mxu0 %v14620_v21  ;;  %11042 = vmatprep.subr.bf16.mxu1 %v14622_v22  ;;  %v1332_v18 = vld [vmem:[#allocation5 + $0x26e0] sm:$0xff]  ;;  %v1321_v21 = vld [vmem:[#allocation5 + $0x2688] sm:$0xff] }
 0x512   :  { %v1333_v22 = vld [vmem:[#allocation5 + $0x26e8] sm:$0xff]  ;;  %v14764_v28 = vcombine.high %v1320_v17, %v1332_v18  ;;  %v14763_v44 = vcombine.low %v1320_v17, %v1332_v18 }
 0x513   :  { %v14766_v30 = vcombine.high %v1321_v21, %v1333_v22  ;;  %v14765_v45 = vcombine.low %v1321_v21, %v1333_v22  ;;  %v14862_v22 = vcombine.high %v1417_v7, %v1429_v8 }
 0x514   :  { %10879 = vmatpush1.bf16.msra.mxu0 %v14619_v31  ;;  %11043 = vmatpush1.bf16.msra.mxu1 %v14621_v32  ;;  %v1344_v31 = vld [vmem:[#allocation5 + $0x2740] sm:$0xff] }
 0x515   :  { %10880 = vmatprep.subr.bf16.mxu0 %v14644_v36  ;;  %11044 = vmatprep.subr.bf16.mxu1 %v14646_v41  ;;  %v1356_v32 = vld [vmem:[#allocation5 + $0x27a0] sm:$0xff]  ;;  %v1345_v36 = vld [vmem:[#allocation5 + $0x2748] sm:$0xff] }
 0x516   :  { %v1357_v41 = vld [vmem:[#allocation5 + $0x27a8] sm:$0xff]  ;;  %v14788_v46 = vcombine.high %v1344_v31, %v1356_v32  ;;  %v14787_v52 = vcombine.low %v1344_v31, %v1356_v32  ;;  %v14861_v32 = vcombine.low %v1417_v7, %v1429_v8 }
 0x517   :  { %v14790_v47 = vcombine.high %v1345_v36, %v1357_v41  ;;  %v14789_v54 = vcombine.low %v1345_v36, %v1357_v41 }
 0x518   :  { %10881 = vmatpush1.bf16.msra.mxu0 %v14643_v24  ;;  %11045 = vmatpush1.bf16.msra.mxu1 %v14645_v49  ;;  %v1368_v24 = vld [vmem:[#allocation5 + $0x2800] sm:$0xff] }
 0x519   :  { %10882 = vmatprep.subr.bf16.mxu0 %v14668_v50  ;;  %11046 = vmatprep.subr.bf16.mxu1 %v14670_v51  ;;  %v1380_v49 = vld [vmem:[#allocation5 + $0x2860] sm:$0xff]  ;;  %v1369_v50 = vld [vmem:[#allocation5 + $0x2808] sm:$0xff] }
 0x51a   :  { %v1381_v51 = vld [vmem:[#allocation5 + $0x2868] sm:$0xff]  ;;  %v14812_v55 = vcombine.high %v1368_v24, %v1380_v49  ;;  %v14811_v63 = vcombine.low %v1368_v24, %v1380_v49 }
 0x51b   :  { %v14814_v56 = vcombine.high %v1369_v50, %v1381_v51  ;;  %v14813_v0 = vcombine.low %v1369_v50, %v1381_v51 }
 0x51c   :  { %10883 = vmatpush1.bf16.msra.mxu0 %v14667_v59  ;;  %11047 = vmatpush1.bf16.msra.mxu1 %v14669_v60  ;;  %v1392_v59 = vld [vmem:[#allocation5 + $0x28c0] sm:$0xff] }
 0x51d   :  { %10893 = vmatprep.subr.bf16.mxu0 %v14692_v61  ;;  %11057 = vmatprep.subr.bf16.mxu1 %v14694_v62  ;;  %v1404_v60 = vld [vmem:[#allocation5 + $0x2920] sm:$0xff]  ;;  %v1393_v61 = vld [vmem:[#allocation5 + $0x28c8] sm:$0xff] }
 0x51e   :  { %v1405_v62 = vld [vmem:[#allocation5 + $0x2928] sm:$0xff]  ;;  %v14836_v1 = vcombine.high %v1392_v59, %v1404_v60 }
 0x51f   :  { %10885 = vmatmul.mubr.bf16.vlgmr.msra.gmra.mrb[16].mxu0 %v16174_v39  ;;  %11049 = vmatmul.mubr.bf16.vlgmr.msra.gmra.mrb[16].mxu1 %v16174_v39  ;;  %v14837_v17 = vcombine.low %v1393_v61, %v1405_v62 }
 0x520   :  { %10894 = vmatpush1.bf16.msra.mxu0 %v14691_v3  ;;  %11058 = vmatpush1.bf16.msra.mxu1 %v14693_v38  ;;  %v14838_v3 = vcombine.high %v1393_v61, %v1405_v62  ;;  %v1416_v38 = vld [vmem:[#allocation5 + $0x2980] sm:$0xff] }
 0x521   :  { %10895 = vmatprep.subr.bf16.mxu0 %v14716_v4  ;;  %11059 = vmatprep.subr.bf16.mxu1 %v14718_v5  ;;  %v1428_v4 = vld [vmem:[#allocation5 + $0x29e0] sm:$0xff] }
 0x522   :  { %10925 = vmatprep.mubr.bf16.mxu0 %v16178_v48  ;;  %11089 = vmatprep.mubr.bf16.mxu1 %v16178_v48  ;;  %v14860_v18 = vcombine.high %v1416_v38, %v1428_v4  ;;  %v14859_v31 = vcombine.low %v1416_v38, %v1428_v4 }
 0x524   :  { %10896 = vmatpush1.bf16.msra.mxu0 %v14715_v10  ;;  %11060 = vmatpush1.bf16.msra.mxu1 %v14717_v11  ;;  %v14835_v11 = vcombine.low %v1392_v59, %v1404_v60 }
 0x525   :  { %10897 = vmatprep.subr.bf16.mxu0 %v14740_v13  ;;  %11061 = vmatprep.subr.bf16.mxu1 %v14742_v16 }
 0x528   :  { %10898 = vmatpush1.bf16.msra.mxu0 %v14739_v26  ;;  %11062 = vmatpush1.bf16.msra.mxu1 %v14741_v27  ;;  %v1440_v26 = vld [vmem:[#allocation5 + $0x2a40] sm:$0xff] }
 0x529   :  { %10899 = vmatprep.subr.bf16.mxu0 %v14764_v28  ;;  %11063 = vmatprep.subr.bf16.mxu1 %v14766_v30  ;;  %v1452_v27 = vld [vmem:[#allocation5 + $0x2aa0] sm:$0xff]  ;;  %v1441_v28 = vld [vmem:[#allocation5 + $0x2a48] sm:$0xff] }
 0x52a   :  { %v1453_v30 = vld [vmem:[#allocation5 + $0x2aa8] sm:$0xff]  ;;  %v14884_v36 = vcombine.high %v1440_v26, %v1452_v27  ;;  %v14883_v24 = vcombine.low %v1440_v26, %v1452_v27  ;;  %v1560_v26 = vld [vmem:[#allocation5 + $0x2e00] sm:$0xff] }
 0x52b   :  { %v14886_v41 = vcombine.high %v1441_v28, %v1453_v30  ;;  %v14885_v49 = vcombine.low %v1441_v28, %v1453_v30  ;;  %v1572_v27 = vld [vmem:[#allocation5 + $0x2e60] sm:$0xff]  ;;  %v1561_v28 = vld [vmem:[#allocation5 + $0x2e08] sm:$0xff] }
 0x52c   :  { %10900 = vmatpush1.bf16.msra.mxu0 %v14763_v44  ;;  %11064 = vmatpush1.bf16.msra.mxu1 %v14765_v45  ;;  %v1464_v44 = vld [vmem:[#allocation5 + $0x2b00] sm:$0xff]  ;;  %v1573_v30 = vld [vmem:[#allocation5 + $0x2e68] sm:$0xff] }
 0x52d   :  { %10901 = vmatprep.subr.bf16.mxu0 %v14788_v46  ;;  %11065 = vmatprep.subr.bf16.mxu1 %v14790_v47  ;;  %v1476_v45 = vld [vmem:[#allocation5 + $0x2b60] sm:$0xff]  ;;  %v1465_v46 = vld [vmem:[#allocation5 + $0x2b08] sm:$0xff] }
 0x52e   :  { %v1477_v47 = vld [vmem:[#allocation5 + $0x2b68] sm:$0xff]  ;;  %v14908_v50 = vcombine.high %v1464_v44, %v1476_v45  ;;  %v14907_v59 = vcombine.low %v1464_v44, %v1476_v45  ;;  %v1584_v44 = vld [vmem:[#allocation5 + $0x2ec0] sm:$0xff] }
 0x52f   :  { %v14910_v51 = vcombine.high %v1465_v46, %v1477_v47  ;;  %v14909_v60 = vcombine.low %v1465_v46, %v1477_v47  ;;  %v1596_v45 = vld [vmem:[#allocation5 + $0x2f20] sm:$0xff]  ;;  %v1585_v46 = vld [vmem:[#allocation5 + $0x2ec8] sm:$0xff] }
 0x530   :  { %10902 = vmatpush1.bf16.msra.mxu0 %v14787_v52  ;;  %11066 = vmatpush1.bf16.msra.mxu1 %v14789_v54  ;;  %v1488_v52 = vld [vmem:[#allocation5 + $0x2bc0] sm:$0xff]  ;;  %v1597_v47 = vld [vmem:[#allocation5 + $0x2f28] sm:$0xff] }
 0x531   :  { %10903 = vmatprep.subr.bf16.mxu0 %v14812_v55  ;;  %11067 = vmatprep.subr.bf16.mxu1 %v14814_v56  ;;  %v1500_v54 = vld [vmem:[#allocation5 + $0x2c20] sm:$0xff]  ;;  %v1489_v55 = vld [vmem:[#allocation5 + $0x2bc8] sm:$0xff] }
 0x532   :  { %v16276_v2 = vpop.f32.mrb[12].mxu0  ;;  %v16278_v5 = vpop.f32.mrb[12].mxu1  ;;  %v1501_v56 = vld [vmem:[#allocation5 + $0x2c28] sm:$0xff]  ;;  %v14932_v61 = vcombine.high %v1488_v52, %v1500_v54  ;;  %v14931_v38 = vcombine.low %v1488_v52, %v1500_v54  ;;  %v1608_v52 = vld [vmem:[#allocation5 + $0x2f80] sm:$0xff] }
 0x533   :  { %v16280_v6 = vpop.f32.mrb[13].mxu0  ;;  %v16282_v9 = vpop.f32.mrb[13].mxu1  ;;  %v14934_v62 = vcombine.high %v1489_v55, %v1501_v56  ;;  %v14933_v4 = vcombine.low %v1489_v55, %v1501_v56  ;;  %v1620_v54 = vld [vmem:[#allocation5 + $0x2fe0] sm:$0xff]  ;;  %v1609_v55 = vld [vmem:[#allocation5 + $0x2f88] sm:$0xff] }
 0x534   :  { %v10603_v10 = vpop.f32.mrb[14].mxu0  ;;  %10904 = vmatpush1.bf16.msra.mxu0 %v14811_v63  ;;  %v10767_v13 = vpop.f32.mrb[14].mxu1  ;;  %11068 = vmatpush1.bf16.msra.mxu1 %v14813_v0  ;;  %v1512_v63 = vld [vmem:[#allocation5 + $0x2c80] sm:$0xff]  ;;  %v1621_v56 = vld [vmem:[#allocation5 + $0x2fe8] sm:$0xff] }
 0x535   :  { %v10604_v16 = vpop.f32.mrb[15].mxu0  ;;  %10905 = vmatprep.subr.bf16.mxu0 %v14836_v1  ;;  %v10768_v21 = vpop.f32.mrb[15].mxu1  ;;  %11069 = vmatprep.subr.bf16.mxu1 %v14838_v3  ;;  %v1524_v0 = vld [vmem:[#allocation5 + $0x2ce0] sm:$0xff]  ;;  %v1513_v1 = vld [vmem:[#allocation5 + $0x2c88] sm:$0xff] }
 0x536   :  { %v1525_v3 = vld [vmem:[#allocation5 + $0x2ce8] sm:$0xff]  ;;  %v14956_v7 = vcombine.high %v1512_v63, %v1524_v0  ;;  %v1536_v10 = vld [vmem:[#allocation5 + $0x2d40] sm:$0xff] }
 0x537   :  { %v14958_v8 = vcombine.high %v1513_v1, %v1525_v3  ;;  %v1537_v13 = vld [vmem:[#allocation5 + $0x2d48] sm:$0xff] }
 0x538   :  { %10906 = vmatpush1.bf16.msra.mxu0 %v14835_v11  ;;  %11070 = vmatpush1.bf16.msra.mxu1 %v14837_v17  ;;  %v1548_v11 = vld [vmem:[#allocation5 + $0x2da0] sm:$0xff]  ;;  %v1549_v16 = vld [vmem:[#allocation5 + $0x2da8] sm:$0xff]  ;;  %v14955_v17 = vcombine.low %v1512_v63, %v1524_v0  ;;  %v98_v63 = vld [vmem:[#allocation5 + $0x50] sm:$0xff] }
 0x539   :  { %10907 = vmatprep.subr.bf16.mxu0 %v14860_v18  ;;  %11071 = vmatprep.subr.bf16.mxu1 %v14862_v22  ;;  %v14957_v18 = vcombine.low %v1513_v1, %v1525_v3  ;;  %v14980_v21 = vcombine.high %v1536_v10, %v1548_v11  ;;  %v14982_v22 = vcombine.high %v1537_v13, %v1549_v16  ;;  %v110_v0 = vld [vmem:[#allocation5 + $0xb0] sm:$0xff]  ;;  %v99_v1 = vld [vmem:[#allocation5 + $0x58] sm:$0xff] }
 0x53a   :  { %v111_v3 = vld [vmem:[#allocation5 + $0xb8] sm:$0xff] }
 0x53c   :  { %10908 = vmatpush1.bf16.msra.mxu0 %v14859_v31  ;;  %11072 = vmatpush1.bf16.msra.mxu1 %v14861_v32  ;;  %v14979_v31 = vcombine.low %v1536_v10, %v1548_v11  ;;  %v14981_v32 = vcombine.low %v1537_v13, %v1549_v16  ;;  %v122_v10 = vld [vmem:[#allocation5 + $0x110] sm:$0xff]  ;;  %v123_v13 = vld [vmem:[#allocation5 + $0x118] sm:$0xff] }
 0x53d   :  { %10909 = vmatprep.subr.bf16.mxu0 %v14884_v36  ;;  %11073 = vmatprep.subr.bf16.mxu1 %v14886_v41  ;;  %v15004_v36 = vcombine.high %v1560_v26, %v1572_v27  ;;  %v15006_v41 = vcombine.high %v1561_v28, %v1573_v30  ;;  %v134_v11 = vld [vmem:[#allocation5 + $0x170] sm:$0xff]  ;;  %v135_v16 = vld [vmem:[#allocation5 + $0x178] sm:$0xff] }
 0x540   :  { %10910 = vmatpush1.bf16.msra.mxu0 %v14883_v24  ;;  %11074 = vmatpush1.bf16.msra.mxu1 %v14885_v49  ;;  %v15003_v24 = vcombine.low %v1560_v26, %v1572_v27  ;;  %v15005_v49 = vcombine.low %v1561_v28, %v1573_v30  ;;  %v146_v26 = vld [vmem:[#allocation5 + $0x1d0] sm:$0xff]  ;;  %v147_v28 = vld [vmem:[#allocation5 + $0x1d8] sm:$0xff] }
 0x541   :  { %10911 = vmatprep.subr.bf16.mxu0 %v14908_v50  ;;  %11075 = vmatprep.subr.bf16.mxu1 %v14910_v51  ;;  %v15028_v50 = vcombine.high %v1584_v44, %v1596_v45  ;;  %v15030_v51 = vcombine.high %v1585_v46, %v1597_v47  ;;  %v158_v27 = vld [vmem:[#allocation5 + $0x230] sm:$0xff]  ;;  %v159_v30 = vld [vmem:[#allocation5 + $0x238] sm:$0xff] }
 0x544   :  { %10912 = vmatpush1.bf16.msra.mxu0 %v14907_v59  ;;  %11076 = vmatpush1.bf16.msra.mxu1 %v14909_v60  ;;  %v15027_v59 = vcombine.low %v1584_v44, %v1596_v45  ;;  %v15029_v60 = vcombine.low %v1585_v46, %v1597_v47  ;;  %v170_v44 = vld [vmem:[#allocation5 + $0x290] sm:$0xff]  ;;  %v171_v46 = vld [vmem:[#allocation5 + $0x298] sm:$0xff] }
 0x545   :  { %10913 = vmatprep.subr.bf16.mxu0 %v14932_v61  ;;  %11077 = vmatprep.subr.bf16.mxu1 %v14934_v62  ;;  %v15052_v61 = vcombine.high %v1608_v52, %v1620_v54  ;;  %v15054_v62 = vcombine.high %v1609_v55, %v1621_v56  ;;  %v182_v45 = vld [vmem:[#allocation5 + $0x2f0] sm:$0xff]  ;;  %v183_v47 = vld [vmem:[#allocation5 + $0x2f8] sm:$0xff] }
 0x548   :  { %10914 = vmatpush1.bf16.msra.mxu0 %v14931_v38  ;;  %11078 = vmatpush1.bf16.msra.mxu1 %v14933_v4  ;;  %v15051_v38 = vcombine.low %v1608_v52, %v1620_v54  ;;  %v15053_v4 = vcombine.low %v1609_v55, %v1621_v56  ;;  %v194_v52 = vld [vmem:[#allocation5 + $0x350] sm:$0xff]  ;;  %v195_v55 = vld [vmem:[#allocation5 + $0x358] sm:$0xff] }
 0x549   :  { %10915 = vmatprep.subr.bf16.mxu0 %v14956_v7  ;;  %11079 = vmatprep.subr.bf16.mxu1 %v14958_v8  ;;  %v13544_v7 = vcombine.high %v98_v63, %v110_v0  ;;  %v13546_v8 = vcombine.high %v99_v1, %v111_v3  ;;  %v206_v54 = vld [vmem:[#allocation5 + $0x3b0] sm:$0xff]  ;;  %v207_v56 = vld [vmem:[#allocation5 + $0x3b8] sm:$0xff] }
 0x54c   :  { %10916 = vmatpush1.bf16.msra.mxu0 %v14955_v17  ;;  %11080 = vmatpush1.bf16.msra.mxu1 %v14957_v18  ;;  %v13543_v17 = vcombine.low %v98_v63, %v110_v0  ;;  %v13545_v18 = vcombine.low %v99_v1, %v111_v3  ;;  %v230_v63 = vld [vmem:[#allocation5 + $0x470] sm:$0xff]  ;;  %v219_v0 = vld [vmem:[#allocation5 + $0x418] sm:$0xff]  ;;  %v13639_v3 = vcombine.low %v194_v52, %v206_v54 }
 0x54d   :  { %10917 = vmatprep.subr.bf16.mxu0 %v14980_v21  ;;  %11081 = vmatprep.subr.bf16.mxu1 %v14982_v22  ;;  %v13568_v21 = vcombine.high %v122_v10, %v134_v11  ;;  %v13570_v22 = vcombine.high %v123_v13, %v135_v16  ;;  %v231_v1 = vld [vmem:[#allocation5 + $0x478] sm:$0xff] }
 0x550   :  { %10918 = vmatpush1.bf16.msra.mxu0 %v14979_v31  ;;  %11082 = vmatpush1.bf16.msra.mxu1 %v14981_v32  ;;  %v13567_v31 = vcombine.low %v122_v10, %v134_v11  ;;  %v13569_v32 = vcombine.low %v123_v13, %v135_v16  ;;  %v254_v10 = vld [vmem:[#allocation5 + $0x530] sm:$0xff]  ;;  %v243_v11 = vld [vmem:[#allocation5 + $0x4d8] sm:$0xff] }
 0x551   :  { %10919 = vmatprep.subr.bf16.mxu0 %v15004_v36  ;;  %11083 = vmatprep.subr.bf16.mxu1 %v15006_v41  ;;  %v13592_v36 = vcombine.high %v146_v26, %v158_v27  ;;  %v13594_v41 = vcombine.high %v147_v28, %v159_v30  ;;  %v255_v13 = vld [vmem:[#allocation5 + $0x538] sm:$0xff] }
 0x554   :  { %10920 = vmatpush1.bf16.msra.mxu0 %v15003_v24  ;;  %11084 = vmatpush1.bf16.msra.mxu1 %v15005_v49  ;;  %v13591_v24 = vcombine.low %v146_v26, %v158_v27  ;;  %v13593_v49 = vcombine.low %v147_v28, %v159_v30  ;;  %v278_v26 = vld [vmem:[#allocation5 + $0x5f0] sm:$0xff]  ;;  %v267_v27 = vld [vmem:[#allocation5 + $0x598] sm:$0xff] }
 0x555   :  { %10921 = vmatprep.subr.bf16.mxu0 %v15028_v50  ;;  %11085 = vmatprep.subr.bf16.mxu1 %v15030_v51  ;;  %v13616_v50 = vcombine.high %v170_v44, %v182_v45  ;;  %v13618_v51 = vcombine.high %v171_v46, %v183_v47  ;;  %v279_v28 = vld [vmem:[#allocation5 + $0x5f8] sm:$0xff] }
 0x558   :  { %10922 = vmatpush1.bf16.msra.mxu0 %v15027_v59  ;;  %11086 = vmatpush1.bf16.msra.mxu1 %v15029_v60  ;;  %v13615_v59 = vcombine.low %v170_v44, %v182_v45  ;;  %v13617_v60 = vcombine.low %v171_v46, %v183_v47  ;;  %v302_v44 = vld [vmem:[#allocation5 + $0x6b0] sm:$0xff]  ;;  %v291_v45 = vld [vmem:[#allocation5 + $0x658] sm:$0xff] }
 0x559   :  { %10923 = vmatprep.subr.bf16.mxu0 %v15052_v61  ;;  %11087 = vmatprep.subr.bf16.mxu1 %v15054_v62  ;;  %v13640_v61 = vcombine.high %v194_v52, %v206_v54  ;;  %v218_v62 = vld [vmem:[#allocation5 + $0x410] sm:$0xff]  ;;  %v303_v46 = vld [vmem:[#allocation5 + $0x6b8] sm:$0xff] }
 0x55a   :  { %v13663_v16 = vcombine.low %v218_v62, %v230_v63  ;;  %v326_v52 = vld [vmem:[#allocation5 + $0x770] sm:$0xff]  ;;  %v315_v54 = vld [vmem:[#allocation5 + $0x718] sm:$0xff] }
 0x55c   :  { %10924 = vmatpush1.bf16.msra.mxu0 %v15051_v38  ;;  %11088 = vmatpush1.bf16.msra.mxu1 %v15053_v4  ;;  %v13641_v38 = vcombine.low %v195_v55, %v207_v56  ;;  %v13664_v4 = vcombine.high %v218_v62, %v230_v63  ;;  %v350_v62 = vld [vmem:[#allocation5 + $0x830] sm:$0xff]  ;;  %v339_v63 = vld [vmem:[#allocation5 + $0x7d8] sm:$0xff] }
 0x55d   :  { %11098 = vmatprep.subr.bf16.mxu0 %v13544_v7  ;;  %11262 = vmatprep.subr.bf16.mxu1 %v13546_v8  ;;  %v13666_v7 = vcombine.high %v219_v0, %v231_v1  ;;  %v242_v8 = vld [vmem:[#allocation5 + $0x4d0] sm:$0xff] }
 0x55e   :  { %v13687_v30 = vcombine.low %v242_v8, %v254_v10 }
 0x55f   :  { %10926 = vmatmul.mubr.bf16.vlgmr.msra.gmra.mrb[16].mxu0 %v16186_v58  ;;  %11090 = vmatmul.mubr.bf16.vlgmr.msra.gmra.mrb[16].mxu1 %v16186_v58 }
 0x560   :  { %11099 = vmatpush1.bf16.msra.mxu0 %v13543_v17  ;;  %11263 = vmatpush1.bf16.msra.mxu1 %v13545_v18  ;;  %v13665_v17 = vcombine.low %v219_v0, %v231_v1  ;;  %v13688_v18 = vcombine.high %v242_v8, %v254_v10  ;;  %v351_v0 = vld [vmem:[#allocation5 + $0x838] sm:$0xff]  ;;  %v374_v8 = vld [vmem:[#allocation5 + $0x8f0] sm:$0xff] }
 0x561   :  { %11100 = vmatprep.subr.bf16.mxu0 %v13568_v21  ;;  %11264 = vmatprep.subr.bf16.mxu1 %v13570_v22  ;;  %v13690_v21 = vcombine.high %v243_v11, %v255_v13  ;;  %v266_v22 = vld [vmem:[#allocation5 + $0x590] sm:$0xff]  ;;  %v363_v10 = vld [vmem:[#allocation5 + $0x898] sm:$0xff] }
 0x562   :  { %11130 = vmatprep.mubr.bf16.mxu0 %v16138_v57  ;;  %11294 = vmatprep.mubr.bf16.mxu1 %v16138_v57  ;;  %v13642_v57 = vcombine.high %v195_v55, %v207_v56  ;;  %v13711_v47 = vcombine.low %v266_v22, %v278_v26  ;;  %v327_v55 = vld [vmem:[#allocation5 + $0x778] sm:$0xff] }
 0x564   :  { %11101 = vmatpush1.bf16.msra.mxu0 %v13567_v31  ;;  %11265 = vmatpush1.bf16.msra.mxu1 %v13569_v32  ;;  %v13689_v31 = vcombine.low %v243_v11, %v255_v13  ;;  %v13712_v32 = vcombine.high %v266_v22, %v278_v26  ;;  %v375_v11 = vld [vmem:[#allocation5 + $0x8f8] sm:$0xff]  ;;  %v398_v22 = vld [vmem:[#allocation5 + $0x9b0] sm:$0xff] }
 0x565   :  { %11102 = vmatprep.subr.bf16.mxu0 %v13592_v36  ;;  %11266 = vmatprep.subr.bf16.mxu1 %v13594_v41  ;;  %v13714_v36 = vcombine.high %v267_v27, %v279_v28  ;;  %v290_v41 = vld [vmem:[#allocation5 + $0x650] sm:$0xff]  ;;  %v387_v26 = vld [vmem:[#allocation5 + $0x958] sm:$0xff] }
 0x566   :  { %v13735_v56 = vcombine.low %v290_v41, %v302_v44 }
 0x568   :  { %11103 = vmatpush1.bf16.msra.mxu0 %v13591_v24  ;;  %11267 = vmatpush1.bf16.msra.mxu1 %v13593_v49  ;;  %v13713_v24 = vcombine.low %v267_v27, %v279_v28  ;;  %v13736_v49 = vcombine.high %v290_v41, %v302_v44  ;;  %v399_v27 = vld [vmem:[#allocation5 + $0x9b8] sm:$0xff]  ;;  %v422_v41 = vld [vmem:[#allocation5 + $0xa70] sm:$0xff] }
 0x569   :  { %11104 = vmatprep.subr.bf16.mxu0 %v13616_v50  ;;  %11268 = vmatprep.subr.bf16.mxu1 %v13618_v51  ;;  %v13738_v50 = vcombine.high %v291_v45, %v303_v46  ;;  %v314_v51 = vld [vmem:[#allocation5 + $0x710] sm:$0xff]  ;;  %v411_v44 = vld [vmem:[#allocation5 + $0xa18] sm:$0xff] }
 0x56a   :  { %v13759_v1 = vcombine.low %v314_v51, %v326_v52 }
 0x56c   :  { %11105 = vmatpush1.bf16.msra.mxu0 %v13615_v59  ;;  %11269 = vmatpush1.bf16.msra.mxu1 %v13617_v60  ;;  %v13737_v59 = vcombine.low %v291_v45, %v303_v46  ;;  %v13760_v60 = vcombine.high %v314_v51, %v326_v52  ;;  %v423_v45 = vld [vmem:[#allocation5 + $0xa78] sm:$0xff]  ;;  %v446_v51 = vld [vmem:[#allocation5 + $0xb30] sm:$0xff] }
 0x56d   :  { %11106 = vmatprep.subr.bf16.mxu0 %v13640_v61  ;;  %11270 = vmatprep.subr.bf16.mxu1 %v13642_v57  ;;  %v13762_v61 = vcombine.high %v315_v54, %v327_v55  ;;  %v338_v57 = vld [vmem:[#allocation5 + $0x7d0] sm:$0xff]  ;;  %v435_v52 = vld [vmem:[#allocation5 + $0xad8] sm:$0xff] }
 0x56e   :  { %v13783_v13 = vcombine.low %v338_v57, %v350_v62 }
 0x570   :  { %11107 = vmatpush1.bf16.msra.mxu0 %v13639_v3  ;;  %11271 = vmatpush1.bf16.msra.mxu1 %v13641_v38  ;;  %v13761_v3 = vcombine.low %v315_v54, %v327_v55  ;;  %v13784_v38 = vcombine.high %v338_v57, %v350_v62  ;;  %v447_v54 = vld [vmem:[#allocation5 + $0xb38] sm:$0xff]  ;;  %v470_v57 = vld [vmem:[#allocation5 + $0xbf0] sm:$0xff] }
 0x571   :  { %11108 = vmatprep.subr.bf16.mxu0 %v13664_v4  ;;  %11272 = vmatprep.subr.bf16.mxu1 %v13666_v7  ;;  %v13786_v4 = vcombine.high %v339_v63, %v351_v0  ;;  %v362_v7 = vld [vmem:[#allocation5 + $0x890] sm:$0xff]  ;;  %v459_v62 = vld [vmem:[#allocation5 + $0xb98] sm:$0xff] }
 0x572   :  { %v13807_v28 = vcombine.low %v362_v7, %v374_v8 }
 0x574   :  { %11109 = vmatpush1.bf16.msra.mxu0 %v13663_v16  ;;  %11273 = vmatpush1.bf16.msra.mxu1 %v13665_v17  ;;  %v13785_v16 = vcombine.low %v339_v63, %v351_v0  ;;  %v13808_v17 = vcombine.high %v362_v7, %v374_v8  ;;  %v471_v63 = vld [vmem:[#allocation5 + $0xbf8] sm:$0xff]  ;;  %v494_v7 = vld [vmem:[#allocation5 + $0xcb0] sm:$0xff] }
 0x575   :  { %11110 = vmatprep.subr.bf16.mxu0 %v13688_v18  ;;  %11274 = vmatprep.subr.bf16.mxu1 %v13690_v21  ;;  %v13810_v18 = vcombine.high %v363_v10, %v375_v11  ;;  %v386_v21 = vld [vmem:[#allocation5 + $0x950] sm:$0xff]  ;;  %v483_v8 = vld [vmem:[#allocation5 + $0xc58] sm:$0xff] }
 0x576   :  { %v13831_v46 = vcombine.low %v386_v21, %v398_v22 }
 0x578   :  { %11111 = vmatpush1.bf16.msra.mxu0 %v13687_v30  ;;  %11275 = vmatpush1.bf16.msra.mxu1 %v13689_v31  ;;  %v13809_v30 = vcombine.low %v363_v10, %v375_v11  ;;  %v13832_v31 = vcombine.high %v386_v21, %v398_v22  ;;  %v495_v10 = vld [vmem:[#allocation5 + $0xcb8] sm:$0xff]  ;;  %v518_v21 = vld [vmem:[#allocation5 + $0xd70] sm:$0xff] }
 0x579   :  { %11112 = vmatprep.subr.bf16.mxu0 %v13712_v32  ;;  %11276 = vmatprep.subr.bf16.mxu1 %v13714_v36  ;;  %v13834_v32 = vcombine.high %v387_v26, %v399_v27  ;;  %v410_v36 = vld [vmem:[#allocation5 + $0xa10] sm:$0xff]  ;;  %v507_v22 = vld [vmem:[#allocation5 + $0xd18] sm:$0xff] }
 0x57a   :  { %v13855_v55 = vcombine.low %v410_v36, %v422_v41 }
 0x57c   :  { %11113 = vmatpush1.bf16.msra.mxu0 %v13711_v47  ;;  %11277 = vmatpush1.bf16.msra.mxu1 %v13713_v24  ;;  %v13833_v47 = vcombine.low %v387_v26, %v399_v27  ;;  %v13856_v24 = vcombine.high %v410_v36, %v422_v41  ;;  %v519_v26 = vld [vmem:[#allocation5 + $0xd78] sm:$0xff]  ;;  %v542_v36 = vld [vmem:[#allocation5 + $0xe30] sm:$0xff] }
 0x57d   :  { %11114 = vmatprep.subr.bf16.mxu0 %v13736_v49  ;;  %11278 = vmatprep.subr.bf16.mxu1 %v13738_v50  ;;  %v13858_v49 = vcombine.high %v411_v44, %v423_v45  ;;  %v434_v50 = vld [vmem:[#allocation5 + $0xad0] sm:$0xff]  ;;  %v531_v41 = vld [vmem:[#allocation5 + $0xdd8] sm:$0xff] }
 0x57e   :  { %v13879_v0 = vcombine.low %v434_v50, %v446_v51 }
 0x580   :  { %11115 = vmatpush1.bf16.msra.mxu0 %v13735_v56  ;;  %11279 = vmatpush1.bf16.msra.mxu1 %v13737_v59  ;;  %v13857_v56 = vcombine.low %v411_v44, %v423_v45  ;;  %v13880_v59 = vcombine.high %v434_v50, %v446_v51  ;;  %v543_v44 = vld [vmem:[#allocation5 + $0xe38] sm:$0xff]  ;;  %v566_v50 = vld [vmem:[#allocation5 + $0xef0] sm:$0xff] }
 0x581   :  { %11116 = vmatprep.subr.bf16.mxu0 %v13760_v60  ;;  %11280 = vmatprep.subr.bf16.mxu1 %v13762_v61  ;;  %v13882_v60 = vcombine.high %v435_v52, %v447_v54  ;;  %v458_v61 = vld [vmem:[#allocation5 + $0xb90] sm:$0xff]  ;;  %v555_v51 = vld [vmem:[#allocation5 + $0xe98] sm:$0xff] }
 0x582   :  { %v13903_v11 = vcombine.low %v458_v61, %v470_v57 }
 0x584   :  { %11117 = vmatpush1.bf16.msra.mxu0 %v13759_v1  ;;  %11281 = vmatpush1.bf16.msra.mxu1 %v13761_v3  ;;  %v13881_v1 = vcombine.low %v435_v52, %v447_v54  ;;  %v13904_v3 = vcombine.high %v458_v61, %v470_v57  ;;  %v567_v52 = vld [vmem:[#allocation5 + $0xef8] sm:$0xff] }
 0x585   :  { %11118 = vmatprep.subr.bf16.mxu0 %v13784_v38  ;;  %11282 = vmatprep.subr.bf16.mxu1 %v13786_v4  ;;  %v13906_v38 = vcombine.high %v459_v62, %v471_v63  ;;  %v482_v4 = vld [vmem:[#allocation5 + $0xc50] sm:$0xff]  ;;  %v579_v61 = vld [vmem:[#allocation5 + $0xf58] sm:$0xff] }
 0x586   :  { %v13927_v27 = vcombine.low %v482_v4, %v494_v7  ;;  %v591_v57 = vld [vmem:[#allocation5 + $0xfb8] sm:$0xff] }
 0x588   :  { %11119 = vmatpush1.bf16.msra.mxu0 %v13783_v13  ;;  %11283 = vmatpush1.bf16.msra.mxu1 %v13785_v16  ;;  %v13905_v13 = vcombine.low %v459_v62, %v471_v63  ;;  %v13928_v16 = vcombine.high %v482_v4, %v494_v7  ;;  %v14001_v63 = vcombine.low %v555_v51, %v567_v52  ;;  %v615_v4 = vld [vmem:[#allocation5 + $0x1078] sm:$0xff] }
 0x589   :  { %11120 = vmatprep.subr.bf16.mxu0 %v13808_v17  ;;  %11284 = vmatprep.subr.bf16.mxu1 %v13810_v18  ;;  %v13930_v17 = vcombine.high %v483_v8, %v495_v10  ;;  %v506_v18 = vld [vmem:[#allocation5 + $0xd10] sm:$0xff] }
 0x58a   :  { %v13951_v45 = vcombine.low %v506_v18, %v518_v21 }
 0x58c   :  { %11121 = vmatpush1.bf16.msra.mxu0 %v13807_v28  ;;  %11285 = vmatpush1.bf16.msra.mxu1 %v13809_v30  ;;  %v13929_v28 = vcombine.low %v483_v8, %v495_v10  ;;  %v13952_v30 = vcombine.high %v506_v18, %v518_v21  ;;  %v14025_v8 = vcombine.low %v579_v61, %v591_v57  ;;  %v639_v18 = vld [vmem:[#allocation5 + $0x1138] sm:$0xff] }
 0x58d   :  { %11122 = vmatprep.subr.bf16.mxu0 %v13832_v31  ;;  %11286 = vmatprep.subr.bf16.mxu1 %v13834_v32  ;;  %v13954_v31 = vcombine.high %v507_v22, %v519_v26  ;;  %v530_v32 = vld [vmem:[#allocation5 + $0xdd0] sm:$0xff] }
 0x58e   :  { %v13975_v54 = vcombine.low %v530_v32, %v542_v36 }
 0x590   :  { %11123 = vmatpush1.bf16.msra.mxu0 %v13831_v46  ;;  %11287 = vmatpush1.bf16.msra.mxu1 %v13833_v47  ;;  %v13953_v46 = vcombine.low %v507_v22, %v519_v26  ;;  %v13976_v47 = vcombine.high %v530_v32, %v542_v36  ;;  %v663_v32 = vld [vmem:[#allocation5 + $0x11f8] sm:$0xff] }
 0x591   :  { %11124 = vmatprep.subr.bf16.mxu0 %v13856_v24  ;;  %11288 = vmatprep.subr.bf16.mxu1 %v13858_v49  ;;  %v13978_v24 = vcombine.high %v531_v41, %v543_v44  ;;  %v554_v49 = vld [vmem:[#allocation5 + $0xe90] sm:$0xff] }
 0x592   :  { %v13999_v62 = vcombine.low %v554_v49, %v566_v50 }
 0x594   :  { %11125 = vmatpush1.bf16.msra.mxu0 %v13855_v55  ;;  %11289 = vmatpush1.bf16.msra.mxu1 %v13857_v56  ;;  %v14000_v55 = vcombine.high %v554_v49, %v566_v50  ;;  %v14002_v56 = vcombine.high %v555_v51, %v567_v52  ;;  %v687_v49 = vld [vmem:[#allocation5 + $0x12b8] sm:$0xff] }
 0x595   :  { %11126 = vmatprep.subr.bf16.mxu0 %v13880_v59  ;;  %11290 = vmatprep.subr.bf16.mxu1 %v13882_v60  ;;  %v578_v59 = vld [vmem:[#allocation5 + $0xf50] sm:$0xff] }
 0x596   :  { %v590_v60 = vld [vmem:[#allocation5 + $0xfb0] sm:$0xff] }
 0x597   :  { %v14023_v7 = vcombine.low %v578_v59, %v590_v60 }
 0x598   :  { %11127 = vmatpush1.bf16.msra.mxu0 %v13879_v0  ;;  %11291 = vmatpush1.bf16.msra.mxu1 %v13881_v1  ;;  %v14024_v0 = vcombine.high %v578_v59, %v590_v60  ;;  %v602_v1 = vld [vmem:[#allocation5 + $0x1010] sm:$0xff]  ;;  %v711_v59 = vld [vmem:[#allocation5 + $0x1378] sm:$0xff] }
 0x599   :  { %11128 = vmatprep.subr.bf16.mxu0 %v13904_v3  ;;  %11292 = vmatprep.subr.bf16.mxu1 %v13906_v38  ;;  %v614_v3 = vld [vmem:[#allocation5 + $0x1070] sm:$0xff]  ;;  %v603_v38 = vld [vmem:[#allocation5 + $0x1018] sm:$0xff] }
 0x59a   :  { %v14048_v10 = vcombine.high %v602_v1, %v614_v3  ;;  %v14047_v21 = vcombine.low %v602_v1, %v614_v3  ;;  %v14049_v22 = vcombine.low %v603_v38, %v615_v4  ;;  %v735_v1 = vld [vmem:[#allocation5 + $0x1438] sm:$0xff] }
 0x59c   :  { %11129 = vmatpush1.bf16.msra.mxu0 %v13903_v11  ;;  %11293 = vmatpush1.bf16.msra.mxu1 %v13905_v13  ;;  %v14050_v11 = vcombine.high %v603_v38, %v615_v4  ;;  %v626_v13 = vld [vmem:[#allocation5 + $0x10d0] sm:$0xff] }
 0x59d   :  { %11139 = vmatprep.subr.bf16.mxu0 %v13928_v16  ;;  %11303 = vmatprep.subr.bf16.mxu1 %v13930_v17  ;;  %v638_v16 = vld [vmem:[#allocation5 + $0x1130] sm:$0xff]  ;;  %v627_v17 = vld [vmem:[#allocation5 + $0x10d8] sm:$0xff] }
 0x59e   :  { %v14072_v26 = vcombine.high %v626_v13, %v638_v16  ;;  %v14071_v36 = vcombine.low %v626_v13, %v638_v16  ;;  %v759_v13 = vld [vmem:[#allocation5 + $0x14f8] sm:$0xff] }
 0x59f   :  { %11131 = vmatmul.mubr.bf16.vlgmr.msra.gmra.mrb[20].mxu0 %v16144_v12  ;;  %11295 = vmatmul.mubr.bf16.vlgmr.msra.gmra.mrb[20].mxu1 %v16144_v12  ;;  %v13977_v12 = vcombine.low %v531_v41, %v543_v44  ;;  %v14073_v41 = vcombine.low %v627_v17, %v639_v18 }
 0x5a0   :  { %11140 = vmatpush1.bf16.msra.mxu0 %v13927_v27  ;;  %11304 = vmatpush1.bf16.msra.mxu1 %v13929_v28  ;;  %v14074_v27 = vcombine.high %v627_v17, %v639_v18  ;;  %v650_v28 = vld [vmem:[#allocation5 + $0x1190] sm:$0xff] }
 0x5a1   :  { %11141 = vmatprep.subr.bf16.mxu0 %v13952_v30  ;;  %11305 = vmatprep.subr.bf16.mxu1 %v13954_v31  ;;  %v662_v30 = vld [vmem:[#allocation5 + $0x11f0] sm:$0xff]  ;;  %v651_v31 = vld [vmem:[#allocation5 + $0x1198] sm:$0xff] }
 0x5a2   :  { %11171 = vmatprep.mubr.bf16.mxu0 %v16150_v53  ;;  %11335 = vmatprep.mubr.bf16.mxu1 %v16150_v53  ;;  %v14026_v53 = vcombine.high %v579_v61, %v591_v57  ;;  %v14096_v44 = vcombine.high %v650_v28, %v662_v30  ;;  %v14095_v50 = vcombine.low %v650_v28, %v662_v30  ;;  %v783_v28 = vld [vmem:[#allocation5 + $0x15b8] sm:$0xff] }
 0x5a3   :  { %v14097_v51 = vcombine.low %v651_v31, %v663_v32 }
 0x5a4   :  { %11142 = vmatpush1.bf16.msra.mxu0 %v13951_v45  ;;  %11306 = vmatpush1.bf16.msra.mxu1 %v13953_v46  ;;  %v14098_v45 = vcombine.high %v651_v31, %v663_v32  ;;  %v674_v46 = vld [vmem:[#allocation5 + $0x1250] sm:$0xff] }
 0x5a5   :  { %11143 = vmatprep.subr.bf16.mxu0 %v13976_v47  ;;  %11307 = vmatprep.subr.bf16.mxu1 %v13978_v24  ;;  %v686_v47 = vld [vmem:[#allocation5 + $0x12b0] sm:$0xff]  ;;  %v675_v24 = vld [vmem:[#allocation5 + $0x1258] sm:$0xff] }
 0x5a6   :  { %v14120_v52 = vcombine.high %v674_v46, %v686_v47  ;;  %v14119_v60 = vcombine.low %v674_v46, %v686_v47  ;;  %v14121_v61 = vcombine.low %v675_v24, %v687_v49  ;;  %v807_v46 = vld [vmem:[#allocation5 + $0x1678] sm:$0xff] }
 0x5a8   :  { %11144 = vmatpush1.bf16.msra.mxu0 %v13975_v54  ;;  %11308 = vmatpush1.bf16.msra.mxu1 %v13977_v12  ;;  %v14122_v54 = vcombine.high %v675_v24, %v687_v49  ;;  %v698_v12 = vld [vmem:[#allocation5 + $0x1310] sm:$0xff] }
 0x5a9   :  { %11145 = vmatprep.subr.bf16.mxu0 %v14000_v55  ;;  %11309 = vmatprep.subr.bf16.mxu1 %v14002_v56  ;;  %v710_v55 = vld [vmem:[#allocation5 + $0x1370] sm:$0xff]  ;;  %v699_v56 = vld [vmem:[#allocation5 + $0x1318] sm:$0xff] }
 0x5aa   :  { %v14144_v57 = vcombine.high %v698_v12, %v710_v55  ;;  %v14143_v3 = vcombine.low %v698_v12, %v710_v55  ;;  %v14145_v38 = vcombine.low %v699_v56, %v711_v59  ;;  %v831_v12 = vld [vmem:[#allocation5 + $0x1738] sm:$0xff] }
 0x5ac   :  { %11146 = vmatpush1.bf16.msra.mxu0 %v13999_v62  ;;  %11310 = vmatpush1.bf16.msra.mxu1 %v14001_v63  ;;  %v14146_v62 = vcombine.high %v699_v56, %v711_v59  ;;  %v722_v63 = vld [vmem:[#allocation5 + $0x13d0] sm:$0xff] }
 0x5ad   :  { %11147 = vmatprep.subr.bf16.mxu0 %v14024_v0  ;;  %11311 = vmatprep.subr.bf16.mxu1 %v14026_v53  ;;  %v734_v0 = vld [vmem:[#allocation5 + $0x1430] sm:$0xff]  ;;  %v723_v53 = vld [vmem:[#allocation5 + $0x13d8] sm:$0xff] }
 0x5ae   :  { %v14168_v4 = vcombine.high %v722_v63, %v734_v0  ;;  %v14167_v16 = vcombine.low %v722_v63, %v734_v0  ;;  %v14169_v17 = vcombine.low %v723_v53, %v735_v1  ;;  %v855_v63 = vld [vmem:[#allocation5 + $0x17f8] sm:$0xff] }
 0x5b0   :  { %11148 = vmatpush1.bf16.msra.mxu0 %v14023_v7  ;;  %11312 = vmatpush1.bf16.msra.mxu1 %v14025_v8  ;;  %v14170_v7 = vcombine.high %v723_v53, %v735_v1  ;;  %v746_v8 = vld [vmem:[#allocation5 + $0x1490] sm:$0xff] }
 0x5b1   :  { %11149 = vmatprep.subr.bf16.mxu0 %v14048_v10  ;;  %11313 = vmatprep.subr.bf16.mxu1 %v14050_v11  ;;  %v758_v10 = vld [vmem:[#allocation5 + $0x14f0] sm:$0xff]  ;;  %v747_v11 = vld [vmem:[#allocation5 + $0x1498] sm:$0xff] }
 0x5b2   :  { %v14192_v18 = vcombine.high %v746_v8, %v758_v10  ;;  %v14191_v30 = vcombine.low %v746_v8, %v758_v10  ;;  %v14193_v31 = vcombine.low %v747_v11, %v759_v13  ;;  %v879_v8 = vld [vmem:[#allocation5 + $0x18b8] sm:$0xff] }
 0x5b4   :  { %11150 = vmatpush1.bf16.msra.mxu0 %v14047_v21  ;;  %11314 = vmatpush1.bf16.msra.mxu1 %v14049_v22  ;;  %v14194_v21 = vcombine.high %v747_v11, %v759_v13  ;;  %v770_v22 = vld [vmem:[#allocation5 + $0x1550] sm:$0xff] }
 0x5b5   :  { %11151 = vmatprep.subr.bf16.mxu0 %v14072_v26  ;;  %11315 = vmatprep.subr.bf16.mxu1 %v14074_v27  ;;  %v782_v26 = vld [vmem:[#allocation5 + $0x15b0] sm:$0xff]  ;;  %v771_v27 = vld [vmem:[#allocation5 + $0x1558] sm:$0xff] }
 0x5b6   :  { %v14216_v32 = vcombine.high %v770_v22, %v782_v26  ;;  %v14215_v47 = vcombine.low %v770_v22, %v782_v26  ;;  %v14217_v24 = vcombine.low %v771_v27, %v783_v28  ;;  %v903_v22 = vld [vmem:[#allocation5 + $0x1978] sm:$0xff] }
 0x5b8   :  { %11152 = vmatpush1.bf16.msra.mxu0 %v14071_v36  ;;  %11316 = vmatpush1.bf16.msra.mxu1 %v14073_v41  ;;  %v14218_v36 = vcombine.high %v771_v27, %v783_v28  ;;  %v794_v41 = vld [vmem:[#allocation5 + $0x1610] sm:$0xff] }
 0x5b9   :  { %11153 = vmatprep.subr.bf16.mxu0 %v14096_v44  ;;  %11317 = vmatprep.subr.bf16.mxu1 %v14098_v45  ;;  %v806_v44 = vld [vmem:[#allocation5 + $0x1670] sm:$0xff]  ;;  %v795_v45 = vld [vmem:[#allocation5 + $0x1618] sm:$0xff] }
 0x5ba   :  { %v14240_v49 = vcombine.high %v794_v41, %v806_v44  ;;  %v14239_v55 = vcombine.low %v794_v41, %v806_v44  ;;  %v14241_v56 = vcombine.low %v795_v45, %v807_v46  ;;  %v927_v41 = vld [vmem:[#allocation5 + $0x1a38] sm:$0xff] }
 0x5bc   :  { %11154 = vmatpush1.bf16.msra.mxu0 %v14095_v50  ;;  %11318 = vmatpush1.bf16.msra.mxu1 %v14097_v51  ;;  %v14242_v50 = vcombine.high %v795_v45, %v807_v46  ;;  %v818_v51 = vld [vmem:[#allocation5 + $0x16d0] sm:$0xff] }
 0x5bd   :  { %11155 = vmatprep.subr.bf16.mxu0 %v14120_v52  ;;  %11319 = vmatprep.subr.bf16.mxu1 %v14122_v54  ;;  %v830_v52 = vld [vmem:[#allocation5 + $0x1730] sm:$0xff]  ;;  %v819_v54 = vld [vmem:[#allocation5 + $0x16d8] sm:$0xff] }
 0x5be   :  { %v14264_v59 = vcombine.high %v818_v51, %v830_v52  ;;  %v14263_v0 = vcombine.low %v818_v51, %v830_v52  ;;  %v14265_v53 = vcombine.low %v819_v54, %v831_v12  ;;  %v951_v51 = vld [vmem:[#allocation5 + $0x1af8] sm:$0xff] }
 0x5c0   :  { %11156 = vmatpush1.bf16.msra.mxu0 %v14119_v60  ;;  %11320 = vmatpush1.bf16.msra.mxu1 %v14121_v61  ;;  %v14266_v60 = vcombine.high %v819_v54, %v831_v12  ;;  %v842_v61 = vld [vmem:[#allocation5 + $0x1790] sm:$0xff] }
 0x5c1   :  { %11157 = vmatprep.subr.bf16.mxu0 %v14144_v57  ;;  %11321 = vmatprep.subr.bf16.mxu1 %v14146_v62  ;;  %v854_v57 = vld [vmem:[#allocation5 + $0x17f0] sm:$0xff]  ;;  %v843_v62 = vld [vmem:[#allocation5 + $0x1798] sm:$0xff] }
 0x5c2   :  { %v14288_v1 = vcombine.high %v842_v61, %v854_v57  ;;  %v14287_v10 = vcombine.low %v842_v61, %v854_v57  ;;  %v14289_v11 = vcombine.low %v843_v62, %v855_v63 }
 0x5c4   :  { %11158 = vmatpush1.bf16.msra.mxu0 %v14143_v3  ;;  %11322 = vmatpush1.bf16.msra.mxu1 %v14145_v38  ;;  %v14290_v3 = vcombine.high %v843_v62, %v855_v63  ;;  %v866_v38 = vld [vmem:[#allocation5 + $0x1850] sm:$0xff] }
 0x5c5   :  { %11159 = vmatprep.subr.bf16.mxu0 %v14168_v4  ;;  %11323 = vmatprep.subr.bf16.mxu1 %v14170_v7  ;;  %v878_v4 = vld [vmem:[#allocation5 + $0x18b0] sm:$0xff]  ;;  %v867_v7 = vld [vmem:[#allocation5 + $0x1858] sm:$0xff] }
 0x5c6   :  { %v14312_v13 = vcombine.high %v866_v38, %v878_v4  ;;  %v14311_v26 = vcombine.low %v866_v38, %v878_v4  ;;  %v14313_v27 = vcombine.low %v867_v7, %v879_v8  ;;  %v986_v63 = vld [vmem:[#allocation5 + $0x1c10] sm:$0xff] }
 0x5c8   :  { %11160 = vmatpush1.bf16.msra.mxu0 %v14167_v16  ;;  %11324 = vmatpush1.bf16.msra.mxu1 %v14169_v17  ;;  %v14314_v16 = vcombine.high %v867_v7, %v879_v8  ;;  %v890_v17 = vld [vmem:[#allocation5 + $0x1910] sm:$0xff] }
 0x5c9   :  { %11161 = vmatprep.subr.bf16.mxu0 %v14192_v18  ;;  %11325 = vmatprep.subr.bf16.mxu1 %v14194_v21  ;;  %v902_v18 = vld [vmem:[#allocation5 + $0x1970] sm:$0xff]  ;;  %v891_v21 = vld [vmem:[#allocation5 + $0x1918] sm:$0xff] }
 0x5ca   :  { %v14336_v28 = vcombine.high %v890_v17, %v902_v18  ;;  %v14335_v44 = vcombine.low %v890_v17, %v902_v18  ;;  %v14337_v45 = vcombine.low %v891_v21, %v903_v22  ;;  %v1010_v8 = vld [vmem:[#allocation5 + $0x1cd0] sm:$0xff] }
 0x5cc   :  { %11162 = vmatpush1.bf16.msra.mxu0 %v14191_v30  ;;  %11326 = vmatpush1.bf16.msra.mxu1 %v14193_v31  ;;  %v14338_v30 = vcombine.high %v891_v21, %v903_v22  ;;  %v914_v31 = vld [vmem:[#allocation5 + $0x19d0] sm:$0xff] }
 0x5cd   :  { %11163 = vmatprep.subr.bf16.mxu0 %v14216_v32  ;;  %11327 = vmatprep.subr.bf16.mxu1 %v14218_v36  ;;  %v926_v32 = vld [vmem:[#allocation5 + $0x1a30] sm:$0xff]  ;;  %v915_v36 = vld [vmem:[#allocation5 + $0x19d8] sm:$0xff] }
 0x5ce   :  { %v14360_v46 = vcombine.high %v914_v31, %v926_v32  ;;  %v14359_v52 = vcombine.low %v914_v31, %v926_v32  ;;  %v1034_v22 = vld [vmem:[#allocation5 + $0x1d90] sm:$0xff] }
 0x5d0   :  { %11164 = vmatpush1.bf16.msra.mxu0 %v14215_v47  ;;  %11328 = vmatpush1.bf16.msra.mxu1 %v14217_v24  ;;  %v14362_v47 = vcombine.high %v915_v36, %v927_v41  ;;  %v938_v24 = vld [vmem:[#allocation5 + $0x1a90] sm:$0xff] }
 0x5d1   :  { %11165 = vmatprep.subr.bf16.mxu0 %v14240_v49  ;;  %11329 = vmatprep.subr.bf16.mxu1 %v14242_v50  ;;  %v950_v49 = vld [vmem:[#allocation5 + $0x1af0] sm:$0xff]  ;;  %v939_v50 = vld [vmem:[#allocation5 + $0x1a98] sm:$0xff] }
 0x5d2   :  { %v14384_v54 = vcombine.high %v938_v24, %v950_v49  ;;  %v14386_v12 = vcombine.high %v939_v50, %v951_v51  ;;  %v14383_v61 = vcombine.low %v938_v24, %v950_v49  ;;  %v14385_v57 = vcombine.low %v939_v50, %v951_v51  ;;  %v1082_v51 = vld [vmem:[#allocation5 + $0x1f10] sm:$0xff] }
 0x5d4   :  { %11166 = vmatpush1.bf16.msra.mxu0 %v14239_v55  ;;  %11330 = vmatpush1.bf16.msra.mxu1 %v14241_v56  ;;  %v962_v55 = vld [vmem:[#allocation5 + $0x1b50] sm:$0xff] }
 0x5d5   :  { %11167 = vmatprep.subr.bf16.mxu0 %v14264_v59  ;;  %11331 = vmatprep.subr.bf16.mxu1 %v14266_v60  ;;  %v974_v56 = vld [vmem:[#allocation5 + $0x1bb0] sm:$0xff]  ;;  %v963_v59 = vld [vmem:[#allocation5 + $0x1b58] sm:$0xff] }
 0x5d6   :  { %v975_v60 = vld [vmem:[#allocation5 + $0x1bb8] sm:$0xff]  ;;  %v14408_v62 = vcombine.high %v962_v55, %v974_v56 }
 0x5d7   :  { %v14409_v38 = vcombine.low %v963_v59, %v975_v60 }
 0x5d8   :  { %11168 = vmatpush1.bf16.msra.mxu0 %v14263_v0  ;;  %11332 = vmatpush1.bf16.msra.mxu1 %v14265_v53  ;;  %v998_v0 = vld [vmem:[#allocation5 + $0x1c70] sm:$0xff]  ;;  %v987_v53 = vld [vmem:[#allocation5 + $0x1c18] sm:$0xff] }
 0x5d9   :  { %11169 = vmatprep.subr.bf16.mxu0 %v14288_v1  ;;  %11333 = vmatprep.subr.bf16.mxu1 %v14290_v3  ;;  %v999_v1 = vld [vmem:[#allocation5 + $0x1c78] sm:$0xff]  ;;  %v14407_v3 = vcombine.low %v962_v55, %v974_v56  ;;  %v14432_v4 = vcombine.high %v986_v63, %v998_v0 }
 0x5da   :  { %v14434_v7 = vcombine.high %v987_v53, %v999_v1  ;;  %v14433_v17 = vcombine.low %v987_v53, %v999_v1  ;;  %v1130_v1 = vld [vmem:[#allocation5 + $0x2090] sm:$0xff] }
 0x5dc   :  { %11170 = vmatpush1.bf16.msra.mxu0 %v14287_v10  ;;  %11334 = vmatpush1.bf16.msra.mxu1 %v14289_v11  ;;  %v1022_v10 = vld [vmem:[#allocation5 + $0x1d30] sm:$0xff]  ;;  %v1011_v11 = vld [vmem:[#allocation5 + $0x1cd8] sm:$0xff] }
 0x5dd   :  { %11180 = vmatprep.subr.bf16.mxu0 %v14312_v13  ;;  %11344 = vmatprep.subr.bf16.mxu1 %v14314_v16  ;;  %v1023_v13 = vld [vmem:[#allocation5 + $0x1d38] sm:$0xff]  ;;  %v14431_v16 = vcombine.low %v986_v63, %v998_v0  ;;  %v14456_v18 = vcombine.high %v1010_v8, %v1022_v10 }
 0x5de   :  { %v14458_v21 = vcombine.high %v1011_v11, %v1023_v13  ;;  %v14457_v31 = vcombine.low %v1011_v11, %v1023_v13  ;;  %v1154_v13 = vld [vmem:[#allocation5 + $0x2150] sm:$0xff] }
 0x5df   :  { %11172 = vmatmul.mubr.bf16.vlgmr.msra.gmra.mrb[20].mxu0 %v16160_v25  ;;  %11336 = vmatmul.mubr.bf16.vlgmr.msra.gmra.mrb[20].mxu1 %v16160_v25  ;;  %v14361_v25 = vcombine.low %v915_v36, %v927_v41  ;;  %v1058_v41 = vld [vmem:[#allocation5 + $0x1e50] sm:$0xff] }
 0x5e0   :  { %11181 = vmatpush1.bf16.msra.mxu0 %v14311_v26  ;;  %11345 = vmatpush1.bf16.msra.mxu1 %v14313_v27  ;;  %v1046_v26 = vld [vmem:[#allocation5 + $0x1df0] sm:$0xff]  ;;  %v1035_v27 = vld [vmem:[#allocation5 + $0x1d98] sm:$0xff] }
 0x5e1   :  { %11182 = vmatprep.subr.bf16.mxu0 %v14336_v28  ;;  %11346 = vmatprep.subr.bf16.mxu1 %v14338_v30  ;;  %v1047_v28 = vld [vmem:[#allocation5 + $0x1df8] sm:$0xff]  ;;  %v14455_v30 = vcombine.low %v1010_v8, %v1022_v10  ;;  %v14480_v32 = vcombine.high %v1034_v22, %v1046_v26 }
 0x5e2   :  { %11212 = vmatprep.mubr.bf16.mxu0 %v16164_v34  ;;  %11376 = vmatprep.mubr.bf16.mxu1 %v16164_v34  ;;  %v14410_v34 = vcombine.high %v963_v59, %v975_v60  ;;  %v14482_v36 = vcombine.high %v1035_v27, %v1047_v28  ;;  %v14481_v24 = vcombine.low %v1035_v27, %v1047_v28  ;;  %v1106_v60 = vld [vmem:[#allocation5 + $0x1fd0] sm:$0xff] }
 0x5e3   :  { %v1178_v28 = vld [vmem:[#allocation5 + $0x2210] sm:$0xff] }
 0x5e4   :  { %11183 = vmatpush1.bf16.msra.mxu0 %v14335_v44  ;;  %11347 = vmatpush1.bf16.msra.mxu1 %v14337_v45  ;;  %v1070_v44 = vld [vmem:[#allocation5 + $0x1eb0] sm:$0xff]  ;;  %v1059_v45 = vld [vmem:[#allocation5 + $0x1e58] sm:$0xff] }
 0x5e5   :  { %11184 = vmatprep.subr.bf16.mxu0 %v14360_v46  ;;  %11348 = vmatprep.subr.bf16.mxu1 %v14362_v47  ;;  %v1071_v46 = vld [vmem:[#allocation5 + $0x1eb8] sm:$0xff]  ;;  %v14479_v47 = vcombine.low %v1034_v22, %v1046_v26  ;;  %v14504_v49 = vcombine.high %v1058_v41, %v1070_v44 }
 0x5e6   :  { %v14506_v50 = vcombine.high %v1059_v45, %v1071_v46  ;;  %v14505_v55 = vcombine.low %v1059_v45, %v1071_v46  ;;  %v1202_v46 = vld [vmem:[#allocation5 + $0x22d0] sm:$0xff] }
 0x5e8   :  { %11185 = vmatpush1.bf16.msra.mxu0 %v14359_v52  ;;  %11349 = vmatpush1.bf16.msra.mxu1 %v14361_v25  ;;  %v1094_v52 = vld [vmem:[#allocation5 + $0x1f70] sm:$0xff]  ;;  %v1083_v25 = vld [vmem:[#allocation5 + $0x1f18] sm:$0xff] }
 0x5e9   :  { %11186 = vmatprep.subr.bf16.mxu0 %v14384_v54  ;;  %11350 = vmatprep.subr.bf16.mxu1 %v14386_v12  ;;  %v1095_v54 = vld [vmem:[#allocation5 + $0x1f78] sm:$0xff]  ;;  %v14503_v12 = vcombine.low %v1058_v41, %v1070_v44  ;;  %v14528_v56 = vcombine.high %v1082_v51, %v1094_v52 }
 0x5ea   :  { %v14530_v59 = vcombine.high %v1083_v25, %v1095_v54  ;;  %v14529_v63 = vcombine.low %v1083_v25, %v1095_v54  ;;  %v1226_v54 = vld [vmem:[#allocation5 + $0x2390] sm:$0xff] }
 0x5ec   :  { %11187 = vmatpush1.bf16.msra.mxu0 %v14383_v61  ;;  %11351 = vmatpush1.bf16.msra.mxu1 %v14385_v57  ;;  %v1118_v61 = vld [vmem:[#allocation5 + $0x2030] sm:$0xff]  ;;  %v1107_v57 = vld [vmem:[#allocation5 + $0x1fd8] sm:$0xff] }
 0x5ed   :  { %11188 = vmatprep.subr.bf16.mxu0 %v14408_v62  ;;  %11352 = vmatprep.subr.bf16.mxu1 %v14410_v34  ;;  %v1119_v62 = vld [vmem:[#allocation5 + $0x2038] sm:$0xff]  ;;  %v14527_v34 = vcombine.low %v1082_v51, %v1094_v52  ;;  %v14552_v0 = vcombine.high %v1106_v60, %v1118_v61 }
 0x5ee   :  { %v14554_v53 = vcombine.high %v1107_v57, %v1119_v62  ;;  %v14553_v8 = vcombine.low %v1107_v57, %v1119_v62  ;;  %v1250_v62 = vld [vmem:[#allocation5 + $0x2450] sm:$0xff] }
 0x5f0   :  { %11189 = vmatpush1.bf16.msra.mxu0 %v14407_v3  ;;  %11353 = vmatpush1.bf16.msra.mxu1 %v14409_v38  ;;  %v1142_v3 = vld [vmem:[#allocation5 + $0x20f0] sm:$0xff]  ;;  %v1131_v38 = vld [vmem:[#allocation5 + $0x2098] sm:$0xff] }
 0x5f1   :  { %11190 = vmatprep.subr.bf16.mxu0 %v14432_v4  ;;  %11354 = vmatprep.subr.bf16.mxu1 %v14434_v7  ;;  %v1143_v4 = vld [vmem:[#allocation5 + $0x20f8] sm:$0xff]  ;;  %v14551_v7 = vcombine.low %v1106_v60, %v1118_v61  ;;  %v14576_v10 = vcombine.high %v1130_v1, %v1142_v3 }
 0x5f2   :  { %v14578_v11 = vcombine.high %v1131_v38, %v1143_v4  ;;  %v14577_v22 = vcombine.low %v1131_v38, %v1143_v4  ;;  %v1274_v4 = vld [vmem:[#allocation5 + $0x2510] sm:$0xff] }
 0x5f4   :  { %11191 = vmatpush1.bf16.msra.mxu0 %v14431_v16  ;;  %11355 = vmatpush1.bf16.msra.mxu1 %v14433_v17  ;;  %v1166_v16 = vld [vmem:[#allocation5 + $0x21b0] sm:$0xff]  ;;  %v1155_v17 = vld [vmem:[#allocation5 + $0x2158] sm:$0xff] }
 0x5f5   :  { %11192 = vmatprep.subr.bf16.mxu0 %v14456_v18  ;;  %11356 = vmatprep.subr.bf16.mxu1 %v14458_v21  ;;  %v1167_v18 = vld [vmem:[#allocation5 + $0x21b8] sm:$0xff]  ;;  %v14575_v21 = vcombine.low %v1130_v1, %v1142_v3  ;;  %v14600_v26 = vcombine.high %v1154_v13, %v1166_v16 }
 0x5f6   :  { %v14602_v27 = vcombine.high %v1155_v17, %v1167_v18  ;;  %v14601_v41 = vcombine.low %v1155_v17, %v1167_v18  ;;  %v1298_v18 = vld [vmem:[#allocation5 + $0x25d0] sm:$0xff] }
 0x5f8   :  { %11193 = vmatpush1.bf16.msra.mxu0 %v14455_v30  ;;  %11357 = vmatpush1.bf16.msra.mxu1 %v14457_v31  ;;  %v1190_v30 = vld [vmem:[#allocation5 + $0x2270] sm:$0xff]  ;;  %v1179_v31 = vld [vmem:[#allocation5 + $0x2218] sm:$0xff] }
 0x5f9   :  { %11194 = vmatprep.subr.bf16.mxu0 %v14480_v32  ;;  %11358 = vmatprep.subr.bf16.mxu1 %v14482_v36  ;;  %v1191_v32 = vld [vmem:[#allocation5 + $0x2278] sm:$0xff]  ;;  %v14599_v36 = vcombine.low %v1154_v13, %v1166_v16  ;;  %v14624_v44 = vcombine.high %v1178_v28, %v1190_v30 }
 0x5fa   :  { %v14626_v45 = vcombine.high %v1179_v31, %v1191_v32  ;;  %v14625_v51 = vcombine.low %v1179_v31, %v1191_v32  ;;  %v1322_v32 = vld [vmem:[#allocation5 + $0x2690] sm:$0xff] }
 0x5fc   :  { %11195 = vmatpush1.bf16.msra.mxu0 %v14479_v47  ;;  %11359 = vmatpush1.bf16.msra.mxu1 %v14481_v24  ;;  %v1214_v47 = vld [vmem:[#allocation5 + $0x2330] sm:$0xff]  ;;  %v1203_v24 = vld [vmem:[#allocation5 + $0x22d8] sm:$0xff] }
 0x5fd   :  { %11196 = vmatprep.subr.bf16.mxu0 %v14504_v49  ;;  %11360 = vmatprep.subr.bf16.mxu1 %v14506_v50  ;;  %v1215_v49 = vld [vmem:[#allocation5 + $0x2338] sm:$0xff]  ;;  %v14623_v50 = vcombine.low %v1178_v28, %v1190_v30  ;;  %v14648_v52 = vcombine.high %v1202_v46, %v1214_v47 }
 0x5fe   :  { %v14650_v25 = vcombine.high %v1203_v24, %v1215_v49  ;;  %v14649_v60 = vcombine.low %v1203_v24, %v1215_v49  ;;  %v1346_v24 = vld [vmem:[#allocation5 + $0x2750] sm:$0xff] }
 0x5ff   :  { %v1358_v49 = vld [vmem:[#allocation5 + $0x27b0] sm:$0xff] }
 0x600   :  { %11197 = vmatpush1.bf16.msra.mxu0 %v14503_v12  ;;  %11361 = vmatpush1.bf16.msra.mxu1 %v14505_v55  ;;  %v1238_v12 = vld [vmem:[#allocation5 + $0x23f0] sm:$0xff]  ;;  %v1227_v55 = vld [vmem:[#allocation5 + $0x2398] sm:$0xff] }
 0x601   :  { %11198 = vmatprep.subr.bf16.mxu0 %v14528_v56  ;;  %11362 = vmatprep.subr.bf16.mxu1 %v14530_v59  ;;  %v1239_v56 = vld [vmem:[#allocation5 + $0x23f8] sm:$0xff]  ;;  %v14647_v59 = vcombine.low %v1202_v46, %v1214_v47  ;;  %v14672_v61 = vcombine.high %v1226_v54, %v1238_v12 }
 0x602   :  { %v14674_v57 = vcombine.high %v1227_v55, %v1239_v56  ;;  %v14673_v1 = vcombine.low %v1227_v55, %v1239_v56  ;;  %v1382_v55 = vld [vmem:[#allocation5 + $0x2870] sm:$0xff]  ;;  %v1371_v56 = vld [vmem:[#allocation5 + $0x2818] sm:$0xff] }
 0x604   :  { %11199 = vmatpush1.bf16.msra.mxu0 %v14527_v34  ;;  %11363 = vmatpush1.bf16.msra.mxu1 %v14529_v63  ;;  %v1262_v34 = vld [vmem:[#allocation5 + $0x24b0] sm:$0xff]  ;;  %v1251_v63 = vld [vmem:[#allocation5 + $0x2458] sm:$0xff] }
 0x605   :  { %11200 = vmatprep.subr.bf16.mxu0 %v14552_v0  ;;  %11364 = vmatprep.subr.bf16.mxu1 %v14554_v53  ;;  %v1263_v0 = vld [vmem:[#allocation5 + $0x24b8] sm:$0xff]  ;;  %v14671_v53 = vcombine.low %v1226_v54, %v1238_v12  ;;  %v14696_v3 = vcombine.high %v1250_v62, %v1262_v34  ;;  %v14792_v54 = vcombine.high %v1346_v24, %v1358_v49  ;;  %v1370_v12 = vld [vmem:[#allocation5 + $0x2810] sm:$0xff] }
 0x606   :  { %v14698_v38 = vcombine.high %v1251_v63, %v1263_v0  ;;  %v14697_v13 = vcombine.low %v1251_v63, %v1263_v0  ;;  %v1406_v63 = vld [vmem:[#allocation5 + $0x2930] sm:$0xff]  ;;  %v1395_v0 = vld [vmem:[#allocation5 + $0x28d8] sm:$0xff] }
 0x608   :  { %11201 = vmatpush1.bf16.msra.mxu0 %v14551_v7  ;;  %11365 = vmatpush1.bf16.msra.mxu1 %v14553_v8  ;;  %v1286_v7 = vld [vmem:[#allocation5 + $0x2570] sm:$0xff]  ;;  %v1275_v8 = vld [vmem:[#allocation5 + $0x2518] sm:$0xff] }
 0x609   :  { %11202 = vmatprep.subr.bf16.mxu0 %v14576_v10  ;;  %11366 = vmatprep.subr.bf16.mxu1 %v14578_v11  ;;  %v1287_v10 = vld [vmem:[#allocation5 + $0x2578] sm:$0xff]  ;;  %v14695_v11 = vcombine.low %v1250_v62, %v1262_v34  ;;  %v14720_v16 = vcombine.high %v1274_v4, %v1286_v7  ;;  %v1394_v34 = vld [vmem:[#allocation5 + $0x28d0] sm:$0xff] }
 0x60a   :  { %v14722_v17 = vcombine.high %v1275_v8, %v1287_v10  ;;  %v14721_v28 = vcombine.low %v1275_v8, %v1287_v10  ;;  %v1418_v8 = vld [vmem:[#allocation5 + $0x2990] sm:$0xff] }
 0x60b   :  { %v1430_v10 = vld [vmem:[#allocation5 + $0x29f0] sm:$0xff] }
 0x60c   :  { %11203 = vmatpush1.bf16.msra.mxu0 %v14575_v21  ;;  %11367 = vmatpush1.bf16.msra.mxu1 %v14577_v22  ;;  %v1310_v21 = vld [vmem:[#allocation5 + $0x2630] sm:$0xff]  ;;  %v1299_v22 = vld [vmem:[#allocation5 + $0x25d8] sm:$0xff] }
 0x60d   :  { %11204 = vmatprep.subr.bf16.mxu0 %v14600_v26  ;;  %11368 = vmatprep.subr.bf16.mxu1 %v14602_v27  ;;  %v1311_v26 = vld [vmem:[#allocation5 + $0x2638] sm:$0xff]  ;;  %v14719_v27 = vcombine.low %v1274_v4, %v1286_v7  ;;  %v14744_v30 = vcombine.high %v1298_v18, %v1310_v21 }
 0x60e   :  { %v14746_v31 = vcombine.high %v1299_v22, %v1311_v26 }
 0x610   :  { %11205 = vmatpush1.bf16.msra.mxu0 %v14599_v36  ;;  %11369 = vmatpush1.bf16.msra.mxu1 %v14601_v41  ;;  %v1334_v36 = vld [vmem:[#allocation5 + $0x26f0] sm:$0xff]  ;;  %v1323_v41 = vld [vmem:[#allocation5 + $0x2698] sm:$0xff] }
 0x611   :  { %11206 = vmatprep.subr.bf16.mxu0 %v14624_v44  ;;  %11370 = vmatprep.subr.bf16.mxu1 %v14626_v45  ;;  %v1335_v44 = vld [vmem:[#allocation5 + $0x26f8] sm:$0xff]  ;;  %v14743_v45 = vcombine.low %v1298_v18, %v1310_v21  ;;  %v14768_v46 = vcombine.high %v1322_v32, %v1334_v36 }
 0x612   :  { %v14770_v47 = vcombine.high %v1323_v41, %v1335_v44 }
 0x614   :  { %11207 = vmatpush1.bf16.msra.mxu0 %v14623_v50  ;;  %11371 = vmatpush1.bf16.msra.mxu1 %v14625_v51  ;;  %v1347_v50 = vld [vmem:[#allocation5 + $0x2758] sm:$0xff] }
 0x615   :  { %11208 = vmatprep.subr.bf16.mxu0 %v14648_v52  ;;  %11372 = vmatprep.subr.bf16.mxu1 %v14650_v25  ;;  %v1359_v51 = vld [vmem:[#allocation5 + $0x27b8] sm:$0xff]  ;;  %v14767_v52 = vcombine.low %v1322_v32, %v1334_v36  ;;  %v14769_v25 = vcombine.low %v1323_v41, %v1335_v44  ;;  %v1442_v36 = vld [vmem:[#allocation5 + $0x2a50] sm:$0xff] }
 0x616   :  { %v1454_v41 = vld [vmem:[#allocation5 + $0x2ab0] sm:$0xff]  ;;  %v1443_v44 = vld [vmem:[#allocation5 + $0x2a58] sm:$0xff] }
 0x618   :  { %11209 = vmatpush1.bf16.msra.mxu0 %v14647_v59  ;;  %11373 = vmatpush1.bf16.msra.mxu1 %v14649_v60  ;;  %v1383_v59 = vld [vmem:[#allocation5 + $0x2878] sm:$0xff]  ;;  %v14791_v60 = vcombine.low %v1346_v24, %v1358_v49  ;;  %v1466_v49 = vld [vmem:[#allocation5 + $0x2b10] sm:$0xff] }
 0x619   :  { %11210 = vmatprep.subr.bf16.mxu0 %v14672_v61  ;;  %11374 = vmatprep.subr.bf16.mxu1 %v14674_v57  ;;  %v14793_v61 = vcombine.low %v1347_v50, %v1359_v51  ;;  %v14816_v57 = vcombine.high %v1370_v12, %v1382_v55  ;;  %v14818_v62 = vcombine.high %v1371_v56, %v1383_v59 }
 0x61c   :  { %11211 = vmatpush1.bf16.msra.mxu0 %v14671_v53  ;;  %11375 = vmatpush1.bf16.msra.mxu1 %v14673_v1  ;;  %v1407_v53 = vld [vmem:[#allocation5 + $0x2938] sm:$0xff]  ;;  %v14815_v1 = vcombine.low %v1370_v12, %v1382_v55  ;;  %v1490_v55 = vld [vmem:[#allocation5 + $0x2bd0] sm:$0xff] }
 0x61d   :  { %11221 = vmatprep.subr.bf16.mxu0 %v14696_v3  ;;  %11385 = vmatprep.subr.bf16.mxu1 %v14698_v38  ;;  %v14817_v3 = vcombine.low %v1371_v56, %v1383_v59  ;;  %v14840_v38 = vcombine.high %v1394_v34, %v1406_v63  ;;  %v14842_v7 = vcombine.high %v1395_v0, %v1407_v53  ;;  %v1502_v56 = vld [vmem:[#allocation5 + $0x2c30] sm:$0xff]  ;;  %v1491_v59 = vld [vmem:[#allocation5 + $0x2bd8] sm:$0xff] }
 0x61f   :  { %11213 = vmatmul.mubr.bf16.vlgmr.msra.gmra.mrb[20].mxu0 %v16174_v39  ;;  %11377 = vmatmul.mubr.bf16.vlgmr.msra.gmra.mrb[20].mxu1 %v16174_v39  ;;  %v14745_v39 = vcombine.low %v1299_v22, %v1311_v26  ;;  %v14839_v22 = vcombine.low %v1394_v34, %v1406_v63  ;;  %v1514_v63 = vld [vmem:[#allocation5 + $0x2c90] sm:$0xff] }
 0x620   :  { %11222 = vmatpush1.bf16.msra.mxu0 %v14695_v11  ;;  %11386 = vmatpush1.bf16.msra.mxu1 %v14697_v13 }
 0x621   :  { %11223 = vmatprep.subr.bf16.mxu0 %v14720_v16  ;;  %11387 = vmatprep.subr.bf16.mxu1 %v14722_v17  ;;  %v1419_v16 = vld [vmem:[#allocation5 + $0x2998] sm:$0xff] }
 0x622   :  { %11253 = vmatprep.mubr.bf16.mxu0 %v16178_v48  ;;  %11417 = vmatprep.mubr.bf16.mxu1 %v16178_v48  ;;  %v14794_v48 = vcombine.high %v1347_v50, %v1359_v51  ;;  %v1431_v17 = vld [vmem:[#allocation5 + $0x29f8] sm:$0xff]  ;;  %v1478_v50 = vld [vmem:[#allocation5 + $0x2b70] sm:$0xff] }
 0x623   :  { %v14866_v32 = vcombine.high %v1419_v16, %v1431_v17  ;;  %v1467_v51 = vld [vmem:[#allocation5 + $0x2b18] sm:$0xff] }
 0x624   :  { %11224 = vmatpush1.bf16.msra.mxu0 %v14719_v27  ;;  %11388 = vmatpush1.bf16.msra.mxu1 %v14721_v28  ;;  %v14841_v28 = vcombine.low %v1395_v0, %v1407_v53  ;;  %v1526_v0 = vld [vmem:[#allocation5 + $0x2cf0] sm:$0xff]  ;;  %v1515_v53 = vld [vmem:[#allocation5 + $0x2c98] sm:$0xff] }
 0x625   :  { %11225 = vmatprep.subr.bf16.mxu0 %v14744_v30  ;;  %11389 = vmatprep.subr.bf16.mxu1 %v14746_v31  ;;  %v14864_v30 = vcombine.high %v1418_v8, %v1430_v10 }
 0x628   :  { %11226 = vmatpush1.bf16.msra.mxu0 %v14743_v45  ;;  %11390 = vmatpush1.bf16.msra.mxu1 %v14745_v39  ;;  %v1455_v45 = vld [vmem:[#allocation5 + $0x2ab8] sm:$0xff]  ;;  %v14863_v39 = vcombine.low %v1418_v8, %v1430_v10  ;;  %v1538_v10 = vld [vmem:[#allocation5 + $0x2d50] sm:$0xff] }
 0x629   :  { %11227 = vmatprep.subr.bf16.mxu0 %v14768_v46  ;;  %11391 = vmatprep.subr.bf16.mxu1 %v14770_v47  ;;  %v14865_v46 = vcombine.low %v1419_v16, %v1431_v17  ;;  %v14888_v47 = vcombine.high %v1442_v36, %v1454_v41  ;;  %v14890_v24 = vcombine.high %v1443_v44, %v1455_v45  ;;  %v1550_v16 = vld [vmem:[#allocation5 + $0x2db0] sm:$0xff]  ;;  %v1630_v17 = vlaneseq }
 0x62c   :  { %11228 = vmatpush1.bf16.msra.mxu0 %v14767_v52  ;;  %11392 = vmatpush1.bf16.msra.mxu1 %v14769_v25  ;;  %v1479_v52 = vld [vmem:[#allocation5 + $0x2b78] sm:$0xff]  ;;  %v14887_v25 = vcombine.low %v1442_v36, %v1454_v41  ;;  %v16308_v36 = vshrl.u32 %v1630_v17, 7 }
 0x62d   :  { %11229 = vmatprep.subr.bf16.mxu0 %v14792_v54  ;;  %11393 = vmatprep.subr.bf16.mxu1 %v14794_v48  ;;  %v14889_v54 = vcombine.low %v1443_v44, %v1455_v45  ;;  %v14912_v48 = vcombine.high %v1466_v49, %v1478_v50  ;;  %v14914_v12 = vcombine.high %v1467_v51, %v1479_v52  ;;  %v1563_v41 = vld [vmem:[#allocation5 + $0x2e18] sm:$0xff] }
 0x62e   :  { %v1575_v44 = vld [vmem:[#allocation5 + $0x2e78] sm:$0xff]  ;;  %v14983_v45 = vcombine.low %v1538_v10, %v1550_v16 }
 0x630   :  { %11230 = vmatpush1.bf16.msra.mxu0 %v14791_v60  ;;  %11394 = vmatpush1.bf16.msra.mxu1 %v14793_v61  ;;  %v1503_v60 = vld [vmem:[#allocation5 + $0x2c38] sm:$0xff]  ;;  %v14911_v61 = vcombine.low %v1466_v49, %v1478_v50  ;;  %v1598_v49 = vld [vmem:[#allocation5 + $0x2f30] sm:$0xff]  ;;  %v16311_v50 = vsub.s32 1, %v16308_v36 }
 0x631   :  { %11231 = vmatprep.subr.bf16.mxu0 %v14816_v57  ;;  %11395 = vmatprep.subr.bf16.mxu1 %v14818_v62  ;;  %v14913_v57 = vcombine.low %v1467_v51, %v1479_v52  ;;  %v14936_v62 = vcombine.high %v1490_v55, %v1502_v56  ;;  %v14938_v34 = vcombine.high %v1491_v59, %v1503_v60  ;;  %v1587_v51 = vld [vmem:[#allocation5 + $0x2ed8] sm:$0xff] }
 0x632   :  { %v16300_v4 = vpop.f32.mrb[16].mxu0  ;;  %v16302_v11 = vpop.f32.mrb[16].mxu1  ;;  %v1599_v52 = vld [vmem:[#allocation5 + $0x2f38] sm:$0xff] }
 0x633   :  { %v16304_v13 = vpop.f32.mrb[17].mxu0  ;;  %v16306_v18 = vpop.f32.mrb[17].mxu1 }
 0x634   :  { %v10931_v21 = vpop.f32.mrb[18].mxu0  ;;  %11232 = vmatpush1.bf16.msra.mxu0 %v14815_v1  ;;  %v11095_v26 = vpop.f32.mrb[18].mxu1  ;;  %11396 = vmatpush1.bf16.msra.mxu1 %v14817_v3  ;;  %v1527_v1 = vld [vmem:[#allocation5 + $0x2cf8] sm:$0xff]  ;;  %v14935_v3 = vcombine.low %v1490_v55, %v1502_v56  ;;  %v15034_v56 = vcombine.high %v1587_v51, %v1599_v52 }
 0x635   :  { %v10932_v27 = vpop.f32.mrb[19].mxu0  ;;  %11233 = vmatprep.subr.bf16.mxu0 %v14840_v38  ;;  %v11096_v31 = vpop.f32.mrb[19].mxu1  ;;  %11397 = vmatprep.subr.bf16.mxu1 %v14842_v7  ;;  %v14937_v38 = vcombine.low %v1491_v59, %v1503_v60  ;;  %v14960_v7 = vcombine.high %v1514_v63, %v1526_v0  ;;  %v14962_v8 = vcombine.high %v1515_v53, %v1527_v1  ;;  %v1539_v21 = vld [vmem:[#allocation5 + $0x2d58] sm:$0xff]  ;;  %v1610_v59 = vld [vmem:[#allocation5 + $0x2f90] sm:$0xff] }
 0x636   :  { %v14959_v26 = vcombine.low %v1514_v63, %v1526_v0  ;;  %v14961_v27 = vcombine.low %v1515_v53, %v1527_v1  ;;  %v1562_v31 = vld [vmem:[#allocation5 + $0x2e10] sm:$0xff]  ;;  %v15033_v0 = vcombine.low %v1587_v51, %v1599_v52  ;;  %v15720_v51 = vld [vmem:[#allocation8 + $0x20] sm:$0xff]   ;;  %v16327_v52 = vsub.s32 0, %v16308_v36 }
 0x637   :  { %v1622_v60 = vld [vmem:[#allocation5 + $0x2ff0] sm:$0xff] }
 0x638   :  { %11234 = vmatpush1.bf16.msra.mxu0 %v14839_v22  ;;  %11398 = vmatpush1.bf16.msra.mxu1 %v14841_v28  ;;  %v1551_v22 = vld [vmem:[#allocation5 + $0x2db8] sm:$0xff]  ;;  %v14984_v28 = vcombine.high %v1538_v10, %v1550_v16  ;;  %v15056_v53 = vcombine.high %v1610_v59, %v1622_v60 }
 0x639   :  { %11235 = vmatprep.subr.bf16.mxu0 %v14864_v30  ;;  %11399 = vmatprep.subr.bf16.mxu1 %v14866_v32  ;;  %v14986_v30 = vcombine.high %v1539_v21, %v1551_v22  ;;  %v1574_v32 = vld [vmem:[#allocation5 + $0x2e70] sm:$0xff]  ;;  %v15702_v10 = vld [vmem:[#allocation8 + $0x40] sm:$0xff]  }
 0x63a   :  { %v15703_v16 = vld [vmem:[#allocation8 + $0xc0] sm:$0xff]  }
 0x63c   :  { %11236 = vmatpush1.bf16.msra.mxu0 %v14863_v39  ;;  %11400 = vmatpush1.bf16.msra.mxu1 %v14865_v46  ;;  %v14985_v39 = vcombine.low %v1539_v21, %v1551_v22  ;;  %v15008_v46 = vcombine.high %v1562_v31, %v1574_v32  ;;  %v15704_v22 = vld [vmem:[#allocation8] sm:$0xff]  }
 0x63d   :  { %11237 = vmatprep.subr.bf16.mxu0 %v14888_v47  ;;  %11401 = vmatprep.subr.bf16.mxu1 %v14890_v24  ;;  %v15010_v47 = vcombine.high %v1563_v41, %v1575_v44  ;;  %v1586_v24 = vld [vmem:[#allocation5 + $0x2ed0] sm:$0xff] }
 0x63e   :  { %v15032_v55 = vcombine.high %v1586_v24, %v1598_v49  ;;  %v15031_v63 = vcombine.low %v1586_v24, %v1598_v49  ;;  %v15718_v24 = vld [vmem:[#allocation8 + $0x60] sm:$0xff]  }
 0x63f   :  { %v15719_v49 = vld [vmem:[#allocation8 + $0xe0] sm:$0xff]  }
 0x640   :  { %11238 = vmatpush1.bf16.msra.mxu0 %v14887_v25  ;;  %11402 = vmatpush1.bf16.msra.mxu1 %v14889_v54  ;;  %v16313_v25 = vld [vmem:[#allocation7] sm:$0xff]  ;;  %v16316_v54 = vsub.s32 3, %v16308_v36 }
 0x641   :  { %11239 = vmatprep.subr.bf16.mxu0 %v14912_v48  ;;  %11403 = vmatprep.subr.bf16.mxu1 %v14914_v12  ;;  %v15007_v48 = vcombine.low %v1562_v31, %v1574_v32  ;;  %v15009_v12 = vcombine.low %v1563_v41, %v1575_v44  ;;  %v15709_v31 = vld [vmem:[#allocation8 + $0x88] sm:$0xff]   ;;  %v15710_v32 = vld [vmem:[#allocation8 + $0x50] sm:$0xff]  }
 0x642   :  { %v15711_v41 = vld [vmem:[#allocation8 + $0xd0] sm:$0xff]  }
 0x643   :  { %v15712_v44 = vld [vmem:[#allocation8 + $0x10] sm:$0xff]  }
 0x644   :  { %11240 = vmatpush1.bf16.msra.mxu0 %v14911_v61  ;;  %11404 = vmatpush1.bf16.msra.mxu1 %v14913_v57  ;;  %v1637_v61 = vrot.slane %v16313_v25, %v16311_v50  ;;  %v1611_v57 = vld [vmem:[#allocation5 + $0x2f98] sm:$0xff] }
 0x645   :  { %11241 = vmatprep.subr.bf16.mxu0 %v14936_v62  ;;  %11405 = vmatprep.subr.bf16.mxu1 %v14938_v34  ;;  %v1623_v62 = vld [vmem:[#allocation5 + $0x2ff8] sm:$0xff]  ;;  %v1645_v34 = vrot.slane %v16313_v25, %v16316_v54 }
 0x646   :  { %v15058_v1 = vcombine.high %v1611_v57, %v1623_v62 }
 0x648   :  { %11242 = vmatpush1.bf16.msra.mxu0 %v14935_v3  ;;  %11406 = vmatpush1.bf16.msra.mxu1 %v14937_v38  ;;  %v15517_v3 = vadd.f32 %v16208_v40, %v1637_v61  ;;  %v15519_v38 = vadd.f32 %v16210_v43, %v1645_v34  ;;  %v15707_v43 = vld [vmem:[#allocation8 + $0xc8] sm:$0xff]   ;;  %v15726_v34 = vld [vmem:[#allocation8 + $0x70] sm:$0xff]  }
 0x649   :  { %11243 = vmatprep.subr.bf16.mxu0 %v14960_v7  ;;  %11407 = vmatprep.subr.bf16.mxu1 %v14962_v8  ;;  %v15055_v7 = vcombine.low %v1610_v59, %v1622_v60  ;;  %v15057_v8 = vcombine.low %v1611_v57, %v1623_v62  ;;  %v16333_v59 = vsub.s32 5, %v16308_v36  ;;  %v16336_v60 = vsub.s32 7, %v16308_v36  ;;  %v15724_v61 = vld [vmem:[#allocation8 + $0x28] sm:$0xff]  }
 0x64a   :  { %v11427_v17 = vmax.f32 %v15517_v3, 0.0  ;;  %v11429_v21 = vmax.f32 %v15519_v38, 0.0  ;;  %v1633_v57 = vrot.slane %v16313_v25, %v16327_v52  ;;  %v15725_v62 = vld [vmem:[#allocation8 + $0xa8] sm:$0xff]   ;;  %v15728_v3 = vld [vmem:[#allocation8 + $0x30] sm:$0xff]  }
 0x64c   :  { %11244 = vmatpush1.bf16.msra.mxu0 %v14959_v26  ;;  %11408 = vmatpush1.bf16.msra.mxu1 %v14961_v27  ;;  %v15705_v26 = vld [vmem:[#allocation8 + $0x80] sm:$0xff]   ;;  %v15706_v27 = vld [vmem:[#allocation8 + $0x48] sm:$0xff]   ;;  %v11451_v40 = vpack.c.bf16 %v11427_v17, %v11427_v17  ;;  %v15516_v38 = vadd.f32 %v16204_v33, %v1633_v57 }
 0x64d   :  { %11245 = vmatprep.subr.bf16.mxu0 %v14984_v28  ;;  %11409 = vmatprep.subr.bf16.mxu1 %v14986_v30  ;;  %v11453_v28 = vpack.c.bf16 %v11429_v21, %v11429_v21  ;;  %v15708_v30 = vld [vmem:[#allocation8 + $0x8] sm:$0xff]   ;;  %v15751_v57 = vld [vmem:[#allocation8 + $0x1e0] sm:$0xff]  }
 0x650   :  { %11246 = vmatpush1.bf16.msra.mxu0 %v14983_v45  ;;  %11410 = vmatpush1.bf16.msra.mxu1 %v14985_v39  ;;  %v15713_v45 = vld [vmem:[#allocation8 + $0x90] sm:$0xff]   ;;  %v15714_v39 = vld [vmem:[#allocation8 + $0x58] sm:$0xff]  }
 0x651   :  { %11247 = vmatprep.subr.bf16.mxu0 %v15008_v46  ;;  %11411 = vmatprep.subr.bf16.mxu1 %v15010_v47  ;;  %v15715_v46 = vld [vmem:[#allocation8 + $0xd8] sm:$0xff]  }
 0x652   :  { %v15717_v47 = vld [vmem:[#allocation8 + $0x98] sm:$0xff]  }
 0x654   :  { %11248 = vmatpush1.bf16.msra.mxu0 %v15007_v48  ;;  %11412 = vmatpush1.bf16.msra.mxu1 %v15009_v12  ;;  %v15721_v48 = vld [vmem:[#allocation8 + $0xa0] sm:$0xff]   ;;  %v15722_v12 = vld [vmem:[#allocation8 + $0x68] sm:$0xff]  }
 0x655   :  { %11249 = vmatprep.subr.bf16.mxu0 %v15032_v55  ;;  %11413 = vmatprep.subr.bf16.mxu1 %v15034_v56  ;;  %v16330_v55 = vsub.s32 2, %v16308_v36  ;;  %v15723_v56 = vld [vmem:[#allocation8 + $0xe8] sm:$0xff]  }
 0x658   :  { %11250 = vmatpush1.bf16.msra.mxu0 %v15031_v63  ;;  %11414 = vmatpush1.bf16.msra.mxu1 %v15033_v0  ;;  %v1641_v63 = vrot.slane %v16313_v25, %v16330_v55  ;;  %v15727_v0 = vld [vmem:[#allocation8 + $0xf0] sm:$0xff]  }
 0x659   :  { %11251 = vmatprep.subr.bf16.mxu0 %v15056_v53  ;;  %11415 = vmatprep.subr.bf16.mxu1 %v15058_v1  ;;  %v1653_v53 = vrot.slane %v16313_v25, %v16333_v59  ;;  %v1661_v1 = vrot.slane %v16313_v25, %v16336_v60 }
 0x65b   :  { %v15521_v17 = vadd.f32 %v16232_v35, %v1653_v53  ;;  %v15523_v21 = vadd.f32 %v16234_v42, %v1661_v1  ;;  %v15737_v35 = vld [vmem:[#allocation8 + $0x180] sm:$0xff]   ;;  %v15738_v42 = vld [vmem:[#allocation8 + $0x148] sm:$0xff]   ;;  %v16354_v53 = vsub.s32 6, %v16308_v36 }
 0x65c   :  { %11252 = vmatpush1.bf16.msra.mxu0 %v15055_v7  ;;  %11416 = vmatpush1.bf16.msra.mxu1 %v15057_v8  ;;  %v15729_v7 = vld [vmem:[#allocation8 + $0xb0] sm:$0xff]   ;;  %v15730_v8 = vld [vmem:[#allocation8 + $0x78] sm:$0xff]   ;;  %v15755_v1 = vld [vmem:[#allocation8 + $0x1e8] sm:$0xff]  }
 0x65d   :  { %15252 = vmatprep.subr.bf16.mxu0 %v15702_v10  ;;  %15274 = vmatprep.subr.bf16.mxu1 %v15703_v16  ;;  %v15518_v10 = vadd.f32 %v16206_v37, %v1641_v63  ;;  %v15731_v16 = vld [vmem:[#allocation8 + $0xf8] sm:$0xff]   ;;  %v15736_v37 = vld [vmem:[#allocation8 + $0x100] sm:$0xff]  }
 0x65e   :  { %v15753_v63 = vld [vmem:[#allocation8 + $0x1a0] sm:$0xff]  }
 0x65f   :  { %11254 = vmatmul.mubr.bf16.vlgmr.msra.gmra.mrb[20].mxu0 %v16186_v58  ;;  %11418 = vmatmul.mubr.bf16.vlgmr.msra.gmra.mrb[20].mxu1 %v16186_v58  ;;  %v15716_v58 = vld [vmem:[#allocation8 + $0x18] sm:$0xff]   ;;  %v11428_v33 = vmax.f32 %v15518_v10, 0.0  ;;  %v15758_v10 = vld [vmem:[#allocation8 + $0x170] sm:$0xff]  }
 0x660   :  { %15253 = vmatpush3.bf16.msra.mxu0 %v15704_v22  ;;  %13049 = vmatprep.mubr.bf16.mxu0 %v11451_v40  ;;  %v15732_v22 = vld [vmem:[#allocation8 + $0x38] sm:$0xff]   ;;  %v15734_v40 = vld [vmem:[#allocation8 + $0x140] sm:$0xff]  }
 0x661   :  { %15275 = vmatpush3.bf16.msra.mxu1 %v15705_v26  ;;  %13089 = vmatprep.mubr.bf16.mxu1 %v11453_v28  ;;  %v11426_v26 = vmax.f32 %v15516_v38, 0.0  ;;  %v11431_v28 = vmax.f32 %v15521_v17, 0.0  ;;  %v15756_v38 = vld [vmem:[#allocation8 + $0x128] sm:$0xff]   ;;  %v15759_v17 = vld [vmem:[#allocation8 + $0x1f0] sm:$0xff]  }
 0x662   :  { %15254 = vmatprep.subr.bf16.mxu0 %v15706_v27  ;;  %15276 = vmatprep.subr.bf16.mxu1 %v15707_v43  ;;  %v15733_v27 = vld [vmem:[#allocation8 + $0xb8] sm:$0xff]   ;;  %v15735_v43 = vld [vmem:[#allocation8 + $0x1c0] sm:$0xff]  }
 0x664   :  { %15255 = vmatpush3.bf16.msra.mxu0 %v15708_v30  ;;  %v11433_v30 = vmax.f32 %v15523_v21, 0.0 }
 0x665   :  { %15277 = vmatpush3.bf16.msra.mxu1 %v15709_v31  ;;  %15256 = vmatprep.subr.bf16.mxu0 %v15710_v32  ;;  %v11450_v31 = vpack.c.bf16 %v11426_v26, %v11426_v26  ;;  %v11452_v32 = vpack.c.bf16 %v11428_v33, %v11428_v33 }
 0x666   :  { %15278 = vmatprep.subr.bf16.mxu1 %v15711_v41  ;;  %v11455_v41 = vpack.c.bf16 %v11431_v28, %v11431_v28 }
 0x668   :  { %15257 = vmatpush3.bf16.msra.mxu0 %v15712_v44  ;;  %v15739_v44 = vld [vmem:[#allocation8 + $0x1c8] sm:$0xff]  }
 0x669   :  { %15279 = vmatpush3.bf16.msra.mxu1 %v15713_v45  ;;  %15258 = vmatprep.subr.bf16.mxu0 %v15714_v39  ;;  %v11457_v45 = vpack.c.bf16 %v11433_v30, %v11433_v30  ;;  %v15740_v39 = vld [vmem:[#allocation8 + $0x108] sm:$0xff]   ;;  %v15764_v30 = vld [vmem:[#allocation8 + $0x138] sm:$0xff]  }
 0x66a   :  { %15280 = vmatprep.subr.bf16.mxu1 %v15715_v46  ;;  %v15741_v46 = vld [vmem:[#allocation8 + $0x188] sm:$0xff]  }
 0x66c   :  { %15259 = vmatpush3.bf16.msra.mxu0 %v15716_v58  ;;  %v15742_v58 = vld [vmem:[#allocation8 + $0x150] sm:$0xff]  }
 0x66d   :  { %15281 = vmatpush3.bf16.msra.mxu1 %v15717_v47  ;;  %15260 = vmatprep.subr.bf16.mxu0 %v15718_v24  ;;  %v15743_v47 = vld [vmem:[#allocation8 + $0x1d0] sm:$0xff]  }
 0x66e   :  { %15282 = vmatprep.subr.bf16.mxu1 %v15719_v49  ;;  %v15744_v24 = vld [vmem:[#allocation8 + $0x110] sm:$0xff]  }
 0x66f   :  { %v15745_v49 = vld [vmem:[#allocation8 + $0x190] sm:$0xff]  }
 0x670   :  { %15261 = vmatpush3.bf16.msra.mxu0 %v15720_v51  ;;  %v15746_v51 = vld [vmem:[#allocation8 + $0x158] sm:$0xff]  }
 0x671   :  { %15283 = vmatpush3.bf16.msra.mxu1 %v15721_v48  ;;  %15262 = vmatprep.subr.bf16.mxu0 %v15722_v12  ;;  %v15747_v48 = vld [vmem:[#allocation8 + $0x1d8] sm:$0xff]  }
 0x672   :  { %15284 = vmatprep.subr.bf16.mxu1 %v15723_v56  ;;  %v15748_v12 = vld [vmem:[#allocation8 + $0x118] sm:$0xff]  }
 0x673   :  { %v15749_v56 = vld [vmem:[#allocation8 + $0x198] sm:$0xff]  }
 0x674   :  { %15263 = vmatpush3.bf16.msra.mxu0 %v15724_v61  ;;  %v15750_v61 = vld [vmem:[#allocation8 + $0x160] sm:$0xff]  }
 0x675   :  { %15285 = vmatpush3.bf16.msra.mxu1 %v15725_v62  ;;  %15264 = vmatprep.subr.bf16.mxu0 %v15726_v34  ;;  %v15752_v62 = vld [vmem:[#allocation8 + $0x120] sm:$0xff]   ;;  %v16351_v34 = vsub.s32 4, %v16308_v36 }
 0x676   :  { %15286 = vmatprep.subr.bf16.mxu1 %v15727_v0  ;;  %v15754_v0 = vld [vmem:[#allocation8 + $0x168] sm:$0xff]  }
 0x678   :  { %15265 = vmatpush3.bf16.msra.mxu0 %v15728_v3  ;;  %v16356_v3 = vld [vmem:[#allocation7 + $0x8] sm:$0xff] }
 0x679   :  { %15287 = vmatpush3.bf16.msra.mxu1 %v15729_v7  ;;  %15266 = vmatprep.subr.bf16.mxu0 %v15730_v8  ;;  %v1649_v7 = vrot.slane %v16313_v25, %v16351_v34  ;;  %v15757_v8 = vld [vmem:[#allocation8 + $0x1a8] sm:$0xff]   ;;  %v1669_v36 = vrot.slane %v16356_v3, %v16311_v50  ;;  %v1677_v21 = vrot.slane %v16356_v3, %v16316_v54 }
 0x67a   :  { %15288 = vmatprep.subr.bf16.mxu1 %v15731_v16  ;;  %v1657_v16 = vrot.slane %v16313_v25, %v16354_v53  ;;  %v15763_v25 = vld [vmem:[#allocation8 + $0x1f8] sm:$0xff]  }
 0x67b   :  { %v15520_v26 = vadd.f32 %v16228_v29, %v1649_v7  ;;  %v15527_v28 = vadd.f32 %v16258_v23, %v1677_v21  ;;  %v15770_v23 = vld [vmem:[#allocation8 + $0x248] sm:$0xff]   ;;  %v1673_v21 = vrot.slane %v16356_v3, %v16330_v55 }
 0x67c   :  { %15267 = vmatpush3.bf16.msra.mxu0 %v15732_v22  ;;  %v15760_v22 = vld [vmem:[#allocation8 + $0x130] sm:$0xff]   ;;  %v15522_v33 = vadd.f32 %v16230_v15, %v1657_v16  ;;  %v15768_v15 = vld [vmem:[#allocation8 + $0x200] sm:$0xff]   ;;  %v15786_v7 = vld [vmem:[#allocation8 + $0x268] sm:$0xff]   ;;  %v1665_v16 = vrot.slane %v16356_v3, %v16327_v52 }
 0x67d   :  { %15289 = vmatpush3.bf16.msra.mxu1 %v15733_v27  ;;  %15296 = vmatprep.subr.bf16.mxu0 %v15734_v40  ;;  %v15761_v27 = vld [vmem:[#allocation8 + $0x1b0] sm:$0xff]   ;;  %v15762_v40 = vld [vmem:[#allocation8 + $0x178] sm:$0xff]  }
 0x67e   :  { %15318 = vmatprep.subr.bf16.mxu1 %v15735_v43  ;;  %v15525_v43 = vadd.f32 %v16256_v20, %v1669_v36  ;;  %v11432_v29 = vmax.f32 %v15522_v33, 0.0  ;;  %v15769_v20 = vld [vmem:[#allocation8 + $0x280] sm:$0xff]   ;;  %v15790_v36 = vld [vmem:[#allocation8 + $0x270] sm:$0xff]   ;;  %v15524_v33 = vadd.f32 %v16252_v14, %v1665_v16  ;;  %v1681_v16 = vrot.slane %v16356_v3, %v16351_v34 }
 0x67f   :  { %13050 = vmatmul.mubr.bf16.vlgmr.msra.gmra.mrb[24].mxu0 %v11450_v31  ;;  %v15765_v31 = vld [vmem:[#allocation8 + $0x1b8] sm:$0xff]  }
 0x680   :  { %13090 = vmatmul.mubr.bf16.vlgmr.msra.gmra.mrb[24].mxu1 %v11452_v32  ;;  %15297 = vmatpush3.bf16.msra.mxu0 %v15736_v37  ;;  %v11430_v37 = vmax.f32 %v15520_v26, 0.0  ;;  %v15767_v32 = vld [vmem:[#allocation8 + $0x2c0] sm:$0xff]   ;;  %v1685_v26 = vrot.slane %v16356_v3, %v16333_v59 }
 0x681   :  { %13129 = vmatprep.mubr.bf16.mxu0 %v11455_v41  ;;  %15319 = vmatpush3.bf16.msra.mxu1 %v15737_v35  ;;  %v15766_v35 = vld [vmem:[#allocation8 + $0x240] sm:$0xff]   ;;  %v11437_v41 = vmax.f32 %v15527_v28, 0.0  ;;  %v15526_v28 = vadd.f32 %v16254_v19, %v1673_v21  ;;  %v1689_v21 = vrot.slane %v16356_v3, %v16354_v53 }
 0x682   :  { %13169 = vmatprep.mubr.bf16.mxu1 %v11457_v45  ;;  %15298 = vmatprep.subr.bf16.mxu0 %v15738_v42  ;;  %v11435_v42 = vmax.f32 %v15525_v43, 0.0  ;;  %v11456_v45 = vpack.c.bf16 %v11432_v29, %v11432_v29  ;;  %v15794_v43 = vld [vmem:[#allocation8 + $0x278] sm:$0xff]   ;;  %v11434_v29 = vmax.f32 %v15524_v33, 0.0  ;;  %v15800_v19 = vld [vmem:[#allocation8 + $0x300] sm:$0xff]   ;;  %v15528_v33 = vadd.f32 %v16276_v2, %v1681_v16  ;;  %v15857_v16 = vld [vmem:[#allocation8 + $0x4b0] sm:$0xff]  }
 0x683   :  { %15320 = vmatprep.subr.bf16.mxu1 %v15739_v44  ;;  %v11454_v44 = vpack.c.bf16 %v11430_v37, %v11430_v37  ;;  %v15529_v37 = vadd.f32 %v16280_v6, %v1685_v26  ;;  %v11436_v14 = vmax.f32 %v15526_v28, 0.0  ;;  %v15801_v6 = vld [vmem:[#allocation8 + $0x380] sm:$0xff]   ;;  %v15530_v28 = vadd.f32 %v16278_v5, %v1689_v21  ;;  %v15860_v21 = vld [vmem:[#allocation8 + $0x438] sm:$0xff]  }
 0x684   :  { %15299 = vmatpush3.bf16.msra.mxu0 %v15740_v39  ;;  %v11459_v39 = vpack.c.bf16 %v11435_v42, %v11435_v42  ;;  %v15798_v42 = vld [vmem:[#allocation8 + $0x340] sm:$0xff]  }
 0x685   :  { %15321 = vmatpush3.bf16.msra.mxu1 %v15741_v46  ;;  %15300 = vmatprep.subr.bf16.mxu0 %v15742_v58  ;;  %v15771_v46 = vld [vmem:[#allocation8 + $0x2c8] sm:$0xff]   ;;  %v11461_v58 = vpack.c.bf16 %v11437_v41, %v11437_v41  ;;  %v15799_v41 = vld [vmem:[#allocation8 + $0x3c0] sm:$0xff]   ;;  %v11440_v2 = vmax.f32 %v15530_v28, 0.0 }
 0x686   :  { %15322 = vmatprep.subr.bf16.mxu1 %v15743_v47  ;;  %v15772_v47 = vld [vmem:[#allocation8 + $0x208] sm:$0xff]   ;;  %v15832_v5 = vld [vmem:[#allocation8 + $0x400] sm:$0xff]  }
 0x687   :  { %v15867_v28 = vld [vmem:[#allocation8 + $0x5c8] sm:$0xff]  }
 0x688   :  { %15301 = vmatpush3.bf16.msra.mxu0 %v15744_v24  ;;  %v15773_v24 = vld [vmem:[#allocation8 + $0x288] sm:$0xff]  }
 0x689   :  { %15323 = vmatpush3.bf16.msra.mxu1 %v15745_v49  ;;  %15302 = vmatprep.subr.bf16.mxu0 %v15746_v51  ;;  %v15774_v49 = vld [vmem:[#allocation8 + $0x250] sm:$0xff]  }
 0x68a   :  { %15324 = vmatprep.subr.bf16.mxu1 %v15747_v48  ;;  %v15775_v51 = vld [vmem:[#allocation8 + $0x2d0] sm:$0xff]  }
 0x68b   :  { %v15776_v48 = vld [vmem:[#allocation8 + $0x210] sm:$0xff]  }
 0x68c   :  { %15303 = vmatpush3.bf16.msra.mxu0 %v15748_v12  ;;  %v15777_v12 = vld [vmem:[#allocation8 + $0x290] sm:$0xff]  }
 0x68d   :  { %15325 = vmatpush3.bf16.msra.mxu1 %v15749_v56  ;;  %15304 = vmatprep.subr.bf16.mxu0 %v15750_v61  ;;  %v15778_v56 = vld [vmem:[#allocation8 + $0x258] sm:$0xff]  }
 0x68e   :  { %15326 = vmatprep.subr.bf16.mxu1 %v15751_v57  ;;  %v15779_v61 = vld [vmem:[#allocation8 + $0x2d8] sm:$0xff]  }
 0x68f   :  { %v15780_v57 = vld [vmem:[#allocation8 + $0x218] sm:$0xff]  }
 0x690   :  { %15305 = vmatpush3.bf16.msra.mxu0 %v15752_v62  ;;  %v15781_v62 = vld [vmem:[#allocation8 + $0x298] sm:$0xff]  }
 0x691   :  { %15327 = vmatpush3.bf16.msra.mxu1 %v15753_v63  ;;  %15306 = vmatprep.subr.bf16.mxu0 %v15754_v0  ;;  %v15782_v63 = vld [vmem:[#allocation8 + $0x260] sm:$0xff]  }
 0x692   :  { %15328 = vmatprep.subr.bf16.mxu1 %v15755_v1  ;;  %v15783_v0 = vld [vmem:[#allocation8 + $0x2e0] sm:$0xff]  }
 0x693   :  { %v15784_v1 = vld [vmem:[#allocation8 + $0x220] sm:$0xff]  }
 0x694   :  { %15307 = vmatpush3.bf16.msra.mxu0 %v15756_v38  ;;  %v15785_v38 = vld [vmem:[#allocation8 + $0x2a0] sm:$0xff]  }
 0x695   :  { %15329 = vmatpush3.bf16.msra.mxu1 %v15757_v8  ;;  %15308 = vmatprep.subr.bf16.mxu0 %v15758_v10  ;;  %v15787_v8 = vld [vmem:[#allocation8 + $0x2e8] sm:$0xff]  }
 0x696   :  { %15330 = vmatprep.subr.bf16.mxu1 %v15759_v17  ;;  %v15788_v10 = vld [vmem:[#allocation8 + $0x228] sm:$0xff]  }
 0x697   :  { %v15789_v17 = vld [vmem:[#allocation8 + $0x2a8] sm:$0xff]  }
 0x698   :  { %15309 = vmatpush3.bf16.msra.mxu0 %v15760_v22  ;;  %v15791_v22 = vld [vmem:[#allocation8 + $0x2f0] sm:$0xff]  }
 0x699   :  { %15331 = vmatpush3.bf16.msra.mxu1 %v15761_v27  ;;  %15310 = vmatprep.subr.bf16.mxu0 %v15762_v40  ;;  %v1693_v27 = vrot.slane %v16356_v3, %v16336_v60  ;;  %v15792_v40 = vld [vmem:[#allocation8 + $0x230] sm:$0xff]   ;;  %v15827_v3 = vld [vmem:[#allocation8 + $0x3f8] sm:$0xff]  }
 0x69a   :  { %15332 = vmatprep.subr.bf16.mxu1 %v15763_v25  ;;  %v15793_v25 = vld [vmem:[#allocation8 + $0x2b0] sm:$0xff]  }
 0x69c   :  { %15311 = vmatpush3.bf16.msra.mxu0 %v15764_v30  ;;  %v15795_v30 = vld [vmem:[#allocation8 + $0x2f8] sm:$0xff]  }
 0x69d   :  { %15333 = vmatpush3.bf16.msra.mxu1 %v15765_v31  ;;  %15340 = vmatprep.subr.bf16.mxu0 %v15766_v35  ;;  %v15531_v31 = vadd.f32 %v16282_v9, %v1693_v27  ;;  %v15796_v35 = vld [vmem:[#allocation8 + $0x238] sm:$0xff]   ;;  %v15802_v9 = vld [vmem:[#allocation8 + $0x348] sm:$0xff]  }
 0x69e   :  { %15362 = vmatprep.subr.bf16.mxu1 %v15767_v32  ;;  %v15797_v32 = vld [vmem:[#allocation8 + $0x2b8] sm:$0xff]  }
 0x69f   :  { %13130 = vmatmul.mubr.bf16.vlgmr.msra.gmra.mrb[28].mxu0 %v11454_v44  ;;  %v11441_v44 = vmax.f32 %v15531_v31, 0.0  ;;  %v11438_v31 = vmax.f32 %v15528_v33, 0.0 }
 0x6a0   :  { %13170 = vmatmul.mubr.bf16.vlgmr.msra.gmra.mrb[28].mxu1 %v11456_v45  ;;  %15341 = vmatpush3.bf16.msra.mxu0 %v15768_v15  ;;  %v11439_v15 = vmax.f32 %v15529_v37, 0.0  ;;  %v11460_v45 = vpack.c.bf16 %v11436_v14, %v11436_v14 }
 0x6a1   :  { %13209 = vmatprep.mubr.bf16.mxu0 %v11459_v39  ;;  %15363 = vmatpush3.bf16.msra.mxu1 %v15769_v20  ;;  %v11458_v20 = vpack.c.bf16 %v11434_v29, %v11434_v29  ;;  %v15803_v39 = vld [vmem:[#allocation8 + $0x3c8] sm:$0xff]   ;;  %v15831_v29 = vld [vmem:[#allocation8 + $0x4c0] sm:$0xff]   ;;  %v11462_v14 = vpack.c.bf16 %v11438_v31, %v11438_v31  ;;  %v15872_v31 = vld [vmem:[#allocation8 + $0x510] sm:$0xff]  }
 0x6a2   :  { %13249 = vmatprep.mubr.bf16.mxu1 %v11461_v58  ;;  %15342 = vmatprep.subr.bf16.mxu0 %v15770_v23  ;;  %v11463_v23 = vpack.c.bf16 %v11439_v15, %v11439_v15  ;;  %v15804_v58 = vld [vmem:[#allocation8 + $0x308] sm:$0xff]  }
 0x6a3   :  { %15364 = vmatprep.subr.bf16.mxu1 %v15771_v46  ;;  %v11465_v46 = vpack.c.bf16 %v11441_v44, %v11441_v44  ;;  %v15835_v44 = vld [vmem:[#allocation8 + $0x4c8] sm:$0xff]  }
 0x6a4   :  { %15343 = vmatpush3.bf16.msra.mxu0 %v15772_v47  ;;  %v15805_v47 = vld [vmem:[#allocation8 + $0x388] sm:$0xff]  }
 0x6a5   :  { %15365 = vmatpush3.bf16.msra.mxu1 %v15773_v24  ;;  %15344 = vmatprep.subr.bf16.mxu0 %v15774_v49  ;;  %v15806_v24 = vld [vmem:[#allocation8 + $0x350] sm:$0xff]  }
 0x6a6   :  { %15366 = vmatprep.subr.bf16.mxu1 %v15775_v51  ;;  %v15807_v49 = vld [vmem:[#allocation8 + $0x3d0] sm:$0xff]  }
 0x6a7   :  { %v15808_v51 = vld [vmem:[#allocation8 + $0x310] sm:$0xff]  }
 0x6a8   :  { %15345 = vmatpush3.bf16.msra.mxu0 %v15776_v48  ;;  %v15809_v48 = vld [vmem:[#allocation8 + $0x390] sm:$0xff]  }
 0x6a9   :  { %15367 = vmatpush3.bf16.msra.mxu1 %v15777_v12  ;;  %15346 = vmatprep.subr.bf16.mxu0 %v15778_v56  ;;  %v15810_v12 = vld [vmem:[#allocation8 + $0x358] sm:$0xff]  }
 0x6aa   :  { %15368 = vmatprep.subr.bf16.mxu1 %v15779_v61  ;;  %v15811_v56 = vld [vmem:[#allocation8 + $0x3d8] sm:$0xff]  }
 0x6ab   :  { %v15812_v61 = vld [vmem:[#allocation8 + $0x318] sm:$0xff]  }
 0x6ac   :  { %15347 = vmatpush3.bf16.msra.mxu0 %v15780_v57  ;;  %v15813_v57 = vld [vmem:[#allocation8 + $0x398] sm:$0xff]  }
 0x6ad   :  { %15369 = vmatpush3.bf16.msra.mxu1 %v15781_v62  ;;  %15348 = vmatprep.subr.bf16.mxu0 %v15782_v63  ;;  %v15814_v62 = vld [vmem:[#allocation8 + $0x360] sm:$0xff]  }
 0x6ae   :  { %15370 = vmatprep.subr.bf16.mxu1 %v15783_v0  ;;  %v15815_v63 = vld [vmem:[#allocation8 + $0x3e0] sm:$0xff]  }
 0x6af   :  { %v15816_v0 = vld [vmem:[#allocation8 + $0x320] sm:$0xff]  }
 0x6b0   :  { %15349 = vmatpush3.bf16.msra.mxu0 %v15784_v1  ;;  %v15817_v1 = vld [vmem:[#allocation8 + $0x3a0] sm:$0xff]  }
 0x6b1   :  { %15371 = vmatpush3.bf16.msra.mxu1 %v15785_v38  ;;  %15350 = vmatprep.subr.bf16.mxu0 %v15786_v7  ;;  %v15818_v38 = vld [vmem:[#allocation8 + $0x368] sm:$0xff]  }
 0x6b2   :  { %15372 = vmatprep.subr.bf16.mxu1 %v15787_v8  ;;  %v15819_v7 = vld [vmem:[#allocation8 + $0x3e8] sm:$0xff]   ;;  %v16382_v8 = vld [vmem:[#allocation7 + $0x10] sm:$0xff] }
 0x6b3   :  { %v1701_v26 = vrot.slane %v16382_v8, %v16311_v50  ;;  %v1709_v27 = vrot.slane %v16382_v8, %v16316_v54  ;;  %v15828_v50 = vld [vmem:[#allocation8 + $0x338] sm:$0xff]  }
 0x6b4   :  { %15351 = vmatpush3.bf16.msra.mxu0 %v15788_v10  ;;  %v15820_v10 = vld [vmem:[#allocation8 + $0x328] sm:$0xff]   ;;  %v15829_v54 = vld [vmem:[#allocation8 + $0x3b8] sm:$0xff]  }
 0x6b5   :  { %15373 = vmatpush3.bf16.msra.mxu1 %v15789_v17  ;;  %15352 = vmatprep.subr.bf16.mxu0 %v15790_v36  ;;  %v15821_v17 = vld [vmem:[#allocation8 + $0x3a8] sm:$0xff]   ;;  %v15822_v36 = vld [vmem:[#allocation8 + $0x370] sm:$0xff]   ;;  %v15535_v37 = vadd.f32 %v16306_v18, %v1709_v27 }
 0x6b6   :  { %15374 = vmatprep.subr.bf16.mxu1 %v15791_v22  ;;  %v15823_v22 = vld [vmem:[#allocation8 + $0x3f0] sm:$0xff]   ;;  %v15834_v18 = vld [vmem:[#allocation8 + $0x448] sm:$0xff]  }
 0x6b8   :  { %15353 = vmatpush3.bf16.msra.mxu0 %v15792_v40  ;;  %v15824_v40 = vld [vmem:[#allocation8 + $0x330] sm:$0xff]  }
 0x6b9   :  { %15375 = vmatpush3.bf16.msra.mxu1 %v15793_v25  ;;  %15354 = vmatprep.subr.bf16.mxu0 %v15794_v43  ;;  %v15825_v25 = vld [vmem:[#allocation8 + $0x3b0] sm:$0xff]   ;;  %v15826_v43 = vld [vmem:[#allocation8 + $0x378] sm:$0xff]  }
 0x6ba   :  { %15376 = vmatprep.subr.bf16.mxu1 %v15795_v30  ;;  %v15533_v30 = vadd.f32 %v16304_v13, %v1701_v26  ;;  %v15833_v13 = vld [vmem:[#allocation8 + $0x480] sm:$0xff]  }
 0x6bb   :  { %v15862_v26 = vld [vmem:[#allocation8 + $0x540] sm:$0xff]  }
 0x6bc   :  { %15355 = vmatpush3.bf16.msra.mxu0 %v15796_v35  ;;  %v15830_v35 = vld [vmem:[#allocation8 + $0x440] sm:$0xff]  }
 0x6bd   :  { %15377 = vmatpush3.bf16.msra.mxu1 %v15797_v32  ;;  %15384 = vmatprep.subr.bf16.mxu0 %v15798_v42  ;;  %v11443_v32 = vmax.f32 %v15533_v30, 0.0  ;;  %v11445_v42 = vmax.f32 %v15535_v37, 0.0  ;;  %v15869_v30 = vld [vmem:[#allocation8 + $0x588] sm:$0xff]   ;;  %v15870_v37 = vld [vmem:[#allocation8 + $0x550] sm:$0xff]  }
 0x6be   :  { %15406 = vmatprep.subr.bf16.mxu1 %v15799_v41  ;;  %v11464_v41 = vpack.c.bf16 %v11440_v2, %v11440_v2  ;;  %v15875_v2 = vld [vmem:[#allocation8 + $0x5d8] sm:$0xff]  }
 0x6bf   :  { %13210 = vmatmul.mubr.bf16.vlgmr.msra.gmra.mrb[32].mxu0 %v11458_v20  ;;  %v11467_v15 = vpack.c.bf16 %v11443_v32, %v11443_v32  ;;  %v15836_v20 = vld [vmem:[#allocation8 + $0x408] sm:$0xff]   ;;  %v15877_v32 = vld [vmem:[#allocation8 + $0x598] sm:$0xff]  }
 0x6c0   :  { %13250 = vmatmul.mubr.bf16.vlgmr.msra.gmra.mrb[32].mxu1 %v11460_v45  ;;  %15385 = vmatpush3.bf16.msra.mxu0 %v15800_v19  ;;  %v11469_v19 = vpack.c.bf16 %v11445_v42, %v11445_v42  ;;  %v15838_v45 = vld [vmem:[#allocation8 + $0x450] sm:$0xff]   ;;  %v15878_v42 = vld [vmem:[#allocation8 + $0x560] sm:$0xff]  }
 0x6c1   :  { %13289 = vmatprep.mubr.bf16.mxu0 %v11463_v23  ;;  %15407 = vmatpush3.bf16.msra.mxu1 %v15801_v6  ;;  %v15837_v6 = vld [vmem:[#allocation8 + $0x488] sm:$0xff]   ;;  %v15840_v23 = vld [vmem:[#allocation8 + $0x410] sm:$0xff]  }
 0x6c2   :  { %13329 = vmatprep.mubr.bf16.mxu1 %v11465_v46  ;;  %15386 = vmatprep.subr.bf16.mxu0 %v15802_v9  ;;  %v15839_v9 = vld [vmem:[#allocation8 + $0x4d0] sm:$0xff]   ;;  %v15842_v46 = vld [vmem:[#allocation8 + $0x458] sm:$0xff]  }
 0x6c3   :  { %15408 = vmatprep.subr.bf16.mxu1 %v15803_v39  ;;  %v15841_v39 = vld [vmem:[#allocation8 + $0x490] sm:$0xff]  }
 0x6c4   :  { %15387 = vmatpush3.bf16.msra.mxu0 %v15804_v58  ;;  %v15843_v58 = vld [vmem:[#allocation8 + $0x4d8] sm:$0xff]  }
 0x6c5   :  { %15409 = vmatpush3.bf16.msra.mxu1 %v15805_v47  ;;  %15388 = vmatprep.subr.bf16.mxu0 %v15806_v24  ;;  %v15844_v47 = vld [vmem:[#allocation8 + $0x418] sm:$0xff]  }
 0x6c6   :  { %15410 = vmatprep.subr.bf16.mxu1 %v15807_v49  ;;  %v15845_v24 = vld [vmem:[#allocation8 + $0x498] sm:$0xff]   ;;  %v15846_v49 = vld [vmem:[#allocation8 + $0x460] sm:$0xff]  }
 0x6c8   :  { %15389 = vmatpush3.bf16.msra.mxu0 %v15808_v51  ;;  %v15847_v51 = vld [vmem:[#allocation8 + $0x4e0] sm:$0xff]  }
 0x6c9   :  { %15411 = vmatpush3.bf16.msra.mxu1 %v15809_v48  ;;  %15390 = vmatprep.subr.bf16.mxu0 %v15810_v12  ;;  %v15848_v48 = vld [vmem:[#allocation8 + $0x420] sm:$0xff]  }
 0x6ca   :  { %15412 = vmatprep.subr.bf16.mxu1 %v15811_v56  ;;  %v15849_v12 = vld [vmem:[#allocation8 + $0x4a0] sm:$0xff]   ;;  %v15850_v56 = vld [vmem:[#allocation8 + $0x468] sm:$0xff]  }
 0x6cc   :  { %15391 = vmatpush3.bf16.msra.mxu0 %v15812_v61  ;;  %v15851_v61 = vld [vmem:[#allocation8 + $0x4e8] sm:$0xff]  }
 0x6cd   :  { %15413 = vmatpush3.bf16.msra.mxu1 %v15813_v57  ;;  %15392 = vmatprep.subr.bf16.mxu0 %v15814_v62  ;;  %v15852_v57 = vld [vmem:[#allocation8 + $0x428] sm:$0xff]   ;;  %v1697_v62 = vrot.slane %v16382_v8, %v16327_v52  ;;  %v15859_v52 = vld [vmem:[#allocation8 + $0x4f8] sm:$0xff]  }
 0x6ce   :  { %15414 = vmatprep.subr.bf16.mxu1 %v15815_v63  ;;  %v15853_v63 = vld [vmem:[#allocation8 + $0x4a8] sm:$0xff]  }
 0x6d0   :  { %15393 = vmatpush3.bf16.msra.mxu0 %v15816_v0  ;;  %v15854_v0 = vld [vmem:[#allocation8 + $0x470] sm:$0xff]  }
 0x6d1   :  { %15415 = vmatpush3.bf16.msra.mxu1 %v15817_v1  ;;  %15394 = vmatprep.subr.bf16.mxu0 %v15818_v38  ;;  %v1705_v1 = vrot.slane %v16382_v8, %v16330_v55  ;;  %v15855_v38 = vld [vmem:[#allocation8 + $0x4f0] sm:$0xff]   ;;  %v15861_v55 = vld [vmem:[#allocation8 + $0x4b8] sm:$0xff]  }
 0x6d2   :  { %15416 = vmatprep.subr.bf16.mxu1 %v15819_v7  ;;  %v15856_v7 = vld [vmem:[#allocation8 + $0x430] sm:$0xff]  }
 0x6d4   :  { %15395 = vmatpush3.bf16.msra.mxu0 %v15820_v10  ;;  %v15532_v10 = vadd.f32 %v16300_v4, %v1697_v62  ;;  %v15864_v4 = vld [vmem:[#allocation8 + $0x500] sm:$0xff]  }
 0x6d5   :  { %15417 = vmatpush3.bf16.msra.mxu1 %v15821_v17  ;;  %15396 = vmatprep.subr.bf16.mxu0 %v15822_v36  ;;  %v15858_v17 = vld [vmem:[#allocation8 + $0x478] sm:$0xff]   ;;  %v15534_v36 = vadd.f32 %v16302_v11, %v1705_v1 }
 0x6d6   :  { %15418 = vmatprep.subr.bf16.mxu1 %v15823_v22  ;;  %v11442_v22 = vmax.f32 %v15532_v10, 0.0 }
 0x6d7   :  { %v11444_v27 = vmax.f32 %v15534_v36, 0.0 }
 0x6d8   :  { %15397 = vmatpush3.bf16.msra.mxu0 %v15824_v40  ;;  %v15863_v40 = vld [vmem:[#allocation8 + $0x5c0] sm:$0xff]   ;;  %v11466_v33 = vpack.c.bf16 %v11442_v22, %v11442_v22 }
 0x6d9   :  { %15419 = vmatpush3.bf16.msra.mxu1 %v15825_v25  ;;  %15398 = vmatprep.subr.bf16.mxu0 %v15826_v43  ;;  %v15865_v25 = vld [vmem:[#allocation8 + $0x580] sm:$0xff]   ;;  %v15866_v43 = vld [vmem:[#allocation8 + $0x548] sm:$0xff]   ;;  %v11468_v11 = vpack.c.bf16 %v11444_v27, %v11444_v27 }
 0x6da   :  { %15420 = vmatprep.subr.bf16.mxu1 %v15827_v3  ;;  %v15868_v3 = vld [vmem:[#allocation8 + $0x508] sm:$0xff]  }
 0x6dc   :  { %15399 = vmatpush3.bf16.msra.mxu0 %v15828_v50  ;;  %v15871_v50 = vld [vmem:[#allocation8 + $0x5d0] sm:$0xff]  }
 0x6dd   :  { %15421 = vmatpush3.bf16.msra.mxu1 %v15829_v54  ;;  %15428 = vmatprep.subr.bf16.mxu0 %v15830_v35  ;;  %v15873_v54 = vld [vmem:[#allocation8 + $0x590] sm:$0xff]   ;;  %v15874_v35 = vld [vmem:[#allocation8 + $0x558] sm:$0xff]  }
 0x6de   :  { %15450 = vmatprep.subr.bf16.mxu1 %v15831_v29  ;;  %v15876_v29 = vld [vmem:[#allocation8 + $0x518] sm:$0xff]  }
 0x6df   :  { %13290 = vmatmul.mubr.bf16.vlgmr.msra.gmra.mrb[36].mxu0 %v11462_v14  ;;  %v15880_v14 = vld [vmem:[#allocation8 + $0x520] sm:$0xff]  }
 0x6e0   :  { %13330 = vmatmul.mubr.bf16.vlgmr.msra.gmra.mrb[36].mxu1 %v11464_v41  ;;  %15429 = vmatpush3.bf16.msra.mxu0 %v15832_v5  ;;  %v15879_v5 = vld [vmem:[#allocation8 + $0x5e0] sm:$0xff]   ;;  %v15882_v41 = vld [vmem:[#allocation8 + $0x568] sm:$0xff]  }
 0x6e1   :  { %13369 = vmatprep.mubr.bf16.mxu0 %v11467_v15  ;;  %15451 = vmatpush3.bf16.msra.mxu1 %v15833_v13  ;;  %v15881_v13 = vld [vmem:[#allocation8 + $0x5a0] sm:$0xff]   ;;  %v15884_v15 = vld [vmem:[#allocation8 + $0x528] sm:$0xff]  }
 0x6e2   :  { %13409 = vmatprep.mubr.bf16.mxu1 %v11469_v19  ;;  %15430 = vmatprep.subr.bf16.mxu0 %v15834_v18  ;;  %v15883_v18 = vld [vmem:[#allocation8 + $0x5e8] sm:$0xff]   ;;  %v15886_v19 = vld [vmem:[#allocation8 + $0x570] sm:$0xff]  }
 0x6e3   :  { %15452 = vmatprep.subr.bf16.mxu1 %v15835_v44  ;;  %v15885_v44 = vld [vmem:[#allocation8 + $0x5a8] sm:$0xff]  }
 0x6e4   :  { %15431 = vmatpush3.bf16.msra.mxu0 %v15836_v20  ;;  %v15887_v20 = vld [vmem:[#allocation8 + $0x5f0] sm:$0xff]  }
 0x6e5   :  { %15453 = vmatpush3.bf16.msra.mxu1 %v15837_v6  ;;  %15432 = vmatprep.subr.bf16.mxu0 %v15838_v45  ;;  %v15888_v6 = vld [vmem:[#allocation8 + $0x530] sm:$0xff]  }
 0x6e6   :  { %15454 = vmatprep.subr.bf16.mxu1 %v15839_v9  ;;  %v15889_v45 = vld [vmem:[#allocation8 + $0x5b0] sm:$0xff]   ;;  %v15890_v9 = vld [vmem:[#allocation8 + $0x578] sm:$0xff]  }
 0x6e8   :  { %15433 = vmatpush3.bf16.msra.mxu0 %v15840_v23  ;;  %v15891_v23 = vld [vmem:[#allocation8 + $0x5f8] sm:$0xff]  }
 0x6e9   :  { %15455 = vmatpush3.bf16.msra.mxu1 %v15841_v39  ;;  %15434 = vmatprep.subr.bf16.mxu0 %v15842_v46  ;;  %v15892_v39 = vld [vmem:[#allocation8 + $0x538] sm:$0xff]  }
 0x6ea   :  { %15456 = vmatprep.subr.bf16.mxu1 %v15843_v58  ;;  %v15893_v46 = vld [vmem:[#allocation8 + $0x5b8] sm:$0xff]   ;;  %v1713_v58 = vrot.slane %v16382_v8, %v16351_v34 }
 0x6ec   :  { %15435 = vmatpush3.bf16.msra.mxu0 %v15844_v47  ;;  %v1721_v47 = vrot.slane %v16382_v8, %v16354_v53 }
 0x6ed   :  { %15457 = vmatpush3.bf16.msra.mxu1 %v15845_v24  ;;  %15436 = vmatprep.subr.bf16.mxu0 %v15846_v49  ;;  %v1717_v24 = vrot.slane %v16382_v8, %v16333_v59  ;;  %v1725_v49 = vrot.slane %v16382_v8, %v16336_v60 }
 0x6ee   :  { %15458 = vmatprep.subr.bf16.mxu1 %v15847_v51 }
 0x6f0   :  { %15437 = vmatpush3.bf16.msra.mxu0 %v15848_v48 }
 0x6f1   :  { %15459 = vmatpush3.bf16.msra.mxu1 %v15849_v12  ;;  %15438 = vmatprep.subr.bf16.mxu0 %v15850_v56 }
 0x6f2   :  { %15460 = vmatprep.subr.bf16.mxu1 %v15851_v61 }
 0x6f4   :  { %15439 = vmatpush3.bf16.msra.mxu0 %v15852_v57 }
 0x6f5   :  { %15461 = vmatpush3.bf16.msra.mxu1 %v15853_v63  ;;  %15440 = vmatprep.subr.bf16.mxu0 %v15854_v0 }
 0x6f6   :  { %15462 = vmatprep.subr.bf16.mxu1 %v15855_v38 }
 0x6f8   :  { %15441 = vmatpush3.bf16.msra.mxu0 %v15856_v7 }
 0x6f9   :  { %15463 = vmatpush3.bf16.msra.mxu1 %v15857_v16  ;;  %15442 = vmatprep.subr.bf16.mxu0 %v15858_v17 }
 0x6fa   :  { %15464 = vmatprep.subr.bf16.mxu1 %v15859_v52 }
 0x6fc   :  { %15443 = vmatpush3.bf16.msra.mxu0 %v15860_v21  ;;  %v15059_v21 = vld [vmem:[#allocation10] ss:$0 sm:$0xff] }
 0x6fd   :  { %15465 = vmatpush3.bf16.msra.mxu1 %v15861_v55  ;;  %15472 = vmatprep.subr.bf16.mxu0 %v15862_v26 }
 0x6fe   :  { %15494 = vmatprep.subr.bf16.mxu1 %v15863_v40 }
 0x6ff   :  { %13370 = vmatmul.mubr.bf16.vlgmr.msra.gmra.mrb[40].mxu0 %v11466_v33 }
 0x700   :  { %13410 = vmatmul.mubr.bf16.vlgmr.msra.gmra.mrb[40].mxu1 %v11468_v11  ;;  %15473 = vmatpush3.bf16.msra.mxu0 %v15864_v4 }
 0x701   :  { %15495 = vmatpush3.bf16.msra.mxu1 %v15865_v25  ;;  %15474 = vmatprep.subr.bf16.mxu0 %v15866_v43 }
 0x702   :  { %15496 = vmatprep.subr.bf16.mxu1 %v15867_v28 }
 0x704   :  { %15475 = vmatpush3.bf16.msra.mxu0 %v15868_v3 }
 0x705   :  { %15497 = vmatpush3.bf16.msra.mxu1 %v15869_v30  ;;  %15476 = vmatprep.subr.bf16.mxu0 %v15870_v37 }
 0x706   :  { %15498 = vmatprep.subr.bf16.mxu1 %v15871_v50 }
 0x708   :  { %15477 = vmatpush3.bf16.msra.mxu0 %v15872_v31 }
 0x709   :  { %15499 = vmatpush3.bf16.msra.mxu1 %v15873_v54  ;;  %15478 = vmatprep.subr.bf16.mxu0 %v15874_v35 }
 0x70a   :  { %15500 = vmatprep.subr.bf16.mxu1 %v15875_v2 }
 0x70c   :  { %15479 = vmatpush3.bf16.msra.mxu0 %v15876_v29 }
 0x70d   :  { %15501 = vmatpush3.bf16.msra.mxu1 %v15877_v32  ;;  %15480 = vmatprep.subr.bf16.mxu0 %v15878_v42 }
 0x70e   :  { %15502 = vmatprep.subr.bf16.mxu1 %v15879_v5 }
 0x710   :  { %15481 = vmatpush3.bf16.msra.mxu0 %v15880_v14 }
 0x711   :  { %15503 = vmatpush3.bf16.msra.mxu1 %v15881_v13  ;;  %15482 = vmatprep.subr.bf16.mxu0 %v15882_v41 }
 0x712   :  { %15504 = vmatprep.subr.bf16.mxu1 %v15883_v18 }
 0x714   :  { %15483 = vmatpush3.bf16.msra.mxu0 %v15884_v15 }
 0x715   :  { %15505 = vmatpush3.bf16.msra.mxu1 %v15885_v44  ;;  %15484 = vmatprep.subr.bf16.mxu0 %v15886_v19 }
 0x716   :  { %15506 = vmatprep.subr.bf16.mxu1 %v15887_v20 }
 0x718   :  { %15485 = vmatpush3.bf16.msra.mxu0 %v15888_v6 }
 0x719   :  { %15507 = vmatpush3.bf16.msra.mxu1 %v15889_v45  ;;  %15486 = vmatprep.subr.bf16.mxu0 %v15890_v9 }
 0x71a   :  { %15508 = vmatprep.subr.bf16.mxu1 %v15891_v23 }
 0x71c   :  { %15487 = vmatpush3.bf16.msra.mxu0 %v15892_v39 }
 0x71d   :  { %15509 = vmatpush3.bf16.msra.mxu1 %v15893_v46 }
 0x732   :  { %v11255_v51 = vpop.f32.mrb[20].mxu0  ;;  %v11419_v12 = vpop.f32.mrb[20].mxu1 }
 0x733   :  { %v15536_v48 = vadd.f32 %v11255_v51, %v1713_v58  ;;  %v11257_v56 = vpop.f32.mrb[21].mxu0  ;;  %v15538_v61 = vadd.f32 %v11419_v12, %v1721_v47  ;;  %v11421_v62 = vpop.f32.mrb[21].mxu1 }
 0x734   :  { %v15537_v57 = vadd.f32 %v11257_v56, %v1717_v24  ;;  %v11259_v63 = vpop.f32.mrb[22].mxu0  ;;  %v15539_v1 = vadd.f32 %v11421_v62, %v1725_v49  ;;  %v11423_v34 = vpop.f32.mrb[22].mxu1 }
 0x735   :  { %v11446_v0 = vmax.f32 %v15536_v48, 0.0  ;;  %v11260_v38 = vpop.f32.mrb[23].mxu0  ;;  %v11448_v7 = vmax.f32 %v15538_v61, 0.0  ;;  %v11424_v10 = vpop.f32.mrb[23].mxu1 }
 0x736   :  { %v11447_v53 = vmax.f32 %v15537_v57, 0.0  ;;  %v11449_v16 = vmax.f32 %v15539_v1, 0.0 }
 0x737   :  { %v11470_v17 = vpack.c.bf16 %v11446_v0, %v11446_v0  ;;  %v11472_v60 = vpack.c.bf16 %v11448_v7, %v11448_v7 }
 0x738   :  { %v11471_v59 = vpack.c.bf16 %v11447_v53, %v11447_v53  ;;  %v11473_v36 = vpack.c.bf16 %v11449_v16, %v11449_v16 }
 0x73a   :  { %13449 = vmatprep.mubr.bf16.mxu0 %v11471_v59  ;;  %13489 = vmatprep.mubr.bf16.mxu1 %v11473_v36 }
 0x73b   :  { %13450 = vmatmul.mubr.bf16.vlgmr.msra.gmra.mrb[44].mxu0 %v11470_v17  ;;  %13490 = vmatmul.mubr.bf16.vlgmr.msra.gmra.mrb[44].mxu1 %v11472_v60 }
 0x752   :  { %v15268_v8 = vpop.f32.mrb[24].mxu0 }
 0x753   :  { %v15290_v52 = vpop.f32.mrb[24].mxu1  ;;  %v15269_v22 = vpop.f32.mrb[25].mxu0 }
 0x754   :  { %v15270_v55 = vadd.f32 %v15269_v22, %v15268_v8  ;;  %v15291_v26 = vpop.f32.mrb[25].mxu1  ;;  %v15271_v27 = vpop.f32.mrb[26].mxu0 }
 0x755   :  { %v15292_v40 = vadd.f32 %v15291_v26, %v15290_v52  ;;  %v15293_v4 = vpop.f32.mrb[26].mxu1  ;;  %v15272_v33 = vpop.f32.mrb[27].mxu0 }
 0x756   :  { %v13052_v25 = vadd.f32 %v15270_v55, %v15059_v21  ;;  %v15294_v43 = vpop.f32.mrb[27].mxu1 }
 0x758   :  { %v13092_v11 = vadd.f32 %v15292_v40, %v13052_v25 }
 0x772   :  { %v15312_v28 = vpop.f32.mrb[28].mxu0 }
 0x773   :  { %v15334_v3 = vpop.f32.mrb[28].mxu1  ;;  %v15313_v30 = vpop.f32.mrb[29].mxu0 }
 0x774   :  { %v15314_v37 = vadd.f32 %v15313_v30, %v15312_v28  ;;  %v15335_v50 = vpop.f32.mrb[29].mxu1  ;;  %v15315_v31 = vpop.f32.mrb[30].mxu0 }
 0x775   :  { %v15336_v54 = vadd.f32 %v15335_v50, %v15334_v3  ;;  %v15337_v35 = vpop.f32.mrb[30].mxu1  ;;  %v15316_v2 = vpop.f32.mrb[31].mxu0 }
 0x776   :  { %v13132_v29 = vadd.f32 %v15314_v37, %v13092_v11  ;;  %v15338_v32 = vpop.f32.mrb[31].mxu1 }
 0x778   :  { %v13172_v42 = vadd.f32 %v15336_v54, %v13132_v29 }
 0x792   :  { %v15356_v5 = vpop.f32.mrb[32].mxu0 }
 0x793   :  { %v15378_v14 = vpop.f32.mrb[32].mxu1  ;;  %v15357_v13 = vpop.f32.mrb[33].mxu0 }
 0x794   :  { %v15358_v41 = vadd.f32 %v15357_v13, %v15356_v5  ;;  %v15379_v18 = vpop.f32.mrb[33].mxu1  ;;  %v15359_v15 = vpop.f32.mrb[34].mxu0 }
 0x795   :  { %v15380_v44 = vadd.f32 %v15379_v18, %v15378_v14  ;;  %v15381_v19 = vpop.f32.mrb[34].mxu1  ;;  %v15360_v20 = vpop.f32.mrb[35].mxu0 }
 0x796   :  { %v13212_v6 = vadd.f32 %v15358_v41, %v13172_v42  ;;  %v15382_v45 = vpop.f32.mrb[35].mxu1 }
 0x798   :  { %v13252_v9 = vadd.f32 %v15380_v44, %v13212_v6 }
 0x7b2   :  { %v15400_v23 = vpop.f32.mrb[36].mxu0 }
 0x7b3   :  { %v15422_v39 = vpop.f32.mrb[36].mxu1  ;;  %v15401_v46 = vpop.f32.mrb[37].mxu0 }
 0x7b4   :  { %v15402_v58 = vadd.f32 %v15401_v46, %v15400_v23  ;;  %v15423_v47 = vpop.f32.mrb[37].mxu1  ;;  %v15403_v24 = vpop.f32.mrb[38].mxu0 }
 0x7b5   :  { %v15424_v49 = vadd.f32 %v15423_v47, %v15422_v39  ;;  %v15425_v51 = vpop.f32.mrb[38].mxu1  ;;  %v15404_v48 = vpop.f32.mrb[39].mxu0 }
 0x7b6   :  { %v13292_v12 = vadd.f32 %v15402_v58, %v13252_v9  ;;  %v15426_v56 = vpop.f32.mrb[39].mxu1 }
 0x7b8   :  { %v13332_v61 = vadd.f32 %v15424_v49, %v13292_v12 }
 0x7d2   :  { %v15444_v57 = vpop.f32.mrb[40].mxu0 }
 0x7d3   :  { %v15466_v62 = vpop.f32.mrb[40].mxu1  ;;  %v15445_v63 = vpop.f32.mrb[41].mxu0 }
 0x7d4   :  { %v15446_v0 = vadd.f32 %v15445_v63, %v15444_v57  ;;  %v15467_v1 = vpop.f32.mrb[41].mxu1  ;;  %v15447_v34 = vpop.f32.mrb[42].mxu0 }
 0x7d5   :  { %v15468_v38 = vadd.f32 %v15467_v1, %v15466_v62  ;;  %v15469_v7 = vpop.f32.mrb[42].mxu1  ;;  %v15448_v53 = vpop.f32.mrb[43].mxu0 }
 0x7d6   :  { %v13372_v10 = vadd.f32 %v15446_v0, %v13332_v61  ;;  %v15470_v16 = vpop.f32.mrb[43].mxu1 }
 0x7d8   :  { %v13412_v59 = vadd.f32 %v15468_v38, %v13372_v10 }
 0x80e   :  { %v15488_v17 = vpop.f32.mrb[44].mxu0  ;;  %v15510_v36 = vpop.f32.mrb[44].mxu1 }
 0x80f   :  { %v15489_v60 = vpop.f32.mrb[45].mxu0  ;;  %v15511_v52 = vpop.f32.mrb[45].mxu1 }
 0x810   :  { %v15490_v8 = vadd.f32 %v15489_v60, %v15488_v17  ;;  %v15491_v21 = vpop.f32.mrb[46].mxu0  ;;  %v15512_v22 = vadd.f32 %v15511_v52, %v15510_v36  ;;  %v15513_v55 = vpop.f32.mrb[46].mxu1 }
 0x811   :  { %v15492_v26 = vpop.f32.mrb[47].mxu0  ;;  %v15514_v40 = vpop.f32.mrb[47].mxu1 }
 0x812   :  { %v13452_v27 = vadd.f32 %v15490_v8, %v13412_v59 }
 0x814   :  { %v13492_v4 = vadd.f32 %v15512_v22, %v13452_v27 }
 0x816   :  { %13497 = vst [vmem:[#allocation11] sm:$0xff] %v13492_v4 }
 0x817   :  { %16015 = shalt.err (!%p16012_p2)
}
 0x818   :  { %s16016_s6 = scalar_lea.hbm %s16427_s5, 128 }
 0x819   :  { %p16017_p3 = scmp.ne.s32.totalorder %s16427_s5, %s16016_s6  ;;  %p16020_p4 = scmp.lt.u32.totalorder %s16016_s6, %s16427_s5 }
 0x81b   :  { %p16022_p5 = pnand %p16020_p4, %p16017_p3 }
 0x81d   :  { %16025 = shalt.err (!%p16022_p5)
}
 0x81e   :  { %13507 = dma.vmem_to_hbm [thread:$0]  %s13505_s28, 128, %s16427_s5, [#allocation4]  }
 0x81f   :  { %16032 = dma.done.wait [#allocation4], 128  }
 0x820   :  { %16033 = vsyncadd [#allocation4], 4294967168 }
 0x821   :  { %13511 = vsyncpa [#allocation3], 1 }
 0x822   :  { %13512 = vsyncpa [#allocation6], 1 }
 0x823   :  { %13513 = vsyncpa [#allocation9], 1 }
 0x824   :  { %13514 = vsyncpa [#allocation4], 1 }

</bundles_post_ra>
